<compile_context>
chip_gen: v5e
topology: v5e:2x2
jax: 0.10.0
libtpu: 0.0.40
codegen_flags: <defaults>
</compile_context>

<pallas_src>
import math

import numpy as np
import jax
import jax.numpy as jnp
from jax.experimental import pallas as pl
from jax.experimental.pallas import tpu as pltpu

FEATURE_STRIDES = {"p2": 4, "p3": 8, "p4": 16, "p5": 32}
FEATURE_CHANNELS = {"p2": 8, "p3": 8, "p4": 8, "p5": 8}
OUTPUT_DIM = 32
OUTPUT_STRIDE = 4
IN_FEATURES = ["p2", "p3", "p4", "p5"]


# ----------------------------------------------------------------------------
# In-kernel 2x bilinear upsample (PyTorch align_corners=False semantics):
#   out[2k]   = 0.75*in[k] + 0.25*in[max(k-1, 0)]
#   out[2k+1] = 0.75*in[k] + 0.25*in[min(k+1, n-1)]
# Done as shift + lerp on the VPU; no constant matrices, no MXU.
# ----------------------------------------------------------------------------
def _upsample2x(x3):
    h, w, c = x3.shape
    # --- rows (axis 0) ---
    prev = jnp.concatenate([x3[:1], x3[:-1]], axis=0)
    nxt = jnp.concatenate([x3[1:], x3[-1:]], axis=0)
    r_even = 0.75 * x3 + 0.25 * prev
    r_odd = 0.75 * x3 + 0.25 * nxt
    # interleave rows: (h, 2, w, c) -> (2h, w, c)  (leading-dim merge only)
    xr = jnp.concatenate([r_even[:, None], r_odd[:, None]], axis=1)
    xr = xr.reshape(2 * h, w, c)
    # --- cols (axis 1) ---
    lf = jnp.concatenate([xr[:, :1], xr[:, :-1]], axis=1)
    rt = jnp.concatenate([xr[:, 1:], xr[:, -1:]], axis=1)
    c_even = 0.75 * xr + 0.25 * lf
    c_odd = 0.75 * xr + 0.25 * rt
    # interleave columns.  W is tiny here (<= 8), so a static unrolled concat is
    # cheap and lowers safely.
    # TODO(synk): for large W replace this unrolled interleave with a blocked
    # reshape / roll-based interleave.
    pieces = []
    for k in range(w):
        pieces.append(c_even[:, k:k + 1])
        pieces.append(c_odd[:, k:k + 1])
    return jnp.concatenate(pieces, axis=1)            # (2h, 2w, c)


# ----------------------------------------------------------------------------
# Fused kernel: all 4 scale heads for one batch element.
#   refs = [x_p2, x_p3, x_p4, x_p5,  w_slab, b_slab,  o_ref,  pad_ref, cols_ref]
#   x_head : (1, Cin, H0*W0)        channel-major per-scale feature block
#   w_slab : (n_convs, 288, 32)     bf16, BN scale folded, im2col layout, K-padded
#   b_slab : (n_convs, 32)          f32 folded BN shift
#   o_ref  : (1, 32, Hout*Wout)     NCHW-native, lane-dense output
#   pad_ref: VMEM f32 scratch for the 1-px zero halo
#   cols_ref: VMEM bf16 scratch for im2col columns
# ----------------------------------------------------------------------------
def _make_fused_kernel(plan, h_out, w_out):
    n_heads = len(plan)

    def kernel(*refs):
        x_refs = refs[:n_heads]
        w_ref = refs[n_heads]
        b_ref = refs[n_heads + 1]
        o_ref = refs[n_heads + 2]
        pad_ref = refs[n_heads + 3]
        cols_ref = refs[n_heads + 4]

        def conv3x3_bn_relu(x3, h, w, cin, widx):
            # zero the (h+2, w+2, cin) window, then write the interior.
            pad_ref[0:h + 2, 0:w + 2, 0:cin] = jnp.zeros(
                (h + 2, w + 2, cin), jnp.float32)
            pad_ref[1:h + 1, 1:w + 1, 0:cin] = x3
            # 9 taps -> im2col columns in bf16 scratch.
            t = 0
            for dy in range(3):
                for dx in range(3):
                    tap = pad_ref[dy:dy + h, dx:dx + w, 0:cin]       # (h, w, cin)
                    cols_ref[0:h * w, t * cin:(t + 1) * cin] = (
                        tap.reshape(h * w, cin).astype(jnp.bfloat16))
                    t += 1
            cols = cols_ref[0:h * w, 0:9 * cin]                      # (h*w, 9cin) bf16
            wm = w_ref[widx, 0:9 * cin, :]                           # (9cin, 32) bf16
            y = jnp.dot(cols, wm, preferred_element_type=jnp.float32)
            return jnp.maximum(y + b_ref[widx:widx + 1, :], 0.0)     # (h*w, 32) f32

        acc_half = None   # sum of upsampled heads at (H/2, W/2), pre final upsample
        acc_full = None   # sum of heads already at output resolution
        wi = 0
        for head_idx, hd in enumerate(plan):
            h, w, cin = hd["h0"], hd["w0"], hd["cin0"]
            x3 = x_refs[head_idx][0].T.reshape(h, w, cin)            # (h, w, cin)
            y = None
            for k in range(hd["n_convs"]):
                y = conv3x3_bn_relu(x3, h, w, cin, wi)
                wi += 1
                last = (k == hd["n_convs"] - 1)
                if not last:
                    x3 = y.reshape(h, w, OUTPUT_DIM)
                    if hd["upsample"]:
                        x3 = _upsample2x(x3)
                        h, w = 2 * h, 2 * w
                    cin = OUTPUT_DIM
            if hd["upsample"]:
                # final 2x upsample of this head is deferred (shared, linear op)
                acc_half = y if acc_half is None else acc_half + y
            else:
                acc_full = y if acc_full is None else acc_full + y

        if acc_half is not None:
            hh, hw = h_out // 2, w_out // 2
            up = _upsample2x(acc_half.reshape(hh, hw, OUTPUT_DIM))
            up = up.reshape(h_out * w_out, OUTPUT_DIM)
            acc_full = up if acc_full is None else acc_full + up

        # single lane-dense store: (32, H*W), last dim 256 is a multiple of 128.
        o_ref[0] = acc_full.T

    return kernel


# ----------------------------------------------------------------------------
# Parameter construction (deterministic, mirrors the module's __init__).
# BN is eval-mode (running stats); c2_msra_fill = kaiming normal, fan_out mode.
# ----------------------------------------------------------------------------
def init_params(key):
    params = {}
    for f in IN_FEATURES:
        head_length = max(
            1, int(math.log2(FEATURE_STRIDES[f]) - math.log2(OUTPUT_STRIDE)))
        head = []
        for k in range(head_length):
            cin = FEATURE_CHANNELS[f] if k == 0 else OUTPUT_DIM
            cout = OUTPUT_DIM
            key, wk = jax.random.split(key)
            fan_out = cout * 3 * 3
            std = math.sqrt(2.0 / fan_out)
            w = std * jax.random.normal(wk, (3, 3, cin, cout), jnp.float32)  # HWIO
            gamma = jnp.ones((cout,), jnp.float32)
            beta = jnp.zeros((cout,), jnp.float32)
            mean = jnp.zeros((cout,), jnp.float32)
            var = jnp.ones((cout,), jnp.float32)
            eps = 1e-5
            scale = gamma / jnp.sqrt(var + eps)   # folded BN scale
            shift = beta - mean * scale           # folded BN shift
            head.append((w, scale, shift))
        params[f] = head
    return params


# ----------------------------------------------------------------------------
# Forward pass wrapper: matches AtlasFPNFeature.forward (NCHW in / NCHW out).
# ----------------------------------------------------------------------------
def atlas_fpn_feature(features_nchw, params):
    n = features_nchw[IN_FEATURES[0]].shape[0]
    h_out, w_out = features_nchw[IN_FEATURES[0]].shape[2:]

    plan, x_args, x_specs = [], [], []
    w_list, b_list, conv_dims = [], [], []
    flops = 0

    for f in IN_FEATURES:
        x = features_nchw[f].astype(jnp.float32)
        _, c, h, w = x.shape
        upsample = FEATURE_STRIDES[f] != OUTPUT_STRIDE
        n_convs = len(params[f])
        plan.append(dict(n_convs=n_convs, upsample=upsample, h0=h, w0=w, cin0=c))
        # channel-major, lane-dense input blocks (pure reshape of NCHW).
        x_args.append(x.reshape(n, c, h * w))
        x_specs.append(pl.BlockSpec((1, c, h * w), lambda i: (i, 0, 0)))

        hh, ww = h, w
        for k, (wk, scale, shift) in enumerate(params[f]):
            cin, cout = wk.shape[2], wk.shape[3]
            conv_dims.append((hh, ww, cin))
            # Fold BN scale into the conv weights; keep shift as a bias.
            w_folded = (wk * scale.reshape(1, 1, 1, cout)).reshape(9 * cin, cout)
            w_list.append(w_folded)
            b_list.append(shift.reshape(1, cout).astype(jnp.float32))
            flops += 2 * hh * ww * 9 * cin * cout
            if upsample:
                flops += 8 * (4 * hh * ww) * cout        # shift+lerp upsample
                hh, ww = 2 * hh, 2 * ww
        assert (hh, ww) == (h_out, w_out), "scale head does not reach output stride"

    # Pack weights / biases into single slabs (bf16 weights, f32 biases).
    n_total = len(w_list)
    kmax = max(wm.shape[0] for wm in w_list)
    w_slab = jnp.zeros((n_total, kmax, OUTPUT_DIM), jnp.float32)
    for i, wm in enumerate(w_list):
        w_slab = w_slab.at[i, :wm.shape[0], :].set(wm)
    w_slab = w_slab.astype(jnp.bfloat16)
    b_slab = jnp.concatenate(b_list, axis=0)                          # (n_total, 32)

    # Scratch sizing.
    pad_h = max(h + 2 for (h, w, c) in conv_dims)
    pad_w = max(w + 2 for (h, w, c) in conv_dims)
    pad_c = max(c for (h, w, c) in conv_dims)
    cols_m = max(h * w for (h, w, c) in conv_dims)
    cols_k = max(9 * c for (h, w, c) in conv_dims)

    kernel = _make_fused_kernel(plan, h_out, w_out)

    args = x_args + [w_slab, b_slab]
    in_specs = x_specs + [
        pl.BlockSpec((n_total, kmax, OUTPUT_DIM), lambda i: (0, 0, 0)),
        pl.BlockSpec((n_total, OUTPUT_DIM), lambda i: (0, 0)),
    ]
    out_bytes = n * OUTPUT_DIM * h_out * w_out * 4
    bytes_accessed = int(sum(int(a.size) * a.dtype.itemsize for a in args)
                         + out_bytes)
    cost = pl.CostEstimate(flops=int(n * flops), transcendentals=0,
                           bytes_accessed=bytes_accessed)

    out = pl.pallas_call(
        kernel,
        out_shape=jax.ShapeDtypeStruct((n, OUTPUT_DIM, h_out * w_out), jnp.float32),
        grid_spec=pltpu.PrefetchScalarGridSpec(
            num_scalar_prefetch=0,
            grid=(n,),
            in_specs=in_specs,
            out_specs=pl.BlockSpec((1, OUTPUT_DIM, h_out * w_out),
                                   lambda i: (i, 0, 0)),
            scratch_shapes=[
                pltpu.VMEM((pad_h, pad_w, pad_c), jnp.float32),
                pltpu.VMEM((cols_m, cols_k), jnp.bfloat16),
            ]),
        compiler_params=pltpu.CompilerParams(
            dimension_semantics=("parallel",),
            vmem_limit_bytes=32 * 1024 * 1024),
        cost_estimate=cost,
    )(*args)

    return out.reshape(n, OUTPUT_DIM, h_out, w_out)      # NCHW, no transpose needed


# ----------------------------------------------------------------------------
# Pure-XLA reference of the same math (independent code path: lax.conv + dense
# bilinear matrices, per-head upsamples NOT shared) for the sanity check.
# ----------------------------------------------------------------------------
def _bilinear_up1d(nsz):
    m = np.zeros((2 * nsz, nsz), np.float32)
    for i in range(2 * nsz):
        c = (i + 0.5) / 2.0 - 0.5
        i0 = int(np.floor(c))
        frac = c - i0
        j0 = min(max(i0, 0), nsz - 1)
        j1 = min(max(i0 + 1, 0), nsz - 1)
        m[i, j0] += 1.0 - frac
        m[i, j1] += frac
    return m


def _bilinear_up2x_matrix(h, w):
    return np.kron(_bilinear_up1d(h), _bilinear_up1d(w)).astype(np.float32)


def _reference_forward(features_nchw, params):
    out = None
    for f in IN_FEATURES:
        x = jnp.transpose(features_nchw[f], (0, 2, 3, 1)).astype(jnp.float32)
        upsample = FEATURE_STRIDES[f] != OUTPUT_STRIDE
        for (wk, scale, shift) in params[f]:
            y = jax.lax.conv_general_dilated(
                x, wk, window_strides=(1, 1), padding=((1, 1), (1, 1)),
                dimension_numbers=("NHWC", "HWIO", "NHWC"))
            x = jnp.maximum(y * scale + shift, 0.0)
            if upsample:
                nb, h, w, c = x.shape
                m = jnp.asarray(_bilinear_up2x_matrix(h, w))
                x = jnp.einsum("ph,nhc->npc", m, x.reshape(nb, h * w, c))
                x = x.reshape(nb, 2 * h, 2 * w, c)
        out = x if out is None else out + x
    return jnp.transpose(out, (0, 3, 1, 2))


if __name__ == "__main__":
    key = jax.random.PRNGKey(0)
    kp, k2, k3, k4, k5 = jax.random.split(key, 5)
    # image 64x64 -> strides 4/8/16/32
    features = {
        "p2": jax.random.normal(k2, (2, FEATURE_CHANNELS["p2"], 16, 16), jnp.float32),
        "p3": jax.random.normal(k3, (2, FEATURE_CHANNELS["p3"], 8, 8), jnp.float32),
        "p4": jax.random.normal(k4, (2, FEATURE_CHANNELS["p4"], 4, 4), jnp.float32),
        "p5": jax.random.normal(k5, (2, FEATURE_CHANNELS["p5"], 2, 2), jnp.float32),
    }
    params = init_params(kp)

    out = atlas_fpn_feature(features, params)
    out = jax.block_until_ready(out)
    assert out.shape == (2, OUTPUT_DIM, 16, 16), out.shape
    assert bool(jnp.all(jnp.isfinite(out)))

    # Sanity check vs. an independent pure-XLA reference (loose tolerance:
    # the kernel uses bf16 MXU inputs with f32 accumulation).
    ref = jax.block_until_ready(_reference_forward(features, params))
    err = float(jnp.max(jnp.abs(out - ref)))
    ref_max = float(jnp.max(jnp.abs(ref))) + 1e-6
    assert err <= 5e-2 + 5e-2 * ref_max, (err, ref_max)

    print("KERNEL_OK")
</pallas_src>

<mosaic_0001>
module attributes {stable_mosaic.version = 11 : i64} {
  func.func @kernel(%arg0: i32, %arg1: memref<1x8x256xf32, #tpu.memory_space<vmem>>, %arg2: memref<1x8x64xf32, #tpu.memory_space<vmem>>, %arg3: memref<1x8x16xf32, #tpu.memory_space<vmem>>, %arg4: memref<1x8x4xf32, #tpu.memory_space<vmem>>, %arg5: memref<7x288x32xbf16, #tpu.memory_space<vmem>>, %arg6: memref<7x32xf32, #tpu.memory_space<vmem>>, %arg7: memref<1x32x256xf32, #tpu.memory_space<vmem>>, %arg8: memref<18x18x32xf32, #tpu.memory_space<vmem>>, %arg9: memref<256x288xbf16, #tpu.memory_space<vmem>>) attributes {dimension_semantics = [#tpu.dimension_semantics<parallel>], iteration_bounds = array<i64: 2>, scalar_prefetch = 0 : i64, scratch_operands = 2 : i64, tpu.core_type = #tpu.core_type<tc>, window_params = [{transform_indices = @transform_0, window_bounds = array<i64: 1, 8, 256>}, {transform_indices = @transform_1, window_bounds = array<i64: 1, 8, 64>}, {transform_indices = @transform_2, window_bounds = array<i64: 1, 8, 16>}, {transform_indices = @transform_3, window_bounds = array<i64: 1, 8, 4>}, {pipeline_mode = #tpu.pipeline_mode<synchronous>, transform_indices = @transform_4, window_bounds = array<i64: 7, 288, 32>}, {pipeline_mode = #tpu.pipeline_mode<synchronous>, transform_indices = @transform_5, window_bounds = array<i64: 7, 32>}, {transform_indices = @transform_6, window_bounds = array<i64: 1, 32, 256>}]} {
    %c0 = arith.constant 0 : index
    %c0_0 = arith.constant 0 : index
    %c0_1 = arith.constant 0 : index
    %0 = vector.load %arg1[%c0, %c0_0, %c0_1] : memref<1x8x256xf32, #tpu.memory_space<vmem>>, vector<1x8x256xf32>
    %1 = vector.shape_cast %0 : vector<1x8x256xf32> to vector<8x256xf32>
    %2 = tpu.transpose %1, [1, 0] : vector<8x256xf32> -> vector<256x8xf32>
    %3 = vector.shape_cast %2 : vector<256x8xf32> to vector<16x16x8xf32>
    %cst = arith.constant 0.000000e+00 : f32
    %4 = vector.broadcast %cst : f32 to vector<18x18x8xf32>
    %c0_2 = arith.constant 0 : index
    %c0_3 = arith.constant 0 : index
    %c0_4 = arith.constant 0 : index
    %5 = vector.load %arg8[%c0_2, %c0_3, %c0_4] : memref<18x18x32xf32, #tpu.memory_space<vmem>>, vector<18x18x8xf32>
    tpu.vector_store %arg8[%c0_2, %c0_3, %c0_4], %4 {strides = array<i32>} : memref<18x18x32xf32, #tpu.memory_space<vmem>>, vector<18x18x8xf32>,
    %c1 = arith.constant 1 : index
    %c1_5 = arith.constant 1 : index
    %c0_6 = arith.constant 0 : index
    %6 = vector.load %arg8[%c1, %c1_5, %c0_6] : memref<18x18x32xf32, #tpu.memory_space<vmem>>, vector<16x16x8xf32>
    tpu.vector_store %arg8[%c1, %c1_5, %c0_6], %3 {strides = array<i32>} : memref<18x18x32xf32, #tpu.memory_space<vmem>>, vector<16x16x8xf32>,
    %c0_7 = arith.constant 0 : index
    %c0_8 = arith.constant 0 : index
    %c0_9 = arith.constant 0 : index
    %7 = vector.load %arg8[%c0_7, %c0_8, %c0_9] : memref<18x18x32xf32, #tpu.memory_space<vmem>>, vector<16x16x8xf32>
    %8 = vector.shape_cast %7 : vector<16x16x8xf32> to vector<256x8xf32>
    %9 = arith.truncf %8 : vector<256x8xf32> to vector<256x8xbf16>
    %c0_10 = arith.constant 0 : index
    %c0_11 = arith.constant 0 : index
    %10 = vector.load %arg9[%c0_10, %c0_11] : memref<256x288xbf16, #tpu.memory_space<vmem>>, vector<256x8xbf16>
    tpu.vector_store %arg9[%c0_10, %c0_11], %9 {strides = array<i32>} : memref<256x288xbf16, #tpu.memory_space<vmem>>, vector<256x8xbf16>,
    %c0_12 = arith.constant 0 : index
    %c1_13 = arith.constant 1 : index
    %c0_14 = arith.constant 0 : index
    %11 = vector.load %arg8[%c0_12, %c1_13, %c0_14] : memref<18x18x32xf32, #tpu.memory_space<vmem>>, vector<16x16x8xf32>
    %12 = vector.shape_cast %11 : vector<16x16x8xf32> to vector<256x8xf32>
    %13 = arith.truncf %12 : vector<256x8xf32> to vector<256x8xbf16>
    %c0_15 = arith.constant 0 : index
    %c8 = arith.constant 8 : index
    %14 = vector.load %arg9[%c0_15, %c8] : memref<256x288xbf16, #tpu.memory_space<vmem>>, vector<256x8xbf16>
    tpu.vector_store %arg9[%c0_15, %c8], %13 {strides = array<i32>} : memref<256x288xbf16, #tpu.memory_space<vmem>>, vector<256x8xbf16>,
    %c0_16 = arith.constant 0 : index
    %c2 = arith.constant 2 : index
    %c0_17 = arith.constant 0 : index
    %15 = vector.load %arg8[%c0_16, %c2, %c0_17] : memref<18x18x32xf32, #tpu.memory_space<vmem>>, vector<16x16x8xf32>
    %16 = vector.shape_cast %15 : vector<16x16x8xf32> to vector<256x8xf32>
    %17 = arith.truncf %16 : vector<256x8xf32> to vector<256x8xbf16>
    %c0_18 = arith.constant 0 : index
    %c16 = arith.constant 16 : index
    %18 = vector.load %arg9[%c0_18, %c16] : memref<256x288xbf16, #tpu.memory_space<vmem>>, vector<256x8xbf16>
    tpu.vector_store %arg9[%c0_18, %c16], %17 {strides = array<i32>} : memref<256x288xbf16, #tpu.memory_space<vmem>>, vector<256x8xbf16>,
    %c1_19 = arith.constant 1 : index
    %c0_20 = arith.constant 0 : index
    %c0_21 = arith.constant 0 : index
    %19 = vector.load %arg8[%c1_19, %c0_20, %c0_21] : memref<18x18x32xf32, #tpu.memory_space<vmem>>, vector<16x16x8xf32>
    %20 = vector.shape_cast %19 : vector<16x16x8xf32> to vector<256x8xf32>
    %21 = arith.truncf %20 : vector<256x8xf32> to vector<256x8xbf16>
    %c0_22 = arith.constant 0 : index
    %c24 = arith.constant 24 : index
    %22 = vector.load %arg9[%c0_22, %c24] : memref<256x288xbf16, #tpu.memory_space<vmem>>, vector<256x8xbf16>
    tpu.vector_store %arg9[%c0_22, %c24], %21 {strides = array<i32>} : memref<256x288xbf16, #tpu.memory_space<vmem>>, vector<256x8xbf16>,
    %c1_23 = arith.constant 1 : index
    %c1_24 = arith.constant 1 : index
    %c0_25 = arith.constant 0 : index
    %23 = vector.load %arg8[%c1_23, %c1_24, %c0_25] : memref<18x18x32xf32, #tpu.memory_space<vmem>>, vector<16x16x8xf32>
    %24 = vector.shape_cast %23 : vector<16x16x8xf32> to vector<256x8xf32>
    %25 = arith.truncf %24 : vector<256x8xf32> to vector<256x8xbf16>
    %c0_26 = arith.constant 0 : index
    %c32 = arith.constant 32 : index
    %26 = vector.load %arg9[%c0_26, %c32] : memref<256x288xbf16, #tpu.memory_space<vmem>>, vector<256x8xbf16>
    tpu.vector_store %arg9[%c0_26, %c32], %25 {strides = array<i32>} : memref<256x288xbf16, #tpu.memory_space<vmem>>, vector<256x8xbf16>,
    %c1_27 = arith.constant 1 : index
    %c2_28 = arith.constant 2 : index
    %c0_29 = arith.constant 0 : index
    %27 = vector.load %arg8[%c1_27, %c2_28, %c0_29] : memref<18x18x32xf32, #tpu.memory_space<vmem>>, vector<16x16x8xf32>
    %28 = vector.shape_cast %27 : vector<16x16x8xf32> to vector<256x8xf32>
    %29 = arith.truncf %28 : vector<256x8xf32> to vector<256x8xbf16>
    %c0_30 = arith.constant 0 : index
    %c40 = arith.constant 40 : index
    %30 = vector.load %arg9[%c0_30, %c40] : memref<256x288xbf16, #tpu.memory_space<vmem>>, vector<256x8xbf16>
    tpu.vector_store %arg9[%c0_30, %c40], %29 {strides = array<i32>} : memref<256x288xbf16, #tpu.memory_space<vmem>>, vector<256x8xbf16>,
    %c2_31 = arith.constant 2 : index
    %c0_32 = arith.constant 0 : index
    %c0_33 = arith.constant 0 : index
    %31 = vector.load %arg8[%c2_31, %c0_32, %c0_33] : memref<18x18x32xf32, #tpu.memory_space<vmem>>, vector<16x16x8xf32>
    %32 = vector.shape_cast %31 : vector<16x16x8xf32> to vector<256x8xf32>
    %33 = arith.truncf %32 : vector<256x8xf32> to vector<256x8xbf16>
    %c0_34 = arith.constant 0 : index
    %c48 = arith.constant 48 : index
    %34 = vector.load %arg9[%c0_34, %c48] : memref<256x288xbf16, #tpu.memory_space<vmem>>, vector<256x8xbf16>
    tpu.vector_store %arg9[%c0_34, %c48], %33 {strides = array<i32>} : memref<256x288xbf16, #tpu.memory_space<vmem>>, vector<256x8xbf16>,
    %c2_35 = arith.constant 2 : index
    %c1_36 = arith.constant 1 : index
    %c0_37 = arith.constant 0 : index
    %35 = vector.load %arg8[%c2_35, %c1_36, %c0_37] : memref<18x18x32xf32, #tpu.memory_space<vmem>>, vector<16x16x8xf32>
    %36 = vector.shape_cast %35 : vector<16x16x8xf32> to vector<256x8xf32>
    %37 = arith.truncf %36 : vector<256x8xf32> to vector<256x8xbf16>
    %c0_38 = arith.constant 0 : index
    %c56 = arith.constant 56 : index
    %38 = vector.load %arg9[%c0_38, %c56] : memref<256x288xbf16, #tpu.memory_space<vmem>>, vector<256x8xbf16>
    tpu.vector_store %arg9[%c0_38, %c56], %37 {strides = array<i32>} : memref<256x288xbf16, #tpu.memory_space<vmem>>, vector<256x8xbf16>,
    %c2_39 = arith.constant 2 : index
    %c2_40 = arith.constant 2 : index
    %c0_41 = arith.constant 0 : index
    %39 = vector.load %arg8[%c2_39, %c2_40, %c0_41] : memref<18x18x32xf32, #tpu.memory_space<vmem>>, vector<16x16x8xf32>
    %40 = vector.shape_cast %39 : vector<16x16x8xf32> to vector<256x8xf32>
    %41 = arith.truncf %40 : vector<256x8xf32> to vector<256x8xbf16>
    %c0_42 = arith.constant 0 : index
    %c64 = arith.constant 64 : index
    %42 = vector.load %arg9[%c0_42, %c64] : memref<256x288xbf16, #tpu.memory_space<vmem>>, vector<256x8xbf16>
    tpu.vector_store %arg9[%c0_42, %c64], %41 {strides = array<i32>} : memref<256x288xbf16, #tpu.memory_space<vmem>>, vector<256x8xbf16>,
    %c0_43 = arith.constant 0 : index
    %c0_44 = arith.constant 0 : index
    %43 = vector.load %arg9[%c0_43, %c0_44] : memref<256x288xbf16, #tpu.memory_space<vmem>>, vector<256x72xbf16>
    %c0_45 = arith.constant 0 : index
    %c0_46 = arith.constant 0 : index
    %c0_47 = arith.constant 0 : index
    %44 = vector.load %arg5[%c0_45, %c0_46, %c0_47] : memref<7x288x32xbf16, #tpu.memory_space<vmem>>, vector<1x72x32xbf16>
    %45 = vector.shape_cast %44 : vector<1x72x32xbf16> to vector<72x32xbf16>
    %cst_48 = arith.constant dense<0.000000e+00> : vector<256x32xf32>
    %46 = tpu.matmul %43, %45, %cst_48 {dimension_numbers = #tpu.dot_dimension_numbers<[1], [0], [0], [1], [0, 0, 1, 1], [], []>} : vector<256x72xbf16>, vector<72x32xbf16>, vector<256x32xf32> -> vector<256x32xf32>
    %c0_49 = arith.constant 0 : index
    %c0_50 = arith.constant 0 : index
    %47 = vector.load %arg6[%c0_49, %c0_50] : memref<7x32xf32, #tpu.memory_space<vmem>>, vector<1x32xf32>
    %48 = vector.broadcast %47 : vector<1x32xf32> to vector<256x32xf32>
    %49 = arith.addf %46, %48 : vector<256x32xf32>
    %cst_51 = arith.constant 0.000000e+00 : f32
    %50 = vector.broadcast %cst_51 : f32 to vector<256x32xf32>
    %51 = arith.maximumf %49, %50 : vector<256x32xf32>
    %c0_52 = arith.constant 0 : index
    %c0_53 = arith.constant 0 : index
    %c0_54 = arith.constant 0 : index
    %52 = vector.load %arg2[%c0_52, %c0_53, %c0_54] : memref<1x8x64xf32, #tpu.memory_space<vmem>>, vector<1x8x64xf32>
    %53 = vector.shape_cast %52 : vector<1x8x64xf32> to vector<8x64xf32>
    %54 = tpu.transpose %53, [1, 0] : vector<8x64xf32> -> vector<64x8xf32>
    %55 = vector.shape_cast %54 : vector<64x8xf32> to vector<8x8x8xf32>
    %cst_55 = arith.constant 0.000000e+00 : f32
    %56 = vector.broadcast %cst_55 : f32 to vector<10x10x8xf32>
    %c0_56 = arith.constant 0 : index
    %c0_57 = arith.constant 0 : index
    %c0_58 = arith.constant 0 : index
    %57 = vector.load %arg8[%c0_56, %c0_57, %c0_58] : memref<18x18x32xf32, #tpu.memory_space<vmem>>, vector<10x10x8xf32>
    tpu.vector_store %arg8[%c0_56, %c0_57, %c0_58], %56 {strides = array<i32>} : memref<18x18x32xf32, #tpu.memory_space<vmem>>, vector<10x10x8xf32>,
    %c1_59 = arith.constant 1 : index
    %c1_60 = arith.constant 1 : index
    %c0_61 = arith.constant 0 : index
    %58 = vector.load %arg8[%c1_59, %c1_60, %c0_61] : memref<18x18x32xf32, #tpu.memory_space<vmem>>, vector<8x8x8xf32>
    tpu.vector_store %arg8[%c1_59, %c1_60, %c0_61], %55 {strides = array<i32>} : memref<18x18x32xf32, #tpu.memory_space<vmem>>, vector<8x8x8xf32>,
    %c0_62 = arith.constant 0 : index
    %c0_63 = arith.constant 0 : index
    %c0_64 = arith.constant 0 : index
    %59 = vector.load %arg8[%c0_62, %c0_63, %c0_64] : memref<18x18x32xf32, #tpu.memory_space<vmem>>, vector<8x8x8xf32>
    %60 = vector.shape_cast %59 : vector<8x8x8xf32> to vector<64x8xf32>
    %61 = arith.truncf %60 : vector<64x8xf32> to vector<64x8xbf16>
    %c0_65 = arith.constant 0 : index
    %c0_66 = arith.constant 0 : index
    %62 = vector.load %arg9[%c0_65, %c0_66] : memref<256x288xbf16, #tpu.memory_space<vmem>>, vector<64x8xbf16>
    tpu.vector_store %arg9[%c0_65, %c0_66], %61 {strides = array<i32>} : memref<256x288xbf16, #tpu.memory_space<vmem>>, vector<64x8xbf16>,
    %c0_67 = arith.constant 0 : index
    %c1_68 = arith.constant 1 : index
    %c0_69 = arith.constant 0 : index
    %63 = vector.load %arg8[%c0_67, %c1_68, %c0_69] : memref<18x18x32xf32, #tpu.memory_space<vmem>>, vector<8x8x8xf32>
    %64 = vector.shape_cast %63 : vector<8x8x8xf32> to vector<64x8xf32>
    %65 = arith.truncf %64 : vector<64x8xf32> to vector<64x8xbf16>
    %c0_70 = arith.constant 0 : index
    %c8_71 = arith.constant 8 : index
    %66 = vector.load %arg9[%c0_70, %c8_71] : memref<256x288xbf16, #tpu.memory_space<vmem>>, vector<64x8xbf16>
    tpu.vector_store %arg9[%c0_70, %c8_71], %65 {strides = array<i32>} : memref<256x288xbf16, #tpu.memory_space<vmem>>, vector<64x8xbf16>,
    %c0_72 = arith.constant 0 : index
    %c2_73 = arith.constant 2 : index
    %c0_74 = arith.constant 0 : index
    %67 = vector.load %arg8[%c0_72, %c2_73, %c0_74] : memref<18x18x32xf32, #tpu.memory_space<vmem>>, vector<8x8x8xf32>
    %68 = vector.shape_cast %67 : vector<8x8x8xf32> to vector<64x8xf32>
    %69 = arith.truncf %68 : vector<64x8xf32> to vector<64x8xbf16>
    %c0_75 = arith.constant 0 : index
    %c16_76 = arith.constant 16 : index
    %70 = vector.load %arg9[%c0_75, %c16_76] : memref<256x288xbf16, #tpu.memory_space<vmem>>, vector<64x8xbf16>
    tpu.vector_store %arg9[%c0_75, %c16_76], %69 {strides = array<i32>} : memref<256x288xbf16, #tpu.memory_space<vmem>>, vector<64x8xbf16>,
    %c1_77 = arith.constant 1 : index
    %c0_78 = arith.constant 0 : index
    %c0_79 = arith.constant 0 : index
    %71 = vector.load %arg8[%c1_77, %c0_78, %c0_79] : memref<18x18x32xf32, #tpu.memory_space<vmem>>, vector<8x8x8xf32>
    %72 = vector.shape_cast %71 : vector<8x8x8xf32> to vector<64x8xf32>
    %73 = arith.truncf %72 : vector<64x8xf32> to vector<64x8xbf16>
    %c0_80 = arith.constant 0 : index
    %c24_81 = arith.constant 24 : index
    %74 = vector.load %arg9[%c0_80, %c24_81] : memref<256x288xbf16, #tpu.memory_space<vmem>>, vector<64x8xbf16>
    tpu.vector_store %arg9[%c0_80, %c24_81], %73 {strides = array<i32>} : memref<256x288xbf16, #tpu.memory_space<vmem>>, vector<64x8xbf16>,
    %c1_82 = arith.constant 1 : index
    %c1_83 = arith.constant 1 : index
    %c0_84 = arith.constant 0 : index
    %75 = vector.load %arg8[%c1_82, %c1_83, %c0_84] : memref<18x18x32xf32, #tpu.memory_space<vmem>>, vector<8x8x8xf32>
    %76 = vector.shape_cast %75 : vector<8x8x8xf32> to vector<64x8xf32>
    %77 = arith.truncf %76 : vector<64x8xf32> to vector<64x8xbf16>
    %c0_85 = arith.constant 0 : index
    %c32_86 = arith.constant 32 : index
    %78 = vector.load %arg9[%c0_85, %c32_86] : memref<256x288xbf16, #tpu.memory_space<vmem>>, vector<64x8xbf16>
    tpu.vector_store %arg9[%c0_85, %c32_86], %77 {strides = array<i32>} : memref<256x288xbf16, #tpu.memory_space<vmem>>, vector<64x8xbf16>,
    %c1_87 = arith.constant 1 : index
    %c2_88 = arith.constant 2 : index
    %c0_89 = arith.constant 0 : index
    %79 = vector.load %arg8[%c1_87, %c2_88, %c0_89] : memref<18x18x32xf32, #tpu.memory_space<vmem>>, vector<8x8x8xf32>
    %80 = vector.shape_cast %79 : vector<8x8x8xf32> to vector<64x8xf32>
    %81 = arith.truncf %80 : vector<64x8xf32> to vector<64x8xbf16>
    %c0_90 = arith.constant 0 : index
    %c40_91 = arith.constant 40 : index
    %82 = vector.load %arg9[%c0_90, %c40_91] : memref<256x288xbf16, #tpu.memory_space<vmem>>, vector<64x8xbf16>
    tpu.vector_store %arg9[%c0_90, %c40_91], %81 {strides = array<i32>} : memref<256x288xbf16, #tpu.memory_space<vmem>>, vector<64x8xbf16>,
    %c2_92 = arith.constant 2 : index
    %c0_93 = arith.constant 0 : index
    %c0_94 = arith.constant 0 : index
    %83 = vector.load %arg8[%c2_92, %c0_93, %c0_94] : memref<18x18x32xf32, #tpu.memory_space<vmem>>, vector<8x8x8xf32>
    %84 = vector.shape_cast %83 : vector<8x8x8xf32> to vector<64x8xf32>
    %85 = arith.truncf %84 : vector<64x8xf32> to vector<64x8xbf16>
    %c0_95 = arith.constant 0 : index
    %c48_96 = arith.constant 48 : index
    %86 = vector.load %arg9[%c0_95, %c48_96] : memref<256x288xbf16, #tpu.memory_space<vmem>>, vector<64x8xbf16>
    tpu.vector_store %arg9[%c0_95, %c48_96], %85 {strides = array<i32>} : memref<256x288xbf16, #tpu.memory_space<vmem>>, vector<64x8xbf16>,
    %c2_97 = arith.constant 2 : index
    %c1_98 = arith.constant 1 : index
    %c0_99 = arith.constant 0 : index
    %87 = vector.load %arg8[%c2_97, %c1_98, %c0_99] : memref<18x18x32xf32, #tpu.memory_space<vmem>>, vector<8x8x8xf32>
    %88 = vector.shape_cast %87 : vector<8x8x8xf32> to vector<64x8xf32>
    %89 = arith.truncf %88 : vector<64x8xf32> to vector<64x8xbf16>
    %c0_100 = arith.constant 0 : index
    %c56_101 = arith.constant 56 : index
    %90 = vector.load %arg9[%c0_100, %c56_101] : memref<256x288xbf16, #tpu.memory_space<vmem>>, vector<64x8xbf16>
    tpu.vector_store %arg9[%c0_100, %c56_101], %89 {strides = array<i32>} : memref<256x288xbf16, #tpu.memory_space<vmem>>, vector<64x8xbf16>,
    %c2_102 = arith.constant 2 : index
    %c2_103 = arith.constant 2 : index
    %c0_104 = arith.constant 0 : index
    %91 = vector.load %arg8[%c2_102, %c2_103, %c0_104] : memref<18x18x32xf32, #tpu.memory_space<vmem>>, vector<8x8x8xf32>
    %92 = vector.shape_cast %91 : vector<8x8x8xf32> to vector<64x8xf32>
    %93 = arith.truncf %92 : vector<64x8xf32> to vector<64x8xbf16>
    %c0_105 = arith.constant 0 : index
    %c64_106 = arith.constant 64 : index
    %94 = vector.load %arg9[%c0_105, %c64_106] : memref<256x288xbf16, #tpu.memory_space<vmem>>, vector<64x8xbf16>
    tpu.vector_store %arg9[%c0_105, %c64_106], %93 {strides = array<i32>} : memref<256x288xbf16, #tpu.memory_space<vmem>>, vector<64x8xbf16>,
    %c0_107 = arith.constant 0 : index
    %c0_108 = arith.constant 0 : index
    %95 = vector.load %arg9[%c0_107, %c0_108] : memref<256x288xbf16, #tpu.memory_space<vmem>>, vector<64x72xbf16>
    %c1_109 = arith.constant 1 : index
    %c0_110 = arith.constant 0 : index
    %c0_111 = arith.constant 0 : index
    %96 = vector.load %arg5[%c1_109, %c0_110, %c0_111] : memref<7x288x32xbf16, #tpu.memory_space<vmem>>, vector<1x72x32xbf16>
    %97 = vector.shape_cast %96 : vector<1x72x32xbf16> to vector<72x32xbf16>
    %cst_112 = arith.constant dense<0.000000e+00> : vector<64x32xf32>
    %98 = tpu.matmul %95, %97, %cst_112 {dimension_numbers = #tpu.dot_dimension_numbers<[1], [0], [0], [1], [0, 0, 1, 1], [], []>} : vector<64x72xbf16>, vector<72x32xbf16>, vector<64x32xf32> -> vector<64x32xf32>
    %c1_113 = arith.constant 1 : index
    %c0_114 = arith.constant 0 : index
    %99 = vector.load %arg6[%c1_113, %c0_114] : memref<7x32xf32, #tpu.memory_space<vmem>>, vector<1x32xf32>
    %100 = vector.broadcast %99 : vector<1x32xf32> to vector<64x32xf32>
    %101 = arith.addf %98, %100 : vector<64x32xf32>
    %cst_115 = arith.constant 0.000000e+00 : f32
    %102 = vector.broadcast %cst_115 : f32 to vector<64x32xf32>
    %103 = arith.maximumf %101, %102 : vector<64x32xf32>
    %c0_116 = arith.constant 0 : index
    %c0_117 = arith.constant 0 : index
    %c0_118 = arith.constant 0 : index
    %104 = vector.load %arg3[%c0_116, %c0_117, %c0_118] : memref<1x8x16xf32, #tpu.memory_space<vmem>>, vector<1x8x16xf32>
    %105 = vector.shape_cast %104 : vector<1x8x16xf32> to vector<8x16xf32>
    %106 = tpu.transpose %105, [1, 0] : vector<8x16xf32> -> vector<16x8xf32>
    %107 = vector.shape_cast %106 : vector<16x8xf32> to vector<4x4x8xf32>
    %cst_119 = arith.constant 0.000000e+00 : f32
    %108 = vector.broadcast %cst_119 : f32 to vector<6x6x8xf32>
    %c0_120 = arith.constant 0 : index
    %c0_121 = arith.constant 0 : index
    %c0_122 = arith.constant 0 : index
    %109 = vector.load %arg8[%c0_120, %c0_121, %c0_122] : memref<18x18x32xf32, #tpu.memory_space<vmem>>, vector<6x6x8xf32>
    tpu.vector_store %arg8[%c0_120, %c0_121, %c0_122], %108 {strides = array<i32>} : memref<18x18x32xf32, #tpu.memory_space<vmem>>, vector<6x6x8xf32>,
    %c1_123 = arith.constant 1 : index
    %c1_124 = arith.constant 1 : index
    %c0_125 = arith.constant 0 : index
    %110 = vector.load %arg8[%c1_123, %c1_124, %c0_125] : memref<18x18x32xf32, #tpu.memory_space<vmem>>, vector<4x4x8xf32>
    tpu.vector_store %arg8[%c1_123, %c1_124, %c0_125], %107 {strides = array<i32>} : memref<18x18x32xf32, #tpu.memory_space<vmem>>, vector<4x4x8xf32>,
    %c0_126 = arith.constant 0 : index
    %c0_127 = arith.constant 0 : index
    %c0_128 = arith.constant 0 : index
    %111 = vector.load %arg8[%c0_126, %c0_127, %c0_128] : memref<18x18x32xf32, #tpu.memory_space<vmem>>, vector<4x4x8xf32>
    %112 = vector.shape_cast %111 : vector<4x4x8xf32> to vector<16x8xf32>
    %113 = arith.truncf %112 : vector<16x8xf32> to vector<16x8xbf16>
    %c0_129 = arith.constant 0 : index
    %c0_130 = arith.constant 0 : index
    %114 = vector.load %arg9[%c0_129, %c0_130] : memref<256x288xbf16, #tpu.memory_space<vmem>>, vector<16x8xbf16>
    tpu.vector_store %arg9[%c0_129, %c0_130], %113 {strides = array<i32>} : memref<256x288xbf16, #tpu.memory_space<vmem>>, vector<16x8xbf16>,
    %c0_131 = arith.constant 0 : index
    %c1_132 = arith.constant 1 : index
    %c0_133 = arith.constant 0 : index
    %115 = vector.load %arg8[%c0_131, %c1_132, %c0_133] : memref<18x18x32xf32, #tpu.memory_space<vmem>>, vector<4x4x8xf32>
    %116 = vector.shape_cast %115 : vector<4x4x8xf32> to vector<16x8xf32>
    %117 = arith.truncf %116 : vector<16x8xf32> to vector<16x8xbf16>
    %c0_134 = arith.constant 0 : index
    %c8_135 = arith.constant 8 : index
    %118 = vector.load %arg9[%c0_134, %c8_135] : memref<256x288xbf16, #tpu.memory_space<vmem>>, vector<16x8xbf16>
    tpu.vector_store %arg9[%c0_134, %c8_135], %117 {strides = array<i32>} : memref<256x288xbf16, #tpu.memory_space<vmem>>, vector<16x8xbf16>,
    %c0_136 = arith.constant 0 : index
    %c2_137 = arith.constant 2 : index
    %c0_138 = arith.constant 0 : index
    %119 = vector.load %arg8[%c0_136, %c2_137, %c0_138] : memref<18x18x32xf32, #tpu.memory_space<vmem>>, vector<4x4x8xf32>
    %120 = vector.shape_cast %119 : vector<4x4x8xf32> to vector<16x8xf32>
    %121 = arith.truncf %120 : vector<16x8xf32> to vector<16x8xbf16>
    %c0_139 = arith.constant 0 : index
    %c16_140 = arith.constant 16 : index
    %122 = vector.load %arg9[%c0_139, %c16_140] : memref<256x288xbf16, #tpu.memory_space<vmem>>, vector<16x8xbf16>
    tpu.vector_store %arg9[%c0_139, %c16_140], %121 {strides = array<i32>} : memref<256x288xbf16, #tpu.memory_space<vmem>>, vector<16x8xbf16>,
    %c1_141 = arith.constant 1 : index
    %c0_142 = arith.constant 0 : index
    %c0_143 = arith.constant 0 : index
    %123 = vector.load %arg8[%c1_141, %c0_142, %c0_143] : memref<18x18x32xf32, #tpu.memory_space<vmem>>, vector<4x4x8xf32>
    %124 = vector.shape_cast %123 : vector<4x4x8xf32> to vector<16x8xf32>
    %125 = arith.truncf %124 : vector<16x8xf32> to vector<16x8xbf16>
    %c0_144 = arith.constant 0 : index
    %c24_145 = arith.constant 24 : index
    %126 = vector.load %arg9[%c0_144, %c24_145] : memref<256x288xbf16, #tpu.memory_space<vmem>>, vector<16x8xbf16>
    tpu.vector_store %arg9[%c0_144, %c24_145], %125 {strides = array<i32>} : memref<256x288xbf16, #tpu.memory_space<vmem>>, vector<16x8xbf16>,
    %c1_146 = arith.constant 1 : index
    %c1_147 = arith.constant 1 : index
    %c0_148 = arith.constant 0 : index
    %127 = vector.load %arg8[%c1_146, %c1_147, %c0_148] : memref<18x18x32xf32, #tpu.memory_space<vmem>>, vector<4x4x8xf32>
    %128 = vector.shape_cast %127 : vector<4x4x8xf32> to vector<16x8xf32>
    %129 = arith.truncf %128 : vector<16x8xf32> to vector<16x8xbf16>
    %c0_149 = arith.constant 0 : index
    %c32_150 = arith.constant 32 : index
    %130 = vector.load %arg9[%c0_149, %c32_150] : memref<256x288xbf16, #tpu.memory_space<vmem>>, vector<16x8xbf16>
    tpu.vector_store %arg9[%c0_149, %c32_150], %129 {strides = array<i32>} : memref<256x288xbf16, #tpu.memory_space<vmem>>, vector<16x8xbf16>,
    %c1_151 = arith.constant 1 : index
    %c2_152 = arith.constant 2 : index
    %c0_153 = arith.constant 0 : index
    %131 = vector.load %arg8[%c1_151, %c2_152, %c0_153] : memref<18x18x32xf32, #tpu.memory_space<vmem>>, vector<4x4x8xf32>
    %132 = vector.shape_cast %131 : vector<4x4x8xf32> to vector<16x8xf32>
    %133 = arith.truncf %132 : vector<16x8xf32> to vector<16x8xbf16>
    %c0_154 = arith.constant 0 : index
    %c40_155 = arith.constant 40 : index
    %134 = vector.load %arg9[%c0_154, %c40_155] : memref<256x288xbf16, #tpu.memory_space<vmem>>, vector<16x8xbf16>
    tpu.vector_store %arg9[%c0_154, %c40_155], %133 {strides = array<i32>} : memref<256x288xbf16, #tpu.memory_space<vmem>>, vector<16x8xbf16>,
    %c2_156 = arith.constant 2 : index
    %c0_157 = arith.constant 0 : index
    %c0_158 = arith.constant 0 : index
    %135 = vector.load %arg8[%c2_156, %c0_157, %c0_158] : memref<18x18x32xf32, #tpu.memory_space<vmem>>, vector<4x4x8xf32>
    %136 = vector.shape_cast %135 : vector<4x4x8xf32> to vector<16x8xf32>
    %137 = arith.truncf %136 : vector<16x8xf32> to vector<16x8xbf16>
    %c0_159 = arith.constant 0 : index
    %c48_160 = arith.constant 48 : index
    %138 = vector.load %arg9[%c0_159, %c48_160] : memref<256x288xbf16, #tpu.memory_space<vmem>>, vector<16x8xbf16>
    tpu.vector_store %arg9[%c0_159, %c48_160], %137 {strides = array<i32>} : memref<256x288xbf16, #tpu.memory_space<vmem>>, vector<16x8xbf16>,
    %c2_161 = arith.constant 2 : index
    %c1_162 = arith.constant 1 : index
    %c0_163 = arith.constant 0 : index
    %139 = vector.load %arg8[%c2_161, %c1_162, %c0_163] : memref<18x18x32xf32, #tpu.memory_space<vmem>>, vector<4x4x8xf32>
    %140 = vector.shape_cast %139 : vector<4x4x8xf32> to vector<16x8xf32>
    %141 = arith.truncf %140 : vector<16x8xf32> to vector<16x8xbf16>
    %c0_164 = arith.constant 0 : index
    %c56_165 = arith.constant 56 : index
    %142 = vector.load %arg9[%c0_164, %c56_165] : memref<256x288xbf16, #tpu.memory_space<vmem>>, vector<16x8xbf16>
    tpu.vector_store %arg9[%c0_164, %c56_165], %141 {strides = array<i32>} : memref<256x288xbf16, #tpu.memory_space<vmem>>, vector<16x8xbf16>,
    %c2_166 = arith.constant 2 : index
    %c2_167 = arith.constant 2 : index
    %c0_168 = arith.constant 0 : index
    %143 = vector.load %arg8[%c2_166, %c2_167, %c0_168] : memref<18x18x32xf32, #tpu.memory_space<vmem>>, vector<4x4x8xf32>
    %144 = vector.shape_cast %143 : vector<4x4x8xf32> to vector<16x8xf32>
    %145 = arith.truncf %144 : vector<16x8xf32> to vector<16x8xbf16>
    %c0_169 = arith.constant 0 : index
    %c64_170 = arith.constant 64 : index
    %146 = vector.load %arg9[%c0_169, %c64_170] : memref<256x288xbf16, #tpu.memory_space<vmem>>, vector<16x8xbf16>
    tpu.vector_store %arg9[%c0_169, %c64_170], %145 {strides = array<i32>} : memref<256x288xbf16, #tpu.memory_space<vmem>>, vector<16x8xbf16>,
    %c0_171 = arith.constant 0 : index
    %c0_172 = arith.constant 0 : index
    %147 = vector.load %arg9[%c0_171, %c0_172] : memref<256x288xbf16, #tpu.memory_space<vmem>>, vector<16x72xbf16>
    %c2_173 = arith.constant 2 : index
    %c0_174 = arith.constant 0 : index
    %c0_175 = arith.constant 0 : index
    %148 = vector.load %arg5[%c2_173, %c0_174, %c0_175] : memref<7x288x32xbf16, #tpu.memory_space<vmem>>, vector<1x72x32xbf16>
    %149 = vector.shape_cast %148 : vector<1x72x32xbf16> to vector<72x32xbf16>
    %cst_176 = arith.constant dense<0.000000e+00> : vector<16x32xf32>
    %150 = tpu.matmul %147, %149, %cst_176 {dimension_numbers = #tpu.dot_dimension_numbers<[1], [0], [0], [1], [0, 0, 1, 1], [], []>} : vector<16x72xbf16>, vector<72x32xbf16>, vector<16x32xf32> -> vector<16x32xf32>
    %c2_177 = arith.constant 2 : index
    %c0_178 = arith.constant 0 : index
    %151 = vector.load %arg6[%c2_177, %c0_178] : memref<7x32xf32, #tpu.memory_space<vmem>>, vector<1x32xf32>
    %152 = vector.broadcast %151 : vector<1x32xf32> to vector<16x32xf32>
    %153 = arith.addf %150, %152 : vector<16x32xf32>
    %cst_179 = arith.constant 0.000000e+00 : f32
    %154 = vector.broadcast %cst_179 : f32 to vector<16x32xf32>
    %155 = arith.maximumf %153, %154 : vector<16x32xf32>
    %156 = vector.shape_cast %155 : vector<16x32xf32> to vector<4x4x32xf32>
    %157 = vector.extract_strided_slice %156 {offsets = [0, 0, 0], sizes = [1, 4, 32], strides = [1, 1, 1]} : vector<4x4x32xf32> to vector<1x4x32xf32>
    %158 = vector.extract_strided_slice %156 {offsets = [0, 0, 0], sizes = [3, 4, 32], strides = [1, 1, 1]} : vector<4x4x32xf32> to vector<3x4x32xf32>
    %159 = tpu.concatenate %157, %158 in 0 : vector<1x4x32xf32>, vector<3x4x32xf32> -> vector<4x4x32xf32>
    %160 = vector.extract_strided_slice %156 {offsets = [1, 0, 0], sizes = [3, 4, 32], strides = [1, 1, 1]} : vector<4x4x32xf32> to vector<3x4x32xf32>
    %161 = vector.extract_strided_slice %156 {offsets = [3, 0, 0], sizes = [1, 4, 32], strides = [1, 1, 1]} : vector<4x4x32xf32> to vector<1x4x32xf32>
    %162 = tpu.concatenate %160, %161 in 0 : vector<3x4x32xf32>, vector<1x4x32xf32> -> vector<4x4x32xf32>
    %cst_180 = arith.constant 7.500000e-01 : f32
    %163 = vector.broadcast %cst_180 : f32 to vector<4x4x32xf32>
    %164 = arith.mulf %163, %156 : vector<4x4x32xf32>
    %cst_181 = arith.constant 2.500000e-01 : f32
    %165 = vector.broadcast %cst_181 : f32 to vector<4x4x32xf32>
    %166 = arith.mulf %165, %159 : vector<4x4x32xf32>
    %167 = arith.addf %164, %166 : vector<4x4x32xf32>
    %cst_182 = arith.constant 7.500000e-01 : f32
    %168 = vector.broadcast %cst_182 : f32 to vector<4x4x32xf32>
    %169 = arith.mulf %168, %156 : vector<4x4x32xf32>
    %cst_183 = arith.constant 2.500000e-01 : f32
    %170 = vector.broadcast %cst_183 : f32 to vector<4x4x32xf32>
    %171 = arith.mulf %170, %162 : vector<4x4x32xf32>
    %172 = arith.addf %169, %171 : vector<4x4x32xf32>
    %173 = vector.shape_cast %167 : vector<4x4x32xf32> to vector<4x1x4x32xf32>
    %174 = vector.shape_cast %172 : vector<4x4x32xf32> to vector<4x1x4x32xf32>
    %175 = tpu.concatenate %173, %174 in 1 : vector<4x1x4x32xf32>, vector<4x1x4x32xf32> -> vector<4x2x4x32xf32>
    %176 = vector.shape_cast %175 : vector<4x2x4x32xf32> to vector<8x4x32xf32>
    %177 = vector.extract_strided_slice %176 {offsets = [0, 0, 0], sizes = [8, 1, 32], strides = [1, 1, 1]} : vector<8x4x32xf32> to vector<8x1x32xf32>
    %178 = vector.extract_strided_slice %176 {offsets = [0, 0, 0], sizes = [8, 3, 32], strides = [1, 1, 1]} : vector<8x4x32xf32> to vector<8x3x32xf32>
    %179 = tpu.concatenate %177, %178 in 1 : vector<8x1x32xf32>, vector<8x3x32xf32> -> vector<8x4x32xf32>
    %180 = vector.extract_strided_slice %176 {offsets = [0, 1, 0], sizes = [8, 3, 32], strides = [1, 1, 1]} : vector<8x4x32xf32> to vector<8x3x32xf32>
    %181 = vector.extract_strided_slice %176 {offsets = [0, 3, 0], sizes = [8, 1, 32], strides = [1, 1, 1]} : vector<8x4x32xf32> to vector<8x1x32xf32>
    %182 = tpu.concatenate %180, %181 in 1 : vector<8x3x32xf32>, vector<8x1x32xf32> -> vector<8x4x32xf32>
    %cst_184 = arith.constant 7.500000e-01 : f32
    %183 = vector.broadcast %cst_184 : f32 to vector<8x4x32xf32>
    %184 = arith.mulf %183, %176 : vector<8x4x32xf32>
    %cst_185 = arith.constant 2.500000e-01 : f32
    %185 = vector.broadcast %cst_185 : f32 to vector<8x4x32xf32>
    %186 = arith.mulf %185, %179 : vector<8x4x32xf32>
    %187 = arith.addf %184, %186 : vector<8x4x32xf32>
    %cst_186 = arith.constant 7.500000e-01 : f32
    %188 = vector.broadcast %cst_186 : f32 to vector<8x4x32xf32>
    %189 = arith.mulf %188, %176 : vector<8x4x32xf32>
    %cst_187 = arith.constant 2.500000e-01 : f32
    %190 = vector.broadcast %cst_187 : f32 to vector<8x4x32xf32>
    %191 = arith.mulf %190, %182 : vector<8x4x32xf32>
    %192 = arith.addf %189, %191 : vector<8x4x32xf32>
    %193 = vector.extract_strided_slice %187 {offsets = [0, 0, 0], sizes = [8, 1, 32], strides = [1, 1, 1]} : vector<8x4x32xf32> to vector<8x1x32xf32>
    %194 = vector.extract_strided_slice %192 {offsets = [0, 0, 0], sizes = [8, 1, 32], strides = [1, 1, 1]} : vector<8x4x32xf32> to vector<8x1x32xf32>
    %195 = vector.extract_strided_slice %187 {offsets = [0, 1, 0], sizes = [8, 1, 32], strides = [1, 1, 1]} : vector<8x4x32xf32> to vector<8x1x32xf32>
    %196 = vector.extract_strided_slice %192 {offsets = [0, 1, 0], sizes = [8, 1, 32], strides = [1, 1, 1]} : vector<8x4x32xf32> to vector<8x1x32xf32>
    %197 = vector.extract_strided_slice %187 {offsets = [0, 2, 0], sizes = [8, 1, 32], strides = [1, 1, 1]} : vector<8x4x32xf32> to vector<8x1x32xf32>
    %198 = vector.extract_strided_slice %192 {offsets = [0, 2, 0], sizes = [8, 1, 32], strides = [1, 1, 1]} : vector<8x4x32xf32> to vector<8x1x32xf32>
    %199 = vector.extract_strided_slice %187 {offsets = [0, 3, 0], sizes = [8, 1, 32], strides = [1, 1, 1]} : vector<8x4x32xf32> to vector<8x1x32xf32>
    %200 = vector.extract_strided_slice %192 {offsets = [0, 3, 0], sizes = [8, 1, 32], strides = [1, 1, 1]} : vector<8x4x32xf32> to vector<8x1x32xf32>
    %201 = tpu.concatenate %193, %194, %195, %196, %197, %198, %199, %200 in 1 : vector<8x1x32xf32>, vector<8x1x32xf32>, vector<8x1x32xf32>, vector<8x1x32xf32>, vector<8x1x32xf32>, vector<8x1x32xf32>, vector<8x1x32xf32>, vector<8x1x32xf32> -> vector<8x8x32xf32>
    %cst_188 = arith.constant 0.000000e+00 : f32
    %202 = vector.broadcast %cst_188 : f32 to vector<10x10x32xf32>
    %c0_189 = arith.constant 0 : index
    %c0_190 = arith.constant 0 : index
    %c0_191 = arith.constant 0 : index
    %203 = vector.load %arg8[%c0_189, %c0_190, %c0_191] : memref<18x18x32xf32, #tpu.memory_space<vmem>>, vector<10x10x32xf32>
    tpu.vector_store %arg8[%c0_189, %c0_190, %c0_191], %202 {strides = array<i32>} : memref<18x18x32xf32, #tpu.memory_space<vmem>>, vector<10x10x32xf32>,
    %c1_192 = arith.constant 1 : index
    %c1_193 = arith.constant 1 : index
    %c0_194 = arith.constant 0 : index
    %204 = vector.load %arg8[%c1_192, %c1_193, %c0_194] : memref<18x18x32xf32, #tpu.memory_space<vmem>>, vector<8x8x32xf32>
    tpu.vector_store %arg8[%c1_192, %c1_193, %c0_194], %201 {strides = array<i32>} : memref<18x18x32xf32, #tpu.memory_space<vmem>>, vector<8x8x32xf32>,
    %c0_195 = arith.constant 0 : index
    %c0_196 = arith.constant 0 : index
    %c0_197 = arith.constant 0 : index
    %205 = vector.load %arg8[%c0_195, %c0_196, %c0_197] : memref<18x18x32xf32, #tpu.memory_space<vmem>>, vector<8x8x32xf32>
    %206 = vector.shape_cast %205 : vector<8x8x32xf32> to vector<64x32xf32>
    %207 = arith.truncf %206 : vector<64x32xf32> to vector<64x32xbf16>
    %c0_198 = arith.constant 0 : index
    %c0_199 = arith.constant 0 : index
    %208 = vector.load %arg9[%c0_198, %c0_199] : memref<256x288xbf16, #tpu.memory_space<vmem>>, vector<64x32xbf16>
    tpu.vector_store %arg9[%c0_198, %c0_199], %207 {strides = array<i32>} : memref<256x288xbf16, #tpu.memory_space<vmem>>, vector<64x32xbf16>,
    %c0_200 = arith.constant 0 : index
    %c1_201 = arith.constant 1 : index
    %c0_202 = arith.constant 0 : index
    %209 = vector.load %arg8[%c0_200, %c1_201, %c0_202] : memref<18x18x32xf32, #tpu.memory_space<vmem>>, vector<8x8x32xf32>
    %210 = vector.shape_cast %209 : vector<8x8x32xf32> to vector<64x32xf32>
    %211 = arith.truncf %210 : vector<64x32xf32> to vector<64x32xbf16>
    %c0_203 = arith.constant 0 : index
    %c32_204 = arith.constant 32 : index
    %212 = vector.load %arg9[%c0_203, %c32_204] : memref<256x288xbf16, #tpu.memory_space<vmem>>, vector<64x32xbf16>
    tpu.vector_store %arg9[%c0_203, %c32_204], %211 {strides = array<i32>} : memref<256x288xbf16, #tpu.memory_space<vmem>>, vector<64x32xbf16>,
    %c0_205 = arith.constant 0 : index
    %c2_206 = arith.constant 2 : index
    %c0_207 = arith.constant 0 : index
    %213 = vector.load %arg8[%c0_205, %c2_206, %c0_207] : memref<18x18x32xf32, #tpu.memory_space<vmem>>, vector<8x8x32xf32>
    %214 = vector.shape_cast %213 : vector<8x8x32xf32> to vector<64x32xf32>
    %215 = arith.truncf %214 : vector<64x32xf32> to vector<64x32xbf16>
    %c0_208 = arith.constant 0 : index
    %c64_209 = arith.constant 64 : index
    %216 = vector.load %arg9[%c0_208, %c64_209] : memref<256x288xbf16, #tpu.memory_space<vmem>>, vector<64x32xbf16>
    tpu.vector_store %arg9[%c0_208, %c64_209], %215 {strides = array<i32>} : memref<256x288xbf16, #tpu.memory_space<vmem>>, vector<64x32xbf16>,
    %c1_210 = arith.constant 1 : index
    %c0_211 = arith.constant 0 : index
    %c0_212 = arith.constant 0 : index
    %217 = vector.load %arg8[%c1_210, %c0_211, %c0_212] : memref<18x18x32xf32, #tpu.memory_space<vmem>>, vector<8x8x32xf32>
    %218 = vector.shape_cast %217 : vector<8x8x32xf32> to vector<64x32xf32>
    %219 = arith.truncf %218 : vector<64x32xf32> to vector<64x32xbf16>
    %c0_213 = arith.constant 0 : index
    %c96 = arith.constant 96 : index
    %220 = vector.load %arg9[%c0_213, %c96] : memref<256x288xbf16, #tpu.memory_space<vmem>>, vector<64x32xbf16>
    tpu.vector_store %arg9[%c0_213, %c96], %219 {strides = array<i32>} : memref<256x288xbf16, #tpu.memory_space<vmem>>, vector<64x32xbf16>,
    %c1_214 = arith.constant 1 : index
    %c1_215 = arith.constant 1 : index
    %c0_216 = arith.constant 0 : index
    %221 = vector.load %arg8[%c1_214, %c1_215, %c0_216] : memref<18x18x32xf32, #tpu.memory_space<vmem>>, vector<8x8x32xf32>
    %222 = vector.shape_cast %221 : vector<8x8x32xf32> to vector<64x32xf32>
    %223 = arith.truncf %222 : vector<64x32xf32> to vector<64x32xbf16>
    %c0_217 = arith.constant 0 : index
    %c128 = arith.constant 128 : index
    %224 = vector.load %arg9[%c0_217, %c128] : memref<256x288xbf16, #tpu.memory_space<vmem>>, vector<64x32xbf16>
    tpu.vector_store %arg9[%c0_217, %c128], %223 {strides = array<i32>} : memref<256x288xbf16, #tpu.memory_space<vmem>>, vector<64x32xbf16>,
    %c1_218 = arith.constant 1 : index
    %c2_219 = arith.constant 2 : index
    %c0_220 = arith.constant 0 : index
    %225 = vector.load %arg8[%c1_218, %c2_219, %c0_220] : memref<18x18x32xf32, #tpu.memory_space<vmem>>, vector<8x8x32xf32>
    %226 = vector.shape_cast %225 : vector<8x8x32xf32> to vector<64x32xf32>
    %227 = arith.truncf %226 : vector<64x32xf32> to vector<64x32xbf16>
    %c0_221 = arith.constant 0 : index
    %c160 = arith.constant 160 : index
    %228 = vector.load %arg9[%c0_221, %c160] : memref<256x288xbf16, #tpu.memory_space<vmem>>, vector<64x32xbf16>
    tpu.vector_store %arg9[%c0_221, %c160], %227 {strides = array<i32>} : memref<256x288xbf16, #tpu.memory_space<vmem>>, vector<64x32xbf16>,
    %c2_222 = arith.constant 2 : index
    %c0_223 = arith.constant 0 : index
    %c0_224 = arith.constant 0 : index
    %229 = vector.load %arg8[%c2_222, %c0_223, %c0_224] : memref<18x18x32xf32, #tpu.memory_space<vmem>>, vector<8x8x32xf32>
    %230 = vector.shape_cast %229 : vector<8x8x32xf32> to vector<64x32xf32>
    %231 = arith.truncf %230 : vector<64x32xf32> to vector<64x32xbf16>
    %c0_225 = arith.constant 0 : index
    %c192 = arith.constant 192 : index
    %232 = vector.load %arg9[%c0_225, %c192] : memref<256x288xbf16, #tpu.memory_space<vmem>>, vector<64x32xbf16>
    tpu.vector_store %arg9[%c0_225, %c192], %231 {strides = array<i32>} : memref<256x288xbf16, #tpu.memory_space<vmem>>, vector<64x32xbf16>,
    %c2_226 = arith.constant 2 : index
    %c1_227 = arith.constant 1 : index
    %c0_228 = arith.constant 0 : index
    %233 = vector.load %arg8[%c2_226, %c1_227, %c0_228] : memref<18x18x32xf32, #tpu.memory_space<vmem>>, vector<8x8x32xf32>
    %234 = vector.shape_cast %233 : vector<8x8x32xf32> to vector<64x32xf32>
    %235 = arith.truncf %234 : vector<64x32xf32> to vector<64x32xbf16>
    %c0_229 = arith.constant 0 : index
    %c224 = arith.constant 224 : index
    %236 = vector.load %arg9[%c0_229, %c224] : memref<256x288xbf16, #tpu.memory_space<vmem>>, vector<64x32xbf16>
    tpu.vector_store %arg9[%c0_229, %c224], %235 {strides = array<i32>} : memref<256x288xbf16, #tpu.memory_space<vmem>>, vector<64x32xbf16>,
    %c2_230 = arith.constant 2 : index
    %c2_231 = arith.constant 2 : index
    %c0_232 = arith.constant 0 : index
    %237 = vector.load %arg8[%c2_230, %c2_231, %c0_232] : memref<18x18x32xf32, #tpu.memory_space<vmem>>, vector<8x8x32xf32>
    %238 = vector.shape_cast %237 : vector<8x8x32xf32> to vector<64x32xf32>
    %239 = arith.truncf %238 : vector<64x32xf32> to vector<64x32xbf16>
    %c0_233 = arith.constant 0 : index
    %c256 = arith.constant 256 : index
    %240 = vector.load %arg9[%c0_233, %c256] : memref<256x288xbf16, #tpu.memory_space<vmem>>, vector<64x32xbf16>
    tpu.vector_store %arg9[%c0_233, %c256], %239 {strides = array<i32>} : memref<256x288xbf16, #tpu.memory_space<vmem>>, vector<64x32xbf16>,
    %c0_234 = arith.constant 0 : index
    %c0_235 = arith.constant 0 : index
    %241 = vector.load %arg9[%c0_234, %c0_235] : memref<256x288xbf16, #tpu.memory_space<vmem>>, vector<64x288xbf16>
    %c3 = arith.constant 3 : index
    %c0_236 = arith.constant 0 : index
    %c0_237 = arith.constant 0 : index
    %242 = vector.load %arg5[%c3, %c0_236, %c0_237] : memref<7x288x32xbf16, #tpu.memory_space<vmem>>, vector<1x288x32xbf16>
    %243 = vector.shape_cast %242 : vector<1x288x32xbf16> to vector<288x32xbf16>
    %cst_238 = arith.constant dense<0.000000e+00> : vector<64x32xf32>
    %244 = tpu.matmul %241, %243, %cst_238 {dimension_numbers = #tpu.dot_dimension_numbers<[1], [0], [0], [1], [0, 0, 1, 1], [], []>} : vector<64x288xbf16>, vector<288x32xbf16>, vector<64x32xf32> -> vector<64x32xf32>
    %c3_239 = arith.constant 3 : index
    %c0_240 = arith.constant 0 : index
    %245 = vector.load %arg6[%c3_239, %c0_240] : memref<7x32xf32, #tpu.memory_space<vmem>>, vector<1x32xf32>
    %246 = vector.broadcast %245 : vector<1x32xf32> to vector<64x32xf32>
    %247 = arith.addf %244, %246 : vector<64x32xf32>
    %cst_241 = arith.constant 0.000000e+00 : f32
    %248 = vector.broadcast %cst_241 : f32 to vector<64x32xf32>
    %249 = arith.maximumf %247, %248 : vector<64x32xf32>
    %250 = arith.addf %103, %249 : vector<64x32xf32>
    %c0_242 = arith.constant 0 : index
    %c0_243 = arith.constant 0 : index
    %c0_244 = arith.constant 0 : index
    %251 = vector.load %arg4[%c0_242, %c0_243, %c0_244] : memref<1x8x4xf32, #tpu.memory_space<vmem>>, vector<1x8x4xf32>
    %252 = vector.shape_cast %251 : vector<1x8x4xf32> to vector<8x4xf32>
    %253 = tpu.transpose %252, [1, 0] : vector<8x4xf32> -> vector<4x8xf32>
    %254 = vector.shape_cast %253 : vector<4x8xf32> to vector<2x2x8xf32>
    %cst_245 = arith.constant 0.000000e+00 : f32
    %255 = vector.broadcast %cst_245 : f32 to vector<4x4x8xf32>
    %c0_246 = arith.constant 0 : index
    %c0_247 = arith.constant 0 : index
    %c0_248 = arith.constant 0 : index
    %256 = vector.load %arg8[%c0_246, %c0_247, %c0_248] : memref<18x18x32xf32, #tpu.memory_space<vmem>>, vector<4x4x8xf32>
    tpu.vector_store %arg8[%c0_246, %c0_247, %c0_248], %255 {strides = array<i32>} : memref<18x18x32xf32, #tpu.memory_space<vmem>>, vector<4x4x8xf32>,
    %c1_249 = arith.constant 1 : index
    %c1_250 = arith.constant 1 : index
    %c0_251 = arith.constant 0 : index
    %257 = vector.load %arg8[%c1_249, %c1_250, %c0_251] : memref<18x18x32xf32, #tpu.memory_space<vmem>>, vector<2x2x8xf32>
    tpu.vector_store %arg8[%c1_249, %c1_250, %c0_251], %254 {strides = array<i32>} : memref<18x18x32xf32, #tpu.memory_space<vmem>>, vector<2x2x8xf32>,
    %c0_252 = arith.constant 0 : index
    %c0_253 = arith.constant 0 : index
    %c0_254 = arith.constant 0 : index
    %258 = vector.load %arg8[%c0_252, %c0_253, %c0_254] : memref<18x18x32xf32, #tpu.memory_space<vmem>>, vector<2x2x8xf32>
    %259 = vector.shape_cast %258 : vector<2x2x8xf32> to vector<4x8xf32>
    %260 = arith.truncf %259 : vector<4x8xf32> to vector<4x8xbf16>
    %c0_255 = arith.constant 0 : index
    %c0_256 = arith.constant 0 : index
    %261 = vector.load %arg9[%c0_255, %c0_256] : memref<256x288xbf16, #tpu.memory_space<vmem>>, vector<4x8xbf16>
    tpu.vector_store %arg9[%c0_255, %c0_256], %260 {strides = array<i32>} : memref<256x288xbf16, #tpu.memory_space<vmem>>, vector<4x8xbf16>,
    %c0_257 = arith.constant 0 : index
    %c1_258 = arith.constant 1 : index
    %c0_259 = arith.constant 0 : index
    %262 = vector.load %arg8[%c0_257, %c1_258, %c0_259] : memref<18x18x32xf32, #tpu.memory_space<vmem>>, vector<2x2x8xf32>
    %263 = vector.shape_cast %262 : vector<2x2x8xf32> to vector<4x8xf32>
    %264 = arith.truncf %263 : vector<4x8xf32> to vector<4x8xbf16>
    %c0_260 = arith.constant 0 : index
    %c8_261 = arith.constant 8 : index
    %265 = vector.load %arg9[%c0_260, %c8_261] : memref<256x288xbf16, #tpu.memory_space<vmem>>, vector<4x8xbf16>
    tpu.vector_store %arg9[%c0_260, %c8_261], %264 {strides = array<i32>} : memref<256x288xbf16, #tpu.memory_space<vmem>>, vector<4x8xbf16>,
    %c0_262 = arith.constant 0 : index
    %c2_263 = arith.constant 2 : index
    %c0_264 = arith.constant 0 : index
    %266 = vector.load %arg8[%c0_262, %c2_263, %c0_264] : memref<18x18x32xf32, #tpu.memory_space<vmem>>, vector<2x2x8xf32>
    %267 = vector.shape_cast %266 : vector<2x2x8xf32> to vector<4x8xf32>
    %268 = arith.truncf %267 : vector<4x8xf32> to vector<4x8xbf16>
    %c0_265 = arith.constant 0 : index
    %c16_266 = arith.constant 16 : index
    %269 = vector.load %arg9[%c0_265, %c16_266] : memref<256x288xbf16, #tpu.memory_space<vmem>>, vector<4x8xbf16>
    tpu.vector_store %arg9[%c0_265, %c16_266], %268 {strides = array<i32>} : memref<256x288xbf16, #tpu.memory_space<vmem>>, vector<4x8xbf16>,
    %c1_267 = arith.constant 1 : index
    %c0_268 = arith.constant 0 : index
    %c0_269 = arith.constant 0 : index
    %270 = vector.load %arg8[%c1_267, %c0_268, %c0_269] : memref<18x18x32xf32, #tpu.memory_space<vmem>>, vector<2x2x8xf32>
    %271 = vector.shape_cast %270 : vector<2x2x8xf32> to vector<4x8xf32>
    %272 = arith.truncf %271 : vector<4x8xf32> to vector<4x8xbf16>
    %c0_270 = arith.constant 0 : index
    %c24_271 = arith.constant 24 : index
    %273 = vector.load %arg9[%c0_270, %c24_271] : memref<256x288xbf16, #tpu.memory_space<vmem>>, vector<4x8xbf16>
    tpu.vector_store %arg9[%c0_270, %c24_271], %272 {strides = array<i32>} : memref<256x288xbf16, #tpu.memory_space<vmem>>, vector<4x8xbf16>,
    %c1_272 = arith.constant 1 : index
    %c1_273 = arith.constant 1 : index
    %c0_274 = arith.constant 0 : index
    %274 = vector.load %arg8[%c1_272, %c1_273, %c0_274] : memref<18x18x32xf32, #tpu.memory_space<vmem>>, vector<2x2x8xf32>
    %275 = vector.shape_cast %274 : vector<2x2x8xf32> to vector<4x8xf32>
    %276 = arith.truncf %275 : vector<4x8xf32> to vector<4x8xbf16>
    %c0_275 = arith.constant 0 : index
    %c32_276 = arith.constant 32 : index
    %277 = vector.load %arg9[%c0_275, %c32_276] : memref<256x288xbf16, #tpu.memory_space<vmem>>, vector<4x8xbf16>
    tpu.vector_store %arg9[%c0_275, %c32_276], %276 {strides = array<i32>} : memref<256x288xbf16, #tpu.memory_space<vmem>>, vector<4x8xbf16>,
    %c1_277 = arith.constant 1 : index
    %c2_278 = arith.constant 2 : index
    %c0_279 = arith.constant 0 : index
    %278 = vector.load %arg8[%c1_277, %c2_278, %c0_279] : memref<18x18x32xf32, #tpu.memory_space<vmem>>, vector<2x2x8xf32>
    %279 = vector.shape_cast %278 : vector<2x2x8xf32> to vector<4x8xf32>
    %280 = arith.truncf %279 : vector<4x8xf32> to vector<4x8xbf16>
    %c0_280 = arith.constant 0 : index
    %c40_281 = arith.constant 40 : index
    %281 = vector.load %arg9[%c0_280, %c40_281] : memref<256x288xbf16, #tpu.memory_space<vmem>>, vector<4x8xbf16>
    tpu.vector_store %arg9[%c0_280, %c40_281], %280 {strides = array<i32>} : memref<256x288xbf16, #tpu.memory_space<vmem>>, vector<4x8xbf16>,
    %c2_282 = arith.constant 2 : index
    %c0_283 = arith.constant 0 : index
    %c0_284 = arith.constant 0 : index
    %282 = vector.load %arg8[%c2_282, %c0_283, %c0_284] : memref<18x18x32xf32, #tpu.memory_space<vmem>>, vector<2x2x8xf32>
    %283 = vector.shape_cast %282 : vector<2x2x8xf32> to vector<4x8xf32>
    %284 = arith.truncf %283 : vector<4x8xf32> to vector<4x8xbf16>
    %c0_285 = arith.constant 0 : index
    %c48_286 = arith.constant 48 : index
    %285 = vector.load %arg9[%c0_285, %c48_286] : memref<256x288xbf16, #tpu.memory_space<vmem>>, vector<4x8xbf16>
    tpu.vector_store %arg9[%c0_285, %c48_286], %284 {strides = array<i32>} : memref<256x288xbf16, #tpu.memory_space<vmem>>, vector<4x8xbf16>,
    %c2_287 = arith.constant 2 : index
    %c1_288 = arith.constant 1 : index
    %c0_289 = arith.constant 0 : index
    %286 = vector.load %arg8[%c2_287, %c1_288, %c0_289] : memref<18x18x32xf32, #tpu.memory_space<vmem>>, vector<2x2x8xf32>
    %287 = vector.shape_cast %286 : vector<2x2x8xf32> to vector<4x8xf32>
    %288 = arith.truncf %287 : vector<4x8xf32> to vector<4x8xbf16>
    %c0_290 = arith.constant 0 : index
    %c56_291 = arith.constant 56 : index
    %289 = vector.load %arg9[%c0_290, %c56_291] : memref<256x288xbf16, #tpu.memory_space<vmem>>, vector<4x8xbf16>
    tpu.vector_store %arg9[%c0_290, %c56_291], %288 {strides = array<i32>} : memref<256x288xbf16, #tpu.memory_space<vmem>>, vector<4x8xbf16>,
    %c2_292 = arith.constant 2 : index
    %c2_293 = arith.constant 2 : index
    %c0_294 = arith.constant 0 : index
    %290 = vector.load %arg8[%c2_292, %c2_293, %c0_294] : memref<18x18x32xf32, #tpu.memory_space<vmem>>, vector<2x2x8xf32>
    %291 = vector.shape_cast %290 : vector<2x2x8xf32> to vector<4x8xf32>
    %292 = arith.truncf %291 : vector<4x8xf32> to vector<4x8xbf16>
    %c0_295 = arith.constant 0 : index
    %c64_296 = arith.constant 64 : index
    %293 = vector.load %arg9[%c0_295, %c64_296] : memref<256x288xbf16, #tpu.memory_space<vmem>>, vector<4x8xbf16>
    tpu.vector_store %arg9[%c0_295, %c64_296], %292 {strides = array<i32>} : memref<256x288xbf16, #tpu.memory_space<vmem>>, vector<4x8xbf16>,
    %c0_297 = arith.constant 0 : index
    %c0_298 = arith.constant 0 : index
    %294 = vector.load %arg9[%c0_297, %c0_298] : memref<256x288xbf16, #tpu.memory_space<vmem>>, vector<4x72xbf16>
    %c4 = arith.constant 4 : index
    %c0_299 = arith.constant 0 : index
    %c0_300 = arith.constant 0 : index
    %295 = vector.load %arg5[%c4, %c0_299, %c0_300] : memref<7x288x32xbf16, #tpu.memory_space<vmem>>, vector<1x72x32xbf16>
    %296 = vector.shape_cast %295 : vector<1x72x32xbf16> to vector<72x32xbf16>
    %cst_301 = arith.constant dense<0.000000e+00> : vector<4x32xf32>
    %297 = tpu.matmul %294, %296, %cst_301 {dimension_numbers = #tpu.dot_dimension_numbers<[1], [0], [0], [1], [0, 0, 1, 1], [], []>} : vector<4x72xbf16>, vector<72x32xbf16>, vector<4x32xf32> -> vector<4x32xf32>
    %c4_302 = arith.constant 4 : index
    %c0_303 = arith.constant 0 : index
    %298 = vector.load %arg6[%c4_302, %c0_303] : memref<7x32xf32, #tpu.memory_space<vmem>>, vector<1x32xf32>
    %299 = vector.broadcast %298 : vector<1x32xf32> to vector<4x32xf32>
    %300 = arith.addf %297, %299 : vector<4x32xf32>
    %cst_304 = arith.constant 0.000000e+00 : f32
    %301 = vector.broadcast %cst_304 : f32 to vector<4x32xf32>
    %302 = arith.maximumf %300, %301 : vector<4x32xf32>
    %303 = vector.shape_cast %302 : vector<4x32xf32> to vector<2x2x32xf32>
    %304 = vector.extract_strided_slice %303 {offsets = [0, 0, 0], sizes = [1, 2, 32], strides = [1, 1, 1]} : vector<2x2x32xf32> to vector<1x2x32xf32>
    %305 = vector.extract_strided_slice %303 {offsets = [0, 0, 0], sizes = [1, 2, 32], strides = [1, 1, 1]} : vector<2x2x32xf32> to vector<1x2x32xf32>
    %306 = tpu.concatenate %304, %305 in 0 : vector<1x2x32xf32>, vector<1x2x32xf32> -> vector<2x2x32xf32>
    %307 = vector.extract_strided_slice %303 {offsets = [1, 0, 0], sizes = [1, 2, 32], strides = [1, 1, 1]} : vector<2x2x32xf32> to vector<1x2x32xf32>
    %308 = vector.extract_strided_slice %303 {offsets = [1, 0, 0], sizes = [1, 2, 32], strides = [1, 1, 1]} : vector<2x2x32xf32> to vector<1x2x32xf32>
    %309 = tpu.concatenate %307, %308 in 0 : vector<1x2x32xf32>, vector<1x2x32xf32> -> vector<2x2x32xf32>
    %cst_305 = arith.constant 7.500000e-01 : f32
    %310 = vector.broadcast %cst_305 : f32 to vector<2x2x32xf32>
    %311 = arith.mulf %310, %303 : vector<2x2x32xf32>
    %cst_306 = arith.constant 2.500000e-01 : f32
    %312 = vector.broadcast %cst_306 : f32 to vector<2x2x32xf32>
    %313 = arith.mulf %312, %306 : vector<2x2x32xf32>
    %314 = arith.addf %311, %313 : vector<2x2x32xf32>
    %cst_307 = arith.constant 7.500000e-01 : f32
    %315 = vector.broadcast %cst_307 : f32 to vector<2x2x32xf32>
    %316 = arith.mulf %315, %303 : vector<2x2x32xf32>
    %cst_308 = arith.constant 2.500000e-01 : f32
    %317 = vector.broadcast %cst_308 : f32 to vector<2x2x32xf32>
    %318 = arith.mulf %317, %309 : vector<2x2x32xf32>
    %319 = arith.addf %316, %318 : vector<2x2x32xf32>
    %320 = vector.shape_cast %314 : vector<2x2x32xf32> to vector<2x1x2x32xf32>
    %321 = vector.shape_cast %319 : vector<2x2x32xf32> to vector<2x1x2x32xf32>
    %322 = tpu.concatenate %320, %321 in 1 : vector<2x1x2x32xf32>, vector<2x1x2x32xf32> -> vector<2x2x2x32xf32>
    %323 = vector.shape_cast %322 : vector<2x2x2x32xf32> to vector<4x2x32xf32>
    %324 = vector.extract_strided_slice %323 {offsets = [0, 0, 0], sizes = [4, 1, 32], strides = [1, 1, 1]} : vector<4x2x32xf32> to vector<4x1x32xf32>
    %325 = vector.extract_strided_slice %323 {offsets = [0, 0, 0], sizes = [4, 1, 32], strides = [1, 1, 1]} : vector<4x2x32xf32> to vector<4x1x32xf32>
    %326 = tpu.concatenate %324, %325 in 1 : vector<4x1x32xf32>, vector<4x1x32xf32> -> vector<4x2x32xf32>
    %327 = vector.extract_strided_slice %323 {offsets = [0, 1, 0], sizes = [4, 1, 32], strides = [1, 1, 1]} : vector<4x2x32xf32> to vector<4x1x32xf32>
    %328 = vector.extract_strided_slice %323 {offsets = [0, 1, 0], sizes = [4, 1, 32], strides = [1, 1, 1]} : vector<4x2x32xf32> to vector<4x1x32xf32>
    %329 = tpu.concatenate %327, %328 in 1 : vector<4x1x32xf32>, vector<4x1x32xf32> -> vector<4x2x32xf32>
    %cst_309 = arith.constant 7.500000e-01 : f32
    %330 = vector.broadcast %cst_309 : f32 to vector<4x2x32xf32>
    %331 = arith.mulf %330, %323 : vector<4x2x32xf32>
    %cst_310 = arith.constant 2.500000e-01 : f32
    %332 = vector.broadcast %cst_310 : f32 to vector<4x2x32xf32>
    %333 = arith.mulf %332, %326 : vector<4x2x32xf32>
    %334 = arith.addf %331, %333 : vector<4x2x32xf32>
    %cst_311 = arith.constant 7.500000e-01 : f32
    %335 = vector.broadcast %cst_311 : f32 to vector<4x2x32xf32>
    %336 = arith.mulf %335, %323 : vector<4x2x32xf32>
    %cst_312 = arith.constant 2.500000e-01 : f32
    %337 = vector.broadcast %cst_312 : f32 to vector<4x2x32xf32>
    %338 = arith.mulf %337, %329 : vector<4x2x32xf32>
    %339 = arith.addf %336, %338 : vector<4x2x32xf32>
    %340 = vector.extract_strided_slice %334 {offsets = [0, 0, 0], sizes = [4, 1, 32], strides = [1, 1, 1]} : vector<4x2x32xf32> to vector<4x1x32xf32>
    %341 = vector.extract_strided_slice %339 {offsets = [0, 0, 0], sizes = [4, 1, 32], strides = [1, 1, 1]} : vector<4x2x32xf32> to vector<4x1x32xf32>
    %342 = vector.extract_strided_slice %334 {offsets = [0, 1, 0], sizes = [4, 1, 32], strides = [1, 1, 1]} : vector<4x2x32xf32> to vector<4x1x32xf32>
    %343 = vector.extract_strided_slice %339 {offsets = [0, 1, 0], sizes = [4, 1, 32], strides = [1, 1, 1]} : vector<4x2x32xf32> to vector<4x1x32xf32>
    %344 = tpu.concatenate %340, %341, %342, %343 in 1 : vector<4x1x32xf32>, vector<4x1x32xf32>, vector<4x1x32xf32>, vector<4x1x32xf32> -> vector<4x4x32xf32>
    %cst_313 = arith.constant 0.000000e+00 : f32
    %345 = vector.broadcast %cst_313 : f32 to vector<6x6x32xf32>
    %c0_314 = arith.constant 0 : index
    %c0_315 = arith.constant 0 : index
    %c0_316 = arith.constant 0 : index
    %346 = vector.load %arg8[%c0_314, %c0_315, %c0_316] : memref<18x18x32xf32, #tpu.memory_space<vmem>>, vector<6x6x32xf32>
    tpu.vector_store %arg8[%c0_314, %c0_315, %c0_316], %345 {strides = array<i32>} : memref<18x18x32xf32, #tpu.memory_space<vmem>>, vector<6x6x32xf32>,
    %c1_317 = arith.constant 1 : index
    %c1_318 = arith.constant 1 : index
    %c0_319 = arith.constant 0 : index
    %347 = vector.load %arg8[%c1_317, %c1_318, %c0_319] : memref<18x18x32xf32, #tpu.memory_space<vmem>>, vector<4x4x32xf32>
    tpu.vector_store %arg8[%c1_317, %c1_318, %c0_319], %344 {strides = array<i32>} : memref<18x18x32xf32, #tpu.memory_space<vmem>>, vector<4x4x32xf32>,
    %c0_320 = arith.constant 0 : index
    %c0_321 = arith.constant 0 : index
    %c0_322 = arith.constant 0 : index
    %348 = vector.load %arg8[%c0_320, %c0_321, %c0_322] : memref<18x18x32xf32, #tpu.memory_space<vmem>>, vector<4x4x32xf32>
    %349 = vector.shape_cast %348 : vector<4x4x32xf32> to vector<16x32xf32>
    %350 = arith.truncf %349 : vector<16x32xf32> to vector<16x32xbf16>
    %c0_323 = arith.constant 0 : index
    %c0_324 = arith.constant 0 : index
    %351 = vector.load %arg9[%c0_323, %c0_324] : memref<256x288xbf16, #tpu.memory_space<vmem>>, vector<16x32xbf16>
    tpu.vector_store %arg9[%c0_323, %c0_324], %350 {strides = array<i32>} : memref<256x288xbf16, #tpu.memory_space<vmem>>, vector<16x32xbf16>,
    %c0_325 = arith.constant 0 : index
    %c1_326 = arith.constant 1 : index
    %c0_327 = arith.constant 0 : index
    %352 = vector.load %arg8[%c0_325, %c1_326, %c0_327] : memref<18x18x32xf32, #tpu.memory_space<vmem>>, vector<4x4x32xf32>
    %353 = vector.shape_cast %352 : vector<4x4x32xf32> to vector<16x32xf32>
    %354 = arith.truncf %353 : vector<16x32xf32> to vector<16x32xbf16>
    %c0_328 = arith.constant 0 : index
    %c32_329 = arith.constant 32 : index
    %355 = vector.load %arg9[%c0_328, %c32_329] : memref<256x288xbf16, #tpu.memory_space<vmem>>, vector<16x32xbf16>
    tpu.vector_store %arg9[%c0_328, %c32_329], %354 {strides = array<i32>} : memref<256x288xbf16, #tpu.memory_space<vmem>>, vector<16x32xbf16>,
    %c0_330 = arith.constant 0 : index
    %c2_331 = arith.constant 2 : index
    %c0_332 = arith.constant 0 : index
    %356 = vector.load %arg8[%c0_330, %c2_331, %c0_332] : memref<18x18x32xf32, #tpu.memory_space<vmem>>, vector<4x4x32xf32>
    %357 = vector.shape_cast %356 : vector<4x4x32xf32> to vector<16x32xf32>
    %358 = arith.truncf %357 : vector<16x32xf32> to vector<16x32xbf16>
    %c0_333 = arith.constant 0 : index
    %c64_334 = arith.constant 64 : index
    %359 = vector.load %arg9[%c0_333, %c64_334] : memref<256x288xbf16, #tpu.memory_space<vmem>>, vector<16x32xbf16>
    tpu.vector_store %arg9[%c0_333, %c64_334], %358 {strides = array<i32>} : memref<256x288xbf16, #tpu.memory_space<vmem>>, vector<16x32xbf16>,
    %c1_335 = arith.constant 1 : index
    %c0_336 = arith.constant 0 : index
    %c0_337 = arith.constant 0 : index
    %360 = vector.load %arg8[%c1_335, %c0_336, %c0_337] : memref<18x18x32xf32, #tpu.memory_space<vmem>>, vector<4x4x32xf32>
    %361 = vector.shape_cast %360 : vector<4x4x32xf32> to vector<16x32xf32>
    %362 = arith.truncf %361 : vector<16x32xf32> to vector<16x32xbf16>
    %c0_338 = arith.constant 0 : index
    %c96_339 = arith.constant 96 : index
    %363 = vector.load %arg9[%c0_338, %c96_339] : memref<256x288xbf16, #tpu.memory_space<vmem>>, vector<16x32xbf16>
    tpu.vector_store %arg9[%c0_338, %c96_339], %362 {strides = array<i32>} : memref<256x288xbf16, #tpu.memory_space<vmem>>, vector<16x32xbf16>,
    %c1_340 = arith.constant 1 : index
    %c1_341 = arith.constant 1 : index
    %c0_342 = arith.constant 0 : index
    %364 = vector.load %arg8[%c1_340, %c1_341, %c0_342] : memref<18x18x32xf32, #tpu.memory_space<vmem>>, vector<4x4x32xf32>
    %365 = vector.shape_cast %364 : vector<4x4x32xf32> to vector<16x32xf32>
    %366 = arith.truncf %365 : vector<16x32xf32> to vector<16x32xbf16>
    %c0_343 = arith.constant 0 : index
    %c128_344 = arith.constant 128 : index
    %367 = vector.load %arg9[%c0_343, %c128_344] : memref<256x288xbf16, #tpu.memory_space<vmem>>, vector<16x32xbf16>
    tpu.vector_store %arg9[%c0_343, %c128_344], %366 {strides = array<i32>} : memref<256x288xbf16, #tpu.memory_space<vmem>>, vector<16x32xbf16>,
    %c1_345 = arith.constant 1 : index
    %c2_346 = arith.constant 2 : index
    %c0_347 = arith.constant 0 : index
    %368 = vector.load %arg8[%c1_345, %c2_346, %c0_347] : memref<18x18x32xf32, #tpu.memory_space<vmem>>, vector<4x4x32xf32>
    %369 = vector.shape_cast %368 : vector<4x4x32xf32> to vector<16x32xf32>
    %370 = arith.truncf %369 : vector<16x32xf32> to vector<16x32xbf16>
    %c0_348 = arith.constant 0 : index
    %c160_349 = arith.constant 160 : index
    %371 = vector.load %arg9[%c0_348, %c160_349] : memref<256x288xbf16, #tpu.memory_space<vmem>>, vector<16x32xbf16>
    tpu.vector_store %arg9[%c0_348, %c160_349], %370 {strides = array<i32>} : memref<256x288xbf16, #tpu.memory_space<vmem>>, vector<16x32xbf16>,
    %c2_350 = arith.constant 2 : index
    %c0_351 = arith.constant 0 : index
    %c0_352 = arith.constant 0 : index
    %372 = vector.load %arg8[%c2_350, %c0_351, %c0_352] : memref<18x18x32xf32, #tpu.memory_space<vmem>>, vector<4x4x32xf32>
    %373 = vector.shape_cast %372 : vector<4x4x32xf32> to vector<16x32xf32>
    %374 = arith.truncf %373 : vector<16x32xf32> to vector<16x32xbf16>
    %c0_353 = arith.constant 0 : index
    %c192_354 = arith.constant 192 : index
    %375 = vector.load %arg9[%c0_353, %c192_354] : memref<256x288xbf16, #tpu.memory_space<vmem>>, vector<16x32xbf16>
    tpu.vector_store %arg9[%c0_353, %c192_354], %374 {strides = array<i32>} : memref<256x288xbf16, #tpu.memory_space<vmem>>, vector<16x32xbf16>,
    %c2_355 = arith.constant 2 : index
    %c1_356 = arith.constant 1 : index
    %c0_357 = arith.constant 0 : index
    %376 = vector.load %arg8[%c2_355, %c1_356, %c0_357] : memref<18x18x32xf32, #tpu.memory_space<vmem>>, vector<4x4x32xf32>
    %377 = vector.shape_cast %376 : vector<4x4x32xf32> to vector<16x32xf32>
    %378 = arith.truncf %377 : vector<16x32xf32> to vector<16x32xbf16>
    %c0_358 = arith.constant 0 : index
    %c224_359 = arith.constant 224 : index
    %379 = vector.load %arg9[%c0_358, %c224_359] : memref<256x288xbf16, #tpu.memory_space<vmem>>, vector<16x32xbf16>
    tpu.vector_store %arg9[%c0_358, %c224_359], %378 {strides = array<i32>} : memref<256x288xbf16, #tpu.memory_space<vmem>>, vector<16x32xbf16>,
    %c2_360 = arith.constant 2 : index
    %c2_361 = arith.constant 2 : index
    %c0_362 = arith.constant 0 : index
    %380 = vector.load %arg8[%c2_360, %c2_361, %c0_362] : memref<18x18x32xf32, #tpu.memory_space<vmem>>, vector<4x4x32xf32>
    %381 = vector.shape_cast %380 : vector<4x4x32xf32> to vector<16x32xf32>
    %382 = arith.truncf %381 : vector<16x32xf32> to vector<16x32xbf16>
    %c0_363 = arith.constant 0 : index
    %c256_364 = arith.constant 256 : index
    %383 = vector.load %arg9[%c0_363, %c256_364] : memref<256x288xbf16, #tpu.memory_space<vmem>>, vector<16x32xbf16>
    tpu.vector_store %arg9[%c0_363, %c256_364], %382 {strides = array<i32>} : memref<256x288xbf16, #tpu.memory_space<vmem>>, vector<16x32xbf16>,
    %c0_365 = arith.constant 0 : index
    %c0_366 = arith.constant 0 : index
    %384 = vector.load %arg9[%c0_365, %c0_366] : memref<256x288xbf16, #tpu.memory_space<vmem>>, vector<16x288xbf16>
    %c5 = arith.constant 5 : index
    %c0_367 = arith.constant 0 : index
    %c0_368 = arith.constant 0 : index
    %385 = vector.load %arg5[%c5, %c0_367, %c0_368] : memref<7x288x32xbf16, #tpu.memory_space<vmem>>, vector<1x288x32xbf16>
    %386 = vector.shape_cast %385 : vector<1x288x32xbf16> to vector<288x32xbf16>
    %cst_369 = arith.constant dense<0.000000e+00> : vector<16x32xf32>
    %387 = tpu.matmul %384, %386, %cst_369 {dimension_numbers = #tpu.dot_dimension_numbers<[1], [0], [0], [1], [0, 0, 1, 1], [], []>} : vector<16x288xbf16>, vector<288x32xbf16>, vector<16x32xf32> -> vector<16x32xf32>
    %c5_370 = arith.constant 5 : index
    %c0_371 = arith.constant 0 : index
    %388 = vector.load %arg6[%c5_370, %c0_371] : memref<7x32xf32, #tpu.memory_space<vmem>>, vector<1x32xf32>
    %389 = vector.broadcast %388 : vector<1x32xf32> to vector<16x32xf32>
    %390 = arith.addf %387, %389 : vector<16x32xf32>
    %cst_372 = arith.constant 0.000000e+00 : f32
    %391 = vector.broadcast %cst_372 : f32 to vector<16x32xf32>
    %392 = arith.maximumf %390, %391 : vector<16x32xf32>
    %393 = vector.shape_cast %392 : vector<16x32xf32> to vector<4x4x32xf32>
    %394 = vector.extract_strided_slice %393 {offsets = [0, 0, 0], sizes = [1, 4, 32], strides = [1, 1, 1]} : vector<4x4x32xf32> to vector<1x4x32xf32>
    %395 = vector.extract_strided_slice %393 {offsets = [0, 0, 0], sizes = [3, 4, 32], strides = [1, 1, 1]} : vector<4x4x32xf32> to vector<3x4x32xf32>
    %396 = tpu.concatenate %394, %395 in 0 : vector<1x4x32xf32>, vector<3x4x32xf32> -> vector<4x4x32xf32>
    %397 = vector.extract_strided_slice %393 {offsets = [1, 0, 0], sizes = [3, 4, 32], strides = [1, 1, 1]} : vector<4x4x32xf32> to vector<3x4x32xf32>
    %398 = vector.extract_strided_slice %393 {offsets = [3, 0, 0], sizes = [1, 4, 32], strides = [1, 1, 1]} : vector<4x4x32xf32> to vector<1x4x32xf32>
    %399 = tpu.concatenate %397, %398 in 0 : vector<3x4x32xf32>, vector<1x4x32xf32> -> vector<4x4x32xf32>
    %cst_373 = arith.constant 7.500000e-01 : f32
    %400 = vector.broadcast %cst_373 : f32 to vector<4x4x32xf32>
    %401 = arith.mulf %400, %393 : vector<4x4x32xf32>
    %cst_374 = arith.constant 2.500000e-01 : f32
    %402 = vector.broadcast %cst_374 : f32 to vector<4x4x32xf32>
    %403 = arith.mulf %402, %396 : vector<4x4x32xf32>
    %404 = arith.addf %401, %403 : vector<4x4x32xf32>
    %cst_375 = arith.constant 7.500000e-01 : f32
    %405 = vector.broadcast %cst_375 : f32 to vector<4x4x32xf32>
    %406 = arith.mulf %405, %393 : vector<4x4x32xf32>
    %cst_376 = arith.constant 2.500000e-01 : f32
    %407 = vector.broadcast %cst_376 : f32 to vector<4x4x32xf32>
    %408 = arith.mulf %407, %399 : vector<4x4x32xf32>
    %409 = arith.addf %406, %408 : vector<4x4x32xf32>
    %410 = vector.shape_cast %404 : vector<4x4x32xf32> to vector<4x1x4x32xf32>
    %411 = vector.shape_cast %409 : vector<4x4x32xf32> to vector<4x1x4x32xf32>
    %412 = tpu.concatenate %410, %411 in 1 : vector<4x1x4x32xf32>, vector<4x1x4x32xf32> -> vector<4x2x4x32xf32>
    %413 = vector.shape_cast %412 : vector<4x2x4x32xf32> to vector<8x4x32xf32>
    %414 = vector.extract_strided_slice %413 {offsets = [0, 0, 0], sizes = [8, 1, 32], strides = [1, 1, 1]} : vector<8x4x32xf32> to vector<8x1x32xf32>
    %415 = vector.extract_strided_slice %413 {offsets = [0, 0, 0], sizes = [8, 3, 32], strides = [1, 1, 1]} : vector<8x4x32xf32> to vector<8x3x32xf32>
    %416 = tpu.concatenate %414, %415 in 1 : vector<8x1x32xf32>, vector<8x3x32xf32> -> vector<8x4x32xf32>
    %417 = vector.extract_strided_slice %413 {offsets = [0, 1, 0], sizes = [8, 3, 32], strides = [1, 1, 1]} : vector<8x4x32xf32> to vector<8x3x32xf32>
    %418 = vector.extract_strided_slice %413 {offsets = [0, 3, 0], sizes = [8, 1, 32], strides = [1, 1, 1]} : vector<8x4x32xf32> to vector<8x1x32xf32>
    %419 = tpu.concatenate %417, %418 in 1 : vector<8x3x32xf32>, vector<8x1x32xf32> -> vector<8x4x32xf32>
    %cst_377 = arith.constant 7.500000e-01 : f32
    %420 = vector.broadcast %cst_377 : f32 to vector<8x4x32xf32>
    %421 = arith.mulf %420, %413 : vector<8x4x32xf32>
    %cst_378 = arith.constant 2.500000e-01 : f32
    %422 = vector.broadcast %cst_378 : f32 to vector<8x4x32xf32>
    %423 = arith.mulf %422, %416 : vector<8x4x32xf32>
    %424 = arith.addf %421, %423 : vector<8x4x32xf32>
    %cst_379 = arith.constant 7.500000e-01 : f32
    %425 = vector.broadcast %cst_379 : f32 to vector<8x4x32xf32>
    %426 = arith.mulf %425, %413 : vector<8x4x32xf32>
    %cst_380 = arith.constant 2.500000e-01 : f32
    %427 = vector.broadcast %cst_380 : f32 to vector<8x4x32xf32>
    %428 = arith.mulf %427, %419 : vector<8x4x32xf32>
    %429 = arith.addf %426, %428 : vector<8x4x32xf32>
    %430 = vector.extract_strided_slice %424 {offsets = [0, 0, 0], sizes = [8, 1, 32], strides = [1, 1, 1]} : vector<8x4x32xf32> to vector<8x1x32xf32>
    %431 = vector.extract_strided_slice %429 {offsets = [0, 0, 0], sizes = [8, 1, 32], strides = [1, 1, 1]} : vector<8x4x32xf32> to vector<8x1x32xf32>
    %432 = vector.extract_strided_slice %424 {offsets = [0, 1, 0], sizes = [8, 1, 32], strides = [1, 1, 1]} : vector<8x4x32xf32> to vector<8x1x32xf32>
    %433 = vector.extract_strided_slice %429 {offsets = [0, 1, 0], sizes = [8, 1, 32], strides = [1, 1, 1]} : vector<8x4x32xf32> to vector<8x1x32xf32>
    %434 = vector.extract_strided_slice %424 {offsets = [0, 2, 0], sizes = [8, 1, 32], strides = [1, 1, 1]} : vector<8x4x32xf32> to vector<8x1x32xf32>
    %435 = vector.extract_strided_slice %429 {offsets = [0, 2, 0], sizes = [8, 1, 32], strides = [1, 1, 1]} : vector<8x4x32xf32> to vector<8x1x32xf32>
    %436 = vector.extract_strided_slice %424 {offsets = [0, 3, 0], sizes = [8, 1, 32], strides = [1, 1, 1]} : vector<8x4x32xf32> to vector<8x1x32xf32>
    %437 = vector.extract_strided_slice %429 {offsets = [0, 3, 0], sizes = [8, 1, 32], strides = [1, 1, 1]} : vector<8x4x32xf32> to vector<8x1x32xf32>
    %438 = tpu.concatenate %430, %431, %432, %433, %434, %435, %436, %437 in 1 : vector<8x1x32xf32>, vector<8x1x32xf32>, vector<8x1x32xf32>, vector<8x1x32xf32>, vector<8x1x32xf32>, vector<8x1x32xf32>, vector<8x1x32xf32>, vector<8x1x32xf32> -> vector<8x8x32xf32>
    %cst_381 = arith.constant 0.000000e+00 : f32
    %439 = vector.broadcast %cst_381 : f32 to vector<10x10x32xf32>
    %c0_382 = arith.constant 0 : index
    %c0_383 = arith.constant 0 : index
    %c0_384 = arith.constant 0 : index
    %440 = vector.load %arg8[%c0_382, %c0_383, %c0_384] : memref<18x18x32xf32, #tpu.memory_space<vmem>>, vector<10x10x32xf32>
    tpu.vector_store %arg8[%c0_382, %c0_383, %c0_384], %439 {strides = array<i32>} : memref<18x18x32xf32, #tpu.memory_space<vmem>>, vector<10x10x32xf32>,
    %c1_385 = arith.constant 1 : index
    %c1_386 = arith.constant 1 : index
    %c0_387 = arith.constant 0 : index
    %441 = vector.load %arg8[%c1_385, %c1_386, %c0_387] : memref<18x18x32xf32, #tpu.memory_space<vmem>>, vector<8x8x32xf32>
    tpu.vector_store %arg8[%c1_385, %c1_386, %c0_387], %438 {strides = array<i32>} : memref<18x18x32xf32, #tpu.memory_space<vmem>>, vector<8x8x32xf32>,
    %c0_388 = arith.constant 0 : index
    %c0_389 = arith.constant 0 : index
    %c0_390 = arith.constant 0 : index
    %442 = vector.load %arg8[%c0_388, %c0_389, %c0_390] : memref<18x18x32xf32, #tpu.memory_space<vmem>>, vector<8x8x32xf32>
    %443 = vector.shape_cast %442 : vector<8x8x32xf32> to vector<64x32xf32>
    %444 = arith.truncf %443 : vector<64x32xf32> to vector<64x32xbf16>
    %c0_391 = arith.constant 0 : index
    %c0_392 = arith.constant 0 : index
    %445 = vector.load %arg9[%c0_391, %c0_392] : memref<256x288xbf16, #tpu.memory_space<vmem>>, vector<64x32xbf16>
    tpu.vector_store %arg9[%c0_391, %c0_392], %444 {strides = array<i32>} : memref<256x288xbf16, #tpu.memory_space<vmem>>, vector<64x32xbf16>,
    %c0_393 = arith.constant 0 : index
    %c1_394 = arith.constant 1 : index
    %c0_395 = arith.constant 0 : index
    %446 = vector.load %arg8[%c0_393, %c1_394, %c0_395] : memref<18x18x32xf32, #tpu.memory_space<vmem>>, vector<8x8x32xf32>
    %447 = vector.shape_cast %446 : vector<8x8x32xf32> to vector<64x32xf32>
    %448 = arith.truncf %447 : vector<64x32xf32> to vector<64x32xbf16>
    %c0_396 = arith.constant 0 : index
    %c32_397 = arith.constant 32 : index
    %449 = vector.load %arg9[%c0_396, %c32_397] : memref<256x288xbf16, #tpu.memory_space<vmem>>, vector<64x32xbf16>
    tpu.vector_store %arg9[%c0_396, %c32_397], %448 {strides = array<i32>} : memref<256x288xbf16, #tpu.memory_space<vmem>>, vector<64x32xbf16>,
    %c0_398 = arith.constant 0 : index
    %c2_399 = arith.constant 2 : index
    %c0_400 = arith.constant 0 : index
    %450 = vector.load %arg8[%c0_398, %c2_399, %c0_400] : memref<18x18x32xf32, #tpu.memory_space<vmem>>, vector<8x8x32xf32>
    %451 = vector.shape_cast %450 : vector<8x8x32xf32> to vector<64x32xf32>
    %452 = arith.truncf %451 : vector<64x32xf32> to vector<64x32xbf16>
    %c0_401 = arith.constant 0 : index
    %c64_402 = arith.constant 64 : index
    %453 = vector.load %arg9[%c0_401, %c64_402] : memref<256x288xbf16, #tpu.memory_space<vmem>>, vector<64x32xbf16>
    tpu.vector_store %arg9[%c0_401, %c64_402], %452 {strides = array<i32>} : memref<256x288xbf16, #tpu.memory_space<vmem>>, vector<64x32xbf16>,
    %c1_403 = arith.constant 1 : index
    %c0_404 = arith.constant 0 : index
    %c0_405 = arith.constant 0 : index
    %454 = vector.load %arg8[%c1_403, %c0_404, %c0_405] : memref<18x18x32xf32, #tpu.memory_space<vmem>>, vector<8x8x32xf32>
    %455 = vector.shape_cast %454 : vector<8x8x32xf32> to vector<64x32xf32>
    %456 = arith.truncf %455 : vector<64x32xf32> to vector<64x32xbf16>
    %c0_406 = arith.constant 0 : index
    %c96_407 = arith.constant 96 : index
    %457 = vector.load %arg9[%c0_406, %c96_407] : memref<256x288xbf16, #tpu.memory_space<vmem>>, vector<64x32xbf16>
    tpu.vector_store %arg9[%c0_406, %c96_407], %456 {strides = array<i32>} : memref<256x288xbf16, #tpu.memory_space<vmem>>, vector<64x32xbf16>,
    %c1_408 = arith.constant 1 : index
    %c1_409 = arith.constant 1 : index
    %c0_410 = arith.constant 0 : index
    %458 = vector.load %arg8[%c1_408, %c1_409, %c0_410] : memref<18x18x32xf32, #tpu.memory_space<vmem>>, vector<8x8x32xf32>
    %459 = vector.shape_cast %458 : vector<8x8x32xf32> to vector<64x32xf32>
    %460 = arith.truncf %459 : vector<64x32xf32> to vector<64x32xbf16>
    %c0_411 = arith.constant 0 : index
    %c128_412 = arith.constant 128 : index
    %461 = vector.load %arg9[%c0_411, %c128_412] : memref<256x288xbf16, #tpu.memory_space<vmem>>, vector<64x32xbf16>
    tpu.vector_store %arg9[%c0_411, %c128_412], %460 {strides = array<i32>} : memref<256x288xbf16, #tpu.memory_space<vmem>>, vector<64x32xbf16>,
    %c1_413 = arith.constant 1 : index
    %c2_414 = arith.constant 2 : index
    %c0_415 = arith.constant 0 : index
    %462 = vector.load %arg8[%c1_413, %c2_414, %c0_415] : memref<18x18x32xf32, #tpu.memory_space<vmem>>, vector<8x8x32xf32>
    %463 = vector.shape_cast %462 : vector<8x8x32xf32> to vector<64x32xf32>
    %464 = arith.truncf %463 : vector<64x32xf32> to vector<64x32xbf16>
    %c0_416 = arith.constant 0 : index
    %c160_417 = arith.constant 160 : index
    %465 = vector.load %arg9[%c0_416, %c160_417] : memref<256x288xbf16, #tpu.memory_space<vmem>>, vector<64x32xbf16>
    tpu.vector_store %arg9[%c0_416, %c160_417], %464 {strides = array<i32>} : memref<256x288xbf16, #tpu.memory_space<vmem>>, vector<64x32xbf16>,
    %c2_418 = arith.constant 2 : index
    %c0_419 = arith.constant 0 : index
    %c0_420 = arith.constant 0 : index
    %466 = vector.load %arg8[%c2_418, %c0_419, %c0_420] : memref<18x18x32xf32, #tpu.memory_space<vmem>>, vector<8x8x32xf32>
    %467 = vector.shape_cast %466 : vector<8x8x32xf32> to vector<64x32xf32>
    %468 = arith.truncf %467 : vector<64x32xf32> to vector<64x32xbf16>
    %c0_421 = arith.constant 0 : index
    %c192_422 = arith.constant 192 : index
    %469 = vector.load %arg9[%c0_421, %c192_422] : memref<256x288xbf16, #tpu.memory_space<vmem>>, vector<64x32xbf16>
    tpu.vector_store %arg9[%c0_421, %c192_422], %468 {strides = array<i32>} : memref<256x288xbf16, #tpu.memory_space<vmem>>, vector<64x32xbf16>,
    %c2_423 = arith.constant 2 : index
    %c1_424 = arith.constant 1 : index
    %c0_425 = arith.constant 0 : index
    %470 = vector.load %arg8[%c2_423, %c1_424, %c0_425] : memref<18x18x32xf32, #tpu.memory_space<vmem>>, vector<8x8x32xf32>
    %471 = vector.shape_cast %470 : vector<8x8x32xf32> to vector<64x32xf32>
    %472 = arith.truncf %471 : vector<64x32xf32> to vector<64x32xbf16>
    %c0_426 = arith.constant 0 : index
    %c224_427 = arith.constant 224 : index
    %473 = vector.load %arg9[%c0_426, %c224_427] : memref<256x288xbf16, #tpu.memory_space<vmem>>, vector<64x32xbf16>
    tpu.vector_store %arg9[%c0_426, %c224_427], %472 {strides = array<i32>} : memref<256x288xbf16, #tpu.memory_space<vmem>>, vector<64x32xbf16>,
    %c2_428 = arith.constant 2 : index
    %c2_429 = arith.constant 2 : index
    %c0_430 = arith.constant 0 : index
    %474 = vector.load %arg8[%c2_428, %c2_429, %c0_430] : memref<18x18x32xf32, #tpu.memory_space<vmem>>, vector<8x8x32xf32>
    %475 = vector.shape_cast %474 : vector<8x8x32xf32> to vector<64x32xf32>
    %476 = arith.truncf %475 : vector<64x32xf32> to vector<64x32xbf16>
    %c0_431 = arith.constant 0 : index
    %c256_432 = arith.constant 256 : index
    %477 = vector.load %arg9[%c0_431, %c256_432] : memref<256x288xbf16, #tpu.memory_space<vmem>>, vector<64x32xbf16>
    tpu.vector_store %arg9[%c0_431, %c256_432], %476 {strides = array<i32>} : memref<256x288xbf16, #tpu.memory_space<vmem>>, vector<64x32xbf16>,
    %c0_433 = arith.constant 0 : index
    %c0_434 = arith.constant 0 : index
    %478 = vector.load %arg9[%c0_433, %c0_434] : memref<256x288xbf16, #tpu.memory_space<vmem>>, vector<64x288xbf16>
    %c6 = arith.constant 6 : index
    %c0_435 = arith.constant 0 : index
    %c0_436 = arith.constant 0 : index
    %479 = vector.load %arg5[%c6, %c0_435, %c0_436] : memref<7x288x32xbf16, #tpu.memory_space<vmem>>, vector<1x288x32xbf16>
    %480 = vector.shape_cast %479 : vector<1x288x32xbf16> to vector<288x32xbf16>
    %cst_437 = arith.constant dense<0.000000e+00> : vector<64x32xf32>
    %481 = tpu.matmul %478, %480, %cst_437 {dimension_numbers = #tpu.dot_dimension_numbers<[1], [0], [0], [1], [0, 0, 1, 1], [], []>} : vector<64x288xbf16>, vector<288x32xbf16>, vector<64x32xf32> -> vector<64x32xf32>
    %c6_438 = arith.constant 6 : index
    %c0_439 = arith.constant 0 : index
    %482 = vector.load %arg6[%c6_438, %c0_439] : memref<7x32xf32, #tpu.memory_space<vmem>>, vector<1x32xf32>
    %483 = vector.broadcast %482 : vector<1x32xf32> to vector<64x32xf32>
    %484 = arith.addf %481, %483 : vector<64x32xf32>
    %cst_440 = arith.constant 0.000000e+00 : f32
    %485 = vector.broadcast %cst_440 : f32 to vector<64x32xf32>
    %486 = arith.maximumf %484, %485 : vector<64x32xf32>
    %487 = arith.addf %250, %486 : vector<64x32xf32>
    %488 = vector.shape_cast %487 : vector<64x32xf32> to vector<8x8x32xf32>
    %489 = vector.extract_strided_slice %488 {offsets = [0, 0, 0], sizes = [1, 8, 32], strides = [1, 1, 1]} : vector<8x8x32xf32> to vector<1x8x32xf32>
    %490 = vector.extract_strided_slice %488 {offsets = [0, 0, 0], sizes = [7, 8, 32], strides = [1, 1, 1]} : vector<8x8x32xf32> to vector<7x8x32xf32>
    %491 = tpu.concatenate %489, %490 in 0 : vector<1x8x32xf32>, vector<7x8x32xf32> -> vector<8x8x32xf32>
    %492 = vector.extract_strided_slice %488 {offsets = [1, 0, 0], sizes = [7, 8, 32], strides = [1, 1, 1]} : vector<8x8x32xf32> to vector<7x8x32xf32>
    %493 = vector.extract_strided_slice %488 {offsets = [7, 0, 0], sizes = [1, 8, 32], strides = [1, 1, 1]} : vector<8x8x32xf32> to vector<1x8x32xf32>
    %494 = tpu.concatenate %492, %493 in 0 : vector<7x8x32xf32>, vector<1x8x32xf32> -> vector<8x8x32xf32>
    %cst_441 = arith.constant 7.500000e-01 : f32
    %495 = vector.broadcast %cst_441 : f32 to vector<8x8x32xf32>
    %496 = arith.mulf %495, %488 : vector<8x8x32xf32>
    %cst_442 = arith.constant 2.500000e-01 : f32
    %497 = vector.broadcast %cst_442 : f32 to vector<8x8x32xf32>
    %498 = arith.mulf %497, %491 : vector<8x8x32xf32>
    %499 = arith.addf %496, %498 : vector<8x8x32xf32>
    %cst_443 = arith.constant 7.500000e-01 : f32
    %500 = vector.broadcast %cst_443 : f32 to vector<8x8x32xf32>
    %501 = arith.mulf %500, %488 : vector<8x8x32xf32>
    %cst_444 = arith.constant 2.500000e-01 : f32
    %502 = vector.broadcast %cst_444 : f32 to vector<8x8x32xf32>
    %503 = arith.mulf %502, %494 : vector<8x8x32xf32>
    %504 = arith.addf %501, %503 : vector<8x8x32xf32>
    %505 = vector.shape_cast %499 : vector<8x8x32xf32> to vector<8x1x8x32xf32>
    %506 = vector.shape_cast %504 : vector<8x8x32xf32> to vector<8x1x8x32xf32>
    %507 = tpu.concatenate %505, %506 in 1 : vector<8x1x8x32xf32>, vector<8x1x8x32xf32> -> vector<8x2x8x32xf32>
    %508 = vector.shape_cast %507 : vector<8x2x8x32xf32> to vector<16x8x32xf32>
    %509 = vector.extract_strided_slice %508 {offsets = [0, 0, 0], sizes = [16, 1, 32], strides = [1, 1, 1]} : vector<16x8x32xf32> to vector<16x1x32xf32>
    %510 = vector.extract_strided_slice %508 {offsets = [0, 0, 0], sizes = [16, 7, 32], strides = [1, 1, 1]} : vector<16x8x32xf32> to vector<16x7x32xf32>
    %511 = tpu.concatenate %509, %510 in 1 : vector<16x1x32xf32>, vector<16x7x32xf32> -> vector<16x8x32xf32>
    %512 = vector.extract_strided_slice %508 {offsets = [0, 1, 0], sizes = [16, 7, 32], strides = [1, 1, 1]} : vector<16x8x32xf32> to vector<16x7x32xf32>
    %513 = vector.extract_strided_slice %508 {offsets = [0, 7, 0], sizes = [16, 1, 32], strides = [1, 1, 1]} : vector<16x8x32xf32> to vector<16x1x32xf32>
    %514 = tpu.concatenate %512, %513 in 1 : vector<16x7x32xf32>, vector<16x1x32xf32> -> vector<16x8x32xf32>
    %cst_445 = arith.constant 7.500000e-01 : f32
    %515 = vector.broadcast %cst_445 : f32 to vector<16x8x32xf32>
    %516 = arith.mulf %515, %508 : vector<16x8x32xf32>
    %cst_446 = arith.constant 2.500000e-01 : f32
    %517 = vector.broadcast %cst_446 : f32 to vector<16x8x32xf32>
    %518 = arith.mulf %517, %511 : vector<16x8x32xf32>
    %519 = arith.addf %516, %518 : vector<16x8x32xf32>
    %cst_447 = arith.constant 7.500000e-01 : f32
    %520 = vector.broadcast %cst_447 : f32 to vector<16x8x32xf32>
    %521 = arith.mulf %520, %508 : vector<16x8x32xf32>
    %cst_448 = arith.constant 2.500000e-01 : f32
    %522 = vector.broadcast %cst_448 : f32 to vector<16x8x32xf32>
    %523 = arith.mulf %522, %514 : vector<16x8x32xf32>
    %524 = arith.addf %521, %523 : vector<16x8x32xf32>
    %525 = vector.extract_strided_slice %519 {offsets = [0, 0, 0], sizes = [16, 1, 32], strides = [1, 1, 1]} : vector<16x8x32xf32> to vector<16x1x32xf32>
    %526 = vector.extract_strided_slice %524 {offsets = [0, 0, 0], sizes = [16, 1, 32], strides = [1, 1, 1]} : vector<16x8x32xf32> to vector<16x1x32xf32>
    %527 = vector.extract_strided_slice %519 {offsets = [0, 1, 0], sizes = [16, 1, 32], strides = [1, 1, 1]} : vector<16x8x32xf32> to vector<16x1x32xf32>
    %528 = vector.extract_strided_slice %524 {offsets = [0, 1, 0], sizes = [16, 1, 32], strides = [1, 1, 1]} : vector<16x8x32xf32> to vector<16x1x32xf32>
    %529 = vector.extract_strided_slice %519 {offsets = [0, 2, 0], sizes = [16, 1, 32], strides = [1, 1, 1]} : vector<16x8x32xf32> to vector<16x1x32xf32>
    %530 = vector.extract_strided_slice %524 {offsets = [0, 2, 0], sizes = [16, 1, 32], strides = [1, 1, 1]} : vector<16x8x32xf32> to vector<16x1x32xf32>
    %531 = vector.extract_strided_slice %519 {offsets = [0, 3, 0], sizes = [16, 1, 32], strides = [1, 1, 1]} : vector<16x8x32xf32> to vector<16x1x32xf32>
    %532 = vector.extract_strided_slice %524 {offsets = [0, 3, 0], sizes = [16, 1, 32], strides = [1, 1, 1]} : vector<16x8x32xf32> to vector<16x1x32xf32>
    %533 = vector.extract_strided_slice %519 {offsets = [0, 4, 0], sizes = [16, 1, 32], strides = [1, 1, 1]} : vector<16x8x32xf32> to vector<16x1x32xf32>
    %534 = vector.extract_strided_slice %524 {offsets = [0, 4, 0], sizes = [16, 1, 32], strides = [1, 1, 1]} : vector<16x8x32xf32> to vector<16x1x32xf32>
    %535 = vector.extract_strided_slice %519 {offsets = [0, 5, 0], sizes = [16, 1, 32], strides = [1, 1, 1]} : vector<16x8x32xf32> to vector<16x1x32xf32>
    %536 = vector.extract_strided_slice %524 {offsets = [0, 5, 0], sizes = [16, 1, 32], strides = [1, 1, 1]} : vector<16x8x32xf32> to vector<16x1x32xf32>
    %537 = vector.extract_strided_slice %519 {offsets = [0, 6, 0], sizes = [16, 1, 32], strides = [1, 1, 1]} : vector<16x8x32xf32> to vector<16x1x32xf32>
    %538 = vector.extract_strided_slice %524 {offsets = [0, 6, 0], sizes = [16, 1, 32], strides = [1, 1, 1]} : vector<16x8x32xf32> to vector<16x1x32xf32>
    %539 = vector.extract_strided_slice %519 {offsets = [0, 7, 0], sizes = [16, 1, 32], strides = [1, 1, 1]} : vector<16x8x32xf32> to vector<16x1x32xf32>
    %540 = vector.extract_strided_slice %524 {offsets = [0, 7, 0], sizes = [16, 1, 32], strides = [1, 1, 1]} : vector<16x8x32xf32> to vector<16x1x32xf32>
    %541 = tpu.concatenate %525, %526, %527, %528, %529, %530, %531, %532, %533, %534, %535, %536, %537, %538, %539, %540 in 1 : vector<16x1x32xf32>, vector<16x1x32xf32>, vector<16x1x32xf32>, vector<16x1x32xf32>, vector<16x1x32xf32>, vector<16x1x32xf32>, vector<16x1x32xf32>, vector<16x1x32xf32>, vector<16x1x32xf32>, vector<16x1x32xf32>, vector<16x1x32xf32>, vector<16x1x32xf32>, vector<16x1x32xf32>, vector<16x1x32xf32>, vector<16x1x32xf32>, vector<16x1x32xf32> -> vector<16x16x32xf32>
    %542 = vector.shape_cast %541 : vector<16x16x32xf32> to vector<256x32xf32>
    %543 = arith.addf %51, %542 : vector<256x32xf32>
    %544 = tpu.transpose %543, [1, 0] : vector<256x32xf32> -> vector<32x256xf32>
    %c0_449 = arith.constant 0 : index
    %c0_450 = arith.constant 0 : index
    %c0_451 = arith.constant 0 : index
    %545 = vector.load %arg7[%c0_449, %c0_450, %c0_451] : memref<1x32x256xf32, #tpu.memory_space<vmem>>, vector<1x32x256xf32>
    %546 = vector.shape_cast %545 : vector<1x32x256xf32> to vector<32x256xf32>
    %547 = vector.shape_cast %544 : vector<32x256xf32> to vector<1x32x256xf32>
    tpu.vector_store %arg7[%c0_449, %c0_450, %c0_451], %547 {strides = array<i32>} : memref<1x32x256xf32, #tpu.memory_space<vmem>>, vector<1x32x256xf32>,
    return
  }
  func.func @transform_0(%arg0: i32) -> (i32, i32, i32) {
    %c0_i32 = arith.constant 0 : i32
    %c0_i32_0 = arith.constant 0 : i32
    %c0_i32_1 = arith.constant 0 : i32
    return %arg0, %c0_i32, %c0_i32_0 : i32, i32, i32
  }
  func.func @transform_1(%arg0: i32) -> (i32, i32, i32) {
    %c0_i32 = arith.constant 0 : i32
    %c0_i32_0 = arith.constant 0 : i32
    %c0_i32_1 = arith.constant 0 : i32
    return %arg0, %c0_i32, %c0_i32_0 : i32, i32, i32
  }
  func.func @transform_2(%arg0: i32) -> (i32, i32, i32) {
    %c0_i32 = arith.constant 0 : i32
    %c0_i32_0 = arith.constant 0 : i32
    %c0_i32_1 = arith.constant 0 : i32
    return %arg0, %c0_i32, %c0_i32_0 : i32, i32, i32
  }
  func.func @transform_3(%arg0: i32) -> (i32, i32, i32) {
    %c0_i32 = arith.constant 0 : i32
    %c0_i32_0 = arith.constant 0 : i32
    %c0_i32_1 = arith.constant 0 : i32
    return %arg0, %c0_i32, %c0_i32_0 : i32, i32, i32
  }
  func.func @transform_4(%arg0: i32) -> (i32, i32, i32) {
    %c0_i32 = arith.constant 0 : i32
    %c0_i32_0 = arith.constant 0 : i32
    %c0_i32_1 = arith.constant 0 : i32
    %c0_i32_2 = arith.constant 0 : i32
    return %c0_i32, %c0_i32_0, %c0_i32_1 : i32, i32, i32
  }
  func.func @transform_5(%arg0: i32) -> (i32, i32) {
    %c0_i32 = arith.constant 0 : i32
    %c0_i32_0 = arith.constant 0 : i32
    %c0_i32_1 = arith.constant 0 : i32
    return %c0_i32, %c0_i32_0 : i32, i32
  }
  func.func @transform_6(%arg0: i32) -> (i32, i32, i32) {
    %c0_i32 = arith.constant 0 : i32
    %c0_i32_0 = arith.constant 0 : i32
    %c0_i32_1 = arith.constant 0 : i32
    return %arg0, %c0_i32, %c0_i32_0 : i32, i32, i32
  }
}

</mosaic_0001>

<bundles_post_ra>
// kernel: tpu_custom_call.1
= control target key start
LH: loop header
LB: loop body
LE: loop exit
PB: predicated region body
PF: predicated region fallthrough
CT: control target
= control target key end

     0   :  { %11 = vsyncpa [#allocation5], 0  ;;  %s13515_s0 = inlined_call_operand.vmem [shape: f32[2,8,256], index: 0, kind: input, shape index: {}]   ;;  %s13516_s1 = inlined_call_operand.vmem [shape: f32[2,8,64], index: 1, kind: input, shape index: {}]   ;;  %s13517_s2 = inlined_call_operand.vmem [shape: f32[2,8,16], index: 2, kind: input, shape index: {}]   ;;  %s13518_s3 = inlined_call_operand.vmem [shape: f32[2,8,4], index: 3, kind: input, shape index: {}]   ;;  %s13519_s4 = inlined_call_operand.vmem [shape: bf16[7,288,32], index: 4, kind: input, shape index: {}]   ;;  %s13520_s5 = inlined_call_operand.vmem [shape: f32[7,32], index: 5, kind: input, shape index: {}]   ;;  %s13521_s6 = inlined_call_operand.hbm [shape: f32[2,32,256], index: 6, kind: output, shape index: {}]  }
   0x1   :  { %13 = vsyncpa [#allocation5 + $0x1], 0  ;;  %s8876_s21 = smov 0   ;;  %s8878_s22 = smov 0  }
   0x2   :  { %s8880_s23 = smov 0   ;;  %s8882_s24 = smov 0  }
   0x3 LB: > { %s8897_s25 = sadd.s32 4294967295, %s8828_s24   ;;  %s7929_s26 = sadd.s32 4294967294, %s8828_s24   ;;  %s8828_s24 = sphi %s8882_s24, %s14060_s24   ;;  %s8824_s23 = sphi %s8880_s23, %s14059_s23   ;;  %s8820_s22 = sphi %s8878_s22, %s14058_s22   ;;  %s8816_s21 = sphi %s8876_s21, %s14057_s21  }
   0x4   : > { %s8901_s27 = sadd.s32 1, %s8828_s24   ;;  %s172_s28 = sadd.s32 1, %s8824_s23 }
   0x5   : > { %s169_s29 = ssub.s32 %s8828_s24, %s8901_s27  ;;  %p182_p0 = scmp.ne.s32.totalorder %s8824_s23, %s8820_s22 }
   0x6   : > { %p170_p1 = scmp.eq.s32.totalorder %s169_s29, 0  ;;  %p183_p2 = scmp.eq.s32.totalorder %s8897_s25, 1 }
   0x7   : > { %p188_p3 = scmp.ne.s32.totalorder %s8820_s22, %s8816_s21  ;;  %p189_p4 = scmp.eq.s32.totalorder %s7929_s26, 1 }
   0x8   : > { %s8912_s30 = scalar_select %p170_p1, %s8824_s23, %s172_s28  }
   0x9   : > { %p8914_p5 = por %p183_p2, %p182_p0  ;;  %p8918_p6 = por %p189_p4, %p188_p3 }
   0xa   : > { %p7932_p7 = scmp.ge.s32.totalorder %s8828_s24, 1  ;;  %p242_p8 = scmp.lt.s32.totalorder %s8828_s24, 3 }
   0xc   : > { %p243_p9 = pnand %p7932_p7, %p242_p8 }
   0xe   : > { %246 = sbr.rel (%p243_p9) target bundleno = 2723 (0xaa3), region = 44 }
  0x13   : > { %p284_p10 = scmp.lt.s32.totalorder %s8897_s25, 1  ;;  %vm368_vm0 = vcmask 64512   ;;  %v13523_v3 = vmov 0.0   ;;  %vm371_vm1 = vcmask 58368   ;;  %s8831_s26 = smov 8   ;;  %vm521_vm2 = vcmask 60416  }
  0x14   : > { %373 = vst.msk [vmem:[#allocation2 + $0x18] sm:$0xff] %vm368_vm0, %v13523_v3  ;;  %vm13559_vm3 = vcmask 126016   ;;  %vm3370_vm4 = vcmask 62464   ;;  %s8832_s28 = smov 16   ;;  %s8833_s29 = smov 24   ;;  %vm13551_vm5 = vcmask 191616  }
  0x15   : > { %s285_s9 = scalar_select %p284_p10, %s8897_s25, 1  ;;  %374 = vst.msk [vmem:[#allocation2 + $0x20] sm:$0xff] %vm368_vm0, %v13523_v3  ;;  %vm4068_vm6 = vcmask 254976   ;;  %vm13562_vm7 = vcmask 257216   ;;  %vm13561_vm8 = vcmask 322816   ;;  %vm1646_vm9 = vcmask 388416  }
  0x16   : > { %369 = vst.msk [vmem:[#allocation2] sm:$0xff] %vm368_vm0, %v13523_v3  ;;  %s8836_s12 = smov 48   ;;  %s8837_s13 = smov 56   ;;  %vm1872_vm10 = vcmask 454016   ;;  %vm13560_vm11 = vcmask 519616   ;;  %vm13550_vm12 = vcmask 585216  }
  0x17   : > { %s8582_s10 = sshll.u32 %s285_s9, 4  ;;  %s8926_s11 = sshll.u32 %s285_s9, 3  ;;  %370 = vst.msk [vmem:[#allocation2 + $0x8] sm:$0xff] %vm368_vm0, %v13523_v3  ;;  %vm2554_vm13 = vcmask 1043456   ;;  %vm4066_vm14 = vcmask 261120   ;;  %vm13552_vm15 = vcmask 588800  }
  0x18   : > { %s8931_s14 = scalar_lea.vmem %s13515_s0, %s8582_s10  ;;  %s292_s17 = scalar_lea.vmem %s13516_s1, %s8926_s11  ;;  %376 = vst.msk [vmem:[#allocation2 + $0x30] sm:$0xff] %vm368_vm0, %v13523_v3 }
  0x19   : > { %v302_v0 = vld [vmem:[%s8931_s14] sm:$0xff]  ;;  %s296_s20 = scalar_lea.vmem %s13517_s2, %s8926_s11  ;;  %377 = vst.msk [vmem:[#allocation2 + $0x38] sm:$0xff] %vm368_vm0, %v13523_v3  ;;  %v303_v4 = vld [vmem:[%s8931_s14 + $0x8] sm:$0xff]  ;;  %s8834_s9 = smov 32  }
  0x1a   : > { %v2679_v1 = vld [vmem:[%s292_s17] sm:$0xff]  ;;  %304 = vxpose.xlu0.b32.start.end [1/1] (short) %v302_v0, 128  ;;  %379 = vst.msk [vmem:[#allocation2 + $0x48] sm:$0xff] %vm368_vm0, %v13523_v3  ;;  %s8835_s10 = smov 40   ;;  %s8838_s14 = smov 64  }
  0x1b   : > { %2680 = vxpose.xlu1.b32.start.end [1/1] (short) (narrow) %v2679_v1, 64  ;;  %v3331_v2 = vld [vmem:[%s296_s20] sm:$0xff]  ;;  %380 = vst.msk [vmem:[#allocation2 + $0x50] sm:$0xff] %vm368_vm0, %v13523_v3  ;;  %s300_s15 = scalar_lea.vmem %s13518_s3, %s8926_s11  ;;  %s8839_s20 = smov 96  }
  0x1c   : > { %3332 = vxpose.xlu2.b32.start.end [1/1] (short) (narrow) %v3331_v2, 16  ;;  %382 = vst.msk [vmem:[#allocation2 + $0x60] sm:$0xff] %vm368_vm0, %v13523_v3  ;;  %s8701_s17 = sshll.u32 %s8897_s25, 6  ;;  %s8786_s19 = scalar_lea.hbm %s13521_s6, 128 }
  0x1d   : > { %383 = vst.msk [vmem:[#allocation2 + $0x68] sm:$0xff] %vm368_vm0, %v13523_v3 }
  0x1e   : > { %385 = vst.msk [vmem:[#allocation2 + $0x78] sm:$0xff] %vm368_vm0, %v13523_v3  ;;  %v554_v5 = vld [vmem:[#allocation2 + $0x1] sm:$0xff] }
  0x1f   : > { %386 = vst.msk [vmem:[#allocation2 + $0x80] sm:$0xff] %vm368_vm0, %v13523_v3  ;;  %v586_v6 = vpack.c.bf16 %v554_v5, %v554_v5 }
  0x20   : > { %388 = vst.msk [vmem:[#allocation2 + $0x90] sm:$0xff] %vm368_vm0, %v13523_v3 }
  0x21   : > { %389 = vst.msk [vmem:[#allocation2 + $0x98] sm:$0xff] %vm368_vm0, %v13523_v3 }
  0x22   : > { %391 = vst.msk [vmem:[#allocation2 + $0xa8] sm:$0xff] %vm368_vm0, %v13523_v3 }
  0x23   : > { %392 = vst.msk [vmem:[#allocation2 + $0xb0] sm:$0xff] %vm368_vm0, %v13523_v3 }
  0x24   : > { %394 = vst.msk [vmem:[#allocation2 + $0xc0] sm:$0xff] %vm368_vm0, %v13523_v3 }
  0x25   : > { %395 = vst.msk [vmem:[#allocation2 + $0xc8] sm:$0xff] %vm368_vm0, %v13523_v3 }
  0x26   : > { %397 = vst.msk [vmem:[#allocation2 + $0xd8] sm:$0xff] %vm368_vm0, %v13523_v3 }
  0x27   : > { %398 = vst.msk [vmem:[#allocation2 + $0xe0] sm:$0xff] %vm368_vm0, %v13523_v3 }
  0x28   : > { %400 = vst.msk [vmem:[#allocation2 + $0xf0] sm:$0xff] %vm368_vm0, %v13523_v3 }
  0x29   : > { %401 = vst.msk [vmem:[#allocation2 + $0xf8] sm:$0xff] %vm368_vm0, %v13523_v3 }
  0x2a   : > { %403 = vst.msk [vmem:[#allocation2 + $0x108] sm:$0xff] %vm368_vm0, %v13523_v3 }
  0x2b   : > { %404 = vst.msk [vmem:[#allocation2 + $0x110] sm:$0xff] %vm368_vm0, %v13523_v3 }
  0x2c   : > { %406 = vst.msk [vmem:[#allocation2 + $0x120] sm:$0xff] %vm368_vm0, %v13523_v3 }
  0x2d   : > { %407 = vst.msk [vmem:[#allocation2 + $0x128] sm:$0xff] %vm368_vm0, %v13523_v3 }
  0x2e   : > { %409 = vst.msk [vmem:[#allocation2 + $0x138] sm:$0xff] %vm368_vm0, %v13523_v3 }
  0x2f   : > { %410 = vst.msk [vmem:[#allocation2 + $0x140] sm:$0xff] %vm368_vm0, %v13523_v3 }
  0x30   : > { %412 = vst.msk [vmem:[#allocation2 + $0x150] sm:$0xff] %vm368_vm0, %v13523_v3 }
  0x31   : > { %413 = vst.msk [vmem:[#allocation2 + $0x158] sm:$0xff] %vm368_vm0, %v13523_v3 }
  0x32   : > { %415 = vst.msk [vmem:[#allocation2 + $0x168] sm:$0xff] %vm368_vm0, %v13523_v3 }
  0x33   : > { %416 = vst.msk [vmem:[#allocation2 + $0x170] sm:$0xff] %vm368_vm0, %v13523_v3 }
  0x34   : > { %418 = vst.msk [vmem:[#allocation2 + $0x180] sm:$0xff] %vm368_vm0, %v13523_v3 }
  0x35   : > { %419 = vst.msk [vmem:[#allocation2 + $0x188] sm:$0xff] %vm368_vm0, %v13523_v3 }
  0x36   : > { %421 = vst.msk [vmem:[#allocation2 + $0x198] sm:$0xff] %vm368_vm0, %v13523_v3 }
  0x37   : > { %422 = vst.msk [vmem:[#allocation2 + $0x1a0] sm:$0xff] %vm368_vm0, %v13523_v3 }
  0x38   : > { %375 = vst.msk [vmem:[#allocation2 + $0x28] sm:$0x3] %vm371_vm1, %v13523_v3 }
  0x39   : > { %372 = vst.msk [vmem:[#allocation2 + $0x10] sm:$0x3] %vm371_vm1, %v13523_v3 }
  0x3a   : > { %378 = vst.msk [vmem:[#allocation2 + $0x40] sm:$0x3] %vm371_vm1, %v13523_v3 }
  0x3b   : > { %381 = vst.msk [vmem:[#allocation2 + $0x58] sm:$0x3] %vm371_vm1, %v13523_v3 }
  0x3c   : > { %384 = vst.msk [vmem:[#allocation2 + $0x70] sm:$0x3] %vm371_vm1, %v13523_v3 }
  0x3d   : > { %387 = vst.msk [vmem:[#allocation2 + $0x88] sm:$0x3] %vm371_vm1, %v13523_v3 }
  0x3e   : > { %390 = vst.msk [vmem:[#allocation2 + $0xa0] sm:$0x3] %vm371_vm1, %v13523_v3 }
  0x3f   : > { %393 = vst.msk [vmem:[#allocation2 + $0xb8] sm:$0x3] %vm371_vm1, %v13523_v3 }
  0x40   : > { %396 = vst.msk [vmem:[#allocation2 + $0xd0] sm:$0x3] %vm371_vm1, %v13523_v3  ;;  %v555_v7 = vld [vmem:[#allocation2 + $0x9] sm:$0xff] }
  0x41   : > { %399 = vst.msk [vmem:[#allocation2 + $0xe8] sm:$0x3] %vm371_vm1, %v13523_v3  ;;  %v587_v8 = vpack.c.bf16 %v555_v7, %v555_v7 }
  0x42   : > { %402 = vst.msk [vmem:[#allocation2 + $0x100] sm:$0x3] %vm371_vm1, %v13523_v3 }
  0x43   : > { %405 = vst.msk [vmem:[#allocation2 + $0x118] sm:$0x3] %vm371_vm1, %v13523_v3 }
  0x44   : > { %408 = vst.msk [vmem:[#allocation2 + $0x130] sm:$0x3] %vm371_vm1, %v13523_v3 }
  0x45   : > { %411 = vst.msk [vmem:[#allocation2 + $0x148] sm:$0x3] %vm371_vm1, %v13523_v3 }
  0x46   : > { %414 = vst.msk [vmem:[#allocation2 + $0x160] sm:$0x3] %vm371_vm1, %v13523_v3 }
  0x47   : > { %417 = vst.msk [vmem:[#allocation2 + $0x178] sm:$0x3] %vm371_vm1, %v13523_v3 }
  0x48   : > { %420 = vst.msk [vmem:[#allocation2 + $0x190] sm:$0x3] %vm371_vm1, %v13523_v3 }
  0x49   : > { %423 = vst.msk [vmem:[#allocation2 + $0x1a8] sm:$0x3] %vm371_vm1, %v13523_v3 }
  0x9a   : > { %336 = vxpose.xlu0.b32.start.end [1/1] (short) %v303_v4, 128 }
  0xad   : > { %650 = vrot.lane.b32.xlu1 %v586_v6, %s8831_s26 }
  0xb5   : > { %652 = vrot.lane.b32.xlu1 %v587_v8, %s8831_s26 }
  0xbe   : > { %v320_v9 = vpop.trf.xlu0 }
  0xbf   : > { %425 = vst.msk [vmem:[#allocation2 + $0x19] sm:$0xff] %vm368_vm0, %v320_v9  ;;  %v2696_v26 = vpop.trf.xlu1 }
  0xc6   : > { %v321_v10 = vpop.trf.xlu0  ;;  %v556_v11 = vld [vmem:[#allocation2 + $0x19] sm:$0xff] }
  0xc7   : > { %v459_v12 = vld [vmem:[#allocation2 + $0x18] sm:$0xff]  ;;  %426 = vst.msk [vmem:[#allocation2 + $0x21] sm:$0xff] %vm368_vm0, %v321_v10  ;;  %v9055_v13 = vpack.c.bf16 %v556_v11, %v556_v11  ;;  %v2697_v33 = vpop.trf.xlu1  ;;  %v9178_v11 = vpop.trf.xlu2 }
  0xc8   : > { %v9057_v14 = vpack.c.bf16 %v459_v12, %v459_v12 }
  0xc9   : > { %654 = vrot.lane.b32.xlu2 %v9055_v13, %s8831_s26 }
  0xca   : > { %524 = vst.msk [vmem:[#allocation3 + $0x18] sm:$0xf] %vm521_vm2, %v9057_v14 }
  0xce   : > { %v1230_v15 = vld [vmem:[#allocation2 + $0x21] sm:$0xff]  ;;  %v322_v16 = vpop.trf.xlu0 }
  0xcf   : > { %v460_v17 = vld [vmem:[#allocation2 + $0x20] sm:$0xff]  ;;  %427 = vst.msk [vmem:[#allocation2 + $0x31] sm:$0xff] %vm368_vm0, %v322_v16  ;;  %v9066_v19 = vpack.c.bf16 %v1230_v15, %v1230_v15  ;;  %v2698_v39 = vpop.trf.xlu1 }
  0xd0   : > { %v9063_v18 = vld [vmem:[#allocation2 + $0x1a] sm:$0xff]  ;;  %v9068_v20 = vpack.c.bf16 %v460_v17, %v460_v17 }
  0xd1   : > { %13571 = vst [vmem:[#allocation7_spill] sm:$0xff] %v9066_v19  ;;  %656 = vrot.lane.b32.xlu2 %v9066_v19, %s8831_s26 }
  0xd2   : > { %2715 = vst.msk [vmem:[#allocation2 + $0x20] sm:$0x3] %vm371_vm1, %v13523_v3 }
  0xd3   : > { %525 = vst.msk [vmem:[#allocation3 + $0x24] sm:$0xf] %vm521_vm2, %v9068_v20 }
  0xd4   : > { %2714 = vst.msk [vmem:[#allocation2 + $0x18] sm:$0xff] %vm368_vm0, %v13523_v3 }
  0xd5   : > { %2732 = vst.msk [vmem:[#allocation2 + $0x19] sm:$0xff] %vm368_vm0, %v2696_v26 }
  0xd6   : > { %v1231_v21 = vld [vmem:[#allocation2 + $0x31] sm:$0xff]  ;;  %v323_v22 = vpop.trf.xlu0 }
  0xd7   : > { %v461_v23 = vld [vmem:[#allocation2 + $0x30] sm:$0xff]  ;;  %428 = vst.msk [vmem:[#allocation2 + $0x39] sm:$0xff] %vm368_vm0, %v323_v22  ;;  %v9079_v24 = vpack.c.bf16 %v1231_v21, %v1231_v21  ;;  %v2699_v46 = vpop.trf.xlu1 }
  0xd8   : > { %v9081_v25 = vpack.c.bf16 %v461_v23, %v461_v23 }
  0xd9   : > { %658 = vrot.lane.b32.xlu1 %v9079_v24, %s8831_s26 }
  0xda   : > { %526 = vst.msk [vmem:[#allocation3 + $0x30] sm:$0xf] %vm521_vm2, %v9081_v25 }
  0xde   : > { %v1681_v27 = vld [vmem:[#allocation2 + $0x38] sm:$0xff]  ;;  %v324_v29 = vpop.trf.xlu0 }
  0xdf   : > { %v1906_v28 = vld [vmem:[#allocation2 + $0x39] sm:$0xff]  ;;  %429 = vst.msk [vmem:[#allocation2 + $0x49] sm:$0xff] %vm368_vm0, %v324_v29  ;;  %v9093_v32 = vpack.c.bf16 %v1681_v27, %v1681_v27  ;;  %v2700_v52 = vpop.trf.xlu1  ;;  %v9206_v29 = vpop.trf.xlu2 }
  0xe0   : > { %v9088_v30 = vld [vmem:[#allocation2 + $0x32] sm:$0xff]  ;;  %v9091_v31 = vpack.c.bf16 %v1906_v28, %v1906_v28 }
  0xe1   : > { %2716 = vst.msk [vmem:[#allocation2 + $0x30] sm:$0xff] %vm368_vm0, %v13523_v3 }
  0xe2   : > { %660 = vrot.lane.b32.xlu2 %v9091_v31, %s8831_s26  ;;  %527 = vst.msk [vmem:[#allocation3 + $0x3c] sm:$0xf] %vm521_vm2, %v9093_v32 }
  0xe3   : > { %2717 = vst.msk [vmem:[#allocation2 + $0x38] sm:$0x3] %vm371_vm1, %v13523_v3 }
  0xe4   : > { %2733 = vst.msk [vmem:[#allocation2 + $0x31] sm:$0xff] %vm368_vm0, %v2697_v33  ;;  %v457_v33 = vld [vmem:[#allocation2] sm:$0xff] }
  0xe6   : > { %v1682_v34 = vld [vmem:[#allocation2 + $0x48] sm:$0xff]  ;;  %v325_v36 = vpop.trf.xlu0 }
  0xe7   : > { %v1907_v35 = vld [vmem:[#allocation2 + $0x49] sm:$0xff]  ;;  %430 = vst.msk [vmem:[#allocation2 + $0x51] sm:$0xff] %vm368_vm0, %v325_v36  ;;  %v9107_v38 = vpack.c.bf16 %v1682_v34, %v1682_v34  ;;  %v9159_v62 = vpop.trf.xlu1 }
  0xe8   : > { %v9105_v37 = vpack.c.bf16 %v1907_v35, %v1907_v35  ;;  %v9210_v34 = vld [vmem:[#allocation2 + $0x2] sm:$0xff] }
  0xe9   : > { %528 = vst.msk [vmem:[#allocation3 + $0x48] sm:$0xf] %vm521_vm2, %v9107_v38 }
  0xea   : > { %13572 = vst [vmem:[#allocation8_spill] sm:$0xff] %v9105_v37  ;;  %662 = vrot.lane.b32.xlu1 %v9105_v37, %s8831_s26 }
  0xeb   : > { %2712 = vst.msk [vmem:[#allocation2] sm:$0xff] %vm368_vm0, %v13523_v3 }
  0xee   : > { %v1683_v40 = vld [vmem:[#allocation2 + $0x50] sm:$0xff]  ;;  %v326_v42 = vpop.trf.xlu0 }
  0xef   : > { %v1908_v41 = vld [vmem:[#allocation2 + $0x51] sm:$0xff]  ;;  %431 = vst.msk [vmem:[#allocation2 + $0x61] sm:$0xff] %vm368_vm0, %v326_v42  ;;  %v9118_v45 = vpack.c.bf16 %v1683_v40, %v1683_v40  ;;  %v9171_v5 = vpop.trf.xlu1 }
  0xf0   : > { %v9113_v43 = vld [vmem:[#allocation2 + $0x4a] sm:$0xff]  ;;  %v9116_v44 = vpack.c.bf16 %v1908_v41, %v1908_v41 }
  0xf1   : > { %2718 = vst.msk [vmem:[#allocation2 + $0x48] sm:$0xff] %vm368_vm0, %v13523_v3 }
  0xf2   : > { %13573 = vst [vmem:[#allocation9_spill] sm:$0xff] %v9116_v44  ;;  %664 = vrot.lane.b32.xlu2 %v9116_v44, %s8831_s26 }
  0xf3   : > { %529 = vst.msk [vmem:[#allocation3 + $0x54] sm:$0xf] %vm521_vm2, %v9118_v45 }
  0xf4   : > { %2719 = vst.msk [vmem:[#allocation2 + $0x50] sm:$0x3] %vm371_vm1, %v13523_v3 }
  0xf5   : > { %2734 = vst.msk [vmem:[#allocation2 + $0x49] sm:$0xff] %vm368_vm0, %v2698_v39  ;;  %v489_v39 = vpack.c.bf16 %v457_v33, %v457_v33 }
  0xf6   : > { %v1684_v47 = vld [vmem:[#allocation2 + $0x60] sm:$0xff]  ;;  %v327_v49 = vpop.trf.xlu0 }
  0xf7   : > { %v1909_v48 = vld [vmem:[#allocation2 + $0x61] sm:$0xff]  ;;  %432 = vst.msk [vmem:[#allocation2 + $0x69] sm:$0xff] %vm368_vm0, %v327_v49  ;;  %v9132_v51 = vpack.c.bf16 %v1684_v47, %v1684_v47  ;;  %v9197_v21 = vpop.trf.xlu1 }
  0xf8   : > { %v9130_v50 = vpack.c.bf16 %v1909_v48, %v1909_v48  ;;  %v9145_v59 = vld [vmem:[#allocation2 + $0x60] sm:$0xff]  ;;  %522 = vst.msk [vmem:[#allocation3] sm:$0xf] %vm521_vm2, %v489_v39 }
  0xf9   : > { %13574 = vst [vmem:[#allocation10_spill] sm:$0xff] %v9132_v51  ;;  %v9263_v39 = vld [vmem:[#allocation2 + $0x19] sm:$0xff] }
  0xfa   : > { %666 = vrot.lane.b32.xlu1 %v9130_v50, %s8831_s26  ;;  %530 = vst.msk [vmem:[#allocation3 + $0x60] sm:$0xf] %vm521_vm2, %v9132_v51 }
  0xfe   : > { %v1685_v53 = vld [vmem:[#allocation2 + $0x68] sm:$0xff]  ;;  %v328_v55 = vpop.trf.xlu0 }
  0xff   : > { %v1910_v54 = vld [vmem:[#allocation2 + $0x69] sm:$0xff]  ;;  %433 = vst.msk [vmem:[#allocation2 + $0x79] sm:$0xff] %vm368_vm0, %v328_v55  ;;  %v9143_v58 = vpack.c.bf16 %v1685_v53, %v1685_v53 }
 0x100   : > { %v9138_v56 = vld [vmem:[#allocation2 + $0x62] sm:$0xff]  ;;  %v9141_v57 = vpack.c.bf16 %v1910_v54, %v1910_v54 }
 0x101   : > { %13576 = vst [vmem:[#allocation12_spill] sm:$0xff] %v9143_v58  ;;  %v9153_v60 = vld [vmem:[#allocation2 + $0x68] sm:$0xff] }
 0x102   : > { %13575 = vst [vmem:[#allocation11_spill] sm:$0xff] %v9141_v57  ;;  %668 = vrot.lane.b32.xlu2 %v9141_v57, %s8831_s26  ;;  %v9155_v61 = vld [vmem:[#allocation2 + $0x69] sm:$0xff] }
 0x103   : > { %2720 = vst.msk [vmem:[#allocation2 + $0x60] sm:$0xff] %vm368_vm0, %v13523_v3 }
 0x104   : > { %531 = vst.msk [vmem:[#allocation3 + $0x6c] sm:$0xf] %vm521_vm2, %v9143_v58 }
 0x105   : > { %13577 = vst [vmem:[#allocation13_spill] sm:$0xff] %v9155_v61 }
 0x106   : > { %2721 = vst.msk [vmem:[#allocation2 + $0x68] sm:$0x3] %vm371_vm1, %v13523_v3  ;;  %v1686_v63 = vld [vmem:[#allocation2 + $0x78] sm:$0xff]  ;;  %v329_v1 = vpop.trf.xlu0 }
 0x107   : > { %2735 = vst.msk [vmem:[#allocation2 + $0x61] sm:$0xff] %vm368_vm0, %v2699_v46  ;;  %v1911_v0 = vld [vmem:[#allocation2 + $0x79] sm:$0xff]  ;;  %v9165_v4 = vpack.c.bf16 %v1686_v63, %v1686_v63  ;;  %v458_v46 = vld [vmem:[#allocation2 + $0x8] sm:$0xff] }
 0x108   : > { %434 = vst.msk [vmem:[#allocation2 + $0x81] sm:$0xff] %vm368_vm0, %v329_v1  ;;  %v9163_v2 = vpack.c.bf16 %v1911_v0, %v1911_v0  ;;  %v9182_v15 = vld [vmem:[#allocation2 + $0x78] sm:$0xff] }
 0x109   : > { %13579 = vst [vmem:[#allocation15_spill] sm:$0xff] %v9165_v4  ;;  %v9184_v16 = vld [vmem:[#allocation2 + $0x79] sm:$0xff] }
 0x10a   : > { %13578 = vst [vmem:[#allocation14_spill] sm:$0xff] %v9163_v2  ;;  %670 = vrot.lane.b32.xlu1 %v9163_v2, %s8831_s26 }
 0x10b   : > { %532 = vst.msk [vmem:[#allocation3 + $0x78] sm:$0xf] %vm521_vm2, %v9165_v4 }
 0x10c   : > { %13582 = vst [vmem:[#allocation18_spill] sm:$0xff] %v9184_v16 }
 0x10d   : > { %2713 = vst.msk [vmem:[#allocation2 + $0x8] sm:$0x3] %vm371_vm1, %v13523_v3 }
 0x10e   : > { %v330_v8 = vpop.trf.xlu0 }
 0x10f   : > { %v1687_v6 = vld [vmem:[#allocation2 + $0x80] sm:$0xff]  ;;  %435 = vst.msk [vmem:[#allocation2 + $0x91] sm:$0xff] %vm368_vm0, %v330_v8 }
 0x110   : > { %v1912_v7 = vld [vmem:[#allocation2 + $0x81] sm:$0xff]  ;;  %v9180_v12 = vpack.c.bf16 %v1687_v6, %v1687_v6  ;;  %v490_v6 = vpack.c.bf16 %v458_v46, %v458_v46 }
 0x111   : > { %v9173_v9 = vld [vmem:[#allocation2 + $0x7a] sm:$0xff]  ;;  %v9176_v10 = vpack.c.bf16 %v1912_v7, %v1912_v7 }
 0x112   : > { %13581 = vst [vmem:[#allocation17_spill] sm:$0xff] %v9180_v12  ;;  %v9192_v17 = vld [vmem:[#allocation2 + $0x80] sm:$0xff] }
 0x113   : > { %13580 = vst [vmem:[#allocation16_spill] sm:$0xff] %v9176_v10  ;;  %672 = vrot.lane.b32.xlu2 %v9176_v10, %s8831_s26 }
 0x114   : > { %2722 = vst.msk [vmem:[#allocation2 + $0x78] sm:$0xff] %vm368_vm0, %v13523_v3  ;;  %v9255_v33 = vld [vmem:[#allocation2 + $0x1] sm:$0xff] }
 0x115   : > { %533 = vst.msk [vmem:[#allocation3 + $0x84] sm:$0xf] %vm521_vm2, %v9180_v12 }
 0x116   : > { %2723 = vst.msk [vmem:[#allocation2 + $0x80] sm:$0x3] %vm371_vm1, %v13523_v3  ;;  %v1913_v22 = vld [vmem:[#allocation2 + $0x91] sm:$0xff]  ;;  %v331_v23 = vpop.trf.xlu0 }
 0x117   : > { %2736 = vst.msk [vmem:[#allocation2 + $0x79] sm:$0xff] %vm368_vm0, %v2700_v52  ;;  %v469_v26 = vld [vmem:[#allocation2 + $0x90] sm:$0xff]  ;;  %v9200_v27 = vpack.c.bf16 %v1913_v22, %v1913_v22 }
 0x118   : > { %436 = vst.msk [vmem:[#allocation2 + $0x99] sm:$0xff] %vm368_vm0, %v331_v23  ;;  %v9202_v28 = vpack.c.bf16 %v469_v26, %v469_v26  ;;  %v9227_v49 = vld [vmem:[#allocation2 + $0x91] sm:$0xff]  ;;  %v9250_v26 = vld [vmem:[#allocation2] sm:$0xff] }
 0x119   : > { %13583 = vst [vmem:[#allocation19_spill] sm:$0xff] %v9200_v27  ;;  %674 = vrot.lane.b32.xlu1 %v9200_v27, %s8831_s26  ;;  %v9232_v53 = vld [vmem:[#allocation2 + $0x90] sm:$0xff] }
 0x11a   : > { %534 = vst.msk [vmem:[#allocation3 + $0x90] sm:$0xf] %vm521_vm2, %v9202_v28  ;;  %v9284_v27 = vld [vmem:[#allocation2 + $0x31] sm:$0xff] }
 0x11b   : > { %13585 = vst [vmem:[#allocation21_spill] sm:$0xff] %v9227_v49 }
 0x11c   : > { %13586 = vst [vmem:[#allocation22_spill] sm:$0xff] %v9232_v53 }
 0x11d   : > { %523 = vst.msk [vmem:[#allocation3 + $0xc] sm:$0xf] %vm521_vm2, %v490_v6 }
 0x11e   : > { %v332_v36 = vpop.trf.xlu0  ;;  %13591 = vst [vmem:[#allocation27_spill] sm:$0xff] %v9250_v26 }
 0x11f   : > { %v1914_v35 = vld [vmem:[#allocation2 + $0x99] sm:$0xff]  ;;  %v651_v40 = vpop.permute.xlu1 %650  ;;  %437 = vst.msk [vmem:[#allocation2 + $0xa9] sm:$0xff] %vm368_vm0, %v332_v36 }
 0x120   : > { %v470_v41 = vld [vmem:[#allocation2 + $0x98] sm:$0xff]  ;;  %v9215_v42 = vpack.c.bf16 %v1914_v35, %v1914_v35  ;;  %747 = vst.msk [vmem:[#allocation3] sm:$0xf] %vm13559_vm3, %v651_v40  ;;  %v9257_v35 = vld [vmem:[#allocation2 + $0x2] sm:$0xff] }
 0x121   : > { %v9217_v47 = vpack.c.bf16 %v470_v41, %v470_v41  ;;  %v9229_v52 = vld [vmem:[#allocation2 + $0x92] sm:$0xff]  ;;  %v9265_v40 = vld [vmem:[#allocation2 + $0x1a] sm:$0xff]  ;;  %3371 = vst.msk [vmem:[#allocation2] sm:$0x3f] %vm3370_vm4, %v13523_v3 }
 0x122   : > { %13584 = vst [vmem:[#allocation20_spill] sm:$0xff] %v9215_v42  ;;  %676 = vrot.lane.b32.xlu2 %v9215_v42, %s8831_s26  ;;  %v9234_v54 = vld [vmem:[#allocation2 + $0x92] sm:$0xff] }
 0x123   : > { %v655_v48 = vpop.permute.xlu2 %654  ;;  %535 = vst.msk [vmem:[#allocation3 + $0x9c] sm:$0xf] %vm521_vm2, %v9217_v47  ;;  %v9236_v55 = vld [vmem:[#allocation2 + $0x99] sm:$0xff] }
 0x124   : > { %749 = vst.msk [vmem:[#allocation3 + $0x18] sm:$0xf] %vm13559_vm3, %v655_v48  ;;  %v9238_v63 = vld [vmem:[#allocation2 + $0x98] sm:$0xff] }
 0x125   : > { %13587 = vst [vmem:[#allocation23_spill] sm:$0xff] %v9234_v54  ;;  %v9261_v36 = vld [vmem:[#allocation2 + $0x18] sm:$0xff] }
 0x126   : > { %13588 = vst [vmem:[#allocation24_spill] sm:$0xff] %v9236_v55  ;;  %v1915_v0 = vld [vmem:[#allocation2 + $0xa9] sm:$0xff]  ;;  %v333_v1 = vpop.trf.xlu0  ;;  %v9288_v42 = vld [vmem:[#allocation2 + $0x32] sm:$0xff] }
 0x127   : > { %13589 = vst [vmem:[#allocation25_spill] sm:$0xff] %v9238_v63  ;;  %v471_v7 = vld [vmem:[#allocation2 + $0xa8] sm:$0xff]  ;;  %v9245_v8 = vpack.c.bf16 %v1915_v0, %v1915_v0  ;;  %v653_v23 = vpop.permute.xlu1 %652 }
 0x128   : > { %2724 = vst.msk [vmem:[#allocation2 + $0x90] sm:$0xff] %vm368_vm0, %v13523_v3  ;;  %v9247_v22 = vpack.c.bf16 %v471_v7, %v471_v7  ;;  %v9279_v7 = vld [vmem:[#allocation2 + $0x30] sm:$0xff] }
 0x129   : > { %2725 = vst.msk [vmem:[#allocation2 + $0x98] sm:$0x3] %vm371_vm1, %v13523_v3  ;;  %678 = vrot.lane.b32.xlu1 %v9245_v8, %s8831_s26 }
 0x12a   : > { %438 = vst.msk [vmem:[#allocation2 + $0xb1] sm:$0xff] %vm368_vm0, %v333_v1 }
 0x12b   : > { %13590 = vst [vmem:[#allocation26_spill] sm:$0xff] %v9245_v8  ;;  %v657_v41 = vpop.permute.xlu2 %656 }
 0x12c   : > { %748 = vst.msk [vmem:[#allocation3 + $0xc] sm:$0xf] %vm13559_vm3, %v653_v23  ;;  %v9281_v23 = vld [vmem:[#allocation2 + $0x48] sm:$0xff] }
 0x12d   : > { %536 = vst.msk [vmem:[#allocation3 + $0xa8] sm:$0xf] %vm521_vm2, %v9247_v22 }
 0x12e   : > { %750 = vst.msk [vmem:[#allocation3 + $0x24] sm:$0xf] %vm13559_vm3, %v657_v41  ;;  %v334_v0 = vpop.trf.xlu0  ;;  %v3366_v41 = vrot.slane %v9178_v11, 4 }
 0x12f   : > { %3372 = vst.msk [vmem:[#allocation2 + $0x18] sm:$0x3f] %vm3370_vm4, %v13523_v3  ;;  %v9286_v3 = vld [vmem:[#allocation2 + $0x49] sm:$0xff] }
 0x130   : > { %3377 = vst.msk [vmem:[#allocation2 + $0x19] sm:$0xf] %vm521_vm2, %v9178_v11  ;;  %v3381_v11 = vld [vmem:[#allocation2] sm:$0xf] }
 0x131   : > { %v1691_v46 = vld [vmem:[#allocation2 + $0xb0] sm:$0xff]  ;;  %439 = vst.msk [vmem:[#allocation2 + $0xc1] sm:$0xff] %vm368_vm0, %v334_v0 }
 0x132   : > { %v1916_v48 = vld [vmem:[#allocation2 + $0xb1] sm:$0xff]  ;;  %v9277_v6 = vpack.c.bf16 %v1691_v46, %v1691_v46  ;;  %13594 = vst [vmem:[#allocation30_spill] sm:$0xff] %v9281_v23  ;;  %v9362_v23 = vld [vmem:[#allocation2 + $0x60] sm:$0xff] }
 0x133   : > { %v9275_v1 = vpack.c.bf16 %v1916_v48, %v1916_v48  ;;  %13595 = vst [vmem:[#allocation31_spill] sm:$0xff] %v9286_v3  ;;  %v9296_v46 = vld [vmem:[#allocation2 + $0x4a] sm:$0xff]  ;;  %v13597_v48 = vmov 0.0   ;;  %v3367_v3 = vrot.slane %v9206_v29, 4 }
 0x134   : > { %13593 = vst [vmem:[#allocation29_spill] sm:$0xff] %v9277_v6  ;;  %v9310_v12 = vld [vmem:[#allocation2 + $0xaa] sm:$0xff] }
 0x135   : > { %13592 = vst [vmem:[#allocation28_spill] sm:$0xff] %v9275_v1  ;;  %680 = vrot.lane.b32.xlu2 %v9275_v1, %s8831_s26  ;;  %v9318_v51 = vld [vmem:[#allocation2 + $0xb1] sm:$0xff] }
 0x136   : > { %2737 = vst.msk [vmem:[#allocation2 + $0x91] sm:$0xff] %vm368_vm0, %v9159_v62  ;;  %v335_v2 = vpop.trf.xlu0 }
 0x137   : > { %537 = vst.msk [vmem:[#allocation3 + $0xb4] sm:$0xf] %vm521_vm2, %v9277_v6  ;;  %v3382_v62 = vld [vmem:[#allocation2 + $0x18] sm:$0xf] }
 0x138   : > { %13596 = vst [vmem:[#allocation32_spill] sm:$0xff] %v9296_v46  ;;  %v1692_v0 = vld [vmem:[#allocation2 + $0xc0] sm:$0xff]  ;;  %v3405_v58 = vld [vmem:[#allocation2 + $0x19] sm:$0xf] }
 0x139   : > { %3373 = vst.msk [vmem:[#allocation2 + $0x30] sm:$0x3f] %vm3370_vm4, %v13597_v48  ;;  %v1917_v1 = vld [vmem:[#allocation2 + $0xc1] sm:$0xff]  ;;  %v9308_v57 = vpack.c.bf16 %v1692_v0, %v1692_v0  ;;  %v3436_v55 = vld [vmem:[#allocation2 + $0x1a] sm:$0xf] }
 0x13a   : > { %3374 = vst.msk [vmem:[#allocation2 + $0x48] sm:$0x3f] %vm3370_vm4, %v13597_v48  ;;  %v9306_v6 = vpack.c.bf16 %v1917_v1, %v1917_v1 }
 0x13b   : > { %3378 = vst.msk [vmem:[#allocation2 + $0x31] sm:$0xf] %vm521_vm2, %v3366_v41  ;;  %v9316_v41 = vld [vmem:[#allocation2 + $0xb0] sm:$0xff] }
 0x13c   : > { %3379 = vst.msk [vmem:[#allocation2 + $0x49] sm:$0xf] %vm521_vm2, %v9206_v29  ;;  %682 = vrot.lane.b32.xlu1 %v9306_v6, %s8831_s26  ;;  %v661_v1 = vpop.permute.xlu2 %660 }
 0x13d   : > { %3389 = vst [vmem:[#allocation1] ss:$2 sm:$0xff] %v3381_v11  ;;  %v9320_v11 = vld [vmem:[#allocation2 + $0xaa] sm:$0xff] }
 0x13e   : > { %440 = vst.msk [vmem:[#allocation2 + $0xc9] sm:$0xff] %vm368_vm0, %v335_v2  ;;  %v9324_v2 = vld [vmem:[#allocation2 + $0xa8] sm:$0xff]  ;;  %v352_v54 = vpop.trf.xlu0 }
 0x13f   : > { %13598 = vst [vmem:[#allocation33_spill] sm:$0xff] %v9306_v6 }
 0x140   : > { %13599 = vst [vmem:[#allocation34_spill] sm:$0xff] %v9308_v57 }
 0x141   : > { %3391 = vst [vmem:[#allocation1 + $0x1] ss:$2 sm:$0xff] %v3382_v62 }
 0x142   : > { %538 = vst.msk [vmem:[#allocation3 + $0xc0] sm:$0xf] %vm521_vm2, %v9308_v57  ;;  %v3383_v0 = vld [vmem:[#allocation2 + $0x30] sm:$0xf] }
 0x143   : > { %13600 = vst [vmem:[#allocation35_spill] sm:$0xff] %v9318_v51  ;;  %v3384_v62 = vld [vmem:[#allocation2 + $0x48] sm:$0xf] }
 0x144   : > { %13601 = vst [vmem:[#allocation36_spill] sm:$0xff] %v9320_v11 }
 0x145   : > { %2727 = vst.msk [vmem:[#allocation2 + $0xb0] sm:$0x3] %vm371_vm1, %v13597_v48  ;;  %v1693_v6 = vld [vmem:[#allocation2 + $0xc8] sm:$0xff] }
 0x146   : > { %13602 = vst [vmem:[#allocation37_spill] sm:$0xff] %v9324_v2  ;;  %v1918_v57 = vld [vmem:[#allocation2 + $0xc9] sm:$0xff]  ;;  %v9332_v4 = vpack.c.bf16 %v1693_v6, %v1693_v6  ;;  %v3404_v2 = vld [vmem:[#allocation2 + $0x1] sm:$0xf]  ;;  %v353_v46 = vpop.trf.xlu0 }
 0x147   : > { %2726 = vst.msk [vmem:[#allocation2 + $0xa8] sm:$0xff] %vm368_vm0, %v13597_v48  ;;  %v9330_v63 = vpack.c.bf16 %v1918_v57, %v1918_v57  ;;  %v3406_v57 = vld [vmem:[#allocation2 + $0x31] sm:$0xf]  ;;  %v9346_v6 = vld [vmem:[#allocation2 + $0xc2] sm:$0xff] }
 0x148   : > { %752 = vst.msk [vmem:[#allocation3 + $0x3c] sm:$0xf] %vm13559_vm3, %v661_v1  ;;  %v9334_v53 = vld.sshfl [vmem:[#allocation1] sm:$0xff pattern:$0x75316420]  ;;  %v9340_v1 = vld [vmem:[#allocation2 + $0xc0] sm:$0xff] }
 0x149   : > { %3393 = vst [vmem:[#allocation1 + $0x10] ss:$2 sm:$0xff] %v3383_v0  ;;  %684 = vrot.lane.b32.xlu2 %v9330_v63, %s8831_s26  ;;  %v9342_v0 = vld [vmem:[#allocation2 + $0xc1] sm:$0xff] }
 0x14a   : > { %3395 = vst [vmem:[#allocation1 + $0x11] ss:$2 sm:$0xff] %v3384_v62  ;;  %v3407_v62 = vld [vmem:[#allocation2 + $0x49] sm:$0xf] }
 0x14b   : > { %441 = vst.msk [vmem:[#allocation2 + $0xd9] sm:$0xff] %vm368_vm0, %v352_v54  ;;  %v9344_v54 = vld [vmem:[#allocation2 + $0xc2] sm:$0xff]  ;;  %v659_v29 = vpop.permute.xlu1 %658 }
 0x14c   : > { %13603 = vst [vmem:[#allocation38_spill] sm:$0xff] %v9330_v63  ;;  %v9348_v11 = vld [vmem:[#allocation2 + $0xc8] sm:$0xff] }
 0x14d   : > { %13604 = vst [vmem:[#allocation39_spill] sm:$0xff] %v9332_v4 }
 0x14e   : > { %13605 = vst [vmem:[#allocation40_spill] sm:$0xff] %v9334_v53 }
 0x14f   : > { %539 = vst.msk [vmem:[#allocation3 + $0xcc] sm:$0xf] %vm521_vm2, %v9332_v4 }
 0x150   : > { %3412 = vst [vmem:[#allocation1] ss:$2 sm:$0xff] %v3404_v2 }
 0x151   : > { %13606 = vst [vmem:[#allocation41_spill] sm:$0xff] %v9342_v0  ;;  %v9352_v53 = vld.sshfl [vmem:[#allocation1 + $0x10] sm:$0xff pattern:$0x75316420] }
 0x152   : > { %3414 = vst [vmem:[#allocation1 + $0x1] ss:$2 sm:$0xff] %v3405_v58  ;;  %v1694_v2 = vld [vmem:[#allocation2 + $0xd8] sm:$0xff]  ;;  %v9364_v0 = vld [vmem:[#allocation2 + $0x61] sm:$0xff] }
 0x153   : > { %13607 = vst [vmem:[#allocation42_spill] sm:$0xff] %v9346_v6  ;;  %v1919_v4 = vld [vmem:[#allocation2 + $0xd9] sm:$0xff]  ;;  %v9360_v6 = vpack.c.bf16 %v1694_v2, %v1694_v2 }
 0x154   : > { %2728 = vst.msk [vmem:[#allocation2 + $0xc0] sm:$0xff] %vm368_vm0, %v13597_v48  ;;  %v9358_v58 = vpack.c.bf16 %v1919_v4, %v1919_v4  ;;  %v3435_v4 = vld [vmem:[#allocation2 + $0x2] sm:$0xf] }
 0x155   : > { %13608 = vst [vmem:[#allocation43_spill] sm:$0xff] %v9352_v53  ;;  %v9366_v53 = vld [vmem:[#allocation2 + $0x62] sm:$0xff] }
 0x156   : > { %2729 = vst.msk [vmem:[#allocation2 + $0xc8] sm:$0x3] %vm371_vm1, %v13597_v48  ;;  %686 = vrot.lane.b32.xlu1 %v9358_v58, %s8831_s26 }
 0x157   : > { %3416 = vst [vmem:[#allocation1 + $0x10] ss:$2 sm:$0xff] %v3406_v57 }
 0x158   : > { %442 = vst.msk [vmem:[#allocation2 + $0xe1] sm:$0xff] %vm368_vm0, %v353_v46  ;;  %v665_v46 = vpop.permute.xlu2 %664 }
 0x159   : > { %13609 = vst [vmem:[#allocation44_spill] sm:$0xff] %v9358_v58  ;;  %v9375_v57 = vld.sshfl [vmem:[#allocation1] sm:$0xff pattern:$0x75316420] }
 0x15a   : > { %13610 = vst [vmem:[#allocation45_spill] sm:$0xff] %v9360_v6 }
 0x15b   : > { %13611 = vst [vmem:[#allocation46_spill] sm:$0xff] %v9362_v23 }
 0x15c   : > { %13612 = vst [vmem:[#allocation47_spill] sm:$0xff] %v9364_v0 }
 0x15d   : > { %13613 = vst [vmem:[#allocation48_spill] sm:$0xff] %v9366_v53  ;;  %v354_v53 = vpop.trf.xlu0 }
 0x15e   : > { %3418 = vst [vmem:[#allocation1 + $0x11] ss:$2 sm:$0xff] %v3407_v62  ;;  %v3437_v62 = vld [vmem:[#allocation2 + $0x32] sm:$0xf] }
 0x15f   : > { %540 = vst.msk [vmem:[#allocation3 + $0xd8] sm:$0xf] %vm521_vm2, %v9360_v6  ;;  %v1695_v2 = vld [vmem:[#allocation2 + $0xe0] sm:$0xff] }
 0x160   : > { %3375 = vst.msk [vmem:[#allocation2 + $0x60] sm:$0x3f] %vm3370_vm4, %v13597_v48  ;;  %v1920_v58 = vld [vmem:[#allocation2 + $0xe1] sm:$0xff]  ;;  %v9382_v0 = vpack.c.bf16 %v1695_v2, %v1695_v2 }
 0x161   : > { %3380 = vst.msk [vmem:[#allocation2 + $0x61] sm:$0xf] %vm521_vm2, %v3367_v3  ;;  %v9380_v6 = vpack.c.bf16 %v1920_v58, %v1920_v58  ;;  %v3438_v3 = vld [vmem:[#allocation2 + $0x4a] sm:$0xf]  ;;  %v9396_v58 = vld [vmem:[#allocation2 + $0xd9] sm:$0xff] }
 0x162   : > { %13614 = vst [vmem:[#allocation49_spill] sm:$0xff] %v9375_v57 }
 0x163   : > { %751 = vst.msk [vmem:[#allocation3 + $0x30] sm:$0xf] %vm13559_vm3, %v659_v29  ;;  %688 = vrot.lane.b32.xlu2 %v9380_v6, %s8831_s26  ;;  %v9400_v29 = vld [vmem:[#allocation2 + $0xda] sm:$0xff] }
 0x164   : > { %754 = vst.msk [vmem:[#allocation3 + $0x54] sm:$0xf] %vm13559_vm3, %v665_v46 }
 0x165   : > { %3443 = vst [vmem:[#allocation1] ss:$2 sm:$0xff] %v3435_v4  ;;  %v9384_v23 = vld.sshfl [vmem:[#allocation1 + $0x10] sm:$0xff pattern:$0x75316420]  ;;  %v9390_v4 = vld [vmem:[#allocation2 + $0xd8] sm:$0xff]  ;;  %v355_v46 = vpop.trf.xlu0 }
 0x166   : > { %443 = vst.msk [vmem:[#allocation2 + $0xf1] sm:$0xff] %vm368_vm0, %v354_v53  ;;  %v9394_v53 = vld [vmem:[#allocation2 + $0xda] sm:$0xff] }
 0x167   : > { %13615 = vst [vmem:[#allocation50_spill] sm:$0xff] %v9380_v6  ;;  %v9409_v6 = vld [vmem:[#allocation2 + $0xe0] sm:$0xff] }
 0x168   : > { %13616 = vst [vmem:[#allocation51_spill] sm:$0xff] %v9382_v0  ;;  %v3500_v44 = vld [vmem:[#allocation2 + $0x61] sm:$0xf] }
 0x169   : > { %13617 = vst [vmem:[#allocation52_spill] sm:$0xff] %v9384_v23  ;;  %v3592_v26 = vld [vmem:[#allocation2 + $0x61] sm:$0xf] }
 0x16a   : > { %3447 = vst [vmem:[#allocation1 + $0x10] ss:$2 sm:$0xff] %v3437_v62 }
 0x16b   : > { %541 = vst.msk [vmem:[#allocation3 + $0xe4] sm:$0xf] %vm521_vm2, %v9382_v0  ;;  %v9411_v0 = vld [vmem:[#allocation2 + $0xe1] sm:$0xff] }
 0x16c   : > { %3449 = vst [vmem:[#allocation1 + $0x11] ss:$2 sm:$0xff] %v3438_v3  ;;  %v3468_v3 = vld [vmem:[#allocation2 + $0x48] sm:$0xf] }
 0x16d   : > { %3445 = vst [vmem:[#allocation1 + $0x1] ss:$2 sm:$0xff] %v3436_v55  ;;  %v574_v62 = vld [vmem:[#allocation2 + $0xf1] sm:$0xff] }
 0x16e   : > { %2739 = vst.msk [vmem:[#allocation2 + $0xc1] sm:$0xff] %vm368_vm0, %v9197_v21  ;;  %v477_v2 = vld [vmem:[#allocation2 + $0xf0] sm:$0xff]  ;;  %v9405_v55 = vpack.c.bf16 %v574_v62, %v574_v62  ;;  %v3466_v62 = vld [vmem:[#allocation2 + $0x18] sm:$0xf] }
 0x16f   : > { %13618 = vst [vmem:[#allocation53_spill] sm:$0xff] %v9396_v58  ;;  %v9407_v21 = vpack.c.bf16 %v477_v2, %v477_v2  ;;  %v663_v2 = vpop.permute.xlu1 %662  ;;  %v356_v58 = vpop.trf.xlu0 }
 0x170   : > { %2738 = vst.msk [vmem:[#allocation2 + $0xa9] sm:$0xff] %vm368_vm0, %v9171_v5  ;;  %v3469_v5 = vld [vmem:[#allocation2 + $0x60] sm:$0xf]  ;;  %690 = vrot.lane.b32.xlu1 %v9405_v55, %s8831_s26 }
 0x171   : > { %13619 = vst [vmem:[#allocation54_spill] sm:$0xff] %v9400_v29  ;;  %v669_v29 = vpop.permute.xlu2 %668 }
 0x172   : > { %2730 = vst.msk [vmem:[#allocation2 + $0xd8] sm:$0xff] %vm368_vm0, %v13597_v48 }
 0x173   : > { %444 = vst.msk [vmem:[#allocation2 + $0xf9] sm:$0xff] %vm368_vm0, %v355_v46  ;;  %v9419_v46 = vld.sshfl [vmem:[#allocation1 + $0x10] sm:$0xff pattern:$0x75316420] }
 0x174   : > { %13620 = vst [vmem:[#allocation55_spill] sm:$0xff] %v9411_v0  ;;  %v9421_v23 = vld.sshfl [vmem:[#allocation1] sm:$0xff pattern:$0x75316420]  ;;  %v3467_v0 = vld [vmem:[#allocation2 + $0x30] sm:$0xf] }
 0x175   : > { %2731 = vst.msk [vmem:[#allocation2 + $0xe0] sm:$0x3] %vm371_vm1, %v13597_v48 }
 0x176   : > { %542 = vst.msk [vmem:[#allocation3 + $0xf0] sm:$0xf] %vm521_vm2, %v9407_v21 }
 0x177   : > { %13621 = vst [vmem:[#allocation56_spill] sm:$0xff] %v9419_v46 }
 0x178   : > { %3478 = vst [vmem:[#allocation1 + $0x10] ss:$2 sm:$0xff] %v3468_v3  ;;  %v3499_v3 = vld [vmem:[#allocation2 + $0x49] sm:$0xf] }
 0x179   : > { %3480 = vst [vmem:[#allocation1 + $0x11] ss:$2 sm:$0xff] %v3469_v5  ;;  %v9431_v5 = vld [vmem:[#allocation2 + $0x78] sm:$0xff] }
 0x17a   : > { %13622 = vst [vmem:[#allocation57_spill] sm:$0xff] %v9421_v23  ;;  %v575_v51 = vld [vmem:[#allocation2 + $0xf9] sm:$0xff]  ;;  %v3559_v23 = vld [vmem:[#allocation2 + $0x30] sm:$0xf] }
 0x17b   : > { %753 = vst.msk [vmem:[#allocation3 + $0x48] sm:$0xf] %vm13559_vm3, %v663_v2  ;;  %v478_v16 = vld [vmem:[#allocation2 + $0xf8] sm:$0xff]  ;;  %v607_v49 = vpack.c.bf16 %v575_v51, %v575_v51 }
 0x17c   : > { %756 = vst.msk [vmem:[#allocation3 + $0x6c] sm:$0xf] %vm13559_vm3, %v669_v29  ;;  %v9426_v46 = vpack.c.bf16 %v478_v16, %v478_v16  ;;  %v9433_v29 = vld [vmem:[#allocation2 + $0x79] sm:$0xff]  ;;  %v357_v16 = vpop.trf.xlu0 }
 0x17d   : > { %3474 = vst [vmem:[#allocation1] ss:$2 sm:$0xff] %v3466_v62  ;;  %692 = vrot.lane.b32.xlu2 %v607_v49, %s8831_s26  ;;  %v9435_v2 = vld [vmem:[#allocation2 + $0x7a] sm:$0xff] }
 0x17e   : > { %445 = vst.msk [vmem:[#allocation2 + $0x109] sm:$0xff] %vm368_vm0, %v356_v58  ;;  %v3497_v51 = vld [vmem:[#allocation2 + $0x19] sm:$0xf] }
 0x17f   : > { %3476 = vst [vmem:[#allocation1 + $0x1] ss:$2 sm:$0xff] %v3467_v0 }
 0x180   : > { %543 = vst.msk [vmem:[#allocation3 + $0xfc] sm:$0xf] %vm521_vm2, %v9426_v46  ;;  %v9437_v62 = vld.sshfl [vmem:[#allocation1 + $0x10] sm:$0xff pattern:$0x75316420] }
 0x181   : > { %13623 = vst [vmem:[#allocation58_spill] sm:$0xff] %v9431_v5 }
 0x182   : > { %13624 = vst [vmem:[#allocation59_spill] sm:$0xff] %v9433_v29  ;;  %v3498_v29 = vld [vmem:[#allocation2 + $0x31] sm:$0xf] }
 0x183   : > { %13625 = vst [vmem:[#allocation60_spill] sm:$0xff] %v9435_v2 }
 0x184   : > { %13626 = vst [vmem:[#allocation61_spill] sm:$0xff] %v9437_v62  ;;  %v3530_v62 = vld [vmem:[#allocation2 + $0x4a] sm:$0xf] }
 0x185   : > { %3376 = vst.msk [vmem:[#allocation2 + $0x78] sm:$0x3f] %vm3370_vm4, %v13597_v48  ;;  %v576_v0 = vld [vmem:[#allocation2 + $0x109] sm:$0xff]  ;;  %vm4112_vm4 = vcmask 257024  }
 0x186   : > { %3509 = vst [vmem:[#allocation1 + $0x10] ss:$2 sm:$0xff] %v3499_v3  ;;  %v479_v49 = vld [vmem:[#allocation2 + $0x108] sm:$0xff]  ;;  %v608_v58 = vpack.c.bf16 %v576_v0, %v576_v0  ;;  %v9444_v5 = vld.sshfl [vmem:[#allocation1] sm:$0xff pattern:$0x75316420]  ;;  %v673_v3 = vpop.permute.xlu2 %672  ;;  %v358_v0 = vpop.trf.xlu0 }
 0x187   : > { %3511 = vst [vmem:[#allocation1 + $0x11] ss:$2 sm:$0xff] %v3500_v44  ;;  %v9442_v61 = vpack.c.bf16 %v479_v49, %v479_v49  ;;  %v667_v44 = vpop.permute.xlu1 %666 }
 0x188   : > { %446 = vst.msk [vmem:[#allocation2 + $0x111] sm:$0xff] %vm368_vm0, %v357_v16  ;;  %694 = vrot.lane.b32.xlu1 %v608_v58, %s8831_s26  ;;  %v3531_v16 = vld [vmem:[#allocation2 + $0x62] sm:$0xf] }
 0x189   : > { %13627 = vst [vmem:[#allocation62_spill] sm:$0xff] %v9442_v61 }
 0x18a   : > { %13628 = vst [vmem:[#allocation63_spill] sm:$0xff] %v9444_v5  ;;  %v3529_v5 = vld [vmem:[#allocation2 + $0x32] sm:$0xf] }
 0x18b   : > { %3505 = vst [vmem:[#allocation1] ss:$2 sm:$0xff] %v3497_v51 }
 0x18c   : > { %544 = vst.msk [vmem:[#allocation3 + $0x108] sm:$0xf] %vm521_vm2, %v9442_v61  ;;  %v3562_v19 = vld [vmem:[#allocation2 + $0x78] sm:$0xf]  ;;  %v3623_v61 = vld [vmem:[#allocation2 + $0x62] sm:$0xf] }
 0x18d   : > { %3507 = vst [vmem:[#allocation1 + $0x1] ss:$2 sm:$0xff] %v3498_v29  ;;  %v3528_v29 = vld [vmem:[#allocation2 + $0x1a] sm:$0xf] }
 0x18e   : > { %v9449_v2 = vld.sshfl [vmem:[#allocation1 + $0x10] sm:$0xff pattern:$0x75316420]  ;;  %755 = vst.msk [vmem:[#allocation3 + $0x60] sm:$0xf] %vm13559_vm3, %v667_v44 }
 0x18f   : > { %13629 = vst [vmem:[#allocation64_spill] sm:$0xff] %v9449_v2  ;;  %v577_v49 = vld [vmem:[#allocation2 + $0x111] sm:$0xff] }
 0x190   : > { %758 = vst.msk [vmem:[#allocation3 + $0x84] sm:$0xf] %vm13559_vm3, %v673_v3  ;;  %v480_v37 = vld [vmem:[#allocation2 + $0x110] sm:$0xff]  ;;  %v9454_v51 = vpack.c.bf16 %v577_v49, %v577_v49  ;;  %v359_v3 = vpop.trf.xlu0 }
 0x191   : > { %3540 = vst [vmem:[#allocation1 + $0x10] ss:$2 sm:$0xff] %v3530_v62  ;;  %v9456_v58 = vpack.c.bf16 %v480_v37, %v480_v37  ;;  %v3561_v62 = vld [vmem:[#allocation2 + $0x60] sm:$0xf] }
 0x192   : > { %447 = vst.msk [vmem:[#allocation2 + $0x121] sm:$0xff] %vm368_vm0, %v358_v0  ;;  %696 = vrot.lane.b32.xlu2 %v9454_v51, %s8831_s26 }
 0x193   : > { %3542 = vst [vmem:[#allocation1 + $0x11] ss:$2 sm:$0xff] %v3531_v16 }
 0x194   : > { %545 = vst.msk [vmem:[#allocation3 + $0x114] sm:$0xf] %vm521_vm2, %v9456_v58  ;;  %v9462_v44 = vld.sshfl [vmem:[#allocation1] sm:$0xff pattern:$0x75316420] }
 0x195   : > { %13630 = vst [vmem:[#allocation65_spill] sm:$0xff] %v9462_v44 }
 0x196   : > { %3536 = vst [vmem:[#allocation1] ss:$2 sm:$0xff] %v3528_v29  ;;  %v671_v29 = vpop.permute.xlu1 %670 }
 0x197   : > { %3538 = vst [vmem:[#allocation1 + $0x1] ss:$2 sm:$0xff] %v3529_v5 }
 0x198   : > { %448 = vst.msk [vmem:[#allocation2 + $0x129] sm:$0xff] %vm368_vm0, %v359_v3  ;;  %v677_v3 = vpop.permute.xlu2 %676 }
 0x199   : > { %v578_v0 = vld [vmem:[#allocation2 + $0x121] sm:$0xff]  ;;  %757 = vst.msk [vmem:[#allocation3 + $0x78] sm:$0xf] %vm13559_vm3, %v671_v29  ;;  %v3590_v29 = vld [vmem:[#allocation2 + $0x31] sm:$0xf] }
 0x19a   : > { %v481_v49 = vld [vmem:[#allocation2 + $0x120] sm:$0xff]  ;;  %v9465_v37 = vpack.c.bf16 %v578_v0, %v578_v0  ;;  %v9469_v16 = vld.sshfl [vmem:[#allocation1 + $0x10] sm:$0xff pattern:$0x75316420]  ;;  %760 = vst.msk [vmem:[#allocation3 + $0x9c] sm:$0xf] %vm13559_vm3, %v677_v3 }
 0x19b   : > { %v9467_v2 = vpack.c.bf16 %v481_v49, %v481_v49  ;;  %13632 = vst [vmem:[#allocation67_spill] sm:$0xff] %v9469_v16  ;;  %v3560_v0 = vld [vmem:[#allocation2 + $0x48] sm:$0xf]  ;;  %v360_v49 = vpop.trf.xlu0 }
 0x19c   : > { %3571 = vst [vmem:[#allocation1 + $0x10] ss:$2 sm:$0xff] %v3561_v62  ;;  %698 = vrot.lane.b32.xlu1 %v9465_v37, %s8831_s26  ;;  %v9481_v62 = vpack.c.bf16 %v9063_v18, %v9063_v18 }
 0x19d   : > { %13631 = vst [vmem:[#allocation66_spill] sm:$0xff] %v9467_v2 }
 0x19e   : > { %546 = vst.msk [vmem:[#allocation3 + $0x120] sm:$0xf] %vm521_vm2, %v9467_v2  ;;  %v9475_v5 = vld.sshfl [vmem:[#allocation1] sm:$0xff pattern:$0x75316420]  ;;  %879 = vrot.lane.b32.xlu0 %v9481_v62, %s8832_s28 }
 0x19f   : > { %13633 = vst [vmem:[#allocation68_spill] sm:$0xff] %v9475_v5  ;;  %v579_v16 = vld [vmem:[#allocation2 + $0x129] sm:$0xff] }
 0x1a0   : > { %3573 = vst [vmem:[#allocation1 + $0x11] ss:$2 sm:$0xff] %v3562_v19  ;;  %v482_v44 = vld [vmem:[#allocation2 + $0x128] sm:$0xff]  ;;  %v9484_v5 = vpack.c.bf16 %v579_v16, %v579_v16 }
 0x1a1   : > { %3567 = vst [vmem:[#allocation1] ss:$2 sm:$0xff] %v3559_v23  ;;  %v9486_v19 = vpack.c.bf16 %v482_v44, %v482_v44  ;;  %v3593_v23 = vld [vmem:[#allocation2 + $0x79] sm:$0xf]  ;;  %v3591_v16 = vld [vmem:[#allocation2 + $0x49] sm:$0xf] }
 0x1a2   : > { %3569 = vst [vmem:[#allocation1 + $0x1] ss:$2 sm:$0xff] %v3560_v0  ;;  %700 = vrot.lane.b32.xlu2 %v9484_v5, %s8831_s26 }
 0x1a3   : > { %449 = vst.msk [vmem:[#allocation2 + $0x139] sm:$0xff] %vm368_vm0, %v360_v49  ;;  %v361_v3 = vpop.trf.xlu0 }
 0x1a4   : > { %547 = vst.msk [vmem:[#allocation3 + $0x12c] sm:$0xf] %vm521_vm2, %v9486_v19 }
 0x1a5   : > { %450 = vst.msk [vmem:[#allocation2 + $0x141] sm:$0xff] %vm368_vm0, %v361_v3 }
 0x1a6   : > { %4069 = vst.msk [vmem:[#allocation2 + $0x8] sm:$0x3] %vm4068_vm6, %v13597_v48 }
 0x1a7   : > { %v9494_v18 = vld.sshfl [vmem:[#allocation1 + $0x10] sm:$0xff pattern:$0x75316420]  ;;  %4073 = vst.msk [vmem:[#allocation2 + $0x38] sm:$0x3] %vm4068_vm6, %v13597_v48 }
 0x1a8   : > { %13634 = vst [vmem:[#allocation69_spill] sm:$0xff] %v9494_v18  ;;  %v681_v18 = vpop.permute.xlu2 %680 }
 0x1a9   : > { %3602 = vst [vmem:[#allocation1 + $0x10] ss:$2 sm:$0xff] %v3592_v26  ;;  %v9496_v44 = vld.sshfl [vmem:[#allocation1] sm:$0xff pattern:$0x75316420] }
 0x1aa   : > { %3604 = vst [vmem:[#allocation1 + $0x11] ss:$2 sm:$0xff] %v3593_v23  ;;  %v580_v0 = vld [vmem:[#allocation2 + $0x139] sm:$0xff]  ;;  %v675_v23 = vpop.permute.xlu1 %674 }
 0x1ab   : > { %13635 = vst [vmem:[#allocation70_spill] sm:$0xff] %v9496_v44  ;;  %v483_v49 = vld [vmem:[#allocation2 + $0x138] sm:$0xff]  ;;  %v612_v57 = vpack.c.bf16 %v580_v0, %v580_v0  ;;  %v362_v3 = vpop.trf.xlu0 }
 0x1ac   : > { %3598 = vst [vmem:[#allocation1] ss:$2 sm:$0xff] %v3590_v29  ;;  %v9499_v2 = vpack.c.bf16 %v483_v49, %v483_v49  ;;  %v3624_v44 = vld [vmem:[#allocation2 + $0x7a] sm:$0xf]  ;;  %v3622_v29 = vld [vmem:[#allocation2 + $0x4a] sm:$0xf] }
 0x1ad   : > { %3600 = vst [vmem:[#allocation1 + $0x1] ss:$2 sm:$0xff] %v3591_v16  ;;  %702 = vrot.lane.b32.xlu1 %v612_v57, %s8831_s26  ;;  %v581_v0 = vld [vmem:[#allocation2 + $0x141] sm:$0xff] }
 0x1ae   : > { %13636 = vst [vmem:[#allocation71_spill] sm:$0xff] %v9499_v2  ;;  %v484_v16 = vld [vmem:[#allocation2 + $0x140] sm:$0xff]  ;;  %v613_v57 = vpack.c.bf16 %v581_v0, %v581_v0 }
 0x1af   : > { %548 = vst.msk [vmem:[#allocation3 + $0x138] sm:$0xf] %vm521_vm2, %v9499_v2  ;;  %v9509_v49 = vpack.c.bf16 %v484_v16, %v484_v16  ;;  %v3621_v2 = vld [vmem:[#allocation2 + $0x32] sm:$0xf] }
 0x1b0   : > { %759 = vst.msk [vmem:[#allocation3 + $0x90] sm:$0xf] %vm13559_vm3, %v675_v23  ;;  %704 = vrot.lane.b32.xlu2 %v613_v57, %s8831_s26  ;;  %v685_v0 = vpop.permute.xlu2 %684 }
 0x1b1   : > { %v9504_v26 = vld.sshfl [vmem:[#allocation1 + $0x10] sm:$0xff pattern:$0x75316420]  ;;  %762 = vst.msk [vmem:[#allocation3 + $0xb4] sm:$0xf] %vm13559_vm3, %v681_v18 }
 0x1b2   : > { %13637 = vst [vmem:[#allocation72_spill] sm:$0xff] %v9504_v26 }
 0x1b3   : > { %3633 = vst [vmem:[#allocation1 + $0x10] ss:$2 sm:$0xff] %v3623_v61  ;;  %v363_v61 = vpop.trf.xlu0 }
 0x1b4   : > { %3635 = vst [vmem:[#allocation1 + $0x11] ss:$2 sm:$0xff] %v3624_v44  ;;  %v9511_v26 = vld.sshfl [vmem:[#allocation1] sm:$0xff pattern:$0x75316420] }
 0x1b5   : > { %451 = vst.msk [vmem:[#allocation2 + $0x151] sm:$0xff] %vm368_vm0, %v362_v3 }
 0x1b6   : > { %13638 = vst [vmem:[#allocation73_spill] sm:$0xff] %v9511_v26 }
 0x1b7   : > { %3631 = vst [vmem:[#allocation1 + $0x1] ss:$2 sm:$0xff] %v3622_v29  ;;  %v679_v29 = vpop.permute.xlu1 %678 }
 0x1b8   : > { %549 = vst.msk [vmem:[#allocation3 + $0x144] sm:$0xf] %vm521_vm2, %v9509_v49 }
 0x1b9   : > { %3629 = vst [vmem:[#allocation1] ss:$2 sm:$0xff] %v3621_v2 }
 0x1ba   : > { %452 = vst.msk [vmem:[#allocation2 + $0x159] sm:$0xff] %vm368_vm0, %v363_v61 }
 0x1bb   : > { %761 = vst.msk [vmem:[#allocation3 + $0xa8] sm:$0xf] %vm13559_vm3, %v679_v29  ;;  %v364_v2 = vpop.trf.xlu0 }
 0x1bc   : > { %v582_v18 = vld [vmem:[#allocation2 + $0x151] sm:$0xff]  ;;  %764 = vst.msk [vmem:[#allocation3 + $0xcc] sm:$0xf] %vm13559_vm3, %v685_v0 }
 0x1bd   : > { %v485_v23 = vld [vmem:[#allocation2 + $0x150] sm:$0xff]  ;;  %v614_v44 = vpack.c.bf16 %v582_v18, %v582_v18  ;;  %453 = vst.msk [vmem:[#allocation2 + $0x169] sm:$0xff] %vm368_vm0, %v364_v2 }
 0x1be   : > { %v9517_v3 = vpack.c.bf16 %v485_v23, %v485_v23  ;;  %4075 = vst.msk [vmem:[#allocation2 + $0x50] sm:$0x3] %vm4068_vm6, %v13597_v48 }
 0x1bf   : > { %706 = vrot.lane.b32.xlu1 %v614_v44, %s8831_s26  ;;  %v683_v2 = vpop.permute.xlu1 %682  ;;  %4077 = vst.msk [vmem:[#allocation2 + $0x68] sm:$0x3] %vm4068_vm6, %v13597_v48 }
 0x1c0   : > { %13639 = vst [vmem:[#allocation74_spill] sm:$0xff] %v9517_v3 }
 0x1c1   : > { %550 = vst.msk [vmem:[#allocation3 + $0x150] sm:$0xf] %vm521_vm2, %v9517_v3  ;;  %v583_v16 = vld [vmem:[#allocation2 + $0x159] sm:$0xff] }
 0x1c2   : > { %v486_v57 = vld [vmem:[#allocation2 + $0x158] sm:$0xff]  ;;  %v615_v61 = vpack.c.bf16 %v583_v16, %v583_v16  ;;  %v689_v16 = vpop.permute.xlu2 %688  ;;  %763 = vst.msk [vmem:[#allocation3 + $0xc0] sm:$0xf] %vm13559_vm3, %v683_v2 }
 0x1c3   : > { %v9525_v18 = vpack.c.bf16 %v486_v57, %v486_v57  ;;  %v365_v23 = vpop.trf.xlu0  ;;  %766 = vst.msk [vmem:[#allocation3 + $0xe4] sm:$0xf] %vm13559_vm3, %v689_v16  ;;  %v811_v57 = vpack.c.bf16 %v9210_v34, %v9210_v34 }
 0x1c4   : > { %708 = vrot.lane.b32.xlu2 %v615_v61, %s8831_s26  ;;  %v584_v44 = vld [vmem:[#allocation2 + $0x169] sm:$0xff]  ;;  %454 = vst.msk [vmem:[#allocation2 + $0x171] sm:$0xff] %vm368_vm0, %v365_v23 }
 0x1c5   : > { %551 = vst.msk [vmem:[#allocation3 + $0x15c] sm:$0xf] %vm521_vm2, %v9525_v18  ;;  %v487_v26 = vld [vmem:[#allocation2 + $0x168] sm:$0xff]  ;;  %v616_v29 = vpack.c.bf16 %v584_v44, %v584_v44 }
 0x1c6   : > { %v9531_v0 = vpack.c.bf16 %v487_v26, %v487_v26  ;;  %v780_v26 = vld [vmem:[#allocation2 + $0xa] sm:$0xff]  ;;  %4071 = vst.msk [vmem:[#allocation2 + $0x20] sm:$0x3] %vm4068_vm6, %v13597_v48 }
 0x1c7   : > { %710 = vrot.lane.b32.xlu1 %v616_v29, %s8831_s26  ;;  %v782_v29 = vld [vmem:[#allocation2 + $0x22] sm:$0xff]  ;;  %v812_v2 = vpack.c.bf16 %v780_v26, %v780_v26  ;;  %4079 = vst.msk [vmem:[#allocation2 + $0x80] sm:$0x3] %vm4068_vm6, %v13597_v48 }
 0x1c8   : > { %552 = vst.msk [vmem:[#allocation3 + $0x168] sm:$0xf] %vm521_vm2, %v9531_v0  ;;  %v9544_v16 = vpack.c.bf16 %v782_v29, %v782_v29  ;;  %v687_v34 = vpop.permute.xlu1 %686  ;;  %v9568_v29 = vpack.c.bf16 %v9113_v43, %v9113_v43 }
 0x1c9   : > { %765 = vst.msk [vmem:[#allocation3 + $0xd8] sm:$0xf] %vm13559_vm3, %v687_v34 }
 0x1ca   : > { %4067 = vst.msk [vmem:[#allocation2] sm:$0xff] %vm4066_vm14, %v13597_v48 }
 0x1cb   : > { %v1033_v61 = vld [vmem:[#allocation2 + $0x170] sm:$0xff]  ;;  %4070 = vst.msk [vmem:[#allocation2 + $0x18] sm:$0xff] %vm4066_vm14, %v13597_v48 }
 0x1cc   : > { %v585_v3 = vld [vmem:[#allocation2 + $0x171] sm:$0xff]  ;;  %v1065_v23 = vpack.c.bf16 %v1033_v61, %v1033_v61  ;;  %4072 = vst.msk [vmem:[#allocation2 + $0x30] sm:$0xff] %vm4066_vm14, %v13597_v48 }
 0x1cd   : > { %v617_v44 = vpack.c.bf16 %v585_v3, %v585_v3  ;;  %4074 = vst.msk [vmem:[#allocation2 + $0x48] sm:$0xff] %vm4066_vm14, %v13597_v48 }
 0x1ce   : > { %1158 = vrot.lane.b32.xlu0 %v1065_v23, %s8833_s29  ;;  %553 = vst.msk [vmem:[#allocation3 + $0x174] sm:$0xf] %vm521_vm2, %v1065_v23  ;;  %v9557_v23 = vpack.c.bf16 %v9088_v30, %v9088_v30 }
 0x1cf   : > { %875 = vrot.lane.b32.xlu1 %v811_v57, %s8832_s28  ;;  %712 = vrot.lane.b32.xlu2 %v617_v44, %s8831_s26  ;;  %v784_v57 = vld [vmem:[#allocation2 + $0x3a] sm:$0xff]  ;;  %v786_v44 = vld [vmem:[#allocation2 + $0x52] sm:$0xff]  ;;  %4076 = vst.msk [vmem:[#allocation2 + $0x60] sm:$0xff] %vm4066_vm14, %v13597_v48 }
 0x1d0   : > { %v9553_v61 = vpack.c.bf16 %v784_v57, %v784_v57  ;;  %v818_v26 = vpack.c.bf16 %v786_v44, %v786_v44  ;;  %v9580_v57 = vpack.c.bf16 %v9138_v56, %v9138_v56  ;;  %4078 = vst.msk [vmem:[#allocation2 + $0x78] sm:$0xff] %vm4066_vm14, %v13597_v48 }
 0x1d6   : > { %1325 = vrot.lane.b32.xlu0 %v9055_v13, %s8834_s9  ;;  %v366_v13 = vpop.trf.xlu0 }
 0x1d7   : > { %881 = vrot.lane.b32.xlu1 %v9544_v16, %s8832_s28  ;;  %877 = vrot.lane.b32.xlu2 %v812_v2, %s8832_s28  ;;  %v693_v3 = vpop.permute.xlu2 %692  ;;  %455 = vst.msk [vmem:[#allocation2 + $0x181] sm:$0xff] %vm368_vm0, %v366_v13  ;;  %v790_v13 = vld [vmem:[#allocation2 + $0x82] sm:$0xff] }
 0x1d8   : > { %768 = vst.msk [vmem:[#allocation3 + $0xfc] sm:$0xf] %vm13559_vm3, %v693_v3  ;;  %v788_v3 = vld [vmem:[#allocation2 + $0x6a] sm:$0xff]  ;;  %v822_v44 = vpack.c.bf16 %v790_v13, %v790_v13  ;;  %v9609_v13 = vpack.c.bf16 %v9310_v12, %v9310_v12  ;;  %v9620_v12 = vpack.c.bf16 %v9344_v54, %v9344_v54 }
 0x1d9   : > { %v820_v43 = vpack.c.bf16 %v788_v3, %v788_v3  ;;  %v794_v3 = vld [vmem:[#allocation2 + $0xb2] sm:$0xff] }
 0x1da   : > { %13642 = vst [vmem:[#allocation77_spill] sm:$0xff] %v9609_v13 }
 0x1db   : > { %13643 = vst [vmem:[#allocation78_spill] sm:$0xff] %v9620_v12 }
 0x1de   : > { %1331 = vrot.lane.b32.xlu0 %v9091_v31, %s8834_s9  ;;  %v367_v30 = vpop.trf.xlu0 }
 0x1df   : > { %885 = vrot.lane.b32.xlu1 %v9553_v61, %s8832_s28  ;;  %883 = vrot.lane.b32.xlu2 %v9557_v23, %s8832_s28  ;;  %456 = vst.msk [vmem:[#allocation2 + $0x189] sm:$0xff] %vm368_vm0, %v367_v30  ;;  %vm5190_vm0 = vcmask 259072  }
 0x1e2   : > { %v691_v2 = vpop.permute.xlu1 %690 }
 0x1e3   : > { %767 = vst.msk [vmem:[#allocation3 + $0xf0] sm:$0xf] %vm13559_vm3, %v691_v2  ;;  %v792_v2 = vld [vmem:[#allocation2 + $0x9a] sm:$0xff] }
 0x1e6   : > { %1337 = vrot.lane.b32.xlu0 %v9130_v50, %s8834_s9 }
 0x1e7   : > { %889 = vrot.lane.b32.xlu1 %v818_v26, %s8832_s28  ;;  %887 = vrot.lane.b32.xlu2 %v9568_v29, %s8832_s28  ;;  %v9589_v26 = vpack.c.bf16 %v9173_v9, %v9173_v9  ;;  %v9600_v9 = vpack.c.bf16 %v9229_v52, %v9229_v52 }
 0x1e9   : > { %13640 = vst [vmem:[#allocation75_spill] sm:$0xff] %v9589_v26 }
 0x1ea   : > { %13641 = vst [vmem:[#allocation76_spill] sm:$0xff] %v9600_v9 }
 0x1ec   : > { %v697_v34 = vpop.permute.xlu2 %696 }
 0x1ed   : > { %770 = vst.msk [vmem:[#allocation3 + $0x114] sm:$0xf] %vm13559_vm3, %v697_v34  ;;  %v824_v34 = vpack.c.bf16 %v792_v2, %v792_v2  ;;  %v798_v2 = vld [vmem:[#allocation2 + $0xe2] sm:$0xff] }
 0x1ee   : > { %1343 = vrot.lane.b32.xlu0 %v9176_v10, %s8834_s9 }
 0x1ef   : > { %893 = vrot.lane.b32.xlu1 %v820_v43, %s8832_s28  ;;  %891 = vrot.lane.b32.xlu2 %v9580_v57, %s8832_s28  ;;  %v826_v43 = vpack.c.bf16 %v794_v3, %v794_v3  ;;  %v9630_v3 = vpack.c.bf16 %v9394_v53, %v9394_v53  ;;  %v802_v53 = vld [vmem:[#allocation2 + $0x112] sm:$0xff] }
 0x1f1   : > { %13644 = vst [vmem:[#allocation79_spill] sm:$0xff] %v9630_v3 }
 0x1f6   : > { %1349 = vrot.lane.b32.xlu0 %v9245_v8, %s8834_s9 }
 0x1f7   : > { %897 = vrot.lane.b32.xlu1 %v822_v44, %s8832_s28  ;;  %895 = vrot.lane.b32.xlu2 %v9589_v26, %s8832_s28 }
 0x1fa   : > { %v695_v56 = vpop.permute.xlu1 %694 }
 0x1fb   : > { %769 = vst.msk [vmem:[#allocation3 + $0x108] sm:$0xf] %vm13559_vm3, %v695_v56  ;;  %v796_v56 = vld [vmem:[#allocation2 + $0xca] sm:$0xff] }
 0x1fc   : > { %v701_v30 = vpop.permute.xlu2 %700 }
 0x1fd   : > { %772 = vst.msk [vmem:[#allocation3 + $0x12c] sm:$0xf] %vm13559_vm3, %v701_v30  ;;  %v828_v30 = vpack.c.bf16 %v796_v56, %v796_v56 }
 0x1fe   : > { %1355 = vrot.lane.b32.xlu0 %v9330_v63, %s8834_s9 }
 0x1ff   : > { %901 = vrot.lane.b32.xlu1 %v824_v34, %s8832_s28  ;;  %899 = vrot.lane.b32.xlu2 %v9600_v9, %s8832_s28  ;;  %v830_v34 = vpack.c.bf16 %v798_v2, %v798_v2 }
 0x206   : > { %1361 = vrot.lane.b32.xlu0 %v9405_v55, %s8834_s9 }
 0x207   : > { %905 = vrot.lane.b32.xlu1 %v826_v43, %s8832_s28  ;;  %903 = vrot.lane.b32.xlu2 %v9609_v13, %s8832_s28  ;;  %v800_v43 = vld [vmem:[#allocation2 + $0xfa] sm:$0xff] }
 0x20a   : > { %v705_v44 = vpop.permute.xlu2 %704 }
 0x20b   : > { %774 = vst.msk [vmem:[#allocation3 + $0x144] sm:$0xf] %vm13559_vm3, %v705_v44  ;;  %v832_v44 = vpack.c.bf16 %v800_v43, %v800_v43 }
 0x20e   : > { %v699_v52 = vpop.permute.xlu1 %698  ;;  %1367 = vrot.lane.b32.xlu0 %v9454_v51, %s8834_s9 }
 0x20f   : > { %771 = vst.msk [vmem:[#allocation3 + $0x120] sm:$0xf] %vm13559_vm3, %v699_v52  ;;  %909 = vrot.lane.b32.xlu1 %v828_v30, %s8832_s28  ;;  %907 = vrot.lane.b32.xlu2 %v9620_v12, %s8832_s28  ;;  %v799_v52 = vld [vmem:[#allocation2 + $0xf2] sm:$0xff]  ;;  %v834_v30 = vpack.c.bf16 %v802_v53, %v802_v53 }
 0x210   : > { %v880_v55 = vpop.permute.xlu0 %879  ;;  %v831_v56 = vpack.c.bf16 %v799_v52, %v799_v52  ;;  %v806_v52 = vld [vmem:[#allocation2 + $0x142] sm:$0xff] }
 0x211   : > { %974 = vst.msk [vmem:[#allocation3 + $0x18] sm:$0xf] %vm13551_vm5, %v880_v55 }
 0x216   : > { %1369 = vrot.lane.b32.xlu0 %v9465_v37, %s8834_s9  ;;  %v801_v37 = vld [vmem:[#allocation2 + $0x10a] sm:$0xff] }
 0x217   : > { %913 = vrot.lane.b32.xlu1 %v830_v34, %s8832_s28  ;;  %911 = vrot.lane.b32.xlu2 %v9630_v3, %s8832_s28  ;;  %v833_v55 = vpack.c.bf16 %v801_v37, %v801_v37 }
 0x21e   : > { %v709_v51 = vpop.permute.xlu2 %708  ;;  %1371 = vrot.lane.b32.xlu0 %v9484_v5, %s8834_s9  ;;  %v803_v5 = vld [vmem:[#allocation2 + $0x122] sm:$0xff] }
 0x21f   : > { %v703_v54 = vpop.permute.xlu1 %702  ;;  %776 = vst.msk [vmem:[#allocation3 + $0x15c] sm:$0xf] %vm13559_vm3, %v709_v51  ;;  %917 = vrot.lane.b32.xlu1 %v832_v44, %s8832_s28  ;;  %915 = vrot.lane.b32.xlu2 %v831_v56, %s8832_s28  ;;  %v835_v43 = vpack.c.bf16 %v803_v5, %v803_v5  ;;  %v805_v44 = vld [vmem:[#allocation2 + $0x13a] sm:$0xff]  ;;  %v838_v56 = vpack.c.bf16 %v806_v52, %v806_v52 }
 0x220   : > { %773 = vst.msk [vmem:[#allocation3 + $0x138] sm:$0xf] %vm13559_vm3, %v703_v54  ;;  %v804_v54 = vld [vmem:[#allocation2 + $0x12a] sm:$0xff]  ;;  %v837_v53 = vpack.c.bf16 %v805_v44, %v805_v44 }
 0x221   : > { %v836_v51 = vpack.c.bf16 %v804_v54, %v804_v54 }
 0x226   : > { %1550 = vrot.lane.b32.xlu0 %v9481_v62, %s8835_s10 }
 0x227   : > { %921 = vrot.lane.b32.xlu1 %v834_v30, %s8832_s28  ;;  %919 = vrot.lane.b32.xlu2 %v833_v55, %s8832_s28  ;;  %v808_v30 = vld [vmem:[#allocation2 + $0x15a] sm:$0xff]  ;;  %v807_v55 = vld [vmem:[#allocation2 + $0x152] sm:$0xff] }
 0x229   : > { %v713_v34 = vpop.permute.xlu2 %712 }
 0x22a   : > { %778 = vst.msk [vmem:[#allocation3 + $0x174] sm:$0xf] %vm13559_vm3, %v713_v34  ;;  %v839_v34 = vpack.c.bf16 %v807_v55, %v807_v55  ;;  %v9692_v55 = vld [vmem:[#allocation2 + $0xc2] sm:$0xff] }
 0x22e   : > { %1552 = vrot.lane.b32.xlu0 %v9544_v16, %s8835_s10 }
 0x22f   : > { %925 = vrot.lane.b32.xlu1 %v836_v51, %s8832_s28  ;;  %923 = vrot.lane.b32.xlu2 %v835_v43, %s8832_s28  ;;  %v810_v43 = vld [vmem:[#allocation2 + $0x172] sm:$0xff] }
 0x230   : > { %v842_v52 = vpack.c.bf16 %v810_v43, %v810_v43 }
 0x231   : > { %v707_v2 = vpop.permute.xlu1 %706  ;;  %v878_v62 = vpop.permute.xlu2 %877 }
 0x232   : > { %775 = vst.msk [vmem:[#allocation3 + $0x150] sm:$0xf] %vm13559_vm3, %v707_v2  ;;  %v840_v2 = vpack.c.bf16 %v808_v30, %v808_v30  ;;  %v9690_v30 = vld [vmem:[#allocation2 + $0x92] sm:$0xff] }
 0x233   : > { %973 = vst.msk [vmem:[#allocation3 + $0xc] sm:$0xf] %vm13551_vm5, %v878_v62  ;;  %v809_v62 = vld [vmem:[#allocation2 + $0x16a] sm:$0xff] }
 0x234   : > { %v841_v44 = vpack.c.bf16 %v809_v62, %v809_v62  ;;  %13645 = vst [vmem:[#allocation80_spill] sm:$0xff] %v9690_v30 }
 0x236   : > { %1776 = vrot.lane.b32.xlu0 %v9081_v25, %s8836_s12 }
 0x237   : > { %929 = vrot.lane.b32.xlu1 %v838_v56, %s8832_s28  ;;  %927 = vrot.lane.b32.xlu2 %v837_v53, %s8832_s28 }
 0x239   : > { %v711_v37 = vpop.permute.xlu1 %710  ;;  %v884_v16 = vpop.permute.xlu2 %883 }
 0x23a   : > { %777 = vst.msk [vmem:[#allocation3 + $0x168] sm:$0xf] %vm13559_vm3, %v711_v37 }
 0x23b   : > { %976 = vst.msk [vmem:[#allocation3 + $0x30] sm:$0xf] %vm13551_vm5, %v884_v16  ;;  %v9688_v16 = vld [vmem:[#allocation2 + $0x91] sm:$0xff] }
 0x23c   : > { %4081 = vst.msk [vmem:[#allocation2 + $0x98] sm:$0x3] %vm4068_vm6, %v13597_v48 }
 0x23e   : > { %2001 = vrot.lane.b32.xlu0 %v9079_v24, %s8837_s13 }
 0x23f   : > { %933 = vrot.lane.b32.xlu1 %v840_v2, %s8832_s28  ;;  %931 = vrot.lane.b32.xlu2 %v839_v34, %s8832_s28  ;;  %v9694_v2 = vld [vmem:[#allocation2 + $0xc1] sm:$0xff]  ;;  %v9698_v34 = vld [vmem:[#allocation2 + $0xa9] sm:$0xff] }
 0x240   : > { %v9664_v5 = vpop.permute.xlu0 %1158  ;;  %4085 = vst.msk [vmem:[#allocation2 + $0xc8] sm:$0x3] %vm4068_vm6, %v13597_v48 }
 0x241   : > { %v876_v54 = vpop.permute.xlu1 %875  ;;  %v888_v51 = vpop.permute.xlu2 %887 }
 0x242   : > { %972 = vst.msk [vmem:[#allocation3] sm:$0xf] %vm13551_vm5, %v876_v54  ;;  %v9702_v54 = vld [vmem:[#allocation2 + $0xaa] sm:$0xff] }
 0x243   : > { %978 = vst.msk [vmem:[#allocation3 + $0x48] sm:$0xf] %vm13551_vm5, %v888_v51 }
 0x244   : > { %13646 = vst [vmem:[#allocation81_spill] sm:$0xff] %v9702_v54 }
 0x245   : > { %4083 = vst.msk [vmem:[#allocation2 + $0xb0] sm:$0x3] %vm4068_vm6, %v13597_v48 }
 0x246   : > { %2226 = vrot.lane.b32.xlu0 %v9557_v23, %s8838_s14 }
 0x247   : > { %937 = vrot.lane.b32.xlu1 %v842_v52, %s8832_s28  ;;  %935 = vrot.lane.b32.xlu2 %v841_v44, %s8832_s28  ;;  %v2772_v52 = vpack.c.bf16 %v9255_v33, %v9255_v33  ;;  %v2773_v44 = vpack.c.bf16 %v9263_v39, %v9263_v39  ;;  %v1043_v39 = vpack.c.bf16 %v9153_v60, %v9153_v60 }
 0x248   : > { %v9682_v53 = vpop.permute.xlu0 %1325  ;;  %v2829_v60 = vpack.c.bf16 %v9265_v40, %v9265_v40 }
 0x249   : > { %v882_v56 = vpop.permute.xlu1 %881  ;;  %v892_v37 = vpop.permute.xlu2 %891 }
 0x24a   : > { %975 = vst.msk [vmem:[#allocation3 + $0x24] sm:$0xf] %vm13551_vm5, %v882_v56 }
 0x24b   : > { %980 = vst.msk [vmem:[#allocation3 + $0x60] sm:$0xf] %vm13551_vm5, %v892_v37  ;;  %v2828_v37 = vpack.c.bf16 %v9257_v35, %v9257_v35  ;;  %v1044_v35 = vpack.c.bf16 %v9182_v15, %v9182_v15 }
 0x24e   : > { %2228 = vrot.lane.b32.xlu0 %v9553_v61, %s8838_s14 }
 0x24f   : > { %1102 = vrot.lane.b32.xlu1 %v9068_v20, %s8833_s29  ;;  %1100 = vrot.lane.b32.xlu2 %v9057_v14, %s8833_s29 }
 0x250   : > { %v9712_v43 = vpop.permute.xlu0 %1331 }
 0x251   : > { %v886_v51 = vpop.permute.xlu1 %885  ;;  %v896_v62 = vpop.permute.xlu2 %895 }
 0x252   : > { %977 = vst.msk [vmem:[#allocation3 + $0x3c] sm:$0xf] %vm13551_vm5, %v886_v51  ;;  %v1042_v51 = vpack.c.bf16 %v9145_v59, %v9145_v59  ;;  %v1045_v59 = vpack.c.bf16 %v9192_v17, %v9192_v17  ;;  %v9766_v17 = vpack.c.bf16 %v9261_v36, %v9261_v36  ;;  %v9780_v36 = vpack.c.bf16 %v9279_v7, %v9279_v7 }
 0x253   : > { %982 = vst.msk [vmem:[#allocation3 + $0x78] sm:$0xf] %vm13551_vm5, %v896_v62  ;;  %v1051_v7 = vpack.c.bf16 %v9348_v11, %v9348_v11  ;;  %v9806_v11 = vpack.c.bf16 %v9284_v27, %v9284_v27 }
 0x256   : > { %2788 = vrot.lane.b32.xlu0 %v2772_v52, %s8831_s26 }
 0x257   : > { %1106 = vrot.lane.b32.xlu1 %v9093_v32, %s8833_s29  ;;  %1104 = vrot.lane.b32.xlu2 %v9081_v25, %s8833_s29 }
 0x258   : > { %v9723_v20 = vpop.permute.xlu0 %1337 }
 0x259   : > { %v890_v14 = vpop.permute.xlu1 %889  ;;  %v900_v61 = vpop.permute.xlu2 %899 }
 0x25a   : > { %979 = vst.msk [vmem:[#allocation3 + $0x54] sm:$0xf] %vm13551_vm5, %v890_v14 }
 0x25b   : > { %984 = vst.msk [vmem:[#allocation3 + $0x90] sm:$0xf] %vm13551_vm5, %v900_v61 }
 0x25e   : > { %2790 = vrot.lane.b32.xlu0 %v2773_v44, %s8831_s26 }
 0x25f   : > { %1110 = vrot.lane.b32.xlu1 %v9118_v45, %s8833_s29  ;;  %1108 = vrot.lane.b32.xlu2 %v9107_v38, %s8833_s29 }
 0x260   : > { %v9734_v33 = vpop.permute.xlu0 %1343 }
 0x261   : > { %v894_v25 = vpop.permute.xlu1 %893  ;;  %v904_v56 = vpop.permute.xlu2 %903 }
 0x262   : > { %981 = vst.msk [vmem:[#allocation3 + $0x6c] sm:$0xf] %vm13551_vm5, %v894_v25 }
 0x263   : > { %986 = vst.msk [vmem:[#allocation3 + $0xa8] sm:$0xf] %vm13551_vm5, %v904_v56 }
 0x266   : > { %2844 = vrot.lane.b32.xlu0 %v2828_v37, %s8832_s28 }
 0x267   : > { %1114 = vrot.lane.b32.xlu1 %v1043_v39, %s8833_s29  ;;  %1112 = vrot.lane.b32.xlu2 %v1042_v51, %s8833_s29  ;;  %v1049_v39 = vpack.c.bf16 %v9316_v41, %v9316_v41  ;;  %v1050_v41 = vpack.c.bf16 %v9340_v1, %v9340_v1  ;;  %v1053_v1 = vpack.c.bf16 %v9409_v6, %v9409_v6 }
 0x268   : > { %v9747_v52 = vpop.permute.xlu0 %1349 }
 0x269   : > { %v898_v62 = vpop.permute.xlu1 %897  ;;  %v908_v14 = vpop.permute.xlu2 %907 }
 0x26a   : > { %983 = vst.msk [vmem:[#allocation3 + $0x84] sm:$0xf] %vm13551_vm5, %v898_v62 }
 0x26b   : > { %988 = vst.msk [vmem:[#allocation3 + $0xc0] sm:$0xf] %vm13551_vm5, %v908_v14 }
 0x26e   : > { %2846 = vrot.lane.b32.xlu0 %v2829_v60, %s8832_s28 }
 0x26f   : > { %1118 = vrot.lane.b32.xlu1 %v1045_v59, %s8833_s29  ;;  %1116 = vrot.lane.b32.xlu2 %v1044_v35, %s8833_s29 }
 0x270   : > { %v9760_v25 = vpop.permute.xlu0 %1355 }
 0x271   : > { %v902_v61 = vpop.permute.xlu1 %901  ;;  %v912_v56 = vpop.permute.xlu2 %911 }
 0x272   : > { %985 = vst.msk [vmem:[#allocation3 + $0x9c] sm:$0xf] %vm13551_vm5, %v902_v61 }
 0x273   : > { %990 = vst.msk [vmem:[#allocation3 + $0xd8] sm:$0xf] %vm13551_vm5, %v912_v56  ;;  %v9829_v56 = vpack.c.bf16 %v9288_v42, %v9288_v42  ;;  %v13648_v42 = vld [vmem:[#allocation66_spill] sm:$0xff] }
 0x276   : > { %2900 = vrot.lane.b32.xlu0 %v9766_v17, %s8833_s29 }
 0x277   : > { %1122 = vrot.lane.b32.xlu1 %v9217_v47, %s8833_s29  ;;  %1120 = vrot.lane.b32.xlu2 %v9202_v28, %s8833_s29 }
 0x278   : > { %v9774_v40 = vpop.permute.xlu0 %1361 }
 0x279   : > { %v906_v15 = vpop.permute.xlu1 %905  ;;  %v916_v37 = vpop.permute.xlu2 %915 }
 0x27a   : > { %987 = vst.msk [vmem:[#allocation3 + $0xb4] sm:$0xf] %vm13551_vm5, %v906_v15 }
 0x27b   : > { %992 = vst.msk [vmem:[#allocation3 + $0xf0] sm:$0xf] %vm13551_vm5, %v916_v37 }
 0x27e   : > { %2902 = vrot.lane.b32.xlu0 %v9780_v36, %s8833_s29 }
 0x27f   : > { %1126 = vrot.lane.b32.xlu1 %v1049_v39, %s8833_s29  ;;  %1124 = vrot.lane.b32.xlu2 %v9247_v22, %s8833_s29 }
 0x280   : > { %v9789_v47 = vpop.permute.xlu0 %1367 }
 0x281   : > { %v910_v28 = vpop.permute.xlu1 %909  ;;  %v920_v51 = vpop.permute.xlu2 %919 }
 0x282   : > { %989 = vst.msk [vmem:[#allocation3 + $0xcc] sm:$0xf] %vm13551_vm5, %v910_v28 }
 0x283   : > { %994 = vst.msk [vmem:[#allocation3 + $0x108] sm:$0xf] %vm13551_vm5, %v920_v51 }
 0x286   : > { %2956 = vrot.lane.b32.xlu0 %v2773_v44, %s8834_s9  ;;  %v1052_v44 = vpack.c.bf16 %v9390_v4, %v9390_v4 }
 0x287   : > { %1130 = vrot.lane.b32.xlu1 %v1051_v7, %s8833_s29  ;;  %1128 = vrot.lane.b32.xlu2 %v1050_v41, %s8833_s29 }
 0x288   : > { %v9800_v62 = vpop.permute.xlu0 %1369 }
 0x289   : > { %v914_v22 = vpop.permute.xlu1 %913  ;;  %v924_v14 = vpop.permute.xlu2 %923 }
 0x28a   : > { %991 = vst.msk [vmem:[#allocation3 + $0xe4] sm:$0xf] %vm13551_vm5, %v914_v22 }
 0x28b   : > { %996 = vst.msk [vmem:[#allocation3 + $0x120] sm:$0xf] %vm13551_vm5, %v924_v14  ;;  %v13651_v14 = vld [vmem:[#allocation49_spill] sm:$0xff] }
 0x28e   : > { %2958 = vrot.lane.b32.xlu0 %v9806_v11, %s8834_s9 }
 0x28f   : > { %1134 = vrot.lane.b32.xlu1 %v1053_v1, %s8833_s29  ;;  %1132 = vrot.lane.b32.xlu2 %v1052_v44, %s8833_s29  ;;  %v3423_v1 = vpack.c.bf16 %v13651_v14, %v13651_v14 }
 0x290   : > { %v9816_v35 = vpop.permute.xlu0 %1371 }
 0x291   : > { %v918_v59 = vpop.permute.xlu1 %917  ;;  %v928_v27 = vpop.permute.xlu2 %927 }
 0x292   : > { %993 = vst.msk [vmem:[#allocation3 + $0xfc] sm:$0xf] %vm13551_vm5, %v918_v59 }
 0x293   : > { %998 = vst.msk [vmem:[#allocation3 + $0x138] sm:$0xf] %vm13551_vm5, %v928_v27 }
 0x296   : > { %3012 = vrot.lane.b32.xlu0 %v2829_v60, %s8835_s10 }
 0x297   : > { %1138 = vrot.lane.b32.xlu1 %v9426_v46, %s8833_s29  ;;  %1136 = vrot.lane.b32.xlu2 %v9407_v21, %s8833_s29  ;;  %v13647_v46 = vld [vmem:[#allocation62_spill] sm:$0xff] }
 0x298   : > { %v1551_v4 = vpop.permute.xlu0 %1550 }
 0x299   : > { %v922_v6 = vpop.permute.xlu1 %921  ;;  %v932_v61 = vpop.permute.xlu2 %931 }
 0x29a   : > { %995 = vst.msk [vmem:[#allocation3 + $0x114] sm:$0xf] %vm13551_vm5, %v922_v6 }
 0x29b   : > { %1000 = vst.msk [vmem:[#allocation3 + $0x150] sm:$0xf] %vm13551_vm5, %v932_v61 }
 0x29e   : > { %3014 = vrot.lane.b32.xlu0 %v9829_v56, %s8835_s10 }
 0x29f   : > { %1142 = vrot.lane.b32.xlu1 %v9456_v58, %s8833_s29  ;;  %1140 = vrot.lane.b32.xlu2 %v13647_v46, %s8833_s29  ;;  %v1035_v46 = vld [vmem:[#allocation2 + $0x188] sm:$0xff] }
 0x2a0   : > { %v9837_v60 = vpop.permute.xlu0 %1552 }
 0x2a1   : > { %v926_v21 = vpop.permute.xlu1 %925  ;;  %v936_v15 = vpop.permute.xlu2 %935 }
 0x2a2   : > { %997 = vst.msk [vmem:[#allocation3 + $0x12c] sm:$0xf] %vm13551_vm5, %v926_v21  ;;  %v13653_v21 = vld [vmem:[#allocation57_spill] sm:$0xff] }
 0x2a3   : > { %1002 = vst.msk [vmem:[#allocation3 + $0x168] sm:$0xf] %vm13551_vm5, %v936_v15  ;;  %v3454_v15 = vpack.c.bf16 %v13653_v21, %v13653_v21 }
 0x2a6   : > { %3068 = vrot.lane.b32.xlu0 %v9780_v36, %s8836_s12 }
 0x2a7   : > { %1146 = vrot.lane.b32.xlu1 %v9486_v19, %s8833_s29  ;;  %1144 = vrot.lane.b32.xlu2 %v13648_v42, %s8833_s29  ;;  %v13649_v19 = vld [vmem:[#allocation71_spill] sm:$0xff] }
 0x2a8   : > { %v1777_v37 = vpop.permute.xlu0 %1776  ;;  %v13654_v42 = vld [vmem:[#allocation7_spill] sm:$0xff] }
 0x2a9   : > { %v930_v58 = vpop.permute.xlu1 %929  ;;  %v1101_v39 = vpop.permute.xlu2 %1100 }
 0x2aa   : > { %999 = vst.msk [vmem:[#allocation3 + $0x144] sm:$0xf] %vm13551_vm5, %v930_v58 }
 0x2ab   : > { %1197 = vst.msk [vmem:[#allocation3] sm:$0xf] %vm13562_vm7, %v1101_v39 }
 0x2ac   : > { %1422 = vst.msk [vmem:[#allocation3] sm:$0xf] %vm13561_vm8, %v9682_v53 }
 0x2ad   : > { %1647 = vst.msk [vmem:[#allocation3] sm:$0xf] %vm1646_vm9, %v1551_v4 }
 0x2ae   : > { %1873 = vst.msk [vmem:[#allocation3] sm:$0xf] %vm1872_vm10, %v1777_v37  ;;  %3124 = vrot.lane.b32.xlu0 %v9806_v11, %s8837_s13 }
 0x2af   : > { %1150 = vrot.lane.b32.xlu1 %v9509_v49, %s8833_s29  ;;  %1148 = vrot.lane.b32.xlu2 %v13649_v19, %s8833_s29  ;;  %v13650_v49 = vld [vmem:[#allocation74_spill] sm:$0xff] }
 0x2b0   : > { %v2002_v51 = vpop.permute.xlu0 %2001 }
 0x2b1   : > { %v934_v28 = vpop.permute.xlu1 %933  ;;  %v1105_v7 = vpop.permute.xlu2 %1104  ;;  %2098 = vst.msk [vmem:[#allocation3] sm:$0xf] %vm13560_vm11, %v2002_v51 }
 0x2b2   : > { %1001 = vst.msk [vmem:[#allocation3 + $0x15c] sm:$0xf] %vm13551_vm5, %v934_v28  ;;  %v13656_v28 = vld [vmem:[#allocation8_spill] sm:$0xff] }
 0x2b3   : > { %1226 = vst.msk [vmem:[#allocation3 + $0x15c] sm:$0xf] %vm13562_vm7, %v9664_v5  ;;  %v1034_v5 = vld [vmem:[#allocation2 + $0x180] sm:$0xff] }
 0x2b4   : > { %1199 = vst.msk [vmem:[#allocation3 + $0x18] sm:$0xf] %vm13562_vm7, %v1105_v7  ;;  %v1066_v44 = vpack.c.bf16 %v1034_v5, %v1034_v5 }
 0x2b6   : > { %3180 = vrot.lane.b32.xlu0 %v9829_v56, %s8838_s14 }
 0x2b7   : > { %1154 = vrot.lane.b32.xlu1 %v9525_v18, %s8833_s29  ;;  %1152 = vrot.lane.b32.xlu2 %v13650_v49, %s8833_s29  ;;  %v13652_v18 = vld [vmem:[#allocation27_spill] sm:$0xff]  ;;  %v13657_v49 = vld [vmem:[#allocation65_spill] sm:$0xff] }
 0x2b8   : > { %v2227_v41 = vpop.permute.xlu0 %2226  ;;  %v2748_v59 = vpack.c.bf16 %v13652_v18, %v13652_v18 }
 0x2b9   : > { %v938_v53 = vpop.permute.xlu1 %937  ;;  %v1109_v22 = vpop.permute.xlu2 %1108  ;;  %2323 = vst.msk [vmem:[#allocation3] sm:$0xf] %vm13550_vm12, %v2227_v41  ;;  %v13658_v41 = vld [vmem:[#allocation13_spill] sm:$0xff] }
 0x2ba   : > { %1003 = vst.msk [vmem:[#allocation3 + $0x174] sm:$0xf] %vm13551_vm5, %v938_v53  ;;  %v3516_v53 = vpack.c.bf16 %v13657_v49, %v13657_v49 }
 0x2bb   : > { %1201 = vst.msk [vmem:[#allocation3 + $0x30] sm:$0xf] %vm13562_vm7, %v1109_v22  ;;  %v1268_v22 = vpack.c.bf16 %v13658_v41, %v13658_v41 }
 0x2be   : > { %3427 = vrot.lane.b32.xlu0 %v3423_v1, %s8831_s26 }
 0x2bf   : > { %1160 = vrot.lane.b32.xlu1 %v1066_v44, %s8833_s29  ;;  %1156 = vrot.lane.b32.xlu2 %v9531_v0, %s8833_s29  ;;  %v1067_v0 = vpack.c.bf16 %v1035_v46, %v1035_v46  ;;  %v13660_v44 = vld [vmem:[#allocation67_spill] sm:$0xff] }
 0x2c0   : > { %v9881_v6 = vpop.permute.xlu0 %2228  ;;  %v9884_v61 = vld [vmem:[#allocation3] sm:$0xf]  ;;  %v3548_v18 = vpack.c.bf16 %v13660_v44, %v13660_v44 }
 0x2c1   : > { %v1103_v27 = vpop.permute.xlu1 %1102  ;;  %v1113_v4 = vpop.permute.xlu2 %1112  ;;  %2756 = vst.msk [vmem:[#allocation3] sm:$0xf] %vm521_vm2, %v2748_v59  ;;  %v13661_v59 = vld [vmem:[#allocation21_spill] sm:$0xff] }
 0x2c2   : > { %1198 = vst.msk [vmem:[#allocation3 + $0xc] sm:$0xf] %vm13562_vm7, %v1103_v27  ;;  %v1271_v27 = vpack.c.bf16 %v13661_v59, %v13661_v59  ;;  %v1248_v59 = vld [vmem:[#allocation2 + $0xf9] sm:$0xff] }
 0x2c3   : > { %1203 = vst.msk [vmem:[#allocation3 + $0x48] sm:$0xf] %vm13562_vm7, %v1113_v4  ;;  %v13662_v4 = vld [vmem:[#allocation18_spill] sm:$0xff] }
 0x2c4   : > { %1428 = vst.msk [vmem:[#allocation3 + $0x48] sm:$0xf] %vm13561_vm8, %v9723_v20  ;;  %v13655_v20 = vld [vmem:[#allocation63_spill] sm:$0xff]  ;;  %v1269_v46 = vpack.c.bf16 %v13662_v4, %v13662_v4  ;;  %v1280_v4 = vpack.c.bf16 %v1248_v59, %v1248_v59 }
 0x2c5   : > { %v3485_v19 = vpack.c.bf16 %v13655_v20, %v13655_v20 }
 0x2c6   : > { %3458 = vrot.lane.b32.xlu0 %v3454_v15, %s8832_s28 }
 0x2c7   : > { %1327 = vrot.lane.b32.xlu1 %v13654_v42, %s8834_s9  ;;  %1162 = vrot.lane.b32.xlu2 %v1067_v0, %s8833_s29  ;;  %v13663_v0 = vld [vmem:[#allocation73_spill] sm:$0xff] }
 0x2c8   : > { %v2789_v37 = vpop.permute.xlu0 %2788  ;;  %v3609_v42 = vpack.c.bf16 %v13663_v0, %v13663_v0 }
 0x2c9   : > { %v1107_v58 = vpop.permute.xlu1 %1106  ;;  %v1117_v39 = vpop.permute.xlu2 %1116  ;;  %2812 = vst.msk [vmem:[#allocation3] sm:$0xf] %vm13559_vm3, %v2789_v37 }
 0x2ca   : > { %1200 = vst.msk [vmem:[#allocation3 + $0x24] sm:$0xf] %vm13562_vm7, %v1107_v58  ;;  %v13664_v58 = vld [vmem:[#allocation35_spill] sm:$0xff] }
 0x2cb   : > { %1425 = vst.msk [vmem:[#allocation3 + $0x24] sm:$0xf] %vm13561_vm8, %v9712_v43  ;;  %v1274_v37 = vpack.c.bf16 %v13664_v58, %v13664_v58  ;;  %v1258_v58 = vld [vmem:[#allocation2 + $0x171] sm:$0xff] }
 0x2cc   : > { %1205 = vst.msk [vmem:[#allocation3 + $0x60] sm:$0xf] %vm13562_vm7, %v1117_v39  ;;  %v13665_v39 = vld [vmem:[#allocation24_spill] sm:$0xff] }
 0x2cd   : > { %v1272_v20 = vpack.c.bf16 %v13665_v39, %v13665_v39 }
 0x2ce   : > { %3489 = vrot.lane.b32.xlu0 %v3485_v19, %s8833_s29 }
 0x2cf   : > { %1333 = vrot.lane.b32.xlu1 %v13656_v28, %s8834_s9  ;;  %1329 = vrot.lane.b32.xlu2 %v9079_v24, %s8834_s9  ;;  %v13659_v24 = vld [vmem:[#allocation9_spill] sm:$0xff] }
 0x2d0   : > { %v9908_v7 = vpop.permute.xlu0 %2790 }
 0x2d1   : > { %v1111_v51 = vpop.permute.xlu1 %1110  ;;  %v1121_v43 = vpop.permute.xlu2 %1120 }
 0x2d2   : > { %1202 = vst.msk [vmem:[#allocation3 + $0x3c] sm:$0xf] %vm13562_vm7, %v1111_v51 }
 0x2d3   : > { %1207 = vst.msk [vmem:[#allocation3 + $0x78] sm:$0xf] %vm13562_vm7, %v1121_v43 }
 0x2d6   : > { %3520 = vrot.lane.b32.xlu0 %v3516_v53, %s8834_s9  ;;  %v13666_v53 = vld [vmem:[#allocation53_spill] sm:$0xff] }
 0x2d7   : > { %1339 = vrot.lane.b32.xlu1 %v1268_v22, %s8834_s9  ;;  %1335 = vrot.lane.b32.xlu2 %v13659_v24, %s8834_s9  ;;  %v1277_v41 = vpack.c.bf16 %v13666_v53, %v13666_v53  ;;  %v13667_v22 = vld [vmem:[#allocation41_spill] sm:$0xff]  ;;  %v1459_v53 = vld [vmem:[#allocation2 + $0x52] sm:$0xff] }
 0x2d8   : > { %v2845_v14 = vpop.permute.xlu0 %2844 }
 0x2d9   : > { %v1115_v5 = vpop.permute.xlu1 %1114  ;;  %v1125_v1 = vpop.permute.xlu2 %1124  ;;  %2868 = vst.msk [vmem:[#allocation3] sm:$0xf] %vm13551_vm5, %v2845_v14 }
 0x2da   : > { %1204 = vst.msk [vmem:[#allocation3 + $0x54] sm:$0xf] %vm13562_vm7, %v1115_v5  ;;  %v1275_v5 = vpack.c.bf16 %v13667_v22, %v13667_v22  ;;  %v13671_v22 = vld [vmem:[#allocation30_spill] sm:$0xff] }
 0x2db   : > { %1209 = vst.msk [vmem:[#allocation3 + $0x90] sm:$0xf] %vm13562_vm7, %v1125_v1 }
 0x2dc   : > { %1434 = vst.msk [vmem:[#allocation3 + $0x90] sm:$0xf] %vm13561_vm8, %v9747_v52 }
 0x2de   : > { %3553 = vrot.lane.b32.xlu0 %v3548_v18, %s8835_s10  ;;  %v1255_v18 = vld [vmem:[#allocation2 + $0x151] sm:$0xff] }
 0x2df   : > { %1345 = vrot.lane.b32.xlu1 %v1271_v27, %s8834_s9  ;;  %1341 = vrot.lane.b32.xlu2 %v1269_v46, %s8834_s9  ;;  %v1287_v27 = vpack.c.bf16 %v1255_v18, %v1255_v18  ;;  %v13668_v46 = vld [vmem:[#allocation55_spill] sm:$0xff]  ;;  %v13672_v18 = vld [vmem:[#allocation72_spill] sm:$0xff] }
 0x2e0   : > { %v9934_v15 = vpop.permute.xlu0 %2846  ;;  %v3610_v59 = vpack.c.bf16 %v13672_v18, %v13672_v18 }
 0x2e1   : > { %v1119_v21 = vpop.permute.xlu1 %1118  ;;  %v1129_v52 = vpop.permute.xlu2 %1128 }
 0x2e2   : > { %1206 = vst.msk [vmem:[#allocation3 + $0x6c] sm:$0xf] %vm13562_vm7, %v1119_v21  ;;  %v1278_v21 = vpack.c.bf16 %v13668_v46, %v13668_v46 }
 0x2e3   : > { %1431 = vst.msk [vmem:[#allocation3 + $0x6c] sm:$0xf] %vm13561_vm8, %v9734_v33  ;;  %v3637_v33 = vld.sshfl [vmem:[#allocation1 + $0x10] sm:$0xff pattern:$0x75316420] }
 0x2e4   : > { %1211 = vst.msk [vmem:[#allocation3 + $0xa8] sm:$0xf] %vm13562_vm7, %v1129_v52  ;;  %v3641_v49 = vpack.c.bf16 %v3637_v33, %v3637_v33 }
 0x2e6   : > { %3613 = vrot.lane.b32.xlu0 %v3609_v42, %s8837_s13 }
 0x2e7   : > { %1351 = vrot.lane.b32.xlu1 %v1274_v37, %s8834_s9  ;;  %1347 = vrot.lane.b32.xlu2 %v1272_v20, %s8834_s9  ;;  %v1290_v37 = vpack.c.bf16 %v1258_v58, %v1258_v58 }
 0x2e8   : > { %v2901_v51 = vpop.permute.xlu0 %2900 }
 0x2e9   : > { %v1123_v19 = vpop.permute.xlu1 %1122  ;;  %v1133_v43 = vpop.permute.xlu2 %1132  ;;  %2924 = vst.msk [vmem:[#allocation3] sm:$0xf] %vm13562_vm7, %v2901_v51  ;;  %v13669_v51 = vld [vmem:[#allocation64_spill] sm:$0xff] }
 0x2ea   : > { %1208 = vst.msk [vmem:[#allocation3 + $0x84] sm:$0xf] %vm13562_vm7, %v1123_v19  ;;  %v3517_v33 = vpack.c.bf16 %v13669_v51, %v13669_v51  ;;  %v13675_v51 = vld [vmem:[#allocation42_spill] sm:$0xff] }
 0x2eb   : > { %1213 = vst.msk [vmem:[#allocation3 + $0xc0] sm:$0xf] %vm13562_vm7, %v1133_v43 }
 0x2ee   : > { %3646 = vrot.lane.b32.xlu0 %v3641_v49, %s8838_s14 }
 0x2ef   : > { %1357 = vrot.lane.b32.xlu1 %v1277_v41, %s8834_s9  ;;  %1353 = vrot.lane.b32.xlu2 %v1275_v5, %s8834_s9  ;;  %v13670_v41 = vld [vmem:[#allocation70_spill] sm:$0xff]  ;;  %v10001_v5 = vpack.c.bf16 %v13671_v22, %v13671_v22 }
 0x2f0   : > { %v9959_v1 = vpop.permute.xlu0 %2902  ;;  %v1471_v22 = vld [vmem:[#allocation2 + $0xe2] sm:$0xff] }
 0x2f1   : > { %v1127_v14 = vpop.permute.xlu1 %1126  ;;  %v1137_v44 = vpop.permute.xlu2 %1136 }
 0x2f2   : > { %1210 = vst.msk [vmem:[#allocation3 + $0x9c] sm:$0xf] %vm13562_vm7, %v1127_v14 }
 0x2f3   : > { %1215 = vst.msk [vmem:[#allocation3 + $0xd8] sm:$0xf] %vm13562_vm7, %v1137_v44 }
 0x2f4   : > { %1440 = vst.msk [vmem:[#allocation3 + $0xd8] sm:$0xf] %vm13561_vm8, %v9774_v40  ;;  %v1249_v40 = vld [vmem:[#allocation2 + $0x109] sm:$0xff] }
 0x2f5   : > { %v1281_v39 = vpack.c.bf16 %v1249_v40, %v1249_v40  ;;  %v13674_v40 = vld [vmem:[#allocation32_spill] sm:$0xff] }
 0x2f6   : > { %1377 = vrot.lane.b32.xlu0 %v1287_v27, %s8834_s9  ;;  %v13673_v27 = vld [vmem:[#allocation31_spill] sm:$0xff] }
 0x2f7   : > { %1363 = vrot.lane.b32.xlu1 %v1280_v4, %s8834_s9  ;;  %1359 = vrot.lane.b32.xlu2 %v1278_v21, %s8834_s9  ;;  %v10018_v4 = vpack.c.bf16 %v13673_v27, %v13673_v27 }
 0x2f8   : > { %v2957_v0 = vpop.permute.xlu0 %2956 }
 0x2f9   : > { %v1131_v52 = vpop.permute.xlu1 %1130  ;;  %v1141_v42 = vpop.permute.xlu2 %1140  ;;  %2980 = vst.msk [vmem:[#allocation3] sm:$0xf] %vm13561_vm8, %v2957_v0  ;;  %v1253_v0 = vld [vmem:[#allocation2 + $0x139] sm:$0xff] }
 0x2fa   : > { %1212 = vst.msk [vmem:[#allocation3 + $0xb4] sm:$0xf] %vm13562_vm7, %v1131_v52  ;;  %v1465_v52 = vld [vmem:[#allocation2 + $0x9a] sm:$0xff]  ;;  %v1285_v58 = vpack.c.bf16 %v1253_v0, %v1253_v0 }
 0x2fb   : > { %1437 = vst.msk [vmem:[#allocation3 + $0xb4] sm:$0xf] %vm13561_vm8, %v9760_v25 }
 0x2fc   : > { %1217 = vst.msk [vmem:[#allocation3 + $0xf0] sm:$0xf] %vm13562_vm7, %v1141_v42  ;;  %v1497_v42 = vpack.c.bf16 %v1465_v52, %v1465_v52 }
 0x2fe   : > { %1383 = vrot.lane.b32.xlu0 %v1290_v37, %s8834_s9  ;;  %v10032_v37 = vpack.c.bf16 %v13674_v40, %v13674_v40 }
 0x2ff   : > { %2003 = vrot.lane.b32.xlu1 %v9091_v31, %s8837_s13  ;;  %1365 = vrot.lane.b32.xlu2 %v1281_v39, %s8834_s9 }
 0x300   : > { %v9979_v19 = vpop.permute.xlu0 %2958 }
 0x301   : > { %v1135_v20 = vpop.permute.xlu1 %1134  ;;  %v1145_v25 = vpop.permute.xlu2 %1144 }
 0x302   : > { %1214 = vst.msk [vmem:[#allocation3 + $0xcc] sm:$0xf] %vm13562_vm7, %v1135_v20 }
 0x303   : > { %1219 = vst.msk [vmem:[#allocation3 + $0x108] sm:$0xf] %vm13562_vm7, %v1145_v25  ;;  %v1256_v25 = vld [vmem:[#allocation2 + $0x159] sm:$0xff] }
 0x304   : > { %1444 = vst.msk [vmem:[#allocation3 + $0x108] sm:$0xf] %vm13561_vm8, %v9800_v62  ;;  %v9995_v62 = vpack.c.bf16 %v1459_v53, %v1459_v53 }
 0x306   : > { %1554 = vrot.lane.b32.xlu0 %v9557_v23, %s8835_s10  ;;  %v3578_v23 = vpack.c.bf16 %v13670_v41, %v13670_v41 }
 0x307   : > { %3522 = vrot.lane.b32.xlu1 %v3517_v33, %s8834_s9  ;;  %1778 = vrot.lane.b32.xlu2 %v9093_v32, %s8836_s12  ;;  %v1500_v33 = vpack.c.bf16 %v13675_v51, %v13675_v51 }
 0x308   : > { %v3013_v43 = vpop.permute.xlu0 %3012 }
 0x309   : > { %v1139_v31 = vpop.permute.xlu1 %1138  ;;  %v1149_v49 = vpop.permute.xlu2 %1148  ;;  %3036 = vst.msk [vmem:[#allocation3] sm:$0xf] %vm1646_vm9, %v3013_v43  ;;  %v13676_v43 = vld [vmem:[#allocation52_spill] sm:$0xff] }
 0x30a   : > { %1216 = vst.msk [vmem:[#allocation3 + $0xe4] sm:$0xf] %vm13562_vm7, %v1139_v31  ;;  %v1288_v31 = vpack.c.bf16 %v1256_v25, %v1256_v25 }
 0x30b   : > { %1221 = vst.msk [vmem:[#allocation3 + $0x120] sm:$0xf] %vm13562_vm7, %v1149_v49  ;;  %v3424_v49 = vpack.c.bf16 %v13676_v43, %v13676_v43  ;;  %v1477_v43 = vld [vmem:[#allocation2 + $0x12a] sm:$0xff] }
 0x30e   : > { %1560 = vrot.lane.b32.xlu0 %v9995_v62, %s8835_s10 }
 0x30f   : > { %3582 = vrot.lane.b32.xlu1 %v3578_v23, %s8836_s12  ;;  %3070 = vrot.lane.b32.xlu2 %v10001_v5, %s8836_s12 }
 0x310   : > { %v10008_v14 = vpop.permute.xlu0 %3014 }
 0x311   : > { %v1143_v32 = vpop.permute.xlu1 %1142  ;;  %v1153_v44 = vpop.permute.xlu2 %1152 }
 0x312   : > { %1218 = vst.msk [vmem:[#allocation3 + $0xfc] sm:$0xf] %vm13562_vm7, %v1143_v32  ;;  %v1259_v32 = vld [vmem:[#allocation2 + $0x181] sm:$0xff] }
 0x313   : > { %1443 = vst.msk [vmem:[#allocation3 + $0xfc] sm:$0xf] %vm13561_vm8, %v9789_v47  ;;  %v1291_v18 = vpack.c.bf16 %v1259_v32, %v1259_v32  ;;  %v1463_v32 = vld [vmem:[#allocation2 + $0x82] sm:$0xff] }
 0x314   : > { %1223 = vst.msk [vmem:[#allocation3 + $0x138] sm:$0xf] %vm13562_vm7, %v1153_v44  ;;  %v1503_v44 = vpack.c.bf16 %v1471_v22, %v1471_v22 }
 0x316   : > { %1566 = vrot.lane.b32.xlu0 %v9589_v26, %s8835_s10 }
 0x317   : > { %3615 = vrot.lane.b32.xlu1 %v3610_v59, %s8837_s13  ;;  %3126 = vrot.lane.b32.xlu2 %v10018_v4, %s8837_s13  ;;  %v13677_v59 = vld [vmem:[#allocation56_spill] sm:$0xff] }
 0x318   : > { %v3069_v21 = vpop.permute.xlu0 %3068  ;;  %v3455_v27 = vpack.c.bf16 %v13677_v59, %v13677_v59 }
 0x319   : > { %v1147_v46 = vpop.permute.xlu1 %1146  ;;  %v1157_v47 = vpop.permute.xlu2 %1156  ;;  %3092 = vst.msk [vmem:[#allocation3] sm:$0xf] %vm1872_vm10, %v3069_v21 }
 0x31a   : > { %1220 = vst.msk [vmem:[#allocation3 + $0x114] sm:$0xf] %vm13562_vm7, %v1147_v46 }
 0x31b   : > { %1445 = vst.msk [vmem:[#allocation3 + $0x114] sm:$0xf] %vm13561_vm8, %v9816_v35 }
 0x31c   : > { %1225 = vst.msk [vmem:[#allocation3 + $0x150] sm:$0xf] %vm13562_vm7, %v1157_v47  ;;  %v13678_v47 = vld [vmem:[#allocation40_spill] sm:$0xff] }
 0x31d   : > { %v3400_v52 = vpack.c.bf16 %v13678_v47, %v13678_v47 }
 0x31e   : > { %1572 = vrot.lane.b32.xlu0 %v1497_v42, %s8835_s10  ;;  %v1474_v42 = vld [vmem:[#allocation2 + $0x10a] sm:$0xff] }
 0x31f   : > { %1373 = vrot.lane.b32.xlu1 %v1285_v58, %s8834_s9  ;;  %3182 = vrot.lane.b32.xlu2 %v10032_v37, %s8838_s14  ;;  %v1457_v58 = vld [vmem:[#allocation2 + $0x3a] sm:$0xff] }
 0x320   : > { %v3125_v20 = vpop.permute.xlu0 %3124 }
 0x321   : > { %v1151_v39 = vpop.permute.xlu1 %1150  ;;  %v1163_v35 = vpop.permute.xlu2 %1162  ;;  %3148 = vst.msk [vmem:[#allocation3] sm:$0xf] %vm13560_vm11, %v3125_v20  ;;  %v1489_v20 = vpack.c.bf16 %v1457_v58, %v1457_v58  ;;  %v1483_v58 = vld [vmem:[#allocation2 + $0x172] sm:$0xff] }
 0x322   : > { %1222 = vst.msk [vmem:[#allocation3 + $0x12c] sm:$0xf] %vm13562_vm7, %v1151_v39  ;;  %v1506_v39 = vpack.c.bf16 %v1474_v42, %v1474_v42 }
 0x323   : > { %1228 = vst.msk [vmem:[#allocation3 + $0x174] sm:$0xf] %vm13562_vm7, %v1163_v35  ;;  %v13680_v35 = vld [vmem:[#allocation61_spill] sm:$0xff] }
 0x324   : > { %v3486_v25 = vpack.c.bf16 %v13680_v35, %v13680_v35  ;;  %v13683_v35 = vld [vmem:[#allocation36_spill] sm:$0xff] }
 0x326   : > { %1578 = vrot.lane.b32.xlu0 %v1500_v33, %s8835_s10 }
 0x327   : > { %1379 = vrot.lane.b32.xlu1 %v1288_v31, %s8834_s9  ;;  %3429 = vrot.lane.b32.xlu2 %v3424_v49, %s8831_s26  ;;  %v1509_v49 = vpack.c.bf16 %v1477_v43, %v1477_v43  ;;  %v8602_v43 = vld [vmem:[%s13519_s4 + $0x18] sm:$0xff] }
 0x328   : > { %v3181_v41 = vpop.permute.xlu0 %3180 }
 0x329   : > { %v1155_v53 = vpop.permute.xlu1 %1154  ;;  %v1330_v23 = vpop.permute.xlu2 %1329  ;;  %3204 = vst.msk [vmem:[#allocation3] sm:$0xf] %vm13550_vm12, %v3181_v41 }
 0x32a   : > { %1224 = vst.msk [vmem:[#allocation3 + $0x144] sm:$0xf] %vm13562_vm7, %v1155_v53  ;;  %v13681_v53 = vld [vmem:[#allocation68_spill] sm:$0xff] }
 0x32b   : > { %1424 = vst.msk [vmem:[#allocation3 + $0x18] sm:$0xf] %vm13561_vm8, %v1330_v23  ;;  %v3547_v41 = vpack.c.bf16 %v13681_v53, %v13681_v53 }
 0x32e   : > { %1584 = vrot.lane.b32.xlu0 %v1503_v44, %s8835_s10  ;;  %v1480_v44 = vld [vmem:[#allocation2 + $0x152] sm:$0xff] }
 0x32f   : > { %1385 = vrot.lane.b32.xlu1 %v1291_v18, %s8834_s9  ;;  %3460 = vrot.lane.b32.xlu2 %v3455_v27, %s8832_s28  ;;  %v1495_v18 = vpack.c.bf16 %v1463_v32, %v1463_v32  ;;  %v1512_v59 = vpack.c.bf16 %v1480_v44, %v1480_v44  ;;  %v13682_v27 = vld [vmem:[#allocation69_spill] sm:$0xff] }
 0x330   : > { %v3428_v21 = vpop.permute.xlu0 %3427  ;;  %v10059_v40 = vld [vmem:[#allocation3] sm:$0xf]  ;;  %v8600_v32 = vld [vmem:[%s13519_s4 + $0x8] sm:$0xff] }
 0x331   : > { %v1161_v46 = vpop.permute.xlu1 %1160  ;;  %v1336_v0 = vpop.permute.xlu2 %1335  ;;  %13679 = vst [vmem:[#allocation62_spill] sm:$0xff] %v10059_v40 }
 0x332   : > { %1227 = vst.msk [vmem:[#allocation3 + $0x168] sm:$0xf] %vm13562_vm7, %v1161_v46  ;;  %v3579_v46 = vpack.c.bf16 %v13682_v27, %v13682_v27  ;;  %v1472_v27 = vld [vmem:[#allocation2 + $0xf2] sm:$0xff] }
 0x333   : > { %1427 = vst.msk [vmem:[#allocation3 + $0x3c] sm:$0xf] %vm13561_vm8, %v1336_v0 }
 0x334   : > { %3402 = vst.msk [vmem:[#allocation3] sm:$0xf] %vm521_vm2, %v3400_v52 }
 0x335   : > { %3433 = vst.msk [vmem:[#allocation3] sm:$0xf] %vm13559_vm3, %v3428_v21  ;;  %v2395_v21 = vld [vmem:[%s13519_s4 + $0x20] sm:$0xf] }
 0x336   : > { %1590 = vrot.lane.b32.xlu0 %v1506_v39, %s8835_s10  ;;  %v2495_v0 = vunpack.c.l.b16 %v2395_v21  ;;  %v3636_v39 = vld.sshfl [vmem:[#allocation1] sm:$0xff pattern:$0x75316420] }
 0x337   : > { %1556 = vrot.lane.b32.xlu1 %v1489_v20, %s8835_s10  ;;  %3491 = vrot.lane.b32.xlu2 %v3486_v25, %s8833_s29  ;;  %v1498_v25 = vpack.c.bf16 %v13683_v35, %v13683_v35  ;;  %v13684_v21 = vld [vmem:[#allocation12_spill] sm:$0xff] }
 0x338   : > { %v3459_v33 = vpop.permute.xlu0 %3458  ;;  %v2500_v20 = vpack.c.b16 %v2495_v0, %v2495_v0 }
 0x339   : > { %v1328_v51 = vpop.permute.xlu1 %1327  ;;  %v1342_v31 = vpop.permute.xlu2 %1341  ;;  %3464 = vst.msk [vmem:[#allocation3] sm:$0xf] %vm13551_vm5, %v3459_v33 }
 0x33a   : > { %1423 = vst.msk [vmem:[#allocation3 + $0xc] sm:$0xf] %vm13561_vm8, %v1328_v51  ;;  %v1515_v51 = vpack.c.bf16 %v1483_v58, %v1483_v58  ;;  %v2556_v33 = vsel %vm2554_vm13, %v2500_v20, 0 }
 0x33b   : > { %1648 = vst.msk [vmem:[#allocation3 + $0xc] sm:$0xf] %vm1646_vm9, %v9837_v60  ;;  %2561 = vmatpush.bf16.msra.mxu0 %v2556_v33  ;;  %8702 = vmatpush.bf16.msra.mxu1 %v2556_v33  ;;  %v1478_v33 = vld [vmem:[#allocation2 + $0x13a] sm:$0xff] }
 0x33c   : > { %1430 = vst.msk [vmem:[#allocation3 + $0x60] sm:$0xf] %vm13561_vm8, %v1342_v31  ;;  %v3640_v31 = vpack.c.bf16 %v3636_v39, %v3636_v39  ;;  %v13685_v39 = vld [vmem:[#allocation22_spill] sm:$0xff] }
 0x33d   : > { %v1720_v20 = vpack.c.bf16 %v13685_v39, %v13685_v39 }
 0x33e   : > { %1596 = vrot.lane.b32.xlu0 %v1509_v49, %s8835_s10 }
 0x33f   : > { %1562 = vrot.lane.b32.xlu1 %v9580_v57, %s8835_s10  ;;  %3551 = vrot.lane.b32.xlu2 %v3547_v41, %s8835_s10 }
 0x340   : > { %v3490_v22 = vpop.permute.xlu0 %3489  ;;  %2562 = vmatpush.bf16.msra.mxu0 %v8602_v43  ;;  %8703 = vmatpush.bf16.msra.mxu1 %v8602_v43  ;;  %v13686_v43 = vld [vmem:[#allocation37_spill] sm:$0xff] }
 0x341   : > { %v1334_v23 = vpop.permute.xlu1 %1333  ;;  %v1348_v60 = vpop.permute.xlu2 %1347  ;;  %3495 = vst.msk [vmem:[#allocation3] sm:$0xf] %vm13562_vm7, %v3490_v22  ;;  %v8601_v22 = vld [vmem:[%s13519_s4 + $0x10] sm:$0xff] }
 0x342   : > { %1426 = vst.msk [vmem:[#allocation3 + $0x30] sm:$0xf] %vm13561_vm8, %v1334_v23  ;;  %v1469_v23 = vld [vmem:[#allocation2 + $0xca] sm:$0xff] }
 0x343   : > { %1433 = vst.msk [vmem:[#allocation3 + $0x84] sm:$0xf] %vm13561_vm8, %v1348_v60  ;;  %v1501_v60 = vpack.c.bf16 %v1469_v23, %v1469_v23 }
 0x344   : > { %2563 = vmatpush.bf16.msra.mxu0 %v8601_v22  ;;  %8704 = vmatpush.bf16.msra.mxu1 %v8601_v22 }
 0x346   : > { %1602 = vrot.lane.b32.xlu0 %v1512_v59, %s8835_s10 }
 0x347   : > { %1568 = vrot.lane.b32.xlu1 %v1495_v18, %s8835_s10  ;;  %3584 = vrot.lane.b32.xlu2 %v3579_v46, %s8836_s12  ;;  %v8599_v46 = vld [vmem:[%s13519_s4] sm:$0xff] }
 0x348   : > { %v3521_v52 = vpop.permute.xlu0 %3520  ;;  %2564 = vmatpush.bf16.msra.mxu0 %v8600_v32  ;;  %8705 = vmatpush.bf16.msra.mxu1 %v8600_v32  ;;  %v4846_v32 = vld [vmem:[%s300_s15] sm:$0xff]  ;;  %s281_s15 = sand.u32 1, %s8820_s22  }
 0x349   : > { %v1340_v47 = vpop.permute.xlu1 %1339  ;;  %v1354_v42 = vpop.permute.xlu2 %1353  ;;  %3526 = vst.msk [vmem:[#allocation3] sm:$0xf] %vm13561_vm8, %v3521_v52  ;;  %s7933_s11 = sshll.u32 %s281_s15, 6 }
 0x34a   : > { %1429 = vst.msk [vmem:[#allocation3 + $0x54] sm:$0xf] %vm13561_vm8, %v1340_v47  ;;  %s13444_s16 = scalar_lea.vmem [#allocation4], %s7933_s11 }
 0x34b   : > { %1436 = vst.msk [vmem:[#allocation3 + $0xa8] sm:$0xf] %vm13561_vm8, %v1354_v42  ;;  %v1475_v42 = vld [vmem:[#allocation2 + $0x112] sm:$0xff] }
 0x34c   : > { %2565 = vmatpush.bf16.msra.mxu0 %v8599_v46  ;;  %8706 = vmatpush.bf16.msra.mxu1 %v8599_v46  ;;  %v1507_v58 = vpack.c.bf16 %v1475_v42, %v1475_v42 }
 0x34e   : > { %1608 = vrot.lane.b32.xlu0 %v1515_v51, %s8835_s10 }
 0x34f   : > { %1574 = vrot.lane.b32.xlu1 %v1498_v25, %s8835_s10  ;;  %3644 = vrot.lane.b32.xlu2 %v3640_v31, %s8838_s14  ;;  %v1510_v31 = vpack.c.bf16 %v1478_v33, %v1478_v33  ;;  %v13688_v33 = vld [vmem:[#allocation43_spill] sm:$0xff] }
 0x350   : > { %v10103_v53 = vpop.permute.xlu0 %3553 }
 0x351   : > { %v1346_v49 = vpop.permute.xlu1 %1345  ;;  %v1360_v41 = vpop.permute.xlu2 %1359 }
 0x352   : > { %1432 = vst.msk [vmem:[#allocation3 + $0x78] sm:$0xf] %vm13561_vm8, %v1346_v49  ;;  %v1722_v49 = vpack.c.bf16 %v13686_v43, %v13686_v43 }
 0x353   : > { %1439 = vst.msk [vmem:[#allocation3 + $0xcc] sm:$0xf] %vm13561_vm8, %v1360_v41 }
 0x356   : > { %1780 = vrot.lane.b32.xlu0 %v9107_v38, %s8836_s12  ;;  %v1504_v38 = vpack.c.bf16 %v1472_v27, %v1472_v27  ;;  %v10163_v27 = vld [vmem:[#allocation2 + $0x2] sm:$0xff] }
 0x357   : > { %1580 = vrot.lane.b32.xlu1 %v1501_v60, %s8835_s10  ;;  %v1481_v60 = vld [vmem:[#allocation2 + $0x15a] sm:$0xff] }
 0x358   : > { %v10116_v18 = vpop.permute.xlu0 %3613 }
 0x359   : > { %v1352_v44 = vpop.permute.xlu1 %1351  ;;  %v1366_v59 = vpop.permute.xlu2 %1365 }
 0x35a   : > { %1435 = vst.msk [vmem:[#allocation3 + $0x9c] sm:$0xf] %vm13561_vm8, %v1352_v44  ;;  %v1513_v44 = vpack.c.bf16 %v1481_v60, %v1481_v60 }
 0x35b   : > { %1442 = vst.msk [vmem:[#allocation3 + $0xf0] sm:$0xf] %vm13561_vm8, %v1366_v59  ;;  %v10161_v59 = vld [vmem:[#allocation2 + $0x1] sm:$0xff] }
 0x35c   : > { %6010 = vst.msk [vmem:[#allocation2 + $0x8] sm:$0x3] %vm4068_vm6, %v13597_v48 }
 0x35e   : > { %1786 = vrot.lane.b32.xlu0 %v13684_v21, %s8836_s12 }
 0x35f   : > { %1586 = vrot.lane.b32.xlu1 %v1504_v38, %s8835_s10 }
 0x360   : > { %v10126_v52 = vpop.permute.xlu0 %3646 }
 0x361   : > { %v1358_v47 = vpop.permute.xlu1 %1357  ;;  %v1779_v0 = vpop.permute.xlu2 %1778 }
 0x362   : > { %1438 = vst.msk [vmem:[#allocation3 + $0xc0] sm:$0xf] %vm13561_vm8, %v1358_v47  ;;  %v1484_v47 = vld [vmem:[#allocation2 + $0x182] sm:$0xff] }
 0x363   : > { %1874 = vst.msk [vmem:[#allocation3 + $0xc] sm:$0xf] %vm1872_vm10, %v1779_v0  ;;  %v1516_v42 = vpack.c.bf16 %v1484_v47, %v1484_v47 }
 0x366   : > { %1792 = vrot.lane.b32.xlu0 %v1720_v20, %s8836_s12  ;;  %v8615_v20 = vld [vmem:[%s13519_s4 + $0x138] sm:$0xff] }
 0x367   : > { %1592 = vrot.lane.b32.xlu1 %v1507_v58, %s8835_s10 }
 0x368   : > { %v1378_v25 = vpop.permute.xlu0 %1377 }
 0x369   : > { %v1364_v35 = vpop.permute.xlu1 %1363  ;;  %v3071_v51 = vpop.permute.xlu2 %3070  ;;  %1448 = vst.msk [vmem:[#allocation3 + $0x138] sm:$0xf] %vm13561_vm8, %v1378_v25  ;;  %v10220_v25 = vld [vmem:[#allocation2 + $0x90] sm:$0xff] }
 0x36a   : > { %1441 = vst.msk [vmem:[#allocation3 + $0xe4] sm:$0xf] %vm13561_vm8, %v1364_v35  ;;  %v10218_v35 = vld [vmem:[#allocation2 + $0x90] sm:$0xff] }
 0x36b   : > { %13687 = vst [vmem:[#allocation66_spill] sm:$0xff] %v10218_v35 }
 0x36c   : > { %4080 = vst.msk [vmem:[#allocation2 + $0x90] sm:$0xff] %vm4066_vm14, %v13597_v48 }
 0x36e   : > { %1796 = vrot.lane.b32.xlu0 %v1722_v49, %s8836_s12  ;;  %v8614_v49 = vld [vmem:[%s13519_s4 + $0x130] sm:$0xff] }
 0x36f   : > { %1598 = vrot.lane.b32.xlu1 %v1510_v31, %s8835_s10  ;;  %v3401_v31 = vpack.c.bf16 %v13688_v33, %v13688_v33 }
 0x370   : > { %v1384_v23 = vpop.permute.xlu0 %1383 }
 0x371   : > { %v2004_v41 = vpop.permute.xlu1 %2003  ;;  %v3127_v22 = vpop.permute.xlu2 %3126  ;;  %1451 = vst.msk [vmem:[#allocation3 + $0x15c] sm:$0xf] %vm13561_vm8, %v1384_v23 }
 0x372   : > { %2099 = vst.msk [vmem:[#allocation3 + $0xc] sm:$0xf] %vm13560_vm11, %v2004_v41 }
 0x373   : > { %2324 = vst.msk [vmem:[#allocation3 + $0xc] sm:$0xf] %vm13550_vm12, %v9881_v6  ;;  %v10159_v6 = vld [vmem:[#allocation2] sm:$0xff] }
 0x374   : > { %4882 = vst.msk [vmem:[#allocation2] sm:$0xf] %vm521_vm2, %v13597_v48 }
 0x375   : > { %4847 = vxpose.xlu2.b32.start.end [1/1] (short) (narrow) %v4846_v32, 8 }
 0x376   : > { %2007 = vrot.lane.b32.xlu0 %v13659_v24, %s8837_s13 }
 0x377   : > { %1604 = vrot.lane.b32.xlu1 %v1513_v44, %s8835_s10  ;;  %v10247_v44 = vld [vmem:[#allocation2 + $0xa8] sm:$0xff] }
 0x378   : > { %v1555_v38 = vpop.permute.xlu0 %1554  ;;  %4082 = vst.msk [vmem:[#allocation2 + $0xa8] sm:$0xff] %vm4066_vm14, %v13597_v48 }
 0x379   : > { %v10167_v46 = vpop.permute.xlu1 %3522  ;;  %v3183_v24 = vpop.permute.xlu2 %3182  ;;  %1649 = vst.msk [vmem:[#allocation3 + $0x18] sm:$0xf] %vm1646_vm9, %v1555_v38  ;;  %v13692_v38 = vld [vmem:[#allocation15_spill] sm:$0xff] }
 0x37a   : > { %v8583_v21 = vld [vmem:[#allocation3 + $0x8] sm:$0xf0] }
 0x37b   : > { %2757 = vst.msk [vmem:[#allocation3 + $0xc] sm:$0xf] %vm521_vm2, %v9766_v17  ;;  %v7942_v0 = vor.u32 %v8583_v21, %v9884_v61  ;;  %v8088_v17 = vld [vmem:[%s13519_s4 + $0x140] sm:$0xf]  ;;  %v10199_v58 = vld [vmem:[#allocation2 + $0x1] sm:$0x3] }
 0x37c   : > { %2813 = vst.msk [vmem:[#allocation3 + $0xc] sm:$0xf] %vm13559_vm3, %v9908_v7  ;;  %v3688_v61 = vunpack.c.l.b16 %v8088_v17  ;;  %v8613_v21 = vld [vmem:[%s13519_s4 + $0x128] sm:$0xff] }
 0x37d   : > { %2869 = vst.msk [vmem:[#allocation3 + $0xc] sm:$0xf] %vm13551_vm5, %v9934_v15  ;;  %8019 = vmatmul.msk.bf16.vlgmr.msra.gmra.mxu0 %vm13552_vm15, %v7942_v0  ;;  %v13693_v17 = vld [vmem:[#allocation25_spill] sm:$0xff] }
 0x37e   : > { %2925 = vst.msk [vmem:[#allocation3 + $0xc] sm:$0xf] %vm13562_vm7, %v9959_v1  ;;  %2232 = vrot.lane.b32.xlu0 %v9995_v62, %s8838_s14  ;;  %v10197_v62 = vld [vmem:[#allocation2] sm:$0x3] }
 0x37f   : > { %2981 = vst.msk [vmem:[#allocation3 + $0xc] sm:$0xf] %vm13561_vm8, %v9979_v19  ;;  %1610 = vrot.lane.b32.xlu1 %v1516_v42, %s8835_s10  ;;  %v3693_v19 = vpack.c.b16 %v3688_v61, %v3688_v61  ;;  %v4186_v42 = vpack.c.bf16 %v10163_v27, %v10163_v27  ;;  %v1721_v61 = vpack.c.bf16 %v13693_v17, %v13693_v17 }
 0x380   : > { %3037 = vst.msk [vmem:[#allocation3 + $0xc] sm:$0xf] %vm1646_vm9, %v10008_v14  ;;  %v1561_v15 = vpop.permute.xlu0 %1560  ;;  %v10202_v14 = vld [vmem:[#allocation2 + $0x2] sm:$0x3] }
 0x381   : > { %3093 = vst.msk [vmem:[#allocation3 + $0xc] sm:$0xf] %vm1872_vm10, %v3071_v51  ;;  %v10193_v7 = vpop.permute.xlu1 %3582  ;;  %v3430_v1 = vpop.permute.xlu2 %3429  ;;  %v3702_v39 = vsel %vm2554_vm13, %v3693_v19, 0  ;;  %v10222_v51 = vld [vmem:[#allocation2 + $0xc0] sm:$0xff] }
 0x382   : > { %3149 = vst.msk [vmem:[#allocation3 + $0xc] sm:$0xf] %vm13560_vm11, %v3127_v22  ;;  %3707 = vmatpush.bf16.msra.mxu2 %v3702_v39  ;;  %v4104_v39 = vpack.c.bf16 %v10159_v6, %v10159_v6 }
 0x383   : > { %3205 = vst.msk [vmem:[#allocation3 + $0xc] sm:$0xf] %vm13550_vm12, %v3183_v24 }
 0x384   : > { %1652 = vst.msk [vmem:[#allocation3 + $0x3c] sm:$0xf] %vm1646_vm9, %v1561_v15 }
 0x385   : > { %5191 = vst.msk [vmem:[#allocation2] sm:$0x3f] %vm5190_vm0, %v13597_v48 }
 0x386   : > { %2794 = vrot.lane.b32.xlu0 %v10018_v4, %s8831_s26  ;;  %3708 = vmatpush.bf16.msra.mxu2 %v8615_v20  ;;  %4084 = vst.msk [vmem:[#allocation2 + $0xc0] sm:$0xff] %vm4066_vm14, %v13597_v48 }
 0x387   : > { %1782 = vrot.lane.b32.xlu1 %v9118_v45, %s8836_s12 }
 0x388   : > { %v1567_v45 = vpop.permute.xlu0 %1566 }
 0x389   : > { %v3616_v43 = vpop.permute.xlu1 %3615  ;;  %v3461_v23 = vpop.permute.xlu2 %3460  ;;  %1655 = vst.msk [vmem:[#allocation3 + $0x60] sm:$0xf] %vm1646_vm9, %v1567_v45  ;;  %v4129_v45 = vpack.c.bf16 %v10161_v59, %v10161_v59 }
 0x38a   : > { %v10233_v41 = vld [vmem:[#allocation3 + $0x8] sm:$0xf0]  ;;  %3709 = vmatpush.bf16.msra.mxu2 %v8614_v49 }
 0x38b   : > { %13689 = vst [vmem:[#allocation71_spill] sm:$0xff] %v10233_v41 }
 0x38c   : > { %3403 = vst.msk [vmem:[#allocation3 + $0xc] sm:$0xf] %vm521_vm2, %v3401_v31  ;;  %v10238_v22 = vld [vmem:[#allocation2] sm:$0xf] }
 0x38d   : > { %3434 = vst.msk [vmem:[#allocation3 + $0xc] sm:$0xf] %vm13559_vm3, %v3430_v1  ;;  %v10241_v60 = vld [vmem:[#allocation2 + $0x1] sm:$0xf] }
 0x38e   : > { %3465 = vst.msk [vmem:[#allocation3 + $0xc] sm:$0xf] %vm13551_vm5, %v3461_v23  ;;  %v10243_v32 = vld [vmem:[#allocation2 + $0x2] sm:$0xf]  ;;  %2848 = vrot.lane.b32.xlu0 %v9829_v56, %s8832_s28  ;;  %3710 = vmatpush.bf16.msra.mxu2 %v8613_v21  ;;  %v8612_v56 = vld [vmem:[%s13519_s4 + $0x120] sm:$0xff] }
 0x38f   : > { %13690 = vst [vmem:[#allocation74_spill] sm:$0xff] %v10241_v60  ;;  %1788 = vrot.lane.b32.xlu1 %v13692_v38, %s8836_s12 }
 0x390   : > { %13691 = vst [vmem:[#allocation49_spill] sm:$0xff] %v10243_v32  ;;  %v1573_v47 = vpop.permute.xlu0 %1572 }
 0x391   : > { %6009 = vst.msk [vmem:[#allocation2] sm:$0xff] %vm4066_vm14, %v13597_v48  ;;  %v1374_v24 = vpop.permute.xlu1 %1373  ;;  %v3492_v0 = vpop.permute.xlu2 %3491 }
 0x392   : > { %1446 = vst.msk [vmem:[#allocation3 + $0x120] sm:$0xf] %vm13561_vm8, %v1374_v24  ;;  %3711 = vmatpush.bf16.msra.mxu2 %v8612_v56 }
 0x393   : > { %3496 = vst.msk [vmem:[#allocation3 + $0xc] sm:$0xf] %vm13562_vm7, %v3492_v0 }
 0x394   : > { %3527 = vst.msk [vmem:[#allocation3 + $0xc] sm:$0xf] %vm13561_vm8, %v10167_v46 }
 0x395   : > { %3558 = vst.msk [vmem:[#allocation3 + $0xc] sm:$0xf] %vm1646_vm9, %v10103_v53 }
 0x396   : > { %1658 = vst.msk [vmem:[#allocation3 + $0x84] sm:$0xf] %vm1646_vm9, %v1573_v47  ;;  %4202 = vrot.lane.b32.xlu0 %v4186_v42, %s8838_s14  ;;  %v1254_v42 = vld [vmem:[#allocation2 + $0x141] sm:$0xff] }
 0x397   : > { %1794 = vrot.lane.b32.xlu1 %v1721_v61, %s8836_s12  ;;  %v1286_v56 = vpack.c.bf16 %v1254_v42, %v1254_v42  ;;  %v1257_v61 = vld [vmem:[#allocation2 + $0x169] sm:$0xff] }
 0x398   : > { %v1579_v15 = vpop.permute.xlu0 %1578 }
 0x399   : > { %v1380_v27 = vpop.permute.xlu1 %1379  ;;  %v3552_v1 = vpop.permute.xlu2 %3551  ;;  %1661 = vst.msk [vmem:[#allocation3 + $0xa8] sm:$0xf] %vm1646_vm9, %v1579_v15 }
 0x39a   : > { %1449 = vst.msk [vmem:[#allocation3 + $0x144] sm:$0xf] %vm13561_vm8, %v1380_v27  ;;  %v1289_v27 = vpack.c.bf16 %v1257_v61, %v1257_v61 }
 0x39b   : > { %3557 = vst.msk [vmem:[#allocation3] sm:$0xf] %vm1646_vm9, %v3552_v1 }
 0x39c   : > { %3588 = vst.msk [vmem:[#allocation3] sm:$0xf] %vm1872_vm10, %v10193_v7 }
 0x39d   : > { %3619 = vst.msk [vmem:[#allocation3] sm:$0xf] %vm13560_vm11, %v10116_v18 }
 0x39e   : > { %2904 = vrot.lane.b32.xlu0 %v10001_v5, %s8833_s29 }
 0x39f   : > { %2005 = vrot.lane.b32.xlu1 %v13656_v28, %s8837_s13 }
 0x3a0   : > { %v1585_v46 = vpop.permute.xlu0 %1584 }
 0x3a1   : > { %v1386_v53 = vpop.permute.xlu1 %1385  ;;  %v3585_v19 = vpop.permute.xlu2 %3584  ;;  %1664 = vst.msk [vmem:[#allocation3 + $0xcc] sm:$0xf] %vm1646_vm9, %v1585_v46 }
 0x3a2   : > { %1452 = vst.msk [vmem:[#allocation3 + $0x168] sm:$0xf] %vm13561_vm8, %v1386_v53  ;;  %v1260_v53 = vld [vmem:[#allocation2 + $0x189] sm:$0xff] }
 0x3a3   : > { %3589 = vst.msk [vmem:[#allocation3 + $0xc] sm:$0xf] %vm1872_vm10, %v3585_v19  ;;  %v1292_v46 = vpack.c.bf16 %v1260_v53, %v1260_v53  ;;  %v1479_v53 = vld [vmem:[#allocation2 + $0x142] sm:$0xff] }
 0x3a4   : > { %3620 = vst.msk [vmem:[#allocation3 + $0xc] sm:$0xf] %vm13560_vm11, %v3616_v43 }
 0x3a5   : > { %3651 = vst.msk [vmem:[#allocation3 + $0xc] sm:$0xf] %vm13550_vm12, %v10126_v52 }
 0x3a7   : > { %2230 = vrot.lane.b32.xlu1 %v9568_v29, %s8838_s14 }
 0x3a8   : > { %v1591_v18 = vpop.permute.xlu0 %1590 }
 0x3a9   : > { %v1557_v28 = vpop.permute.xlu1 %1556  ;;  %v3645_v7 = vpop.permute.xlu2 %3644  ;;  %1667 = vst.msk [vmem:[#allocation3 + $0xf0] sm:$0xf] %vm1646_vm9, %v1591_v18 }
 0x3aa   : > { %1650 = vst.msk [vmem:[#allocation3 + $0x24] sm:$0xf] %vm1646_vm9, %v1557_v28 }
 0x3ab   : > { %3650 = vst.msk [vmem:[#allocation3] sm:$0xf] %vm13550_vm12, %v3645_v7 }
 0x3ac   : > { %v8611_v31 = vld [vmem:[#allocation3 + $0x8] sm:$0xf0] }
 0x3af   : > { %2792 = vrot.lane.b32.xlu1 %v9806_v11, %s8831_s26 }
 0x3b0   : > { %v1597_v20 = vpop.permute.xlu0 %1596 }
 0x3b1   : > { %v1563_v52 = vpop.permute.xlu1 %1562  ;;  %1670 = vst.msk [vmem:[#allocation3 + $0x114] sm:$0xf] %vm1646_vm9, %v1597_v20 }
 0x3b2   : > { %v8091_v33 = vld [vmem:[#allocation3] sm:$0xf]  ;;  %1653 = vst.msk [vmem:[#allocation3 + $0x48] sm:$0xf] %vm1646_vm9, %v1563_v52 }
 0x3b3   : > { %4113 = vst.msk [vmem:[#allocation3] sm:$0xf] %vm4112_vm4, %v4104_v39  ;;  %v8092_v43 = vor.u32 %v8611_v31, %v8091_v33  ;;  %v1461_v39 = vld [vmem:[#allocation2 + $0x6a] sm:$0xff] }
 0x3b4   : > { %v10332_v52 = vpack.c.bf16 %v1461_v39, %v1461_v39  ;;  %v13694_v31 = vld [vmem:[#allocation23_spill] sm:$0xff] }
 0x3b5   : > { %8109 = vmatmul.msk.bf16.vlgmr.msra.gmra.mxu2 %vm13552_vm15, %v8092_v43  ;;  %v1496_v43 = vpack.c.bf16 %v13694_v31, %v13694_v31 }
 0x3b7   : > { %4145 = vrot.lane.b32.xlu1 %v4129_v45, %s8834_s9 }
 0x3b8   : > { %v1603_v6 = vpop.permute.xlu0 %1602 }
 0x3b9   : > { %v1569_v11 = vpop.permute.xlu1 %1568  ;;  %1673 = vst.msk [vmem:[#allocation3 + $0x138] sm:$0xf] %vm1646_vm9, %v1603_v6 }
 0x3ba   : > { %1656 = vst.msk [vmem:[#allocation3 + $0x6c] sm:$0xf] %vm1646_vm9, %v1569_v11  ;;  %v1467_v11 = vld [vmem:[#allocation2 + $0xb2] sm:$0xff] }
 0x3bb   : > { %v1499_v6 = vpack.c.bf16 %v1467_v11, %v1467_v11 }
 0x3bf   : > { %2850 = vrot.lane.b32.xlu1 %v10032_v37, %s8832_s28 }
 0x3c0   : > { %v1609_v23 = vpop.permute.xlu0 %1608 }
 0x3c1   : > { %v1575_v49 = vpop.permute.xlu1 %1574  ;;  %1676 = vst.msk [vmem:[#allocation3 + $0x15c] sm:$0xf] %vm1646_vm9, %v1609_v23 }
 0x3c2   : > { %1659 = vst.msk [vmem:[#allocation3 + $0x90] sm:$0xf] %vm1646_vm9, %v1575_v49 }
 0x3c8   : > { %v1781_v38 = vpop.permute.xlu0 %1780 }
 0x3c9   : > { %v1581_v59 = vpop.permute.xlu1 %1580  ;;  %1875 = vst.msk [vmem:[#allocation3 + $0x18] sm:$0xf] %vm1872_vm10, %v1781_v38 }
 0x3ca   : > { %1662 = vst.msk [vmem:[#allocation3 + $0xb4] sm:$0xf] %vm1646_vm9, %v1581_v59 }
 0x3d0   : > { %v1787_v24 = vpop.permute.xlu0 %1786 }
 0x3d1   : > { %v1587_v21 = vpop.permute.xlu1 %1586  ;;  %1878 = vst.msk [vmem:[#allocation3 + $0x3c] sm:$0xf] %vm1872_vm10, %v1787_v24  ;;  %v1473_v24 = vld [vmem:[#allocation2 + $0xfa] sm:$0xff] }
 0x3d2   : > { %1665 = vst.msk [vmem:[#allocation3 + $0xd8] sm:$0xf] %vm1646_vm9, %v1587_v21 }
 0x3d8   : > { %v1793_v0 = vpop.permute.xlu0 %1792 }
 0x3d9   : > { %v1593_v47 = vpop.permute.xlu1 %1592  ;;  %1881 = vst.msk [vmem:[#allocation3 + $0x60] sm:$0xf] %vm1872_vm10, %v1793_v0 }
 0x3da   : > { %1668 = vst.msk [vmem:[#allocation3 + $0xfc] sm:$0xf] %vm1646_vm9, %v1593_v47  ;;  %v1505_v47 = vpack.c.bf16 %v1473_v24, %v1473_v24 }
 0x3de   : > { %1375 = vrot.lane.b32.xlu2 %v1286_v56, %s8834_s9 }
 0x3e0   : > { %v10321_v15 = vpop.permute.xlu0 %1796 }
 0x3e1   : > { %v1599_v17 = vpop.permute.xlu1 %1598 }
 0x3e2   : > { %1671 = vst.msk [vmem:[#allocation3 + $0x120] sm:$0xf] %vm1646_vm9, %v1599_v17  ;;  %v1476_v17 = vld [vmem:[#allocation2 + $0x122] sm:$0xff] }
 0x3e6   : > { %1381 = vrot.lane.b32.xlu2 %v1289_v27, %s8834_s9  ;;  %v1508_v27 = vpack.c.bf16 %v1476_v17, %v1476_v17 }
 0x3e8   : > { %v2008_v19 = vpop.permute.xlu0 %2007 }
 0x3e9   : > { %v1605_v1 = vpop.permute.xlu1 %1604 }
 0x3ea   : > { %1674 = vst.msk [vmem:[#allocation3 + $0x144] sm:$0xf] %vm1646_vm9, %v1605_v1 }
 0x3ee   : > { %1387 = vrot.lane.b32.xlu2 %v1292_v46, %s8834_s9 }
 0x3f0   : > { %v2233_v7 = vpop.permute.xlu0 %2232 }
 0x3f1   : > { %v1611_v28 = vpop.permute.xlu1 %1610 }
 0x3f2   : > { %1677 = vst.msk [vmem:[#allocation3 + $0x168] sm:$0xf] %vm1646_vm9, %v1611_v28  ;;  %v1482_v28 = vld [vmem:[#allocation2 + $0x16a] sm:$0xff] }
 0x3f6   : > { %1558 = vrot.lane.b32.xlu2 %v9568_v29, %s8835_s10 }
 0x3f8   : > { %v2795_v29 = vpop.permute.xlu0 %2794 }
 0x3f9   : > { %v1783_v18 = vpop.permute.xlu1 %1782 }
 0x3fa   : > { %1876 = vst.msk [vmem:[#allocation3 + $0x24] sm:$0xf] %vm1872_vm10, %v1783_v18  ;;  %v1514_v18 = vpack.c.bf16 %v1482_v28, %v1482_v28 }
 0x3fb   : > { %2101 = vst.msk [vmem:[#allocation3 + $0x24] sm:$0xf] %vm13560_vm11, %v2008_v19 }
 0x3fc   : > { %2326 = vst.msk [vmem:[#allocation3 + $0x24] sm:$0xf] %vm13550_vm12, %v2233_v7  ;;  %v8758_v7 = vld [vmem:[%s13520_s5 + $0x2] ss:$0 sm:$0xff] }
 0x3fe   : > { %1564 = vrot.lane.b32.xlu2 %v10332_v52, %s8835_s10 }
 0x400   : > { %v2849_v49 = vpop.permute.xlu0 %2848 }
 0x401   : > { %v1789_v20 = vpop.permute.xlu1 %1788 }
 0x402   : > { %1879 = vst.msk [vmem:[#allocation3 + $0x48] sm:$0xf] %vm1872_vm10, %v1789_v20 }
 0x403   : > { %v8584_v33 = vld [vmem:[#allocation3 + $0x20] sm:$0xf0] }
 0x404   : > { %2759 = vst.msk [vmem:[#allocation3 + $0x24] sm:$0xf] %vm521_vm2, %v10001_v5  ;;  %v13695_v5 = vld [vmem:[#allocation54_spill] sm:$0xff] }
 0x405   : > { %2815 = vst.msk [vmem:[#allocation3 + $0x24] sm:$0xf] %vm13559_vm3, %v2795_v29  ;;  %v1502_v59 = vpack.c.bf16 %v13695_v5, %v13695_v5  ;;  %v1485_v29 = vld [vmem:[#allocation2 + $0x18a] sm:$0xff] }
 0x406   : > { %1570 = vrot.lane.b32.xlu2 %v1496_v43, %s8835_s10 }
 0x408   : > { %v10349_v21 = vpop.permute.xlu0 %4202 }
 0x409   : > { %v1795_v45 = vpop.permute.xlu1 %1794 }
 0x40a   : > { %1882 = vst.msk [vmem:[#allocation3 + $0x6c] sm:$0xf] %vm1872_vm10, %v1795_v45 }
 0x40e   : > { %1576 = vrot.lane.b32.xlu2 %v1499_v6, %s8835_s10  ;;  %v10362_v46 = vpop.trf.xlu2  ;;  %v1517_v6 = vpack.c.bf16 %v1485_v29, %v1485_v29 }
 0x410   : > { %v2905_v61 = vpop.permute.xlu0 %2904 }
 0x411   : > { %v2006_v23 = vpop.permute.xlu1 %2005 }
 0x412   : > { %2100 = vst.msk [vmem:[#allocation3 + $0x18] sm:$0xf] %vm13560_vm11, %v2006_v23  ;;  %vm13567_vm11 = vcmask 1044480  }
 0x416   : > { %1582 = vrot.lane.b32.xlu2 %v1502_v59, %s8835_s10 }
 0x419   : > { %v2231_v38 = vpop.permute.xlu1 %2230 }
 0x41a   : > { %2325 = vst.msk [vmem:[#allocation3 + $0x18] sm:$0xf] %vm13550_vm12, %v2231_v38  ;;  %vm4169_vm12 = vcmask 519424  }
 0x41e   : > { %1588 = vrot.lane.b32.xlu2 %v1505_v47, %s8835_s10 }
 0x421   : > { %v7945_v0 = vld [vmem:[#allocation3 + $0x18] sm:$0xf]  ;;  %v2793_v42 = vpop.permute.xlu1 %2792 }
 0x422   : > { %2758 = vst.msk [vmem:[#allocation3 + $0x18] sm:$0xf] %vm521_vm2, %v9780_v36  ;;  %v7946_v56 = vor.u32 %v8584_v33, %v7945_v0  ;;  %v1511_v36 = vpack.c.bf16 %v1479_v53, %v1479_v53 }
 0x423   : > { %2814 = vst.msk [vmem:[#allocation3 + $0x18] sm:$0xf] %vm13559_vm3, %v2793_v42  ;;  %vm4014_vm3 = vcmask 1041408  }
 0x424   : > { %2870 = vst.msk [vmem:[#allocation3 + $0x18] sm:$0xf] %vm13551_vm5, %v2849_v49  ;;  %8020 = vmatmul.msk.bf16.gmra.mxu0 %vm13552_vm15, %v7946_v56  ;;  %vm13568_vm15 = vcmask 1042432  }
 0x425   : > { %2926 = vst.msk [vmem:[#allocation3 + $0x18] sm:$0xf] %vm13562_vm7, %v2905_v61  ;;  %vm13565_vm7 = vcmask 1046528  }
 0x426   : > { %1594 = vrot.lane.b32.xlu2 %v1508_v27, %s8835_s10 }
 0x429   : > { %v4146_v1 = vpop.permute.xlu1 %4145 }
 0x42a   : > { %4170 = vst.msk [vmem:[#allocation3] sm:$0xf] %vm4169_vm12, %v4146_v1 }
 0x42e   : > { %1600 = vrot.lane.b32.xlu2 %v1511_v36, %s8835_s10 }
 0x431   : > { %v2851_v19 = vpop.permute.xlu1 %2850 }
 0x432   : > { %2871 = vst.msk [vmem:[#allocation3 + $0x24] sm:$0xf] %vm13551_vm5, %v2851_v19  ;;  %v13696_v19 = vld [vmem:[#allocation10_spill] sm:$0xff]  ;;  %vm3785_vm5 = vcmask 1040384  }
 0x436   : > { %1606 = vrot.lane.b32.xlu2 %v1514_v18, %s8835_s10 }
 0x438   : > { %v3713_v39 = vpop.f32.mrf.mxu2  ;;  %v1376_v33 = vpop.permute.xlu2 %1375 }
 0x439   : > { %v3714_v20 = vadd.f32 %v8758_v7, %v3713_v39  ;;  %1447 = vst.msk [vmem:[#allocation3 + $0x12c] sm:$0xf] %vm13561_vm8, %v1376_v33 }
 0x43b   : > { %v3718_v31 = vmax.f32 %v3714_v20, 0.0 }
 0x43d   : > { %v3722_v43 = vrot.slane %v3718_v31, 4  ;;  %v3726_v45 = vmul.f32 0.75, %v3718_v31  ;;  %v3730_v11 = vmul.f32 0.25, %v3718_v31 }
 0x43e   : > { %1612 = vrot.lane.b32.xlu2 %v1517_v6, %s8835_s10  ;;  %v13697_v6 = vld [vmem:[#allocation17_spill] sm:$0xff] }
 0x43f   : > { %v3727_v49 = vmul.f32 0.75, %v3722_v43  ;;  %v3731_v23 = vmul.f32 0.25, %v3722_v43  ;;  %v10370_v5 = vadd.f32 %v3730_v11, %v3726_v45 }
 0x440   : > { %v3715_v59 = vpop.f32.mrf.mxu2  ;;  %v1382_v0 = vpop.permute.xlu2 %1381 }
 0x441   : > { %v10373_v38 = vadd.f32 %v3730_v11, %v3727_v49  ;;  %v10375_v24 = vadd.f32 %v3731_v23, %v3726_v45  ;;  %3750 = vst [vmem:[#allocation1] ss:$2 sm:$0xff] %v10370_v5  ;;  %v3716_v47 = vadd.f32 %v8758_v7, %v3715_v59 }
 0x442   : > { %1450 = vst.msk [vmem:[#allocation3 + $0x150] sm:$0xf] %vm13561_vm8, %v1382_v0 }
 0x443   : > { %3753 = vst [vmem:[#allocation1 + $0x10] ss:$2 sm:$0xff] %v10375_v24  ;;  %v3719_v42 = vmax.f32 %v3716_v47, 0.0 }
 0x444   : > { %3756 = vst [vmem:[#allocation1 + $0x20] ss:$2 sm:$0xff] %v10373_v38 }
 0x445   : > { %v3723_v56 = vrot.slane %v3719_v42, 4  ;;  %v3728_v17 = vmul.f32 0.75, %v3719_v42  ;;  %v3732_v61 = vmul.f32 0.25, %v3719_v42 }
 0x446   : > { %1784 = vrot.lane.b32.xlu2 %v13696_v19, %s8836_s12 }
 0x447   : > { %v3729_v27 = vmul.f32 0.75, %v3723_v56  ;;  %v10381_v1 = vadd.f32 %v3731_v23, %v3728_v17  ;;  %v3737_v53 = vmul.f32 0.25, %v3723_v56  ;;  %v10383_v36 = vadd.f32 %v3732_v61, %v3727_v49 }
 0x448   : > { %v3751_v28 = vld.sshfl [vmem:[#allocation1] sm:$0xff pattern:$0x75316420]  ;;  %v1388_v20 = vpop.permute.xlu2 %1387 }
 0x449   : > { %v3769_v18 = vrot.slane %v3751_v28, 7  ;;  %v10387_v7 = vadd.f32 %v3732_v61, %v3729_v27  ;;  %v10389_v39 = vadd.f32 %v3737_v53, %v3728_v17  ;;  %3759 = vst [vmem:[#allocation1 + $0x30] ss:$2 sm:$0xff] %v10383_v36  ;;  %v10400_v11 = vadd.f32 %v3737_v53, %v3729_v27 }
 0x44a   : > { %v3754_v33 = vld.sshfl [vmem:[#allocation1 + $0x10] sm:$0xff pattern:$0x75316420]  ;;  %3761 = vst [vmem:[#allocation1] ss:$2 sm:$0xff] %v10381_v1  ;;  %v10406_v61 = vmul.f32 0.75, %v10370_v5 }
 0x44b   : > { %v3757_v29 = vld.sshfl [vmem:[#allocation1 + $0x20] sm:$0xff pattern:$0x75316420]  ;;  %3763 = vst [vmem:[#allocation1 + $0x10] ss:$2 sm:$0xff] %v10389_v39  ;;  %v3786_v43 = vsel %vm3785_vm5, %v10370_v5, %v3769_v18  ;;  %v3770_v49 = vrot.slane %v3754_v33, 7 }
 0x44c   : > { %v3771_v31 = vrot.slane %v3757_v29, 7  ;;  %3765 = vst [vmem:[#allocation1 + $0x20] ss:$2 sm:$0xff] %v10387_v7  ;;  %v3846_v23 = vmul.f32 0.25, %v3786_v43  ;;  %v10409_v27 = vmul.f32 0.75, %v10375_v24  ;;  %v10412_v53 = vmul.f32 0.75, %v10373_v38 }
 0x44d   : > { %1453 = vst.msk [vmem:[#allocation3 + $0x174] sm:$0xf] %vm13561_vm8, %v1388_v20  ;;  %vm13566_vm8 = vcmask 1045504  }
 0x44e   : > { %v3788_v45 = vsel %vm3785_vm5, %v10373_v38, %v3771_v31  ;;  %1790 = vrot.lane.b32.xlu2 %v13697_v6, %s8836_s12  ;;  %v3787_v31 = vsel %vm3785_vm5, %v10375_v24, %v3770_v49  ;;  %v10420_v43 = vadd.f32 %v3846_v23, %v10406_v61  ;;  %v10427_v6 = vmul.f32 0.75, %v10381_v1 }
 0x44f   : > { %v3848_v56 = vmul.f32 0.25, %v3788_v45  ;;  %v10424_v45 = vmul.f32 0.75, %v10383_v36  ;;  %v10452_v41 = vmul.f32 0.25, %v3787_v31 }
 0x450   : > { %v3760_v59 = vld.sshfl [vmem:[#allocation1 + $0x30] sm:$0xff pattern:$0x75316420]  ;;  %v1559_v42 = vpop.permute.xlu2 %1558 }
 0x451   : > { %v3762_v47 = vld.sshfl [vmem:[#allocation1] sm:$0xff pattern:$0x75316420]  ;;  %3767 = vst [vmem:[#allocation1 + $0x30] ss:$2 sm:$0xff] %v10400_v11  ;;  %v3772_v0 = vrot.slane %v3760_v59, 7  ;;  %v10430_v59 = vadd.f32 %v3848_v56, %v10412_v53 }
 0x452   : > { %v3764_v17 = vld.sshfl [vmem:[#allocation1 + $0x10] sm:$0xff pattern:$0x75316420]  ;;  %v3773_v18 = vrot.slane %v3762_v47, 7  ;;  %3794 = vst [vmem:[#allocation1] ss:$2 sm:$0xff] %v10370_v5 }
 0x453   : > { %v3766_v19 = vld.sshfl [vmem:[#allocation1 + $0x20] sm:$0xff pattern:$0x75316420]  ;;  %v3789_v28 = vsel %vm3785_vm5, %v10383_v36, %v3772_v0  ;;  %v3774_v20 = vrot.slane %v3764_v17, 7  ;;  %3797 = vst [vmem:[#allocation1 + $0x10] ss:$2 sm:$0xff] %v10375_v24 }
 0x454   : > { %v3775_v33 = vrot.slane %v3766_v19, 7  ;;  %v3849_v29 = vmul.f32 0.25, %v3789_v28  ;;  %v3790_v47 = vsel %vm3785_vm5, %v10381_v1, %v3773_v18  ;;  %3800 = vst [vmem:[#allocation1 + $0x20] ss:$2 sm:$0xff] %v10373_v38  ;;  %v10440_v0 = vmul.f32 0.75, %v10389_v39 }
 0x455   : > { %v3791_v49 = vsel %vm3785_vm5, %v10389_v39, %v3774_v20  ;;  %v3850_v17 = vmul.f32 0.25, %v3790_v47  ;;  %1651 = vst.msk [vmem:[#allocation3 + $0x30] sm:$0xf] %vm1646_vm9, %v1559_v42  ;;  %v10447_v18 = vmul.f32 0.75, %v10387_v7  ;;  %v10450_v20 = vmul.f32 0.75, %v10400_v11 }
 0x456   : > { %v3792_v23 = vsel %vm3785_vm5, %v10387_v7, %v3775_v33  ;;  %v3851_v19 = vmul.f32 0.25, %v3791_v49  ;;  %v10443_v28 = vadd.f32 %v3849_v29, %v10424_v45 }
 0x457   : > { %v3852_v33 = vmul.f32 0.25, %v3792_v23  ;;  %v10465_v47 = vadd.f32 %v3850_v17, %v10427_v6 }
 0x458   : > { %v3768_v56 = vld.sshfl [vmem:[#allocation1 + $0x30] sm:$0xff pattern:$0x75316420]  ;;  %v1565_v29 = vpop.permute.xlu2 %1564 }
 0x459   : > { %v3776_v49 = vrot.slane %v3768_v56, 7  ;;  %3803 = vst [vmem:[#allocation1 + $0x30] ss:$2 sm:$0xff] %v10383_v36  ;;  %v3795_v23 = vld.sshfl [vmem:[#allocation1] sm:$0xff pattern:$0x75316420]  ;;  %v10468_v56 = vadd.f32 %v3851_v19, %v10440_v0  ;;  %v10473_v13 = vadd.f32 %v3852_v33, %v10447_v18 }
 0x45a   : > { %1654 = vst.msk [vmem:[#allocation3 + $0x54] sm:$0xf] %vm1646_vm9, %v1565_v29  ;;  %v3798_v40 = vld.sshfl [vmem:[#allocation1 + $0x10] sm:$0xff pattern:$0x75316420]  ;;  %v3813_v12 = vrot.slane %v3795_v23, 1 }
 0x45b   : > { %v3793_v31 = vsel %vm3785_vm5, %v10400_v11, %v3776_v49  ;;  %3805 = vst [vmem:[#allocation1] ss:$2 sm:$0xff] %v10381_v1  ;;  %v3801_v29 = vld.sshfl [vmem:[#allocation1 + $0x20] sm:$0xff pattern:$0x75316420]  ;;  %v3814_v3 = vrot.slane %v3798_v40, 1 }
 0x45c   : > { %3807 = vst [vmem:[#allocation1 + $0x10] ss:$2 sm:$0xff] %v10389_v39  ;;  %v3853_v49 = vmul.f32 0.25, %v3793_v31  ;;  %v3815_v17 = vrot.slane %v3801_v29, 1  ;;  %v3830_v19 = vsel %vm13568_vm15, %v3813_v12, %v10370_v5  ;;  %v13698_v29 = vperm.slane %v10420_v43, 1 }
 0x45d   : > { %3809 = vst [vmem:[#allocation1 + $0x20] ss:$2 sm:$0xff] %v10387_v7  ;;  %v3862_v23 = vmul.f32 0.25, %v3830_v19  ;;  %v13701_v54 = vperm.slane %v10465_v47, 1  ;;  %v13703_v30 = vperm.slane %v10473_v13, 1 }
 0x45e   : > { %v10482_v9 = vadd.f32 %v3853_v49, %v10450_v20  ;;  %v3832_v31 = vsel %vm13568_vm15, %v3815_v17, %v10373_v38 }
 0x45f   : > { %v3864_v49 = vmul.f32 0.25, %v3832_v31  ;;  %v10493_v19 = vadd.f32 %v3862_v23, %v10406_v61 }
 0x460   : > { %v3804_v8 = vld.sshfl [vmem:[#allocation1 + $0x30] sm:$0xff pattern:$0x75316420]  ;;  %v1571_v33 = vpop.permute.xlu2 %1570 }
 0x461   : > { %3811 = vst [vmem:[#allocation1 + $0x30] ss:$2 sm:$0xff] %v10400_v11  ;;  %v3816_v42 = vrot.slane %v3804_v8, 1  ;;  %v10503_v31 = vadd.f32 %v3864_v49, %v10412_v53  ;;  %v3886_v40 = vperm.slane %v10493_v19, 0 }
 0x462   : > { %1657 = vst.msk [vmem:[#allocation3 + $0x78] sm:$0xf] %vm1646_vm9, %v1571_v33  ;;  %v3806_v5 = vld.sshfl [vmem:[#allocation1] sm:$0xff pattern:$0x75316420] }
 0x463   : > { %v3833_v8 = vsel %vm13568_vm15, %v3816_v42, %v10383_v36  ;;  %v3808_v23 = vld.sshfl [vmem:[#allocation1 + $0x10] sm:$0xff pattern:$0x75316420]  ;;  %v3817_v32 = vrot.slane %v3806_v5, 1  ;;  %v10512_v36 = vsel %vm13568_vm15, %v3814_v3, %v10375_v24  ;;  %v3888_v5 = vperm.slane %v10503_v31, 0 }
 0x464   : > { %v3865_v12 = vmul.f32 0.25, %v3833_v8  ;;  %v3810_v17 = vld.sshfl [vmem:[#allocation1 + $0x20] sm:$0xff pattern:$0x75316420]  ;;  %v3818_v63 = vrot.slane %v3808_v23, 1  ;;  %v3928_v38 = vperm.slane %v10503_v31, 1  ;;  %v4006_v3 = vsel %vm3785_vm5, %v10420_v43, %v3886_v40 }
 0x465   : > { %v3819_v53 = vrot.slane %v3810_v17, 1  ;;  %v3834_v42 = vsel %vm13568_vm15, %v3817_v32, %v10381_v1  ;;  %4892 = vst [vmem:[#allocation1] ss:$4 sm:$0xff] %v10197_v62 }
 0x466   : > { %v10517_v49 = vadd.f32 %v3865_v12, %v10424_v45  ;;  %v3835_v8 = vsel %vm13568_vm15, %v3818_v63, %v10389_v39  ;;  %v3866_v23 = vmul.f32 0.25, %v3834_v42  ;;  %1883 = vst.msk [vmem:[#allocation3 + $0x78] sm:$0xf] %vm1872_vm10, %v10321_v15 }
 0x467   : > { %v3836_v24 = vsel %vm13568_vm15, %v3819_v53, %v10387_v7  ;;  %v3867_v1 = vmul.f32 0.25, %v3835_v8 }
 0x468   : > { %v3812_v32 = vld.sshfl [vmem:[#allocation1 + $0x30] sm:$0xff pattern:$0x75316420]  ;;  %v3889_v45 = vperm.slane %v10517_v49, 0  ;;  %v3868_v63 = vmul.f32 0.25, %v3836_v24  ;;  %v10533_v39 = vadd.f32 %v3866_v23, %v10427_v6  ;;  %v1577_v40 = vpop.permute.xlu2 %1576  ;;  %v3929_v15 = vperm.slane %v10517_v49, 1 }
 0x469   : > { %v3820_v12 = vrot.slane %v3812_v32, 1  ;;  %v10537_v42 = vadd.f32 %v3867_v1, %v10440_v0  ;;  %v3961_v7 = vperm.slane %v10517_v49, 2  ;;  %1660 = vst.msk [vmem:[#allocation3 + $0x9c] sm:$0xf] %vm1646_vm9, %v1577_v40  ;;  %v4008_v1 = vsel %vm3785_vm5, %v10430_v59, %v3888_v5 }
 0x46a   : > { %v10546_v6 = vadd.f32 %v3868_v63, %v10447_v18  ;;  %v3890_v23 = vperm.slane %v10533_v39, 0  ;;  %v4009_v40 = vsel %vm3785_vm5, %v10443_v28, %v3889_v45  ;;  %v3994_v60 = vperm.slane %v10533_v39, 3 }
 0x46b   : > { %v3837_v8 = vsel %vm13568_vm15, %v3820_v12, %v10400_v11  ;;  %v3891_v24 = vperm.slane %v10537_v42, 0  ;;  %v3930_v11 = vperm.slane %v10533_v39, 1  ;;  %v3931_v18 = vperm.slane %v10537_v42, 1 }
 0x46c   : > { %v3869_v32 = vmul.f32 0.25, %v3837_v8  ;;  %v3892_v53 = vperm.slane %v10546_v6, 0  ;;  %v3962_v12 = vperm.slane %v10533_v39, 2  ;;  %v3932_v8 = vperm.slane %v10546_v6, 1 }
 0x46d   : > { %v3963_v5 = vperm.slane %v10537_v42, 2  ;;  %v3964_v0 = vperm.slane %v10546_v6, 2  ;;  %v4010_v45 = vsel %vm3785_vm5, %v10465_v47, %v3890_v23  ;;  %v4011_v17 = vsel %vm3785_vm5, %v10468_v56, %v3891_v24 }
 0x46e   : > { %v10560_v63 = vadd.f32 %v3869_v32, %v10450_v20  ;;  %v4012_v62 = vsel %vm3785_vm5, %v10473_v13, %v3892_v53  ;;  %v4015_v20 = vsel %vm4014_vm3, %v4006_v3, %v13698_v29  ;;  %v13699_v23 = vperm.slane %v10430_v59, 1 }
 0x46f   : > { %v13700_v24 = vperm.slane %v10443_v28, 1  ;;  %v4019_v29 = vsel %vm4014_vm3, %v4010_v45, %v13701_v54  ;;  %v13702_v3 = vperm.slane %v10468_v56, 1  ;;  %v13705_v54 = vperm.slane %v10482_v9, 1 }
 0x470   : > { %v3893_v32 = vperm.slane %v10560_v63, 0  ;;  %v3933_v61 = vperm.slane %v10560_v63, 1  ;;  %v3965_v33 = vperm.slane %v10560_v63, 2  ;;  %v4017_v35 = vsel %vm4014_vm3, %v4008_v1, %v13699_v23  ;;  %v1583_v10 = vpop.permute.xlu2 %1582 }
 0x471   : > { %v4018_v53 = vsel %vm4014_vm3, %v4009_v40, %v13700_v24  ;;  %v4020_v26 = vsel %vm4014_vm3, %v4011_v17, %v13702_v3  ;;  %v4021_v1 = vsel %vm4014_vm3, %v4012_v62, %v13703_v30  ;;  %v13704_v23 = vperm.slane %v10493_v19, 1  ;;  %1663 = vst.msk [vmem:[#allocation3 + $0xc0] sm:$0xf] %vm1646_vm9, %v1583_v10 }
 0x472   : > { %v4013_v39 = vsel %vm3785_vm5, %v10482_v9, %v3893_v32  ;;  %v4025_v24 = vsel %vm13568_vm15, %v4017_v35, %v3928_v38  ;;  %v4026_v45 = vsel %vm13568_vm15, %v4018_v53, %v3929_v15  ;;  %v4027_v32 = vsel %vm13568_vm15, %v4019_v29, %v3930_v11  ;;  %v10626_v29 = vld [vmem:[#allocation2 + $0xda] sm:$0xff] }
 0x473   : > { %v4023_v40 = vsel %vm13568_vm15, %v4015_v20, %v13704_v23  ;;  %v4022_v17 = vsel %vm4014_vm3, %v4013_v39, %v13705_v54  ;;  %v4028_v3 = vsel %vm13568_vm15, %v4020_v26, %v3931_v18  ;;  %v4029_v30 = vsel %vm13568_vm15, %v4021_v1, %v3932_v8  ;;  %v10628_v1 = vld [vmem:[#allocation2 + $0xd8] sm:$0xff] }
 0x474   : > { %v4030_v62 = vsel %vm13568_vm15, %v4022_v17, %v3933_v61  ;;  %v13706_v20 = vperm.slane %v10420_v43, 2  ;;  %v13707_v10 = vperm.slane %v10430_v59, 2  ;;  %v13708_v39 = vperm.slane %v10443_v28, 2  ;;  %v10630_v23 = vld [vmem:[#allocation2 + $0xd9] sm:$0xff] }
 0x475   : > { %v13709_v11 = vperm.slane %v10465_v47, 2  ;;  %v13710_v18 = vperm.slane %v10468_v56, 2  ;;  %v13711_v8 = vperm.slane %v10473_v13, 2  ;;  %v13713_v54 = vperm.slane %v10493_v19, 2  ;;  %4086 = vst.msk [vmem:[#allocation2 + $0xd8] sm:$0xff] %vm4066_vm14, %v13597_v48 }
 0x476   : > { %v4031_v35 = vsel %vm2554_vm13, %v4023_v40, %v13706_v20  ;;  %v4033_v38 = vsel %vm2554_vm13, %v4025_v24, %v13707_v10  ;;  %v4034_v15 = vsel %vm2554_vm13, %v4026_v45, %v13708_v39  ;;  %v13712_v40 = vperm.slane %v10482_v9, 2  ;;  %4087 = vst.msk [vmem:[#allocation2 + $0xe0] sm:$0x3] %vm4068_vm6, %v13597_v48 }
 0x477   : > { %v4035_v26 = vsel %vm2554_vm13, %v4027_v32, %v13709_v11  ;;  %v4036_v61 = vsel %vm2554_vm13, %v4028_v3, %v13710_v18  ;;  %v4037_v53 = vsel %vm2554_vm13, %v4029_v30, %v13711_v8  ;;  %v4040_v17 = vsel %vm13567_vm11, %v4031_v35, %v13713_v54 }
 0x478   : > { %v4038_v24 = vsel %vm2554_vm13, %v4030_v62, %v13712_v40  ;;  %v13714_v45 = vperm.slane %v10503_v31, 2  ;;  %v4043_v3 = vsel %vm13567_vm11, %v4034_v15, %v3961_v7  ;;  %v4044_v30 = vsel %vm13567_vm11, %v4035_v26, %v3962_v12 }
 0x479   : > { %v4045_v20 = vsel %vm13567_vm11, %v4036_v61, %v3963_v5  ;;  %v4046_v10 = vsel %vm13567_vm11, %v4037_v53, %v3964_v0  ;;  %v4047_v62 = vsel %vm13567_vm11, %v4038_v24, %v3965_v33  ;;  %v13715_v35 = vperm.slane %v10420_v43, 3  ;;  %v1589_v61 = vpop.permute.xlu2 %1588 }
 0x47a   : > { %v4042_v32 = vsel %vm13567_vm11, %v4033_v38, %v13714_v45  ;;  %v13716_v7 = vperm.slane %v10430_v59, 3  ;;  %v13717_v15 = vperm.slane %v10443_v28, 3  ;;  %v13718_v5 = vperm.slane %v10465_v47, 3  ;;  %1666 = vst.msk [vmem:[#allocation3 + $0xe4] sm:$0xf] %vm1646_vm9, %v1589_v61 }
 0x47b   : > { %v4049_v38 = vsel %vm13566_vm8, %v4040_v17, %v13715_v35  ;;  %v3980_v33 = vperm.slane %v10473_v13, 3  ;;  %v3995_v11 = vperm.slane %v10537_v42, 3  ;;  %v13719_v43 = vperm.slane %v10468_v56, 3 }
 0x47c   : > { %v4051_v39 = vsel %vm13566_vm8, %v4042_v32, %v13716_v7  ;;  %v4052_v12 = vsel %vm13566_vm8, %v4043_v3, %v13717_v15  ;;  %v4053_v0 = vsel %vm13566_vm8, %v4044_v30, %v13718_v5  ;;  %v13720_v59 = vperm.slane %v10493_v19, 3 }
 0x47d   : > { %v4054_v26 = vsel %vm13566_vm8, %v4045_v20, %v13719_v43  ;;  %v13721_v28 = vperm.slane %v10482_v9, 3  ;;  %v13722_v47 = vperm.slane %v10503_v31, 3  ;;  %v13723_v13 = vperm.slane %v10517_v49, 3 }
 0x47e   : > { %v4058_v18 = vsel %vm13565_vm7, %v4049_v38, %v13720_v59  ;;  %v4062_v56 = vsel %vm13565_vm7, %v4053_v0, %v3994_v60  ;;  %v3997_v19 = vperm.slane %v10560_v63, 3  ;;  %v4055_v40 = vsel %vm13566_vm8, %v4046_v10, %v3980_v33 }
 0x47f   : > { %v4056_v8 = vsel %vm13566_vm8, %v4047_v62, %v13721_v28  ;;  %v4060_v53 = vsel %vm13565_vm7, %v4051_v39, %v13722_v47  ;;  %v4061_v42 = vsel %vm13565_vm7, %v4052_v12, %v13723_v13  ;;  %4088 = vst.msk [vmem:[#allocation2 + $0x19] sm:$0xff] %vm4066_vm14, %v4058_v18  ;;  %v3863_v9 = vmul.f32 0.25, %v10512_v36  ;;  %v13725_v13 = vld [vmem:[#allocation60_spill] sm:$0xff] }
 0x480   : > { %4090 = vst.msk [vmem:[#allocation2 + $0x49] sm:$0xff] %vm4066_vm14, %v4060_v53  ;;  %v3855_v31 = vadd.f32 %v10452_v41, %v10409_v27  ;;  %v3996_v24 = vperm.slane %v10546_v6, 3  ;;  %v4063_v49 = vsel %vm13565_vm7, %v4054_v26, %v3995_v11  ;;  %v4065_v60 = vsel %vm13565_vm7, %v4056_v8, %v3997_v19  ;;  %v13724_v8 = vld [vmem:[#allocation46_spill] sm:$0xff] }
 0x481   : > { %4091 = vst.msk [vmem:[#allocation2 + $0x61] sm:$0xff] %vm4066_vm14, %v4061_v42  ;;  %v3871_v63 = vadd.f32 %v3863_v9, %v10409_v27  ;;  %v1595_v20 = vpop.permute.xlu2 %1594  ;;  %v10736_v47 = vpack.c.bf16 %v13724_v8, %v13724_v8  ;;  %v10742_v42 = vpack.c.bf16 %v13725_v13, %v13725_v13 }
 0x482   : > { %4092 = vst.msk [vmem:[#allocation2 + $0x79] sm:$0xff] %vm4066_vm14, %v4062_v56  ;;  %v4064_v54 = vsel %vm13565_vm7, %v4055_v40, %v3996_v24  ;;  %v3911_v41 = vperm.slane %v3855_v31, 1  ;;  %v3943_v6 = vperm.slane %v3855_v31, 2  ;;  %v3975_v5 = vperm.slane %v3855_v31, 3 }
 0x483   : > { %v3887_v36 = vperm.slane %v3871_v63, 0  ;;  %4093 = vst.msk [vmem:[#allocation2 + $0x91] sm:$0xff] %vm4066_vm14, %v4063_v49  ;;  %v3927_v3 = vperm.slane %v3871_v63, 1  ;;  %v3959_v15 = vperm.slane %v3871_v63, 2  ;;  %v3991_v33 = vperm.slane %v3871_v63, 3 }
 0x484   : > { %4095 = vst.msk [vmem:[#allocation2 + $0xc1] sm:$0xff] %vm4066_vm14, %v4065_v60  ;;  %v4880_v56 = vrot.slane %v10362_v46, 2 }
 0x485   : > { %v4007_v30 = vsel %vm3785_vm5, %v3855_v31, %v3887_v36  ;;  %4094 = vst.msk [vmem:[#allocation2 + $0xa9] sm:$0xff] %vm4066_vm14, %v4064_v54  ;;  %v13726_v54 = vld [vmem:[#allocation58_spill] sm:$0xff] }
 0x486   : > { %v4097_v17 = vld [vmem:[#allocation2 + $0x18] sm:$0xff]  ;;  %v4016_v35 = vsel %vm4014_vm3, %v4007_v30, %v3911_v41  ;;  %1669 = vst.msk [vmem:[#allocation3 + $0x108] sm:$0xf] %vm1646_vm9, %v1595_v20  ;;  %v10773_v36 = vpack.c.bf16 %v13726_v54, %v13726_v54 }
 0x487   : > { %v4122_v45 = vld [vmem:[#allocation2 + $0x19] sm:$0xff]  ;;  %v10699_v27 = vld [vmem:[#allocation2 + $0x48] sm:$0xff]  ;;  %v4243_v38 = vpack.c.bf16 %v4097_v17, %v4097_v17  ;;  %v4024_v12 = vsel %vm13568_vm15, %v4016_v35, %v3927_v3  ;;  %v13727_v35 = vld [vmem:[#allocation47_spill] sm:$0xff]  ;;  %vm13750_vm15 = vcmask 257216  }
 0x488   : > { %v4179_v32 = vld [vmem:[#allocation2 + $0x1a] sm:$0xff]  ;;  %v4124_v10 = vld [vmem:[#allocation2 + $0x49] sm:$0xff]  ;;  %v4130_v39 = vpack.c.bf16 %v4122_v45, %v4122_v45  ;;  %v4032_v0 = vsel %vm2554_vm13, %v4024_v12, %v3943_v6 }
 0x489   : > { %v10701_v62 = vld [vmem:[#allocation2 + $0x4a] sm:$0xff]  ;;  %4883 = vst.msk [vmem:[#allocation2 + $0x18] sm:$0xf] %vm521_vm2, %v13597_v48  ;;  %v10706_v7 = vpack.c.bf16 %v4179_v32, %v4179_v32  ;;  %4259 = vrot.lane.b32.xlu0 %v4243_v38, %s8839_s20  ;;  %v4041_v11 = vsel %vm13567_vm11, %v4032_v0, %v3959_v15  ;;  %v1601_v59 = vpop.permute.xlu2 %1600  ;;  %v10749_v19 = vld [vmem:[#allocation2 + $0x7a] sm:$0xff]  ;;  %v10776_v41 = vpack.c.bf16 %v4124_v10, %v4124_v10  ;;  %v4486_v0 = vld [vmem:[#allocation2 + $0x62] sm:$0xff]  ;;  %vm13734_vm11 = vcmask 322816  }
 0x48a   : > { %4885 = vst.msk [vmem:[#allocation2 + $0x48] sm:$0xf] %vm521_vm2, %v13597_v48  ;;  %4147 = vrot.lane.b32.xlu2 %v4130_v39, %s8834_s9  ;;  %v4050_v43 = vsel %vm13566_vm8, %v4041_v11, %v3975_v5  ;;  %v4126_v40 = vld [vmem:[#allocation2 + $0x79] sm:$0xff]  ;;  %v4125_v10 = vld [vmem:[#allocation2 + $0x61] sm:$0xff]  ;;  %vm13733_vm8 = vcmask 257216  }
 0x48b   : > { %4886 = vst.msk [vmem:[#allocation2 + $0x19] sm:$0x3] %vm371_vm1, %v10362_v46  ;;  %4204 = vrot.lane.b32.xlu1 %v10706_v7, %s8838_s14  ;;  %v4059_v26 = vsel %vm13565_vm7, %v4050_v43, %v3991_v33  ;;  %v10754_v9 = vld [vmem:[#allocation2 + $0x78] sm:$0xff]  ;;  %v4238_v45 = vld [vmem:[#allocation2 + $0x60] sm:$0xff]  ;;  %v10788_v32 = vpack.c.bf16 %v4126_v40, %v4126_v40  ;;  %v10815_v5 = vpack.c.bf16 %v4125_v10, %v4125_v10  ;;  %vm4283_vm7 = vcmask 1044224  }
 0x48c   : > { %6012 = vst.msk [vmem:[#allocation2 + $0x20] sm:$0x3] %vm4068_vm6, %v13597_v48  ;;  %v4128_v6 = vld [vmem:[#allocation2 + $0xa9] sm:$0xff]  ;;  %v4127_v33 = vld [vmem:[#allocation2 + $0x91] sm:$0xff] }
 0x48d   : > { %6016 = vst.msk [vmem:[#allocation2 + $0x50] sm:$0x3] %vm4068_vm6, %v13597_v48  ;;  %v10794_v30 = vpack.c.bf16 %v4128_v6, %v4128_v6  ;;  %v10822_v11 = vld [vmem:[#allocation2 + $0x62] sm:$0xff]  ;;  %v10836_v40 = vpack.c.bf16 %v4127_v33, %v4127_v33  ;;  %v4488_v6 = vld [vmem:[#allocation2 + $0x92] sm:$0xff] }
 0x48e   : > { %4089 = vst.msk [vmem:[#allocation2 + $0x31] sm:$0xff] %vm4066_vm14, %v4059_v26  ;;  %v4490_v10 = vld [vmem:[#allocation2 + $0xc2] sm:$0xff]  ;;  %v10902_v33 = vld [vmem:[#allocation2 + $0x90] sm:$0xff] }
 0x48f   : > { %4114 = vst.msk [vmem:[#allocation3 + $0xc] sm:$0xf] %vm4112_vm4, %v4243_v38  ;;  %v10800_v38 = vpack.c.bf16 %v13727_v35, %v13727_v35  ;;  %v4491_v35 = vld [vmem:[#allocation2 + $0xda] sm:$0xff] }
 0x490   : > { %1672 = vst.msk [vmem:[#allocation3 + $0x12c] sm:$0xf] %vm1646_vm9, %v1601_v59  ;;  %v4434_v59 = vld [vmem:[#allocation2 + $0xc1] sm:$0xff] }
 0x491   : > { %v10728_v18 = vld [vmem:[#allocation2 + $0x48] sm:$0x3]  ;;  %v10732_v28 = vld [vmem:[#allocation2 + $0x4a] sm:$0x3]  ;;  %2960 = vrot.lane.b32.xlu0 %v10018_v4, %s8834_s9  ;;  %5196 = vst.msk [vmem:[#allocation2 + $0x78] sm:$0x3f] %vm5190_vm0, %v13597_v48  ;;  %v1607_v46 = vpop.permute.xlu2 %1606 }
 0x492   : > { %v10730_v61 = vld [vmem:[#allocation2 + $0x49] sm:$0x3]  ;;  %v4889_v53 = vld [vmem:[#allocation2 + $0x18] sm:$0x3]  ;;  %2854 = vrot.lane.b32.xlu2 %v10742_v42, %s8832_s28  ;;  %6020 = vst.msk [vmem:[#allocation2 + $0x80] sm:$0x3] %vm4068_vm6, %v13597_v48 }
 0x493   : > { %5194 = vst.msk [vmem:[#allocation2 + $0x48] sm:$0x3f] %vm5190_vm0, %v13597_v48  ;;  %2906 = vrot.lane.b32.xlu1 %v10736_v47, %s8833_s29  ;;  %v4900_v49 = vld [vmem:[#allocation2 + $0x19] sm:$0x3] }
 0x494   : > { %4894 = vst [vmem:[#allocation1 + $0x1] ss:$4 sm:$0xff] %v4889_v53  ;;  %v10786_v17 = vld [vmem:[#allocation2 + $0x19] sm:$0x3] }
 0x495   : > { %v4098_v31 = vld [vmem:[#allocation2 + $0x30] sm:$0xff]  ;;  %1675 = vst.msk [vmem:[#allocation3 + $0x150] sm:$0xf] %vm1646_vm9, %v1607_v46  ;;  %v10792_v3 = vld [vmem:[#allocation2 + $0x1a] sm:$0x3]  ;;  %v10851_v46 = vpack.c.bf16 %v4434_v59, %v4434_v59  ;;  %v10909_v59 = vpack.c.bf16 %v9688_v16, %v9688_v16 }
 0x496   : > { %v4123_v4 = vld [vmem:[#allocation2 + $0x31] sm:$0xff]  ;;  %v10767_v60 = vpack.c.bf16 %v4098_v31, %v4098_v31  ;;  %4308 = vst.msk [vmem:[#allocation3 + $0x4] sm:$0xf] %vm4112_vm4, %v4130_v39  ;;  %v10803_v39 = vpack.c.bf16 %v4238_v45, %v4238_v45  ;;  %v10871_v45 = vpack.c.bf16 %v4486_v0, %v4486_v0 }
 0x497   : > { %v10758_v24 = vld [vmem:[#allocation2 + $0x32] sm:$0xff]  ;;  %4310 = vst.msk [vmem:[#allocation3 + $0x1c] sm:$0xf] %vm4112_vm4, %v10776_v41  ;;  %v10807_v15 = vpack.c.bf16 %v4123_v4, %v4123_v4 }
 0x498   : > { %4884 = vst.msk [vmem:[#allocation2 + $0x30] sm:$0xf] %vm521_vm2, %v13597_v48  ;;  %v13728_v31 = vld [vmem:[#allocation48_spill] sm:$0xff]  ;;  %v10863_v54 = vpack.c.bf16 %v10758_v24, %v10758_v24  ;;  %v10877_v24 = vpack.c.bf16 %v10749_v19, %v10749_v19 }
 0x499   : > { %4887 = vst.msk [vmem:[#allocation2 + $0x31] sm:$0x3] %vm371_vm1, %v4880_v56  ;;  %3016 = vrot.lane.b32.xlu0 %v10032_v37, %s8835_s10  ;;  %v4931_v37 = vld [vmem:[#allocation2 + $0x18] sm:$0x3]  ;;  %v1613_v20 = vpop.permute.xlu2 %1612  ;;  %v10844_v4 = vpack.c.bf16 %v13728_v31, %v13728_v31  ;;  %v13729_v31 = vld [vmem:[#allocation11_spill] sm:$0xff] }
 0x49a   : > { %6014 = vst.msk [vmem:[#allocation2 + $0x38] sm:$0x3] %vm4068_vm6, %v13597_v48  ;;  %2908 = vrot.lane.b32.xlu2 %v10773_v36, %s8833_s29  ;;  %v10900_v0 = vld [vmem:[#allocation2 + $0x92] sm:$0xff] }
 0x49b   : > { %v10769_v63 = vld.sshfl [vmem:[#allocation1] sm:$0xff pattern:$0x73625140]  ;;  %4261 = vrot.lane.b32.xlu1 %v10767_v60, %s8839_s20  ;;  %1678 = vst.msk [vmem:[#allocation3 + $0x174] sm:$0xf] %vm1646_vm9, %v1613_v20  ;;  %v4496_v20 = vpack.c.bf16 %v4488_v6, %v4488_v6  ;;  %v10933_v6 = vld [vmem:[#allocation2 + $0xc0] sm:$0xff] }
 0x49c   : > { %4903 = vst [vmem:[#allocation1] ss:$4 sm:$0xff] %v10199_v58  ;;  %v4916_v58 = vld [vmem:[#allocation2 + $0x1a] sm:$0x3] }
 0x49d   : > { %4905 = vst [vmem:[#allocation1 + $0x1] ss:$4 sm:$0xff] %v4900_v49 }
 0x49e   : > { %5192 = vst.msk [vmem:[#allocation2 + $0x18] sm:$0x3f] %vm5190_vm0, %v13597_v48 }
 0x49f   : > { %4312 = vst.msk [vmem:[#allocation3 + $0x34] sm:$0xf] %vm4112_vm4, %v10788_v32 }
 0x4a0   : > { %4314 = vst.msk [vmem:[#allocation3 + $0x4c] sm:$0xf] %vm4112_vm4, %v10794_v30  ;;  %v4932_v43 = vld [vmem:[#allocation2 + $0x30] sm:$0x3]  ;;  %v10826_v8 = vld [vmem:[#allocation2 + $0x32] sm:$0x3] }
 0x4a1   : > { %3072 = vrot.lane.b32.xlu0 %v10736_v47, %s8836_s12  ;;  %v4948_v26 = vld [vmem:[#allocation2 + $0x31] sm:$0x3]  ;;  %4309 = vst.msk [vmem:[#allocation3 + $0x10] sm:$0xf] %vm4112_vm4, %v10807_v15  ;;  %v1785_v56 = vpop.permute.xlu2 %1784 }
 0x4a2   : > { %4265 = vrot.lane.b32.xlu2 %v10803_v39, %s8839_s20  ;;  %v10828_v53 = vld [vmem:[#allocation2 + $0x30] sm:$0x3]  ;;  %4311 = vst.msk [vmem:[#allocation3 + $0x28] sm:$0xf] %vm4112_vm4, %v10815_v5  ;;  %v10834_v13 = vld [vmem:[#allocation2 + $0x32] sm:$0x3] }
 0x4a3   : > { %2962 = vrot.lane.b32.xlu1 %v10800_v38, %s8834_s9  ;;  %5195 = vst.msk [vmem:[#allocation2 + $0x60] sm:$0x3f] %vm5190_vm0, %v13597_v48 }
 0x4a4   : > { %v10809_v12 = vld.sshfl [vmem:[#allocation1] sm:$0xff pattern:$0x73625140]  ;;  %1877 = vst.msk [vmem:[#allocation3 + $0x30] sm:$0xf] %vm1872_vm10, %v1785_v56  ;;  %v10911_v56 = vld [vmem:[#allocation2 + $0xa8] sm:$0xff] }
 0x4a5   : > { %4919 = vst [vmem:[#allocation1] ss:$4 sm:$0xff] %v10202_v14  ;;  %v10832_v14 = vld [vmem:[#allocation2 + $0x31] sm:$0x3] }
 0x4a6   : > { %4921 = vst [vmem:[#allocation1 + $0x1] ss:$4 sm:$0xff] %v4916_v58 }
 0x4a7   : > { %5193 = vst.msk [vmem:[#allocation2 + $0x30] sm:$0x3f] %vm5190_vm0, %v13597_v48  ;;  %vm4226_vm0 = vcmask 781824  }
 0x4a8   : > { %6018 = vst.msk [vmem:[#allocation2 + $0x68] sm:$0x3] %vm4068_vm6, %v13597_v48 }
 0x4a9   : > { %2009 = vrot.lane.b32.xlu0 %v9130_v50, %s8837_s13  ;;  %4313 = vst.msk [vmem:[#allocation3 + $0x40] sm:$0xf] %vm4112_vm4, %v10836_v40  ;;  %v10867_v50 = vpack.c.bf16 %v10701_v62, %v10701_v62  ;;  %v1791_v58 = vpop.permute.xlu2 %1790  ;;  %v10882_v62 = vpack.c.bf16 %v10247_v44, %v10247_v44 }
 0x4aa   : > { %3020 = vrot.lane.b32.xlu2 %v10742_v42, %s8835_s10  ;;  %4315 = vst.msk [vmem:[#allocation3 + $0x58] sm:$0xf] %vm4112_vm4, %v10851_v46 }
 0x4ab   : > { %3018 = vrot.lane.b32.xlu1 %v10844_v4, %s8835_s10  ;;  %4500 = vst.msk [vmem:[#allocation3 + $0x8] sm:$0xf] %vm4112_vm4, %v10863_v54 }
 0x4ac   : > { %1880 = vst.msk [vmem:[#allocation3 + $0x54] sm:$0xf] %vm1872_vm10, %v1791_v58  ;;  %v10935_v58 = vld [vmem:[#allocation2 + $0xc2] sm:$0xff] }
 0x4ad   : > { %v10855_v49 = vld.sshfl [vmem:[#allocation1] sm:$0xff pattern:$0x73625140]  ;;  %4501 = vst.msk [vmem:[#allocation3 + $0x14] sm:$0xf] %vm4112_vm4, %v10867_v50 }
 0x4ae   : > { %4935 = vst [vmem:[#allocation1] ss:$4 sm:$0xff] %v4931_v37  ;;  %v4489_v37 = vld [vmem:[#allocation2 + $0xaa] sm:$0xff] }
 0x4af   : > { %4937 = vst [vmem:[#allocation1 + $0x1] ss:$4 sm:$0xff] %v4932_v43  ;;  %v4497_v44 = vpack.c.bf16 %v4489_v37, %v4489_v37  ;;  %v4498_v43 = vpack.c.bf16 %v4490_v10, %v4490_v10  ;;  %v13730_v37 = vld [vmem:[#allocation59_spill] sm:$0xff]  ;;  %v11051_v10 = vpack.c.bf16 %v9694_v2, %v9694_v2  ;;  %v3171_v2 = vpack.c.bf16 %v10626_v29, %v10626_v29 }
 0x4b0   : > { %4502 = vst.msk [vmem:[#allocation3 + $0x20] sm:$0xf] %vm4112_vm4, %v10871_v45  ;;  %v11079_v29 = vpack.c.bf16 %v10900_v0, %v10900_v0 }
 0x4b1   : > { %3128 = vrot.lane.b32.xlu0 %v10800_v38, %s8837_s13  ;;  %4503 = vst.msk [vmem:[#allocation3 + $0x2c] sm:$0xf] %vm4112_vm4, %v10877_v24 }
 0x4b2   : > { %3078 = vrot.lane.b32.xlu2 %v10882_v62, %s8836_s12  ;;  %4504 = vst.msk [vmem:[#allocation3 + $0x38] sm:$0xf] %vm4112_vm4, %v4496_v20  ;;  %v10939_v20 = vpack.c.bf16 %v13730_v37, %v13730_v37  ;;  %v4897_v37 = vpack.c.bf16 %v10769_v63, %v10769_v63  ;;  %v13736_v63 = vld [vmem:[#allocation14_spill] sm:$0xff] }
 0x4b3   : > { %3074 = vrot.lane.b32.xlu1 %v10773_v36, %s8836_s12  ;;  %4505 = vst.msk [vmem:[#allocation3 + $0x44] sm:$0xf] %vm4112_vm4, %v4497_v44 }
 0x4b4   : > { %6021 = vst.msk [vmem:[#allocation2 + $0x90] sm:$0xff] %vm4066_vm14, %v13597_v48 }
 0x4b5   : > { %6022 = vst.msk [vmem:[#allocation2 + $0x98] sm:$0x3] %vm4068_vm6, %v13597_v48 }
 0x4b6   : > { %v10896_v19 = vld.sshfl [vmem:[#allocation1] sm:$0xff pattern:$0x73625140]  ;;  %4506 = vst.msk [vmem:[#allocation3 + $0x50] sm:$0xf] %vm4112_vm4, %v4498_v43 }
 0x4b7   : > { %4951 = vst [vmem:[#allocation1] ss:$4 sm:$0xff] %v10786_v17  ;;  %v10913_v17 = vld [vmem:[#allocation2 + $0xaa] sm:$0xff] }
 0x4b8   : > { %4953 = vst [vmem:[#allocation1 + $0x1] ss:$4 sm:$0xff] %v4948_v26  ;;  %v4499_v26 = vpack.c.bf16 %v4491_v35, %v4491_v35 }
 0x4b9   : > { %2234 = vrot.lane.b32.xlu0 %v9580_v57, %s8838_s14  ;;  %6023 = vst.msk [vmem:[#allocation2 + $0xa8] sm:$0xff] %vm4066_vm14, %v13597_v48  ;;  %v2137_v57 = vld [vmem:[#allocation2 + $0x82] sm:$0xff] }
 0x4ba   : > { %3132 = vrot.lane.b32.xlu2 %v10909_v59, %s8837_s13  ;;  %6024 = vst.msk [vmem:[#allocation2 + $0xb0] sm:$0x3] %vm4068_vm6, %v13597_v48  ;;  %v2169_v44 = vpack.c.bf16 %v2137_v57, %v2137_v57  ;;  %v13732_v57 = vld [vmem:[#allocation16_spill] sm:$0xff] }
 0x4bb   : > { %2011 = vrot.lane.b32.xlu1 %v13729_v31, %s8837_s13  ;;  %4507 = vst.msk [vmem:[#allocation3 + $0x5c] sm:$0xf] %vm4112_vm4, %v4499_v26  ;;  %v13731_v26 = vld [vmem:[#allocation80_spill] sm:$0xff] }
 0x4bc   : > { %6025 = vst.msk [vmem:[#allocation2 + $0xc0] sm:$0xff] %vm4066_vm14, %v13597_v48  ;;  %v3001_v31 = vpack.c.bf16 %v13731_v26, %v13731_v26 }
 0x4bd   : > { %6026 = vst.msk [vmem:[#allocation2 + $0xc8] sm:$0x3] %vm4068_vm6, %v13597_v48 }
 0x4be   : > { %4227 = vst.msk [vmem:[#allocation3] sm:$0xf] %vm4226_vm0, %v10349_v21  ;;  %v11007_v21 = vpack.c.bf16 %v10699_v27, %v10699_v27  ;;  %v8631_v27 = vld [vmem:[%s13519_s4 + $0x1c8] sm:$0xff] }
 0x4bf   : > { %v10928_v16 = vld.sshfl [vmem:[#allocation1] sm:$0xff pattern:$0x73625140] }
 0x4c0   : > { %4967 = vst [vmem:[#allocation1] ss:$4 sm:$0xff] %v10792_v3 }
 0x4c1   : > { %4969 = vst [vmem:[#allocation1 + $0x1] ss:$4 sm:$0xff] %v10826_v8  ;;  %3184 = vrot.lane.b32.xlu0 %v10844_v4, %s8838_s14 }
 0x4c2   : > { %2240 = vrot.lane.b32.xlu2 %v2169_v44, %s8838_s14 }
 0x4c3   : > { %3130 = vrot.lane.b32.xlu1 %v10939_v20, %s8837_s13 }
 0x4c8   : > { %v10950_v3 = vld.sshfl [vmem:[#allocation1] sm:$0xff pattern:$0x73625140] }
 0x4c9   : > { %4985 = vst [vmem:[#allocation1 + $0x1] ss:$4 sm:$0xff] %v10728_v18  ;;  %2796 = vrot.lane.b32.xlu0 %v10800_v38, %s8831_s26 }
 0x4ca   : > { %4983 = vst [vmem:[#allocation1] ss:$4 sm:$0xff] %v10828_v53  ;;  %2800 = vrot.lane.b32.xlu2 %v10909_v59, %s8831_s26  ;;  %v8632_v53 = vld [vmem:[%s13519_s4 + $0x1d0] sm:$0xff] }
 0x4cb   : > { %2236 = vrot.lane.b32.xlu1 %v10332_v52, %s8838_s14  ;;  %v8635_v52 = vld [vmem:[%s13519_s4 + $0x1e8] sm:$0xff] }
 0x4cc   : > { %4743 = vmatpush.bf16.msra.mxu3 %v8635_v52 }
 0x4d1   : > { %v10960_v8 = vld.sshfl [vmem:[#allocation1] sm:$0xff pattern:$0x73625140]  ;;  %4149 = vrot.lane.b32.xlu0 %v10807_v15, %s8834_s9 }
 0x4d2   : > { %4999 = vst [vmem:[#allocation1] ss:$4 sm:$0xff] %v10832_v14  ;;  %4155 = vrot.lane.b32.xlu2 %v10788_v32, %s8834_s9 }
 0x4d3   : > { %5001 = vst [vmem:[#allocation1 + $0x1] ss:$4 sm:$0xff] %v10730_v61  ;;  %3186 = vrot.lane.b32.xlu1 %v10742_v42, %s8838_s14  ;;  %v8634_v61 = vld [vmem:[%s13519_s4 + $0x1e0] sm:$0xff]  ;;  %v10990_v42 = vpack.c.bf16 %v10222_v51, %v10222_v51  ;;  %v8633_v51 = vld [vmem:[%s13519_s4 + $0x1d8] sm:$0xff] }
 0x4d4   : > { %4744 = vmatpush.bf16.msra.mxu3 %v8634_v61 }
 0x4d8   : > { %4745 = vmatpush.bf16.msra.mxu3 %v8633_v51 }
 0x4d9   : > { %2852 = vrot.lane.b32.xlu0 %v10844_v4, %s8832_s28  ;;  %v11034_v4 = vpack.c.bf16 %v9692_v55, %v9692_v55  ;;  %v8628_v55 = vld [vmem:[%s13519_s4 + $0x1b0] sm:$0xff] }
 0x4da   : > { %v10973_v18 = vld.sshfl [vmem:[#allocation1] sm:$0xff pattern:$0x73625140]  ;;  %4210 = vrot.lane.b32.xlu2 %v10871_v45, %s8838_s14 }
 0x4db   : > { %5015 = vst [vmem:[#allocation1] ss:$4 sm:$0xff] %v10834_v13  ;;  %2798 = vrot.lane.b32.xlu1 %v10939_v20, %s8831_s26  ;;  %v8630_v13 = vld [vmem:[%s13519_s4 + $0x1c0] sm:$0xff] }
 0x4dc   : > { %5017 = vst [vmem:[#allocation1 + $0x1] ss:$4 sm:$0xff] %v10732_v28  ;;  %4746 = vmatpush.bf16.msra.mxu3 %v8632_v53 }
 0x4e0   : > { %4747 = vmatpush.bf16.msra.mxu3 %v8631_v27 }
 0x4e1   : > { %4208 = vrot.lane.b32.xlu0 %v10867_v50, %s8838_s14 }
 0x4e2   : > { %2914 = vrot.lane.b32.xlu2 %v10990_v42, %s8833_s29 }
 0x4e3   : > { %v10992_v38 = vld.sshfl [vmem:[#allocation1] sm:$0xff pattern:$0x73625140]  ;;  %4151 = vrot.lane.b32.xlu1 %v10776_v41, %s8834_s9 }
 0x4e4   : > { %5209 = vst [vmem:[#allocation1] ss:$2 sm:$0xff] %v10238_v22  ;;  %v4148_v28 = vpop.permute.xlu2 %4147  ;;  %v11014_v22 = vpack.c.bf16 %v9698_v34, %v9698_v34  ;;  %v2889_v34 = vpack.c.bf16 %v10220_v25, %v10220_v25  ;;  %4748 = vmatpush.bf16.msra.mxu3 %v8630_v13  ;;  %v8629_v25 = vld [vmem:[%s13519_s4 + $0x1b8] sm:$0xff]  ;;  %v11095_v13 = vpack.c.bf16 %v10933_v6, %v10933_v6 }
 0x4e5   : > { %4171 = vst.msk [vmem:[#allocation3 + $0xc] sm:$0xf] %vm4169_vm12, %v4148_v28  ;;  %v13735_v28 = vld [vmem:[#allocation75_spill] sm:$0xff]  ;;  %v4940_v6 = vpack.c.bf16 %v10896_v19, %v10896_v19 }
 0x4e8   : > { %4749 = vmatpush.bf16.msra.mxu3 %v8629_v25 }
 0x4e9   : > { %4263 = vrot.lane.b32.xlu0 %v11007_v21, %s8839_s20 }
 0x4ea   : > { %2968 = vrot.lane.b32.xlu2 %v11014_v22, %s8834_s9 }
 0x4eb   : > { %4206 = vrot.lane.b32.xlu1 %v10863_v54, %s8838_s14 }
 0x4ec   : > { %v11025_v14 = vpop.permute.xlu2 %2854  ;;  %4750 = vmatpush.bf16.msra.mxu3 %v8628_v55 }
 0x4f1   : > { %2966 = vrot.lane.b32.xlu0 %v10909_v59, %s8834_s9 }
 0x4f2   : > { %3026 = vrot.lane.b32.xlu2 %v11034_v4, %s8835_s10 }
 0x4f3   : > { %2910 = vrot.lane.b32.xlu1 %v2889_v34, %s8833_s29 }
 0x4f4   : > { %v11044_v45 = vpop.permute.xlu2 %2908 }
 0x4f9   : > { %3076 = vrot.lane.b32.xlu0 %v2889_v34, %s8836_s12  ;;  %v13737_v34 = vld [vmem:[#allocation81_spill] sm:$0xff] }
 0x4fa   : > { %3136 = vrot.lane.b32.xlu2 %v11051_v10, %s8837_s13  ;;  %v3169_v0 = vpack.c.bf16 %v13737_v34, %v13737_v34  ;;  %v11145_v34 = vpack.c.bf16 %v10902_v33, %v10902_v33  ;;  %v11161_v33 = vpack.c.bf16 %v10754_v9, %v10754_v9  ;;  %v3059_v9 = vpack.c.bf16 %v10628_v1, %v10628_v1 }
 0x4fb   : > { %2964 = vrot.lane.b32.xlu1 %v10939_v20, %s8834_s9  ;;  %v4260_v43 = vpop.permute.xlu0 %4259 }
 0x4fc   : > { %v11059_v59 = vpop.permute.xlu2 %4265  ;;  %4284 = vst.msk [vmem:[#allocation3] sm:$0xf] %vm4283_vm7, %v4260_v43 }
 0x4fd   : > { %v4205_v35 = vpop.permute.xlu1 %4204 }
 0x4fe   : > { %4228 = vst.msk [vmem:[#allocation3 + $0xc] sm:$0xf] %vm4226_vm0, %v4205_v35 }
 0x501   : > { %2015 = vrot.lane.b32.xlu0 %v13732_v57, %s8837_s13 }
 0x502   : > { %3194 = vrot.lane.b32.xlu2 %v3171_v2, %s8838_s14 }
 0x503   : > { %3022 = vrot.lane.b32.xlu1 %v3001_v31, %s8835_s10  ;;  %v2961_v44 = vpop.permute.xlu0 %2960  ;;  %v8148_v52 = vld [vmem:[#allocation3] sm:$0xf] }
 0x504   : > { %v11073_v61 = vpop.permute.xlu2 %3020  ;;  %4898 = vst.msk [vmem:[#allocation3] sm:$0x3] %vm371_vm1, %v4897_v37  ;;  %vm13738_vm1 = vmmov %vm13734_vm11 }
 0x505   : > { %v2907_v20 = vpop.permute.xlu1 %2906  ;;  %2982 = vst.msk [vmem:[#allocation3 + $0x18] sm:$0xf] %vm13734_vm11, %v2961_v44 }
 0x506   : > { %2927 = vst.msk [vmem:[#allocation3 + $0x24] sm:$0xf] %vm13733_vm8, %v2907_v20  ;;  %vm13739_vm8 = vcmask 519616   ;;  %v4988_v20 = vpack.c.bf16 %v10960_v8, %v10960_v8  ;;  %v11130_v8 = vld [vmem:[#allocation2 + $0x7a] sm:$0xf] }
 0x507   : > { %vm13740_vm11 = vmmov %vm13739_vm8 }
 0x509   : > { %2238 = vrot.lane.b32.xlu0 %v13735_v28, %s8838_s14  ;;  %v11125_v28 = vld [vmem:[#allocation2 + $0x78] sm:$0xf] }
 0x50a   : > { %4214 = vrot.lane.b32.xlu2 %v11079_v29, %s8838_s14 }
 0x50b   : > { %2013 = vrot.lane.b32.xlu1 %v13736_v63, %s8837_s13  ;;  %v3017_v53 = vpop.permute.xlu0 %3016  ;;  %v11128_v63 = vld [vmem:[#allocation2 + $0x79] sm:$0xf] }
 0x50c   : > { %v11088_v27 = vpop.permute.xlu2 %3078  ;;  %3038 = vst.msk [vmem:[#allocation3 + $0x18] sm:$0xf] %vm1646_vm9, %v3017_v53 }
 0x50d   : > { %v4262_v51 = vpop.permute.xlu1 %4261  ;;  %6019 = vst.msk [vmem:[#allocation2 + $0x78] sm:$0xff] %vm4066_vm14, %v13597_v48 }
 0x50e   : > { %4285 = vst.msk [vmem:[#allocation3 + $0xc] sm:$0xf] %vm4283_vm7, %v4262_v51 }
 0x511   : > { %3190 = vrot.lane.b32.xlu0 %v3169_v0, %s8838_s14 }
 0x512   : > { %4273 = vrot.lane.b32.xlu2 %v11095_v13, %s8839_s20 }
 0x513   : > { %3134 = vrot.lane.b32.xlu1 %v11014_v22, %s8837_s13  ;;  %v3073_v55 = vpop.permute.xlu0 %3072 }
 0x514   : > { %v11103_v43 = vpop.permute.xlu2 %3132  ;;  %3094 = vst.msk [vmem:[#allocation3 + $0x18] sm:$0xf] %vm1872_vm10, %v3073_v55 }
 0x515   : > { %v2963_v25 = vpop.permute.xlu1 %2962  ;;  %v8617_v35 = vld [vmem:[#allocation3 + $0x8] sm:$0xf0] }
 0x516   : > { %2983 = vst.msk [vmem:[#allocation3 + $0x24] sm:$0xf] %vm13738_vm1, %v2963_v25  ;;  %v8149_v2 = vor.u32 %v8617_v35, %v8148_v52  ;;  %vm13741_vm1 = vmmov %vm13739_vm8 }
 0x518   : > { %4751 = vmatmul.bf16.vlgmr.msra.gmra.mxu3 %v8149_v2 }
 0x519   : > { %4153 = vrot.lane.b32.xlu0 %v10815_v5, %s8834_s9 }
 0x51a   : > { %4942 = vrot.lane.b32.xlu2 %v4940_v6, %s8833_s29 }
 0x51b   : > { %3188 = vrot.lane.b32.xlu1 %v3001_v31, %s8838_s14  ;;  %v2010_v57 = vpop.permute.xlu0 %2009 }
 0x51c   : > { %v11113_v37 = vpop.permute.xlu2 %2240  ;;  %2102 = vst.msk [vmem:[#allocation3 + $0x30] sm:$0xf] %vm13739_vm8, %v2010_v57  ;;  %vm13742_vm8 = vcmask 585216  }
 0x51d   : > { %v3019_v26 = vpop.permute.xlu1 %3018 }
 0x51e   : > { %3039 = vst.msk [vmem:[#allocation3 + $0x24] sm:$0xf] %vm1646_vm9, %v3019_v26 }
 0x521   : > { %2858 = vrot.lane.b32.xlu0 %v3169_v0, %s8832_s28 }
 0x522   : > { %4990 = vrot.lane.b32.xlu2 %v4988_v20, %s8836_s12 }
 0x523   : > { %2802 = vrot.lane.b32.xlu1 %v11014_v22, %s8831_s26  ;;  %v3129_v44 = vpop.permute.xlu0 %3128 }
 0x524   : > { %v11123_v52 = vpop.permute.xlu2 %2800  ;;  %3150 = vst.msk [vmem:[#allocation3 + $0x18] sm:$0xf] %vm13740_vm11, %v3129_v44  ;;  %vm13743_vm11 = vmmov %vm13741_vm1 }
 0x525   : > { %v3075_v19 = vpop.permute.xlu1 %3074 }
 0x526   : > { %3095 = vst.msk [vmem:[#allocation3 + $0x24] sm:$0xf] %vm1872_vm10, %v3075_v19 }
 0x529   : > { %2912 = vrot.lane.b32.xlu0 %v10882_v62, %s8833_s29  ;;  %s7827_s29 = scalar_lea.hbm %s13521_s6, %s8701_s17 }
 0x52a   : > { %4340 = vrot.lane.b32.xlu2 %v10706_v7, %s8834_s9 }
 0x52b   : > { %2856 = vrot.lane.b32.xlu1 %v3001_v31, %s8832_s28  ;;  %v2235_v51 = vpop.permute.xlu0 %2234 }
 0x52c   : > { %v11140_v53 = vpop.permute.xlu2 %4155  ;;  %2327 = vst.msk [vmem:[#allocation3 + $0x30] sm:$0xf] %vm13742_vm8, %v2235_v51 }
 0x52d   : > { %v2012_v22 = vpop.permute.xlu1 %2011 }
 0x52e   : > { %2103 = vst.msk [vmem:[#allocation3 + $0x3c] sm:$0xf] %vm13741_vm1, %v2012_v22  ;;  %vm13744_vm1 = vmmov %vm13742_vm8 }
 0x52f   : > { %vm13745_vm8 = vmmov %vm13744_vm1 }
 0x531   : > { %4269 = vrot.lane.b32.xlu0 %v11145_v34, %s8839_s20 }
 0x532   : > { %4398 = vrot.lane.b32.xlu2 %v11007_v21, %s8838_s14 }
 0x533   : > { %4212 = vrot.lane.b32.xlu1 %v10877_v24, %s8838_s14  ;;  %v3185_v31 = vpop.permute.xlu0 %3184  ;;  %v7949_v25 = vld [vmem:[#allocation3 + $0x30] sm:$0xf] }
 0x534   : > { %v11154_v55 = vpop.permute.xlu2 %4210  ;;  %2760 = vst.msk [vmem:[#allocation3 + $0x30] sm:$0xf] %vm521_vm2, %v10736_v47 }
 0x535   : > { %v3131_v7 = vpop.permute.xlu1 %3130  ;;  %3206 = vst.msk [vmem:[#allocation3 + $0x18] sm:$0xf] %vm13744_vm1, %v3185_v31 }
 0x536   : > { %3151 = vst.msk [vmem:[#allocation3 + $0x24] sm:$0xf] %vm13743_vm11, %v3131_v7  ;;  %vm13746_vm11 = vcmask 126016  }
 0x539   : > { %3024 = vrot.lane.b32.xlu0 %v3169_v0, %s8835_s10 }
 0x53a   : > { %4344 = vrot.lane.b32.xlu2 %v10867_v50, %s8834_s9 }
 0x53b   : > { %4267 = vrot.lane.b32.xlu1 %v11161_v33, %s8839_s20  ;;  %v2797_v2 = vpop.permute.xlu0 %2796 }
 0x53c   : > { %v11169_v6 = vpop.permute.xlu2 %2914  ;;  %v11171_v47 = vld [vmem:[#allocation3 + $0x18] sm:$0xf]  ;;  %2816 = vst.msk [vmem:[#allocation3 + $0x30] sm:$0xf] %vm13746_vm11, %v2797_v2 }
 0x53d   : > { %v2237_v35 = vpop.permute.xlu1 %2236  ;;  %4115 = vst.msk [vmem:[#allocation3 + $0x18] sm:$0xf] %vm4112_vm4, %v10767_v60 }
 0x53e   : > { %2328 = vst.msk [vmem:[#allocation3 + $0x3c] sm:$0xf] %vm13745_vm8, %v2237_v35  ;;  %vm13747_vm8 = vcmask 588800   ;;  %v4908_v35 = vpack.c.bf16 %v10809_v12, %v10809_v12  ;;  %v4956_v12 = vpack.c.bf16 %v10928_v16, %v10928_v16  ;;  %v5004_v16 = vpack.c.bf16 %v10973_v18, %v10973_v18  ;;  %v13758_v18 = vld [vmem:[#allocation66_spill] sm:$0xff] }
 0x541   : > { %3082 = vrot.lane.b32.xlu0 %v3059_v9, %s8836_s12 }
 0x542   : > { %4402 = vrot.lane.b32.xlu2 %v11161_v33, %s8838_s14 }
 0x543   : > { %2970 = vrot.lane.b32.xlu1 %v11051_v10, %s8834_s9  ;;  %v4150_v26 = vpop.permute.xlu0 %4149 }
 0x544   : > { %v11185_v57 = vpop.permute.xlu2 %2968  ;;  %4172 = vst.msk [vmem:[#allocation3 + $0x18] sm:$0xf] %vm4169_vm12, %v4150_v26 }
 0x545   : > { %v8585_v50 = vld [vmem:[#allocation3 + $0x38] sm:$0xf0]  ;;  %v3187_v0 = vpop.permute.xlu1 %3186 }
 0x546   : > { %2761 = vst.msk [vmem:[#allocation3 + $0x3c] sm:$0xf] %vm521_vm2, %v10773_v36  ;;  %v7950_v1 = vor.u32 %v8585_v50, %v7949_v25 }
 0x547   : > { %3207 = vst.msk [vmem:[#allocation3 + $0x24] sm:$0xf] %vm13744_vm1, %v3187_v0  ;;  %vm13748_vm1 = vcmask 191616  }
 0x548   : > { %8021 = vmatmul.msk.bf16.gmra.mxu0 %vm13747_vm8, %v7950_v1  ;;  %vm13749_vm8 = vmmov %vm13748_vm1 }
 0x549   : > { %3192 = vrot.lane.b32.xlu0 %v11034_v4, %s8838_s14  ;;  %v3115_v4 = vpack.c.bf16 %v10630_v23, %v10630_v23 }
 0x54a   : > { %4348 = vrot.lane.b32.xlu2 %v10877_v24, %s8834_s9  ;;  %v11212_v24 = vpack.c.bf16 %v10911_v56, %v10911_v56  ;;  %v4330_v56 = vpack.c.bf16 %v10913_v17, %v10913_v17 }
 0x54b   : > { %3080 = vrot.lane.b32.xlu1 %v10990_v42, %s8836_s12  ;;  %v2853_v36 = vpop.permute.xlu0 %2852 }
 0x54c   : > { %v11199_v19 = vpop.permute.xlu2 %3026  ;;  %2872 = vst.msk [vmem:[#allocation3 + $0x30] sm:$0xf] %vm13749_vm8, %v2853_v36  ;;  %vm13753_vm8 = vcmask 519616  }
 0x54d   : > { %v2799_v10 = vpop.permute.xlu1 %2798  ;;  %2928 = vst.msk [vmem:[#allocation3 + $0x30] sm:$0xf] %vm13750_vm15, %v11044_v45 }
 0x54e   : > { %v11196_v20 = vld [vmem:[#allocation3 + $0x20] sm:$0xf0]  ;;  %2817 = vst.msk [vmem:[#allocation3 + $0x3c] sm:$0xf] %vm13746_vm11, %v2799_v10  ;;  %vm13751_vm11 = vcmask 322816  }
 0x54f   : > { %4116 = vst.msk [vmem:[#allocation3 + $0x24] sm:$0xf] %vm4112_vm4, %v11007_v21 }
 0x550   : > { %2873 = vst.msk [vmem:[#allocation3 + $0x3c] sm:$0xf] %vm13748_vm1, %v11025_v14  ;;  %vm13752_vm1 = vmmov %vm13751_vm11 }
 0x551   : > { %4159 = vrot.lane.b32.xlu0 %v10794_v30, %s8834_s9 }
 0x552   : > { %4406 = vrot.lane.b32.xlu2 %v11212_v24, %s8838_s14 }
 0x553   : > { %3138 = vrot.lane.b32.xlu1 %v3115_v4, %s8837_s13  ;;  %v4209_v42 = vpop.permute.xlu0 %4208 }
 0x554   : > { %v11219_v21 = vpop.permute.xlu2 %3136 }
 0x555   : > { %v4152_v23 = vpop.permute.xlu1 %4151 }
 0x556   : > { %4173 = vst.msk [vmem:[#allocation3 + $0x24] sm:$0xf] %vm4169_vm12, %v4152_v23 }
 0x557   : > { %4230 = vst.msk [vmem:[#allocation3 + $0x24] sm:$0xf] %vm4226_vm0, %v4209_v42 }
 0x558   : > { %4287 = vst.msk [vmem:[#allocation3 + $0x24] sm:$0xf] %vm4283_vm7, %v11059_v59  ;;  %v4924_v59 = vpack.c.bf16 %v10855_v49, %v10855_v49  ;;  %v4972_v49 = vpack.c.bf16 %v10950_v3, %v10950_v3  ;;  %v5020_v3 = vpack.c.bf16 %v10992_v38, %v10992_v38 }
 0x559   : > { %4271 = vrot.lane.b32.xlu0 %v11212_v24, %s8839_s20 }
 0x55a   : > { %4352 = vrot.lane.b32.xlu2 %v4330_v56, %s8834_s9 }
 0x55b   : > { %4157 = vrot.lane.b32.xlu1 %v10836_v40, %s8834_s9  ;;  %v4264_v45 = vpop.permute.xlu0 %4263 }
 0x55c   : > { %v11232_v44 = vpop.permute.xlu2 %3194 }
 0x55d   : > { %v4207_v14 = vpop.permute.xlu1 %4206 }
 0x55e   : > { %4229 = vst.msk [vmem:[#allocation3 + $0x18] sm:$0xf] %vm4226_vm0, %v4207_v14 }
 0x55f   : > { %4286 = vst.msk [vmem:[#allocation3 + $0x18] sm:$0xf] %vm4283_vm7, %v4264_v45  ;;  %v8620_v31 = vld [vmem:[#allocation3 + $0x20] sm:$0xf0] }
 0x561   : > { %4926 = vrot.lane.b32.xlu0 %v4924_v59, %s8832_s28 }
 0x563   : > { %4216 = vrot.lane.b32.xlu1 %v4330_v56, %s8838_s14  ;;  %v2967_v22 = vpop.permute.xlu0 %2966 }
 0x564   : > { %v11240_v51 = vpop.permute.xlu2 %4214 }
 0x565   : > { %v2911_v17 = vpop.permute.xlu1 %2910 }
 0x566   : > { %2929 = vst.msk [vmem:[#allocation3 + $0x3c] sm:$0xf] %vm13750_vm15, %v2911_v17  ;;  %v8160_v7 = vld [vmem:[#allocation3 + $0x18] sm:$0xf]  ;;  %vm13754_vm15 = vmmov %vm13753_vm8 }
 0x567   : > { %2985 = vst.msk [vmem:[#allocation3 + $0x3c] sm:$0xf] %vm13751_vm11, %v2967_v22  ;;  %v8161_v25 = vor.u32 %v8620_v31, %v8160_v7  ;;  %vm13755_vm11 = vcmask 585216   ;;  %v8649_v7 = vld [vmem:[%s13519_s4 + $0x258] sm:$0xff] }
 0x569   : > { %4756 = vmatmul.bf16.gmra.mxu3 %v8161_v25  ;;  %4974 = vrot.lane.b32.xlu0 %v4972_v49, %s8835_s10  ;;  %v4331_v25 = vpack.c.bf16 %v10935_v58, %v10935_v58  ;;  %s7828_s10 = sshll.u32 %s13444_s16, 4  ;;  %s7829_s10 = int_to_ptr.vmem [resolvable:$true] %s7828_s10 }
 0x56b   : > { %4910 = vrot.lane.b32.xlu1 %v4908_v35, %s8831_s26  ;;  %v3077_v9 = vpop.permute.xlu0 %3076  ;;  %v8648_v35 = vld [vmem:[%s13519_s4 + $0x250] sm:$0xff] }
 0x56c   : > { %v11250_v50 = vpop.permute.xlu2 %4273 }
 0x56d   : > { %v2965_v2 = vpop.permute.xlu1 %2964 }
 0x56e   : > { %2984 = vst.msk [vmem:[#allocation3 + $0x30] sm:$0xf] %vm13752_vm1, %v2965_v2  ;;  %vm13756_vm1 = vmmov %vm13753_vm8 }
 0x56f   : > { %3040 = vst.msk [vmem:[#allocation3 + $0x30] sm:$0xf] %vm1646_vm9, %v11073_v61 }
 0x570   : > { %3096 = vst.msk [vmem:[#allocation3 + $0x30] sm:$0xf] %vm1872_vm10, %v3077_v9 }
 0x571   : > { %3152 = vst.msk [vmem:[#allocation3 + $0x30] sm:$0xf] %vm13753_vm8, %v11103_v43  ;;  %5022 = vrot.lane.b32.xlu0 %v5020_v3, %s8838_s14  ;;  %vm13757_vm8 = vmmov %vm13755_vm11 }
 0x573   : > { %4958 = vrot.lane.b32.xlu1 %v4956_v12, %s8834_s9  ;;  %v2016_v26 = vpop.permute.xlu0 %2015 }
 0x574   : > { %v11264_v1 = vpop.permute.xlu2 %4942  ;;  %2105 = vst.msk [vmem:[#allocation3 + $0x54] sm:$0xf] %vm13754_vm15, %v2016_v26  ;;  %vm13759_vm15 = vmmov %vm13756_vm1 }
 0x575   : > { %v3023_v0 = vpop.permute.xlu1 %3022  ;;  %2330 = vst.msk [vmem:[#allocation3 + $0x54] sm:$0xf] %vm13755_vm11, %v11113_v37  ;;  %vm13760_vm11 = vcmask 126016  }
 0x576   : > { %3041 = vst.msk [vmem:[#allocation3 + $0x3c] sm:$0xf] %vm1646_vm9, %v3023_v0 }
 0x577   : > { %3097 = vst.msk [vmem:[#allocation3 + $0x3c] sm:$0xf] %vm1872_vm10, %v11088_v27 }
 0x579   : > { %4396 = vrot.lane.b32.xlu0 %v10767_v60, %s8838_s14  ;;  %v2754_v60 = vpack.c.bf16 %v13758_v18, %v13758_v18  ;;  %v8642_v18 = vld [vmem:[%s13519_s4 + $0x220] sm:$0xff] }
 0x57b   : > { %5006 = vrot.lane.b32.xlu1 %v5004_v16, %s8837_s13  ;;  %v2239_v61 = vpop.permute.xlu0 %2238  ;;  %v8647_v16 = vld [vmem:[%s13519_s4 + $0x248] sm:$0xff] }
 0x57c   : > { %v11278_v43 = vpop.permute.xlu2 %4990  ;;  %v8586_v27 = vld [vmem:[#allocation3 + $0x50] sm:$0xf0] }
 0x57d   : > { %v2014_v38 = vpop.permute.xlu1 %2013  ;;  %2763 = vst.msk [vmem:[#allocation3 + $0x54] sm:$0xf] %vm521_vm2, %v10882_v62 }
 0x57e   : > { %2104 = vst.msk [vmem:[#allocation3 + $0x48] sm:$0xf] %vm13756_vm1, %v2014_v38  ;;  %vm13761_vm1 = vcmask 588800  }
 0x57f   : > { %2329 = vst.msk [vmem:[#allocation3 + $0x48] sm:$0xf] %vm13757_vm8, %v2239_v61 }
 0x581   : > { %4454 = vrot.lane.b32.xlu0 %v10776_v41, %s8839_s20 }
 0x583   : > { %4342 = vrot.lane.b32.xlu1 %v10863_v54, %s8834_s9  ;;  %v3191_v10 = vpop.permute.xlu0 %3190 }
 0x584   : > { %v4341_v4 = vpop.permute.xlu2 %4340 }
 0x585   : > { %v3135_v37 = vpop.permute.xlu1 %3134  ;;  %4364 = vst.msk [vmem:[#allocation3 + $0x4] sm:$0xf] %vm4169_vm12, %v4341_v4 }
 0x586   : > { %v7953_v36 = vld [vmem:[#allocation3 + $0x48] sm:$0xf]  ;;  %3153 = vst.msk [vmem:[#allocation3 + $0x3c] sm:$0xf] %vm13759_vm15, %v3135_v37  ;;  %vm13762_vm15 = vmmov %vm13757_vm8 }
 0x587   : > { %2762 = vst.msk [vmem:[#allocation3 + $0x48] sm:$0xf] %vm521_vm2, %v2754_v60  ;;  %v7954_v23 = vor.u32 %v8586_v27, %v7953_v36  ;;  %vm13763_vm2 = vmmov %vm13760_vm11  ;;  %v8639_v36 = vld [vmem:[%s13519_s4 + $0x208] sm:$0xff] }
 0x588   : > { %2818 = vst.msk [vmem:[#allocation3 + $0x48] sm:$0xf] %vm13760_vm11, %v11123_v52  ;;  %v4327_v52 = vpack.c.bf16 %v10822_v11, %v10822_v11  ;;  %v8278_v11 = vld [vmem:[%s13519_s4 + $0x260] sm:$0xf]  ;;  %vm13764_vm11 = vcmask 191616  }
 0x589   : > { %8022 = vmatmul.msk.bf16.gmra.mxu0 %vm13761_vm1, %v7954_v23  ;;  %3209 = vst.msk [vmem:[#allocation3 + $0x3c] sm:$0xf] %vm13757_vm8, %v3191_v10  ;;  %4400 = vrot.lane.b32.xlu0 %v10803_v39, %s8838_s14  ;;  %vm13765_vm1 = vcmask 257216   ;;  %vm13766_vm8 = vmmov %vm13764_vm11  ;;  %v8640_v10 = vld [vmem:[%s13519_s4 + $0x210] sm:$0xff] }
 0x58b   : > { %4452 = vrot.lane.b32.xlu1 %v10807_v15, %s8839_s20  ;;  %v4154_v54 = vpop.permute.xlu0 %4153 }
 0x58c   : > { %v11301_v62 = vpop.permute.xlu2 %4398 }
 0x58d   : > { %v3189_v41 = vpop.permute.xlu1 %3188 }
 0x58e   : > { %3208 = vst.msk [vmem:[#allocation3 + $0x30] sm:$0xf] %vm13762_vm15, %v3189_v41  ;;  %vm13767_vm15 = vmmov %vm13765_vm1 }
 0x590   : > { %v11303_v42 = vld [vmem:[#allocation3 + $0x38] sm:$0xf0] }
 0x591   : > { %4118 = vst.msk [vmem:[#allocation3 + $0x3c] sm:$0xf] %vm4112_vm4, %v11161_v33  ;;  %4458 = vrot.lane.b32.xlu0 %v10788_v32, %s8839_s20  ;;  %v5057_v32 = vunpack.c.l.b16 %v8278_v11 }
 0x592   : > { %4175 = vst.msk [vmem:[#allocation3 + $0x3c] sm:$0xf] %vm4169_vm12, %v11140_v53  ;;  %v4435_v53 = vld [vmem:[#allocation2 + $0xd9] sm:$0xff] }
 0x593   : > { %4346 = vrot.lane.b32.xlu1 %v4327_v52, %s8834_s9  ;;  %v2859_v14 = vpop.permute.xlu0 %2858  ;;  %6028 = vst.msk [vmem:[#allocation2 + $0xe0] sm:$0x3] %vm4068_vm6, %v13597_v48  ;;  %v4443_v31 = vpack.c.bf16 %v4435_v53, %v4435_v53  ;;  %v8637_v52 = vld [vmem:[%s13519_s4 + $0x1f8] sm:$0xff] }
 0x594   : > { %v4345_v45 = vpop.permute.xlu2 %4344 }
 0x595   : > { %v11314_v15 = vld [vmem:[#allocation3 + $0x30] sm:$0xf]  ;;  %v2803_v56 = vpop.permute.xlu1 %2802  ;;  %4366 = vst.msk [vmem:[#allocation3 + $0x1c] sm:$0xf] %vm4169_vm12, %v4345_v45 }
 0x596   : > { %4117 = vst.msk [vmem:[#allocation3 + $0x30] sm:$0xf] %vm4112_vm4, %v10803_v39  ;;  %v5062_v39 = vpack.c.b16 %v5057_v32, %v5057_v32 }
 0x597   : > { %4174 = vst.msk [vmem:[#allocation3 + $0x30] sm:$0xf] %vm4169_vm12, %v4154_v54 }
 0x598   : > { %4231 = vst.msk [vmem:[#allocation3 + $0x30] sm:$0xf] %vm4226_vm0, %v11154_v55  ;;  %v5071_v17 = vsel %vm2554_vm13, %v5062_v39, 0 }
 0x599   : > { %2819 = vst.msk [vmem:[#allocation3 + $0x54] sm:$0xf] %vm13763_vm2, %v2803_v56  ;;  %4404 = vrot.lane.b32.xlu0 %v11145_v34, %s8838_s14  ;;  %5076 = vmatpush.bf16.msrb.mxu3 %v5071_v17  ;;  %vm13768_vm2 = vcmask 322816   ;;  %v8636_v56 = vld [vmem:[%s13519_s4 + $0x1f0] sm:$0xff] }
 0x59a   : > { %2875 = vst.msk [vmem:[#allocation3 + $0x54] sm:$0xf] %vm13764_vm11, %v2859_v14  ;;  %vm13769_vm6 = vmmov %vm13768_vm2  ;;  %vm13770_vm11 = vcmask 519616  }
 0x59b   : > { %4456 = vrot.lane.b32.xlu1 %v10815_v5, %s8839_s20  ;;  %2931 = vst.msk [vmem:[#allocation3 + $0x54] sm:$0xf] %vm13765_vm1, %v11169_v6  ;;  %v2913_v33 = vpop.permute.xlu0 %2912  ;;  %vm13772_vm1 = vmmov %vm13770_vm11 }
 0x59c   : > { %v11336_v59 = vpop.permute.xlu2 %4402 }
 0x59d   : > { %v2857_v55 = vpop.permute.xlu1 %2856  ;;  %5077 = vmatpush.bf16.msrb.mxu3 %v8649_v7 }
 0x59e   : > { %2874 = vst.msk [vmem:[#allocation3 + $0x48] sm:$0xf] %vm13766_vm8, %v2857_v55 }
 0x59f   : > { %2930 = vst.msk [vmem:[#allocation3 + $0x48] sm:$0xf] %vm13767_vm15, %v2913_v33  ;;  %vm4913_vm15 = vcmask 123968  }
 0x5a0   : > { %2986 = vst.msk [vmem:[#allocation3 + $0x48] sm:$0xf] %vm13768_vm2, %v11185_v57  ;;  %vm4929_vm2 = vcmask 189568  }
 0x5a1   : > { %4462 = vrot.lane.b32.xlu0 %v10794_v30, %s8839_s20  ;;  %5078 = vmatpush.bf16.msrb.mxu3 %v8648_v35 }
 0x5a3   : > { %4350 = vrot.lane.b32.xlu1 %v11079_v29, %s8834_s9  ;;  %v4270_v6 = vpop.permute.xlu0 %4269 }
 0x5a4   : > { %v4349_v22 = vpop.permute.xlu2 %4348 }
 0x5a5   : > { %v4213_v5 = vpop.permute.xlu1 %4212  ;;  %4368 = vst.msk [vmem:[#allocation3 + $0x34] sm:$0xf] %vm4169_vm12, %v4349_v22  ;;  %5079 = vmatpush.bf16.msrb.mxu3 %v8647_v16 }
 0x5a6   : > { %4232 = vst.msk [vmem:[#allocation3 + $0x3c] sm:$0xf] %vm4226_vm0, %v4213_v5 }
 0x5a7   : > { %4289 = vst.msk [vmem:[#allocation3 + $0x3c] sm:$0xf] %vm4283_vm7, %v4270_v6 }
 0x5a9   : > { %4408 = vrot.lane.b32.xlu0 %v11095_v13, %s8838_s14 }
 0x5ab   : > { %4460 = vrot.lane.b32.xlu1 %v10836_v40, %s8839_s20  ;;  %v3025_v29 = vpop.permute.xlu0 %3024  ;;  %v4379_v40 = vld [vmem:[#allocation2 + $0xd8] sm:$0xff] }
 0x5ac   : > { %v11357_v57 = vpop.permute.xlu2 %4406  ;;  %3042 = vst.msk [vmem:[#allocation3 + $0x48] sm:$0xf] %vm1646_vm9, %v3025_v29  ;;  %v4387_v13 = vpack.c.bf16 %v4379_v40, %v4379_v40 }
 0x5ad   : > { %v4268_v30 = vpop.permute.xlu1 %4267  ;;  %6027 = vst.msk [vmem:[#allocation2 + $0xd8] sm:$0xff] %vm4066_vm14, %v13597_v48 }
 0x5ae   : > { %4288 = vst.msk [vmem:[#allocation3 + $0x30] sm:$0xf] %vm4283_vm7, %v4268_v30  ;;  %v8623_v12 = vld [vmem:[#allocation3 + $0x38] sm:$0xf0]  ;;  %4410 = vrot.lane.b32.xlu2 %v4387_v13, %s8838_s14 }
 0x5b1   : > { %4466 = vrot.lane.b32.xlu0 %v4443_v31, %s8839_s20 }
 0x5b3   : > { %4354 = vrot.lane.b32.xlu1 %v4331_v25, %s8834_s9  ;;  %v3083_v2 = vpop.permute.xlu0 %3082 }
 0x5b4   : > { %v4353_v58 = vpop.permute.xlu2 %4352 }
 0x5b5   : > { %v2971_v49 = vpop.permute.xlu1 %2970  ;;  %v8172_v9 = vld [vmem:[#allocation3 + $0x30] sm:$0xf]  ;;  %4370 = vst.msk [vmem:[#allocation3 + $0x4c] sm:$0xf] %vm4169_vm12, %v4353_v58 }
 0x5b6   : > { %2987 = vst.msk [vmem:[#allocation3 + $0x54] sm:$0xf] %vm13769_vm6, %v2971_v49  ;;  %v8173_v3 = vor.u32 %v8623_v12, %v8172_v9  ;;  %vm4945_vm6 = vcmask 255168  }
 0x5b7   : > { %3043 = vst.msk [vmem:[#allocation3 + $0x54] sm:$0xf] %vm1646_vm9, %v11199_v19  ;;  %vm13771_vm9 = vcmask 585216  }
 0x5b8   : > { %4761 = vmatmul.bf16.gmra.mxu3 %v8173_v3  ;;  %3099 = vst.msk [vmem:[#allocation3 + $0x54] sm:$0xf] %vm1872_vm10, %v3083_v2  ;;  %vm13773_vm8 = vmmov %vm13771_vm9  ;;  %v4752_v3 = vpop.f32.mrf.mxu3 }
 0x5bb   : > { %4464 = vrot.lane.b32.xlu1 %v10851_v46, %s8839_s20  ;;  %v3193_v26 = vpop.permute.xlu0 %3192  ;;  %v8643_v46 = vld [vmem:[%s13519_s4 + $0x228] sm:$0xff] }
 0x5bc   : > { %4772 = vmatpush.bf16.msrb.mxu2 %v8643_v46 }
 0x5bd   : > { %v3081_v0 = vpop.permute.xlu1 %3080 }
 0x5be   : > { %3098 = vst.msk [vmem:[#allocation3 + $0x48] sm:$0xf] %vm1872_vm10, %v3081_v0 }
 0x5bf   : > { %3154 = vst.msk [vmem:[#allocation3 + $0x48] sm:$0xf] %vm13770_vm11, %v11219_v21  ;;  %v8646_v21 = vld [vmem:[%s13519_s4 + $0x240] sm:$0xff]  ;;  %vm4961_vm11 = vcmask 320768  }
 0x5c0   : > { %3210 = vst.msk [vmem:[#allocation3 + $0x48] sm:$0xf] %vm13771_vm9, %v3193_v26  ;;  %5080 = vmatpush.bf16.msrb.mxu3 %v8646_v21  ;;  %4773 = vmatpush.bf16.msrb.mxu2 %v8642_v18  ;;  %vm4977_vm9 = vcmask 386368  }
 0x5c3   : > { %v4160_v38 = vpop.permute.xlu0 %4159 }
 0x5c5   : > { %v3139_v19 = vpop.permute.xlu1 %3138 }
 0x5c6   : > { %3155 = vst.msk [vmem:[#allocation3 + $0x54] sm:$0xf] %vm13772_vm1, %v3139_v19  ;;  %vm4993_vm1 = vcmask 451968   ;;  %v11456_v19 = vpop.f32.mrf.mxu3 }
 0x5c7   : > { %v11385_v61 = vld [vmem:[#allocation3 + $0x48] sm:$0xf]  ;;  %3211 = vst.msk [vmem:[#allocation3 + $0x54] sm:$0xf] %vm13773_vm8, %v11232_v44  ;;  %vm5009_vm8 = vcmask 517568  }
 0x5c8   : > { %4119 = vst.msk [vmem:[#allocation3 + $0x48] sm:$0xf] %vm4112_vm4, %v11145_v34  ;;  %v8641_v34 = vld [vmem:[%s13519_s4 + $0x218] sm:$0xff] }
 0x5c9   : > { %4774 = vmatpush.bf16.msrb.mxu2 %v8641_v34  ;;  %v8760_v34 = vld [vmem:[%s13520_s5 + $0x4] ss:$0 sm:$0xff] }
 0x5cb   : > { %v4272_v44 = vpop.permute.xlu0 %4271 }
 0x5cd   : > { %v4158_v27 = vpop.permute.xlu1 %4157  ;;  %4775 = vmatpush.bf16.msrb.mxu2 %v8640_v10 }
 0x5ce   : > { %v11400_v60 = vld [vmem:[#allocation3 + $0x50] sm:$0xf0]  ;;  %4176 = vst.msk [vmem:[#allocation3 + $0x48] sm:$0xf] %vm4169_vm12, %v4158_v27 }
 0x5cf   : > { %4120 = vst.msk [vmem:[#allocation3 + $0x54] sm:$0xf] %vm4112_vm4, %v11212_v24 }
 0x5d0   : > { %4177 = vst.msk [vmem:[#allocation3 + $0x54] sm:$0xf] %vm4169_vm12, %v4160_v38 }
 0x5d1   : > { %4233 = vst.msk [vmem:[#allocation3 + $0x48] sm:$0xf] %vm4226_vm0, %v11240_v51  ;;  %4776 = vmatpush.bf16.msrb.mxu2 %v8639_v36  ;;  %v8638_v51 = vld [vmem:[%s13519_s4 + $0x200] sm:$0xff] }
 0x5d2   : > { %4290 = vst.msk [vmem:[#allocation3 + $0x48] sm:$0xf] %vm4283_vm7, %v4272_v44 }
 0x5d3   : > { %v4927_v24 = vpop.permute.xlu0 %4926 }
 0x5d5   : > { %v4217_v37 = vpop.permute.xlu1 %4216  ;;  %4777 = vmatpush.bf16.msrb.mxu2 %v8638_v51 }
 0x5d6   : > { %4234 = vst.msk [vmem:[#allocation3 + $0x54] sm:$0xf] %vm4226_vm0, %v4217_v37 }
 0x5d7   : > { %4291 = vst.msk [vmem:[#allocation3 + $0x54] sm:$0xf] %vm4283_vm7, %v11250_v50 }
 0x5d9   : > { %v8184_v41 = vld [vmem:[#allocation3 + $0x48] sm:$0xf]  ;;  %4778 = vmatpush.bf16.msrb.mxu2 %v8637_v52 }
 0x5db   : > { %v4975_v23 = vpop.permute.xlu0 %4974 }
 0x5dd   : > { %v4911_v4 = vpop.permute.xlu1 %4910  ;;  %4779 = vmatpush.bf16.msrb.mxu2 %v8636_v56 }
 0x5de   : > { %4914 = vst.msk [vmem:[#allocation3] sm:$0x3] %vm4913_vm15, %v4911_v4  ;;  %v8626_v54 = vld [vmem:[#allocation3 + $0x50] sm:$0xf0]  ;;  %vm5025_vm15 = vcmask 583168  }
 0x5df   : > { %4930 = vst.msk [vmem:[#allocation3] sm:$0x3] %vm4929_vm2, %v4927_v24  ;;  %v8185_v50 = vor.u32 %v8626_v54, %v8184_v41  ;;  %vm13774_vm2 = vcmask 588800  }
 0x5e0   : > { %4946 = vst.msk [vmem:[#allocation3] sm:$0x3] %vm4945_vm6, %v11264_v1  ;;  %vm13775_vm6 = vcmask 1042432  }
 0x5e1   : > { %4766 = vmatmul.bf16.gmra.mxu3 %v8185_v50 }
 0x5e3   : > { %v5023_v45 = vpop.permute.xlu0 %5022 }
 0x5e5   : > { %v4959_v14 = vpop.permute.xlu1 %4958 }
 0x5e6   : > { %4962 = vst.msk [vmem:[#allocation3] sm:$0x3] %vm4961_vm11, %v4959_v14  ;;  %vm13776_vm11 = vmmov %vm13775_vm6 }
 0x5e7   : > { %4978 = vst.msk [vmem:[#allocation3] sm:$0x3] %vm4977_vm9, %v4975_v23  ;;  %v11476_v23 = vld [vmem:[%s13520_s5 + $0x3] ss:$0 sm:$0xff]  ;;  %vm13777_vm9 = vmmov %vm13775_vm6 }
 0x5e8   : > { %4994 = vst.msk [vmem:[#allocation3] sm:$0x3] %vm4993_vm1, %v11278_v43  ;;  %vm13778_vm1 = vmmov %vm13775_vm6 }
 0x5eb   : > { %v4397_v1 = vpop.permute.xlu0 %4396 }
 0x5ec   : > { %4420 = vst.msk [vmem:[#allocation3 + $0x4] sm:$0xf] %vm4226_vm0, %v4397_v1  ;;  %v11458_v38 = vpop.f32.mrf.mxu3  ;;  %v4753_v1 = vadd.f32 %v11476_v23, %v4752_v3 }
 0x5ed   : > { %v5007_v11 = vpop.permute.xlu1 %5006 }
 0x5ee   : > { %5010 = vst.msk [vmem:[#allocation3] sm:$0x3] %vm5009_vm8, %v5007_v11  ;;  %vm13797_vm8 = vcmask 519616  }
 0x5ef   : > { %5026 = vst.msk [vmem:[#allocation3] sm:$0x3] %vm5025_vm15, %v5023_v45  ;;  %vm13798_vm15 = vmmov %vm13797_vm8 }
 0x5f3   : > { %v4455_v39 = vpop.permute.xlu0 %4454 }
 0x5f4   : > { %v11460_v46 = vpop.f32.mrf.mxu3 }
 0x5f5   : > { %v4343_v32 = vpop.permute.xlu1 %4342 }
 0x5f6   : > { %4365 = vst.msk [vmem:[#allocation3 + $0x10] sm:$0xf] %vm4169_vm12, %v4343_v32  ;;  %v5027_v53 = vld [vmem:[#allocation3] sm:$0x3] }
 0x5f7   : > { %4421 = vst.msk [vmem:[#allocation3 + $0x10] sm:$0xf] %vm4226_vm0, %v11301_v62  ;;  %8295 = vmatmul.msk.bf16.vlgmr.msrb.gmra.mxu3 %vm13774_vm2, %v5027_v53  ;;  %vm13800_vm2 = vcmask 585216  }
 0x5f8   : > { %4477 = vst.msk [vmem:[#allocation3 + $0x10] sm:$0xf] %vm4283_vm7, %v4455_v39 }
 0x5fb   : > { %v4401_v55 = vpop.permute.xlu0 %4400 }
 0x5fc   : > { %4422 = vst.msk [vmem:[#allocation3 + $0x1c] sm:$0xf] %vm4226_vm0, %v4401_v55 }
 0x5fd   : > { %v4453_v43 = vpop.permute.xlu1 %4452 }
 0x5fe   : > { %4476 = vst.msk [vmem:[#allocation3 + $0x4] sm:$0xf] %vm4283_vm7, %v4453_v43 }
 0x5ff   : > { %v8150_v5 = vld [vmem:[#allocation3 + $0xc] sm:$0xf0] }
 0x603   : > { %v4459_v6 = vpop.permute.xlu0 %4458 }
 0x605   : > { %v4347_v33 = vpop.permute.xlu1 %4346  ;;  %v8616_v17 = vld [vmem:[#allocation3 + $0x4] sm:$0xf] }
 0x606   : > { %4367 = vst.msk [vmem:[#allocation3 + $0x28] sm:$0xf] %vm4169_vm12, %v4347_v33  ;;  %v8153_v22 = vor.u32 %v8616_v17, %v8150_v5 }
 0x607   : > { %4423 = vst.msk [vmem:[#allocation3 + $0x28] sm:$0xf] %vm4226_vm0, %v11336_v59 }
 0x608   : > { %4479 = vst.msk [vmem:[#allocation3 + $0x28] sm:$0xf] %vm4283_vm7, %v4459_v6  ;;  %4780 = vmatmul.bf16.vlgmr.msrb.gmra.mxu2 %v8153_v22  ;;  %v4411_v13 = vpop.permute.xlu2 %4410 }
 0x60b   : > { %v4405_v7 = vpop.permute.xlu0 %4404 }
 0x60c   : > { %4424 = vst.msk [vmem:[#allocation3 + $0x34] sm:$0xf] %vm4226_vm0, %v4405_v7 }
 0x60d   : > { %v4457_v62 = vpop.permute.xlu1 %4456 }
 0x60e   : > { %4478 = vst.msk [vmem:[#allocation3 + $0x1c] sm:$0xf] %vm4283_vm7, %v4457_v62 }
 0x60f   : > { %v8162_v31 = vld [vmem:[#allocation3 + $0x24] sm:$0xf0] }
 0x613   : > { %v4463_v25 = vpop.permute.xlu0 %4462 }
 0x615   : > { %v4351_v30 = vpop.permute.xlu1 %4350  ;;  %v8619_v29 = vld [vmem:[#allocation3 + $0x1c] sm:$0xf] }
 0x616   : > { %4369 = vst.msk [vmem:[#allocation3 + $0x40] sm:$0xf] %vm4169_vm12, %v4351_v30  ;;  %v8165_v35 = vor.u32 %v8619_v29, %v8162_v31 }
 0x617   : > { %4425 = vst.msk [vmem:[#allocation3 + $0x40] sm:$0xf] %vm4226_vm0, %v11357_v57 }
 0x618   : > { %4481 = vst.msk [vmem:[#allocation3 + $0x40] sm:$0xf] %vm4283_vm7, %v4463_v25  ;;  %4785 = vmatmul.bf16.gmra.mxu2 %v8165_v35 }
 0x61b   : > { %v4409_v40 = vpop.permute.xlu0 %4408 }
 0x61c   : > { %4426 = vst.msk [vmem:[#allocation3 + $0x4c] sm:$0xf] %vm4226_vm0, %v4409_v40 }
 0x61d   : > { %v4461_v59 = vpop.permute.xlu1 %4460 }
 0x61e   : > { %4480 = vst.msk [vmem:[#allocation3 + $0x34] sm:$0xf] %vm4283_vm7, %v4461_v59 }
 0x61f   : > { %v8174_v9 = vld [vmem:[#allocation3 + $0x3c] sm:$0xf0] }
 0x623   : > { %v4467_v58 = vpop.permute.xlu0 %4466 }
 0x625   : > { %v4355_v49 = vpop.permute.xlu1 %4354  ;;  %v8622_v2 = vld [vmem:[#allocation3 + $0x34] sm:$0xf] }
 0x626   : > { %4371 = vst.msk [vmem:[#allocation3 + $0x58] sm:$0xf] %vm4169_vm12, %v4355_v49  ;;  %v8177_v12 = vor.u32 %v8622_v2, %v8174_v9 }
 0x627   : > { %4427 = vst.msk [vmem:[#allocation3 + $0x58] sm:$0xf] %vm4226_vm0, %v4411_v13 }
 0x628   : > { %4790 = vmatmul.bf16.gmra.mxu2 %v8177_v12  ;;  %4483 = vst.msk [vmem:[#allocation3 + $0x58] sm:$0xf] %vm4283_vm7, %v4467_v58 }
 0x62d   : > { %v4465_v57 = vpop.permute.xlu1 %4464 }
 0x62e   : > { %4482 = vst.msk [vmem:[#allocation3 + $0x4c] sm:$0xf] %vm4283_vm7, %v4465_v57 }
 0x62f   : > { %v8186_v0 = vld [vmem:[#allocation3 + $0x54] sm:$0xf0] }
 0x635   : > { %v8625_v26 = vld [vmem:[#allocation3 + $0x4c] sm:$0xf] }
 0x636   : > { %v8189_v16 = vor.u32 %v8625_v26, %v8186_v0 }
 0x638   : > { %4795 = vmatmul.bf16.gmra.mxu2 %v8189_v16 }
 0x63b   : > { %v11462_v21 = vpop.f32.mrf.mxu3 }
 0x643   : > { %v11464_v27 = vpop.f32.mrf.mxu3 }
 0x664   : > { %v11466_v18 = vpop.f32.mrf.mxu3 }
 0x66c   : > { %v11468_v44 = vpop.f32.mrf.mxu3 }
 0x67a   : > { %v5082_v37 = vpop.f32.mrf.mxu3 }
 0x67b   : > { %v5083_v10 = vadd.f32 %v8760_v34, %v5082_v37 }
 0x67d   : > { %v5086_v24 = vmax.f32 %v5083_v10, 0.0 }
 0x67f   : > { %v5088_v36 = vrot.slane %v5086_v24, 2  ;;  %v5090_v51 = vmul.f32 0.75, %v5086_v24  ;;  %v5092_v4 = vmul.f32 0.25, %v5086_v24 }
 0x681   : > { %v5091_v41 = vmul.f32 0.75, %v5088_v36  ;;  %v5093_v54 = vadd.f32 %v5092_v4, %v5090_v51  ;;  %v5095_v50 = vmul.f32 0.25, %v5088_v36 }
 0x682   : > { %v5084_v52 = vpop.f32.mrf.mxu3 }
 0x683   : > { %v5094_v56 = vadd.f32 %v5092_v4, %v5091_v41  ;;  %v5096_v14 = vadd.f32 %v5095_v50, %v5090_v51  ;;  %v5097_v45 = vadd.f32 %v5095_v50, %v5091_v41  ;;  %v5102_v11 = vperm.slane %v5093_v54, 0 }
 0x684   : > { %v5114_v32 = vperm.slane %v5093_v54, 1  ;;  %v5126_v39 = vmul.f32 0.75, %v5093_v54 }
 0x685   : > { %v5103_v53 = vperm.slane %v5096_v14, 0  ;;  %v5104_v43 = vperm.slane %v5094_v56, 0  ;;  %v5105_v55 = vperm.slane %v5097_v45, 0  ;;  %v5110_v33 = vsel %vm3785_vm5, %v5093_v54, %v5102_v11 }
 0x686   : > { %v5115_v17 = vperm.slane %v5096_v14, 1  ;;  %v5116_v5 = vperm.slane %v5094_v56, 1  ;;  %v5117_v6 = vperm.slane %v5097_v45, 1  ;;  %v5122_v22 = vsel %vm3785_vm5, %v5114_v32, %v5093_v54 }
 0x687   : > { %v5111_v62 = vsel %vm3785_vm5, %v5096_v14, %v5103_v53  ;;  %v5112_v7 = vsel %vm3785_vm5, %v5094_v56, %v5104_v43  ;;  %v5113_v30 = vsel %vm3785_vm5, %v5097_v45, %v5105_v55  ;;  %v5127_v29 = vmul.f32 0.75, %v5096_v14 }
 0x688   : > { %v5123_v31 = vsel %vm3785_vm5, %v5115_v17, %v5096_v14  ;;  %v5124_v25 = vsel %vm3785_vm5, %v5116_v5, %v5094_v56  ;;  %v5125_v35 = vsel %vm3785_vm5, %v5117_v6, %v5097_v45  ;;  %v5128_v59 = vmul.f32 0.75, %v5094_v56 }
 0x689   : > { %v5129_v40 = vmul.f32 0.75, %v5097_v45  ;;  %v5130_v13 = vmul.f32 0.25, %v5110_v33  ;;  %v5131_v49 = vmul.f32 0.25, %v5111_v62  ;;  %v5132_v2 = vmul.f32 0.25, %v5112_v7 }
 0x68a   : > { %v5133_v9 = vmul.f32 0.25, %v5113_v30  ;;  %v5138_v12 = vmul.f32 0.25, %v5122_v22  ;;  %v5139_v58 = vmul.f32 0.25, %v5123_v31  ;;  %v5140_v57 = vmul.f32 0.25, %v5124_v25 }
 0x68b   : > { %v5134_v3 = vadd.f32 %v5130_v13, %v5126_v39  ;;  %v5135_v0 = vadd.f32 %v5131_v49, %v5127_v29  ;;  %v5136_v26 = vadd.f32 %v5132_v2, %v5128_v59  ;;  %v5141_v16 = vmul.f32 0.25, %v5125_v35  ;;  %v4781_v34 = vpop.f32.mrf.mxu2 }
 0x68c   : > { %v5137_v37 = vadd.f32 %v5133_v9, %v5129_v40  ;;  %v5142_v10 = vadd.f32 %v5138_v12, %v5126_v39  ;;  %v5143_v24 = vadd.f32 %v5139_v58, %v5127_v29  ;;  %v5144_v36 = vadd.f32 %v5140_v57, %v5128_v59 }
 0x68d   : > { %v5145_v51 = vadd.f32 %v5141_v16, %v5129_v40  ;;  %v5162_v4 = vperm.slane %v5134_v3, 1  ;;  %v5163_v41 = vperm.slane %v5135_v0, 1  ;;  %v5164_v54 = vperm.slane %v5136_v26, 1 }
 0x68e   : > { %v5150_v50 = vperm.slane %v5142_v10, 0  ;;  %v5151_v52 = vperm.slane %v5143_v24, 0  ;;  %v5152_v56 = vperm.slane %v5144_v36, 0  ;;  %v5165_v14 = vperm.slane %v5137_v37, 1 }
 0x68f   : > { %v5153_v45 = vperm.slane %v5145_v51, 0  ;;  %v5170_v11 = vperm.slane %v5142_v10, 1  ;;  %v5171_v32 = vperm.slane %v5143_v24, 1  ;;  %v5172_v53 = vperm.slane %v5144_v36, 1 }
 0x690   : > { %v5173_v43 = vperm.slane %v5145_v51, 1  ;;  %v5178_v55 = vsel %vm3785_vm5, %v5134_v3, %v5150_v50  ;;  %v5179_v33 = vsel %vm3785_vm5, %v5135_v0, %v5151_v52  ;;  %v5180_v39 = vsel %vm3785_vm5, %v5136_v26, %v5152_v56 }
 0x691   : > { %v5181_v17 = vsel %vm3785_vm5, %v5137_v37, %v5153_v45  ;;  %v5182_v5 = vsel %vm4014_vm3, %v5178_v55, %v5162_v4  ;;  %v5183_v6 = vsel %vm4014_vm3, %v5179_v33, %v5163_v41  ;;  %v5184_v22 = vsel %vm4014_vm3, %v5180_v39, %v5164_v54 }
 0x692   : > { %v5185_v62 = vsel %vm4014_vm3, %v5181_v17, %v5165_v14  ;;  %v5186_v7 = vsel %vm13775_vm6, %v5182_v5, %v5170_v11  ;;  %v5187_v30 = vsel %vm13776_vm11, %v5183_v6, %v5171_v32  ;;  %v5188_v29 = vsel %vm13777_vm9, %v5184_v22, %v5172_v53  ;;  %v13779_v17 = vld [vmem:[#allocation74_spill] sm:$0xff]  ;;  %vm13801_vm6 = vmmov %vm13800_vm2 }
 0x693   : > { %v5189_v31 = vsel %vm13778_vm1, %v5185_v62, %v5173_v43  ;;  %5197 = vst.msk [vmem:[#allocation2 + $0x19] sm:$0xf] %vm4112_vm4, %v5186_v7  ;;  %v11500_v25 = vadd.f32 %v4781_v34, %v4753_v1  ;;  %v11502_v35 = vpop.f32.mrf.mxu2  ;;  %v4758_v59 = vadd.f32 %v11476_v23, %v11458_v38  ;;  %v4763_v39 = vadd.f32 %v11476_v23, %v11462_v21  ;;  %vm13802_vm11 = vmmov %vm13797_vm8 }
 0x694   : > { %5198 = vst.msk [vmem:[#allocation2 + $0x31] sm:$0xf] %vm4112_vm4, %v5187_v30  ;;  %vm13803_vm9 = vmmov %vm13797_vm8  ;;  %vm13804_vm1 = vcmask 588800  }
 0x695   : > { %5199 = vst.msk [vmem:[#allocation2 + $0x49] sm:$0xf] %vm4112_vm4, %v5188_v29  ;;  %v13780_v29 = vld [vmem:[#allocation49_spill] sm:$0xff] }
 0x696   : > { %5200 = vst.msk [vmem:[#allocation2 + $0x61] sm:$0xf] %vm4112_vm4, %v5189_v31 }
 0x69a   : > { %v5202_v49 = vld [vmem:[#allocation2 + $0x18] sm:$0xf] }
 0x69b   : > { %v4786_v40 = vpop.f32.mrf.mxu2  ;;  %v5203_v2 = vld [vmem:[#allocation2 + $0x30] sm:$0xf]  ;;  %v5225_v12 = vld [vmem:[#allocation2 + $0x19] sm:$0xf]  ;;  %5211 = vst [vmem:[#allocation1 + $0x1] ss:$2 sm:$0xff] %v5202_v49 }
 0x69c   : > { %v11509_v13 = vadd.f32 %v4786_v40, %v4758_v59  ;;  %v5204_v9 = vld [vmem:[#allocation2 + $0x48] sm:$0xf]  ;;  %v5256_v1 = vld [vmem:[#allocation2 + $0x1a] sm:$0xf]  ;;  %5213 = vst [vmem:[#allocation1 + $0x10] ss:$2 sm:$0xff] %v5203_v2  ;;  %v4768_v2 = vadd.f32 %v11476_v23, %v11466_v18 }
 0x69d   : > { %v11511_v58 = vld [vmem:[#allocation2 + $0x18] sm:$0xf]  ;;  %v11517_v0 = vld [vmem:[#allocation2 + $0x60] sm:$0xf]  ;;  %v5287_v10 = vld [vmem:[#allocation2 + $0x30] sm:$0xf] }
 0x69e   : > { %v11513_v57 = vld [vmem:[#allocation2 + $0x19] sm:$0xf]  ;;  %v11519_v26 = vld [vmem:[#allocation2 + $0x61] sm:$0xf]  ;;  %v5318_v24 = vld [vmem:[#allocation2 + $0x31] sm:$0xf] }
 0x69f   : > { %v11515_v3 = vld [vmem:[#allocation2 + $0x1a] sm:$0xf]  ;;  %v11521_v38 = vld [vmem:[#allocation2 + $0x62] sm:$0xf]  ;;  %v11529_v36 = vld [vmem:[#allocation2 + $0x32] sm:$0xf] }
 0x6a0   : > { %v11523_v16 = vld [vmem:[#allocation2 + $0x60] sm:$0xf]  ;;  %v11531_v51 = vld [vmem:[#allocation2 + $0x30] sm:$0xf]  ;;  %5215 = vst [vmem:[#allocation1 + $0x11] ss:$2 sm:$0xff] %v5204_v9 }
 0x6a1   : > { %v11525_v34 = vld [vmem:[#allocation2 + $0x61] sm:$0xf]  ;;  %v11533_v4 = vld [vmem:[#allocation2 + $0x31] sm:$0xf]  ;;  %v5319_v50 = vld [vmem:[#allocation2 + $0x49] sm:$0xf] }
 0x6a2   : > { %v11535_v41 = vld [vmem:[#allocation2 + $0x32] sm:$0xf]  ;;  %v11537_v54 = vld [vmem:[#allocation2 + $0x62] sm:$0xf]  ;;  %v11539_v52 = vld [vmem:[#allocation2 + $0x48] sm:$0xf] }
 0x6a3   : > { %v11527_v37 = vpop.f32.mrf.mxu2  ;;  %v11541_v56 = vld [vmem:[#allocation2 + $0x49] sm:$0xf]  ;;  %6011 = vst.msk [vmem:[#allocation2 + $0x18] sm:$0xff] %vm4066_vm14, %v13597_v48  ;;  %v5226_v45 = vld [vmem:[#allocation2 + $0x31] sm:$0xf] }
 0x6a4   : > { %v11543_v14 = vld [vmem:[#allocation2 + $0x4a] sm:$0xf]  ;;  %6017 = vst.msk [vmem:[#allocation2 + $0x60] sm:$0xff] %vm4066_vm14, %v13597_v48  ;;  %v5257_v32 = vld [vmem:[#allocation2 + $0x32] sm:$0xf] }
 0x6a5   : > { %v5227_v11 = vld [vmem:[#allocation2 + $0x49] sm:$0xf]  ;;  %6013 = vst.msk [vmem:[#allocation2 + $0x30] sm:$0xff] %vm4066_vm14, %v13597_v48  ;;  %v5216_v33 = vld.sshfl [vmem:[#allocation1] sm:$0xff pattern:$0x75316420] }
 0x6a6   : > { %v5258_v53 = vld [vmem:[#allocation2 + $0x4a] sm:$0xf]  ;;  %5232 = vst [vmem:[#allocation1] ss:$2 sm:$0xff] %v13779_v17  ;;  %v5220_v5 = vpack.c.bf16 %v5216_v33, %v5216_v33  ;;  %v13783_v33 = vld [vmem:[#allocation45_spill] sm:$0xff]  ;;  %v1697_v17 = vld [vmem:[#allocation2 + $0xf8] sm:$0xff] }
 0x6a7   : > { %v5288_v43 = vld [vmem:[#allocation2 + $0x48] sm:$0xf]  ;;  %5234 = vst [vmem:[#allocation1 + $0x1] ss:$2 sm:$0xff] %v5225_v12 }
 0x6a8   : > { %v5342_v55 = vld [vmem:[#allocation2 + $0x4a] sm:$0xf]  ;;  %5222 = vst.msk [vmem:[#allocation3] sm:$0xf] %vm4112_vm4, %v5220_v5  ;;  %v1696_v5 = vld [vmem:[#allocation2 + $0xf0] sm:$0xff] }
 0x6a9   : > { %6015 = vst.msk [vmem:[#allocation2 + $0x48] sm:$0xff] %vm4066_vm14, %v13597_v48  ;;  %v5217_v6 = vld.sshfl [vmem:[#allocation1 + $0x10] sm:$0xff pattern:$0x75316420]  ;;  %v4765_v48 = vadd.f32 %v11476_v23, %v11464_v27 }
 0x6aa   : > { %5236 = vst [vmem:[#allocation1 + $0x10] ss:$2 sm:$0xff] %v5226_v45  ;;  %v5221_v7 = vpack.c.bf16 %v5217_v6, %v5217_v6  ;;  %v1729_v6 = vpack.c.bf16 %v1697_v17, %v1697_v17  ;;  %v8668_v17 = vld [vmem:[%s13519_s4 + $0x348] sm:$0xff] }
 0x6ab   : > { %v4791_v22 = vpop.f32.mrf.mxu2  ;;  %5238 = vst [vmem:[#allocation1 + $0x11] ss:$2 sm:$0xff] %v5227_v11  ;;  %5639 = vmatpush.bf16.msra.mxu3 %v8668_v17  ;;  %v1923_v17 = vld [vmem:[#allocation2 + $0x109] sm:$0xff] }
 0x6ac   : > { %v11556_v62 = vadd.f32 %v4791_v22, %v4763_v39  ;;  %5223 = vst.msk [vmem:[#allocation3 + $0xc] sm:$0xf] %vm4112_vm4, %v5221_v7  ;;  %v13785_v22 = vld [vmem:[#allocation51_spill] sm:$0xff]  ;;  %v1728_v7 = vpack.c.bf16 %v1696_v5, %v1696_v5  ;;  %v1702_v5 = vld [vmem:[#allocation2 + $0x138] sm:$0xff] }
 0x6ae   : > { %v5239_v30 = vld.sshfl [vmem:[#allocation1] sm:$0xff pattern:$0x75316420] }
 0x6af   : > { %v5243_v21 = vpack.c.bf16 %v5239_v30, %v5239_v30  ;;  %5263 = vst [vmem:[#allocation1] ss:$2 sm:$0xff] %v13780_v29  ;;  %v1698_v30 = vld [vmem:[#allocation2 + $0x108] sm:$0xff]  ;;  %v1699_v29 = vld [vmem:[#allocation2 + $0x110] sm:$0xff] }
 0x6b0   : > { %5265 = vst [vmem:[#allocation1 + $0x1] ss:$2 sm:$0xff] %v5256_v1 }
 0x6b1   : > { %5247 = vrot.lane.b32.xlu2 %v5243_v21, %s8834_s9  ;;  %v1708_v21 = vld [vmem:[#allocation2 + $0x180] sm:$0xff] }
 0x6b2   : > { %v5240_v59 = vld.sshfl [vmem:[#allocation1 + $0x10] sm:$0xff pattern:$0x75316420] }
 0x6b3   : > { %v4793_v31 = vpop.f32.mrf.mxu2  ;;  %v5244_v49 = vpack.c.bf16 %v5240_v59, %v5240_v59  ;;  %5267 = vst [vmem:[#allocation1 + $0x10] ss:$2 sm:$0xff] %v5257_v32  ;;  %v1740_v59 = vpack.c.bf16 %v1708_v21, %v1708_v21  ;;  %v8667_v21 = vld [vmem:[%s13519_s4 + $0x340] sm:$0xff] }
 0x6b4   : > { %v11563_v40 = vadd.f32 %v4793_v31, %v4765_v48  ;;  %5269 = vst [vmem:[#allocation1 + $0x11] ss:$2 sm:$0xff] %v5258_v53  ;;  %v8660_v48 = vld [vmem:[%s13519_s4 + $0x308] sm:$0xff]  ;;  %v1730_v31 = vpack.c.bf16 %v1698_v30, %v1698_v30  ;;  %v1734_v30 = vpack.c.bf16 %v1702_v5, %v1702_v5  ;;  %5640 = vmatpush.bf16.msra.mxu3 %v8667_v21 }
 0x6b5   : > { %5249 = vrot.lane.b32.xlu1 %v5244_v49, %s8834_s9  ;;  %5625 = vmatpush.bf16.msra.mxu2 %v8660_v48  ;;  %v1731_v49 = vpack.c.bf16 %v1699_v29, %v1699_v29  ;;  %v1704_v29 = vld [vmem:[#allocation2 + $0x150] sm:$0xff]  ;;  %v1922_v5 = vld [vmem:[#allocation2 + $0xf9] sm:$0xff] }
 0x6b7   : > { %v5270_v27 = vld.sshfl [vmem:[#allocation1] sm:$0xff pattern:$0x75316420] }
 0x6b8   : > { %v5274_v12 = vpack.c.bf16 %v5270_v27, %v5270_v27  ;;  %5294 = vst [vmem:[#allocation1] ss:$2 sm:$0xff] %v11511_v58  ;;  %v1709_v27 = vld [vmem:[#allocation2 + $0x188] sm:$0xff] }
 0x6b9   : > { %5296 = vst [vmem:[#allocation1 + $0x1] ss:$2 sm:$0xff] %v5287_v10 }
 0x6ba   : > { %5278 = vrot.lane.b32.xlu0 %v5274_v12, %s8838_s14  ;;  %v1933_v12 = vld [vmem:[#allocation2 + $0x181] sm:$0xff] }
 0x6bb   : > { %v4796_v9 = vpop.f32.mrf.mxu2  ;;  %v5271_v1 = vld.sshfl [vmem:[#allocation1 + $0x10] sm:$0xff pattern:$0x75316420] }
 0x6bc   : > { %v11570_v45 = vadd.f32 %v4796_v9, %v4768_v2  ;;  %v5275_v11 = vpack.c.bf16 %v5271_v1, %v5271_v1  ;;  %5300 = vst [vmem:[#allocation1 + $0x11] ss:$2 sm:$0xff] %v11517_v0  ;;  %v8659_v2 = vld [vmem:[%s13519_s4 + $0x300] sm:$0xff]  ;;  %v1934_v9 = vld [vmem:[#allocation2 + $0x189] sm:$0xff]  ;;  %v1741_v1 = vpack.c.bf16 %v1709_v27, %v1709_v27  ;;  %v1736_v27 = vpack.c.bf16 %v1704_v29, %v1704_v29 }
 0x6bd   : > { %5298 = vst [vmem:[#allocation1 + $0x10] ss:$2 sm:$0xff] %v5288_v43  ;;  %5626 = vmatpush.bf16.msra.mxu2 %v8659_v2  ;;  %v8666_v2 = vld [vmem:[%s13519_s4 + $0x338] sm:$0xff] }
 0x6be   : > { %5280 = vrot.lane.b32.xlu2 %v5275_v11, %s8838_s14  ;;  %v1966_v11 = vpack.c.bf16 %v1934_v9, %v1934_v9  ;;  %5641 = vmatpush.bf16.msra.mxu3 %v8666_v2  ;;  %v1925_v2 = vld [vmem:[#allocation2 + $0x121] sm:$0xff] }
 0x6c0   : > { %v5301_v32 = vld.sshfl [vmem:[#allocation1] sm:$0xff pattern:$0x75316420] }
 0x6c1   : > { %v5305_v53 = vpack.c.bf16 %v5301_v32, %v5301_v32  ;;  %5325 = vst [vmem:[#allocation1] ss:$2 sm:$0xff] %v11513_v57  ;;  %v1965_v32 = vpack.c.bf16 %v1933_v12, %v1933_v12 }
 0x6c2   : > { %5327 = vst [vmem:[#allocation1 + $0x1] ss:$2 sm:$0xff] %v5318_v24 }
 0x6c3   : > { %5309 = vrot.lane.b32.xlu1 %v5305_v53, %s8839_s20  ;;  %v8658_v53 = vld [vmem:[%s13519_s4 + $0x2f8] sm:$0xff] }
 0x6c4   : > { %v5302_v18 = vld.sshfl [vmem:[#allocation1 + $0x10] sm:$0xff pattern:$0x75316420]  ;;  %5627 = vmatpush.bf16.msra.mxu2 %v8658_v53  ;;  %v1707_v53 = vld [vmem:[#allocation2 + $0x170] sm:$0xff] }
 0x6c5   : > { %v5306_v23 = vpack.c.bf16 %v5302_v18, %v5302_v18  ;;  %5329 = vst [vmem:[#allocation1 + $0x10] ss:$2 sm:$0xff] %v5319_v50  ;;  %v1710_v18 = vld [vmem:[#allocation2 + $0x198] sm:$0xff] }
 0x6c6   : > { %5331 = vst [vmem:[#allocation1 + $0x11] ss:$2 sm:$0xff] %v11519_v26 }
 0x6c7   : > { %5311 = vrot.lane.b32.xlu0 %v5306_v23, %s8839_s20  ;;  %v2158_v23 = vld [vmem:[#allocation2 + $0x182] sm:$0xff] }
 0x6c9   : > { %v5332_v58 = vld.sshfl [vmem:[#allocation1] sm:$0xff pattern:$0x75316420] }
 0x6ca   : > { %5348 = vst [vmem:[#allocation1] ss:$2 sm:$0xff] %v11515_v3  ;;  %v5336_v0 = vpack.c.bf16 %v5332_v58, %v5332_v58 }
 0x6cb   : > { %5350 = vst [vmem:[#allocation1 + $0x1] ss:$2 sm:$0xff] %v11529_v36 }
 0x6cc   : > { %5338 = vst.msk [vmem:[#allocation3 + $0x4] sm:$0xf] %vm4112_vm4, %v5336_v0  ;;  %v2159_v0 = vld [vmem:[#allocation2 + $0x18a] sm:$0xff] }
 0x6cd   : > { %v5333_v10 = vld.sshfl [vmem:[#allocation1 + $0x10] sm:$0xff pattern:$0x75316420] }
 0x6ce   : > { %5352 = vst [vmem:[#allocation1 + $0x10] ss:$2 sm:$0xff] %v5342_v55  ;;  %v5337_v43 = vpack.c.bf16 %v5333_v10, %v5333_v10  ;;  %v13782_v55 = vld [vmem:[#allocation34_spill] sm:$0xff]  ;;  %v1742_v10 = vpack.c.bf16 %v1710_v18, %v1710_v18 }
 0x6cf   : > { %5354 = vst [vmem:[#allocation1 + $0x11] ss:$2 sm:$0xff] %v11521_v38  ;;  %v8669_v18 = vld [vmem:[%s13519_s4 + $0x350] sm:$0xff] }
 0x6d0   : > { %5339 = vst.msk [vmem:[#allocation3 + $0x10] sm:$0xf] %vm4112_vm4, %v5337_v43  ;;  %v2190_v43 = vpack.c.bf16 %v2158_v23, %v2158_v23  ;;  %v8664_v23 = vld [vmem:[%s13519_s4 + $0x328] sm:$0xff] }
 0x6d2   : > { %v5355_v57 = vld.sshfl [vmem:[#allocation1] sm:$0xff pattern:$0x75316420] }
 0x6d3   : > { %v5359_v24 = vpack.c.bf16 %v5355_v57, %v5355_v57  ;;  %5379 = vst [vmem:[#allocation1] ss:$2 sm:$0xff] %v11531_v51  ;;  %v2191_v57 = vpack.c.bf16 %v2159_v0, %v2159_v0 }
 0x6d4   : > { %5381 = vst [vmem:[#allocation1 + $0x1] ss:$2 sm:$0xff] %v11539_v52 }
 0x6d5   : > { %5363 = vrot.lane.b32.xlu2 %v5359_v24, %s8834_s9  ;;  %v8657_v24 = vld [vmem:[%s13519_s4 + $0x2f0] sm:$0xff] }
 0x6d6   : > { %v5356_v26 = vld.sshfl [vmem:[#allocation1 + $0x10] sm:$0xff pattern:$0x75316420]  ;;  %5628 = vmatpush.bf16.msra.mxu2 %v8657_v24  ;;  %v13787_v24 = vld [vmem:[#allocation19_spill] sm:$0xff] }
 0x6d7   : > { %v5360_v3 = vpack.c.bf16 %v5356_v26, %v5356_v26  ;;  %5383 = vst [vmem:[#allocation1 + $0x10] ss:$2 sm:$0xff] %v11523_v16  ;;  %v1711_v26 = vld [vmem:[#allocation2 + $0x1a0] sm:$0xff] }
 0x6d8   : > { %5385 = vst [vmem:[#allocation1 + $0x11] ss:$2 sm:$0xff] %v11125_v28 }
 0x6d9   : > { %5365 = vrot.lane.b32.xlu1 %v5360_v3, %s8834_s9  ;;  %v1936_v3 = vld [vmem:[#allocation2 + $0x1a1] sm:$0xff] }
 0x6db   : > { %v5386_v38 = vld.sshfl [vmem:[#allocation1] sm:$0xff pattern:$0x75316420] }
 0x6dc   : > { %v5390_v36 = vpack.c.bf16 %v5386_v38, %v5386_v38  ;;  %5410 = vst [vmem:[#allocation1] ss:$2 sm:$0xff] %v11533_v4  ;;  %v8656_v38 = vld [vmem:[%s13519_s4 + $0x2e8] sm:$0xff] }
 0x6dd   : > { %5412 = vst [vmem:[#allocation1 + $0x1] ss:$2 sm:$0xff] %v11541_v56  ;;  %5629 = vmatpush.bf16.msra.mxu2 %v8656_v38  ;;  %v8663_v38 = vld [vmem:[%s13519_s4 + $0x320] sm:$0xff] }
 0x6de   : > { %5394 = vrot.lane.b32.xlu0 %v5390_v36, %s8838_s14  ;;  %v1935_v36 = vld [vmem:[#allocation2 + $0x199] sm:$0xff] }
 0x6df   : > { %v5387_v50 = vld.sshfl [vmem:[#allocation1 + $0x10] sm:$0xff pattern:$0x75316420] }
 0x6e0   : > { %v5391_v51 = vpack.c.bf16 %v5387_v50, %v5387_v50  ;;  %5414 = vst [vmem:[#allocation1 + $0x10] ss:$2 sm:$0xff] %v11525_v34  ;;  %v13781_v34 = vld [vmem:[#allocation29_spill] sm:$0xff]  ;;  %v1743_v50 = vpack.c.bf16 %v1711_v26, %v1711_v26 }
 0x6e1   : > { %5416 = vst [vmem:[#allocation1 + $0x11] ss:$2 sm:$0xff] %v11128_v63 }
 0x6e2   : > { %5396 = vrot.lane.b32.xlu2 %v5391_v51, %s8838_s14  ;;  %v1968_v51 = vpack.c.bf16 %v1936_v3, %v1936_v3 }
 0x6e4   : > { %v5417_v16 = vld.sshfl [vmem:[#allocation1] sm:$0xff pattern:$0x75316420] }
 0x6e5   : > { %v5421_v28 = vpack.c.bf16 %v5417_v16, %v5417_v16  ;;  %5441 = vst [vmem:[#allocation1] ss:$2 sm:$0xff] %v11535_v41  ;;  %v11606_v41 = vld [vmem:[#allocation3 + $0x8] sm:$0xf]  ;;  %v1967_v16 = vpack.c.bf16 %v1935_v36, %v1935_v36  ;;  %v8662_v36 = vld [vmem:[%s13519_s4 + $0x318] sm:$0xff] }
 0x6e6   : > { %5443 = vst [vmem:[#allocation1 + $0x1] ss:$2 sm:$0xff] %v11543_v14 }
 0x6e7   : > { %5425 = vrot.lane.b32.xlu1 %v5421_v28, %s8839_s20  ;;  %v2160_v28 = vld [vmem:[#allocation2 + $0x19a] sm:$0xff] }
 0x6e8   : > { %v5418_v52 = vld.sshfl [vmem:[#allocation1 + $0x10] sm:$0xff pattern:$0x75316420] }
 0x6e9   : > { %v5422_v4 = vpack.c.bf16 %v5418_v52, %v5418_v52  ;;  %5445 = vst [vmem:[#allocation1 + $0x10] ss:$2 sm:$0xff] %v11537_v54  ;;  %v11613_v54 = vld [vmem:[#allocation3 + $0x10] sm:$0xf0]  ;;  %v8655_v52 = vld [vmem:[%s13519_s4 + $0x2e0] sm:$0xff] }
 0x6ea   : > { %5447 = vst [vmem:[#allocation1 + $0x11] ss:$2 sm:$0xff] %v11130_v8  ;;  %1798 = vrot.lane.b32.xlu2 %v13781_v34, %s8836_s12  ;;  %v13784_v8 = vld [vmem:[#allocation39_spill] sm:$0xff]  ;;  %v2192_v34 = vpack.c.bf16 %v2160_v28, %v2160_v28  ;;  %5630 = vmatpush.bf16.msra.mxu2 %v8655_v52  ;;  %v13789_v28 = vld [vmem:[#allocation33_spill] sm:$0xff] }
 0x6eb   : > { %5427 = vrot.lane.b32.xlu0 %v5422_v4, %s8839_s20  ;;  %v2161_v4 = vld [vmem:[#allocation2 + $0x1a2] sm:$0xff] }
 0x6ed   : > { %v5448_v63 = vld.sshfl [vmem:[#allocation1] sm:$0xff pattern:$0x75316420] }
 0x6ee   : > { %v5452_v56 = vpack.c.bf16 %v5448_v63, %v5448_v63  ;;  %v1700_v63 = vld [vmem:[#allocation2 + $0x120] sm:$0xff] }
 0x6ef   : > { %1800 = vrot.lane.b32.xlu1 %v13782_v55, %s8836_s12  ;;  %v2193_v55 = vpack.c.bf16 %v2161_v4, %v2161_v4  ;;  %v13790_v4 = vld [vmem:[#allocation28_spill] sm:$0xff] }
 0x6f0   : > { %5454 = vst.msk [vmem:[#allocation3 + $0x8] sm:$0xf] %vm4112_vm4, %v5452_v56  ;;  %v8654_v56 = vld [vmem:[%s13519_s4 + $0x2d8] sm:$0xff] }
 0x6f1   : > { %v5449_v14 = vld.sshfl [vmem:[#allocation1 + $0x10] sm:$0xff pattern:$0x75316420]  ;;  %5631 = vmatpush.bf16.msra.mxu2 %v8654_v56 }
 0x6f2   : > { %1804 = vrot.lane.b32.xlu2 %v13783_v33, %s8836_s12  ;;  %v5453_v39 = vpack.c.bf16 %v5449_v14, %v5449_v14  ;;  %v1732_v14 = vpack.c.bf16 %v1700_v63, %v1700_v63  ;;  %v8653_v33 = vld [vmem:[%s13519_s4 + $0x2d0] sm:$0xff] }
 0x6f3   : > { %1802 = vrot.lane.b32.xlu0 %v13784_v8, %s8836_s12  ;;  %v1703_v8 = vld [vmem:[#allocation2 + $0x140] sm:$0xff]  ;;  %v8661_v63 = vld [vmem:[%s13519_s4 + $0x310] sm:$0xff] }
 0x6f4   : > { %5455 = vst.msk [vmem:[#allocation3 + $0x14] sm:$0xf] %vm4112_vm4, %v5453_v39  ;;  %v1701_v39 = vld [vmem:[#allocation2 + $0x128] sm:$0xff]  ;;  %v1735_v48 = vpack.c.bf16 %v1703_v8, %v1703_v8  ;;  %v1921_v8 = vld [vmem:[#allocation2 + $0xf1] sm:$0xff] }
 0x6f5   : > { %5632 = vmatpush.bf16.msra.mxu2 %v8653_v33  ;;  %v13791_v56 = vld [vmem:[#allocation38_spill] sm:$0xff] }
 0x6f7   : > { %1806 = vrot.lane.b32.xlu1 %v13785_v22, %s8836_s12 }
 0x6fa   : > { %1810 = vrot.lane.b32.xlu2 %v1729_v6, %s8836_s12  ;;  %v1733_v6 = vpack.c.bf16 %v1701_v39, %v1701_v39 }
 0x6fb   : > { %1808 = vrot.lane.b32.xlu0 %v1728_v7, %s8836_s12 }
 0x6ff   : > { %1812 = vrot.lane.b32.xlu1 %v1730_v31, %s8836_s12  ;;  %v1706_v31 = vld [vmem:[#allocation2 + $0x168] sm:$0xff] }
 0x700   : > { %v1738_v9 = vpack.c.bf16 %v1706_v31, %v1706_v31 }
 0x702   : > { %1832 = vrot.lane.b32.xlu2 %v1740_v59, %s8836_s12  ;;  %v1705_v59 = vld [vmem:[#allocation2 + $0x158] sm:$0xff] }
 0x703   : > { %1814 = vrot.lane.b32.xlu0 %v1731_v49, %s8836_s12  ;;  %v1737_v12 = vpack.c.bf16 %v1705_v59, %v1705_v59  ;;  %v1924_v59 = vld [vmem:[#allocation2 + $0x111] sm:$0xff] }
 0x707   : > { %1834 = vrot.lane.b32.xlu1 %v1741_v1, %s8836_s12 }
 0x70a   : > { %2059 = vrot.lane.b32.xlu2 %v1966_v11, %s8837_s13  ;;  %v8670_v11 = vld [vmem:[%s13519_s4 + $0x358] sm:$0xff] }
 0x70b   : > { %2057 = vrot.lane.b32.xlu0 %v1965_v32, %s8837_s13  ;;  %v5248_v58 = vpop.permute.xlu2 %5247  ;;  %5659 = vmatpush.bf16.msrb.mxu2 %v8670_v11  ;;  %v8665_v32 = vld [vmem:[%s13519_s4 + $0x330] sm:$0xff] }
 0x70c   : > { %5253 = vst.msk [vmem:[#allocation3] sm:$0xf] %vm4169_vm12, %v5248_v58  ;;  %5642 = vmatpush.bf16.msra.mxu3 %v8665_v32  ;;  %v1739_v58 = vpack.c.bf16 %v1707_v53, %v1707_v53  ;;  %v1927_v53 = vld [vmem:[#allocation2 + $0x139] sm:$0xff] }
 0x70f   : > { %2282 = vrot.lane.b32.xlu1 %v2190_v43, %s8838_s14  ;;  %5660 = vmatpush.bf16.msrb.mxu2 %v8669_v18  ;;  %v6037_v43 = vld [vmem:[#allocation2] sm:$0xff] }
 0x710   : > { %5643 = vmatpush.bf16.msra.mxu3 %v8664_v23  ;;  %v6045_v3 = vpack.c.bf16 %v6037_v43, %v6037_v43  ;;  %v2139_v18 = vld [vmem:[#allocation2 + $0x9a] sm:$0xff]  ;;  %v1959_v23 = vpack.c.bf16 %v1927_v53, %v1927_v53 }
 0x712   : > { %1836 = vrot.lane.b32.xlu2 %v1742_v10, %s8836_s12 }
 0x713   : > { %2284 = vrot.lane.b32.xlu0 %v2191_v57, %s8838_s14  ;;  %v13786_v57 = vld [vmem:[#allocation20_spill] sm:$0xff] }
 0x714   : > { %5644 = vmatpush.bf16.msra.mxu3 %v8663_v38 }
 0x717   : > { %1838 = vrot.lane.b32.xlu1 %v1743_v50, %s8836_s12 }
 0x718   : > { %v5281_v7 = vpop.permute.xlu2 %5280  ;;  %5645 = vmatpush.bf16.msra.mxu3 %v8662_v36  ;;  %v1929_v36 = vld [vmem:[#allocation2 + $0x151] sm:$0xff] }
 0x71a   : > { %2063 = vrot.lane.b32.xlu2 %v1968_v51, %s8837_s13  ;;  %v13788_v51 = vld [vmem:[#allocation26_spill] sm:$0xff] }
 0x71b   : > { %2061 = vrot.lane.b32.xlu0 %v1967_v16, %s8837_s13 }
 0x71c   : > { %5646 = vmatpush.bf16.msra.mxu3 %v8661_v63  ;;  %v1931_v63 = vld [vmem:[#allocation2 + $0x169] sm:$0xff] }
 0x71f   : > { %2286 = vrot.lane.b32.xlu1 %v2192_v34, %s8838_s14 }
 0x722   : > { %1816 = vrot.lane.b32.xlu2 %v1732_v14, %s8836_s12  ;;  %v13793_v14 = vld [vmem:[#allocation44_spill] sm:$0xff] }
 0x723   : > { %2288 = vrot.lane.b32.xlu0 %v2193_v55, %s8838_s14  ;;  %v13792_v55 = vld [vmem:[#allocation50_spill] sm:$0xff] }
 0x727   : > { %v5250_v22 = vpop.permute.xlu1 %5249  ;;  %1818 = vrot.lane.b32.xlu1 %v1733_v6, %s8836_s12  ;;  %v1953_v6 = vpack.c.bf16 %v1921_v8, %v1921_v8 }
 0x728   : > { %5254 = vst.msk [vmem:[#allocation3 + $0xc] sm:$0xf] %vm4169_vm12, %v5250_v22  ;;  %v8652_v22 = vld [vmem:[#allocation3 + $0x10] sm:$0xf0] }
 0x729   : > { %5285 = vst.msk [vmem:[#allocation3 + $0xc] sm:$0xf] %vm4226_vm0, %v5281_v7  ;;  %v1955_v7 = vpack.c.bf16 %v1923_v17, %v1923_v17  ;;  %v1932_v17 = vld [vmem:[#allocation2 + $0x171] sm:$0xff] }
 0x72a   : > { %1822 = vrot.lane.b32.xlu2 %v1735_v48, %s8836_s12  ;;  %v1954_v48 = vpack.c.bf16 %v1922_v5, %v1922_v5 }
 0x72b   : > { %1820 = vrot.lane.b32.xlu0 %v1734_v30, %s8836_s12  ;;  %v8342_v30 = vld [vmem:[#allocation3 + $0x8] sm:$0xf] }
 0x72c   : > { %v5279_v49 = vpop.permute.xlu0 %5278  ;;  %v8343_v29 = vor.u32 %v8652_v22, %v8342_v30  ;;  %v1964_v22 = vpack.c.bf16 %v1932_v17, %v1932_v17 }
 0x72d   : > { %5284 = vst.msk [vmem:[#allocation3] sm:$0xf] %vm4226_vm0, %v5279_v49  ;;  %v1926_v49 = vld [vmem:[#allocation2 + $0x129] sm:$0xff] }
 0x72f   : > { %1824 = vrot.lane.b32.xlu1 %v1736_v27, %s8836_s12  ;;  %v5364_v1 = vpop.permute.xlu2 %5363  ;;  %v1956_v27 = vpack.c.bf16 %v1924_v59, %v1924_v59  ;;  %v2146_v59 = vld [vmem:[#allocation2 + $0xf2] sm:$0xff] }
 0x730   : > { %5369 = vst.msk [vmem:[#allocation3 + $0x4] sm:$0xf] %vm4169_vm12, %v5364_v1 }
 0x732   : > { %1828 = vrot.lane.b32.xlu2 %v1738_v9, %s8836_s12  ;;  %v1958_v9 = vpack.c.bf16 %v1926_v49, %v1926_v49 }
 0x733   : > { %1826 = vrot.lane.b32.xlu0 %v1737_v12, %s8836_s12  ;;  %v1957_v12 = vpack.c.bf16 %v1925_v2, %v1925_v2  ;;  %v2145_v2 = vld [vmem:[#allocation2 + $0xe2] sm:$0xff] }
 0x735   : > { %v5310_v0 = vpop.permute.xlu1 %5309 }
 0x736   : > { %5315 = vst.msk [vmem:[#allocation3] sm:$0xf] %vm4283_vm7, %v5310_v0  ;;  %v2171_v0 = vpack.c.bf16 %v2139_v18, %v2139_v18 }
 0x737   : > { %1830 = vrot.lane.b32.xlu1 %v1739_v58, %s8836_s12  ;;  %v13794_v58 = vld [vmem:[#allocation76_spill] sm:$0xff] }
 0x739   : > { %v5312_v10 = vpop.permute.xlu0 %5311 }
 0x73a   : > { %2019 = vrot.lane.b32.xlu2 %v13786_v57, %s8837_s13  ;;  %5316 = vst.msk [vmem:[#allocation3 + $0xc] sm:$0xf] %vm4283_vm7, %v5312_v10  ;;  %v1928_v57 = vld [vmem:[#allocation2 + $0x141] sm:$0xff] }
 0x73b   : > { %2017 = vrot.lane.b32.xlu0 %v13787_v24, %s8837_s13 }
 0x73c   : > { %v5397_v26 = vpop.permute.xlu2 %5396 }
 0x73d   : > { %v8334_v50 = vld [vmem:[#allocation3] sm:$0xf] }
 0x73e   : > { %6053 = vst.msk [vmem:[#allocation3] sm:$0xf] %vm4112_vm4, %v6045_v3 }
 0x73f   : > { %2021 = vrot.lane.b32.xlu1 %v13788_v51, %s8837_s13  ;;  %v1961_v51 = vpack.c.bf16 %v1929_v36, %v1929_v36 }
 0x741   : > { %v8651_v16 = vld [vmem:[#allocation3 + $0x8] sm:$0xf0] }
 0x742   : > { %2025 = vrot.lane.b32.xlu2 %v13789_v28, %s8837_s13  ;;  %v8335_v52 = vor.u32 %v8651_v16, %v8334_v50  ;;  %v1960_v50 = vpack.c.bf16 %v1928_v57, %v1928_v57  ;;  %v13795_v16 = vld [vmem:[#allocation77_spill] sm:$0xff] }
 0x743   : > { %2023 = vrot.lane.b32.xlu0 %v13790_v4, %s8837_s13  ;;  %v2141_v4 = vld [vmem:[#allocation2 + $0xb2] sm:$0xff] }
 0x744   : > { %v1799_v34 = vpop.permute.xlu2 %1798  ;;  %5633 = vmatmul.bf16.vlgmr.msra.gmra.mxu2 %v8335_v52 }
 0x745   : > { %1884 = vst.msk [vmem:[#allocation3 + $0x84] sm:$0xf] %vm1872_vm10, %v1799_v34 }
 0x747   : > { %2027 = vrot.lane.b32.xlu1 %v13791_v56, %s8837_s13  ;;  %v1930_v56 = vld [vmem:[#allocation2 + $0x159] sm:$0xff] }
 0x74a   : > { %2031 = vrot.lane.b32.xlu2 %v13792_v55, %s8837_s13  ;;  %v2173_v55 = vpack.c.bf16 %v2141_v4, %v2141_v4 }
 0x74b   : > { %2029 = vrot.lane.b32.xlu0 %v13793_v14, %s8837_s13  ;;  %v5366_v33 = vpop.permute.xlu1 %5365  ;;  %v1963_v14 = vpack.c.bf16 %v1931_v63, %v1931_v63 }
 0x74c   : > { %v1805_v39 = vpop.permute.xlu2 %1804  ;;  %5370 = vst.msk [vmem:[#allocation3 + $0x10] sm:$0xf] %vm4169_vm12, %v5366_v33  ;;  %v1962_v33 = vpack.c.bf16 %v1930_v56, %v1930_v56 }
 0x74d   : > { %1887 = vst.msk [vmem:[#allocation3 + $0xa8] sm:$0xf] %vm1872_vm10, %v1805_v39 }
 0x74e   : > { %5401 = vst.msk [vmem:[#allocation3 + $0x10] sm:$0xf] %vm4226_vm0, %v5397_v26 }
 0x74f   : > { %2033 = vrot.lane.b32.xlu1 %v1953_v6, %s8837_s13  ;;  %v2143_v6 = vld [vmem:[#allocation2 + $0xca] sm:$0xff] }
 0x750   : > { %v5395_v21 = vpop.permute.xlu0 %5394 }
 0x751   : > { %5400 = vst.msk [vmem:[#allocation3 + $0x4] sm:$0xf] %vm4226_vm0, %v5395_v21 }
 0x752   : > { %2037 = vrot.lane.b32.xlu2 %v1955_v7, %s8837_s13  ;;  %v2175_v7 = vpack.c.bf16 %v2143_v6, %v2143_v6 }
 0x753   : > { %2035 = vrot.lane.b32.xlu0 %v1954_v48, %s8837_s13  ;;  %v13796_v48 = vld [vmem:[#allocation78_spill] sm:$0xff] }
 0x754   : > { %v1811_v31 = vpop.permute.xlu2 %1810  ;;  %8416 = vmatmul.msk.bf16.vlgmr.msrb.gmra.mxu2 %vm4066_vm14, %v8343_v29  ;;  %v8043_v29 = vld [vmem:[%s13519_s4 + $0xb0] sm:$0xf] }
 0x755   : > { %1890 = vst.msk [vmem:[#allocation3 + $0xcc] sm:$0xf] %vm1872_vm10, %v1811_v31  ;;  %v3269_v49 = vunpack.c.l.b16 %v8043_v29 }
 0x757   : > { %2039 = vrot.lane.b32.xlu1 %v1956_v27, %s8837_s13  ;;  %v3274_v27 = vpack.c.b16 %v3269_v49, %v3269_v49 }
 0x759   : > { %v5426_v1 = vpop.permute.xlu1 %5425 }
 0x75a   : > { %2043 = vrot.lane.b32.xlu2 %v1958_v9, %s8837_s13  ;;  %5431 = vst.msk [vmem:[#allocation3 + $0x4] sm:$0xf] %vm4283_vm7, %v5426_v1  ;;  %v2178_v9 = vpack.c.bf16 %v2146_v59, %v2146_v59  ;;  %v2177_v1 = vpack.c.bf16 %v2145_v2, %v2145_v2 }
 0x75b   : > { %2041 = vrot.lane.b32.xlu0 %v1957_v12, %s8837_s13  ;;  %v13799_v12 = vld [vmem:[#allocation79_spill] sm:$0xff] }
 0x75c   : > { %v1833_v11 = vpop.permute.xlu2 %1832 }
 0x75d   : > { %1901 = vst.msk [vmem:[#allocation3 + $0x150] sm:$0xf] %vm1872_vm10, %v1833_v11  ;;  %v5428_v32 = vpop.permute.xlu0 %5427  ;;  %v3292_v11 = vsel %vm2554_vm13, %v3274_v27, 0 }
 0x75e   : > { %5432 = vst.msk [vmem:[#allocation3 + $0x10] sm:$0xf] %vm4283_vm7, %v5428_v32  ;;  %3297 = vmatpush.bf16.msrb.mxu1 %v3292_v11  ;;  %v8610_v32 = vld [vmem:[%s13519_s4 + $0xa8] sm:$0xff] }
 0x75f   : > { %2242 = vrot.lane.b32.xlu1 %v13794_v58, %s8838_s14 }
 0x761   : > { %v1801_v10 = vpop.permute.xlu1 %1800  ;;  %v8650_v26 = vld [vmem:[#allocation3 + $0x4] sm:$0xf] }
 0x762   : > { %2045 = vrot.lane.b32.xlu2 %v1959_v23, %s8837_s13  ;;  %1885 = vst.msk [vmem:[#allocation3 + $0x90] sm:$0xf] %vm1872_vm10, %v1801_v10  ;;  %v2147_v23 = vld [vmem:[#allocation2 + $0xfa] sm:$0xff]  ;;  %v2148_v10 = vld [vmem:[#allocation2 + $0x10a] sm:$0xff]  ;;  %3298 = vmatpush.bf16.msrb.mxu1 %v8610_v32 }
 0x763   : > { %2244 = vrot.lane.b32.xlu0 %v2171_v0, %s8838_s14  ;;  %v2149_v0 = vld [vmem:[#allocation2 + $0x112] sm:$0xff]  ;;  %v2179_v57 = vpack.c.bf16 %v2147_v23, %v2147_v23  ;;  %v11826_v23 = vpop.f32.mrf.mxu2 }
 0x764   : > { %v2060_v43 = vpop.permute.xlu2 %2059 }
 0x765   : > { %v1803_v24 = vpop.permute.xlu0 %1802  ;;  %v8336_v3 = vld [vmem:[#allocation3 + $0xc] sm:$0xf0] }
 0x766   : > { %1886 = vst.msk [vmem:[#allocation3 + $0x9c] sm:$0xf] %vm1872_vm10, %v1803_v24  ;;  %v8339_v38 = vor.u32 %v8650_v26, %v8336_v3  ;;  %v2181_v24 = vpack.c.bf16 %v2149_v0, %v2149_v0  ;;  %v2180_v26 = vpack.c.bf16 %v2148_v10, %v2148_v10  ;;  %v8608_v3 = vld [vmem:[%s13519_s4 + $0x98] sm:$0xff] }
 0x767   : > { %2047 = vrot.lane.b32.xlu1 %v1960_v50, %s8837_s13 }
 0x768   : > { %5647 = vmatmul.bf16.vlgmr.msra.gmra.mxu3 %v8339_v38 }
 0x769   : > { %v1807_v28 = vpop.permute.xlu1 %1806 }
 0x76a   : > { %2246 = vrot.lane.b32.xlu2 %v13795_v16, %s8838_s14  ;;  %1888 = vst.msk [vmem:[#allocation3 + $0xb4] sm:$0xf] %vm1872_vm10, %v1807_v28 }
 0x76b   : > { %2049 = vrot.lane.b32.xlu0 %v1961_v51, %s8837_s13 }
 0x76c   : > { %v1837_v52 = vpop.permute.xlu2 %1836 }
 0x76d   : > { %1903 = vst.msk [vmem:[#allocation3 + $0x168] sm:$0xf] %vm1872_vm10, %v1837_v52  ;;  %v1809_v34 = vpop.permute.xlu0 %1808  ;;  %v8607_v52 = vld [vmem:[%s13519_s4 + $0x90] sm:$0xff] }
 0x76e   : > { %1889 = vst.msk [vmem:[#allocation3 + $0xc0] sm:$0xf] %vm1872_vm10, %v1809_v34 }
 0x76f   : > { %2248 = vrot.lane.b32.xlu1 %v2173_v55, %s8838_s14 }
 0x771   : > { %v1813_v39 = vpop.permute.xlu1 %1812 }
 0x772   : > { %2053 = vrot.lane.b32.xlu2 %v1963_v14, %s8837_s13  ;;  %1891 = vst.msk [vmem:[#allocation3 + $0xd8] sm:$0xf] %vm1872_vm10, %v1813_v39 }
 0x773   : > { %2051 = vrot.lane.b32.xlu0 %v1962_v33, %s8837_s13 }
 0x774   : > { %v2064_v8 = vpop.permute.xlu2 %2063 }
 0x775   : > { %v1815_v5 = vpop.permute.xlu0 %1814 }
 0x776   : > { %1892 = vst.msk [vmem:[#allocation3 + $0xe4] sm:$0xf] %vm1872_vm10, %v1815_v5 }
 0x777   : > { %2055 = vrot.lane.b32.xlu1 %v1964_v22, %s8837_s13 }
 0x779   : > { %v1835_v30 = vpop.permute.xlu1 %1834 }
 0x77a   : > { %2252 = vrot.lane.b32.xlu2 %v2175_v7, %s8838_s14  ;;  %1902 = vst.msk [vmem:[#allocation3 + $0x15c] sm:$0xf] %vm1872_vm10, %v1835_v30  ;;  %v13812_v30 = vld [vmem:[#allocation62_spill] sm:$0xff] }
 0x77b   : > { %2250 = vrot.lane.b32.xlu0 %v13796_v48, %s8838_s14  ;;  %2127 = vst.msk [vmem:[#allocation3 + $0x15c] sm:$0xf] %vm13797_vm8, %v2060_v43  ;;  %v8609_v43 = vld [vmem:[%s13519_s4 + $0xa0] sm:$0xff]  ;;  %vm13805_vm8 = vmmov %vm13800_vm2 }
 0x77c   : > { %v1817_v21 = vpop.permute.xlu2 %1816  ;;  %3299 = vmatpush.bf16.msrb.mxu1 %v8609_v43 }
 0x77d   : > { %v2058_v31 = vpop.permute.xlu0 %2057  ;;  %1893 = vst.msk [vmem:[#allocation3 + $0xf0] sm:$0xf] %vm1872_vm10, %v1817_v21  ;;  %v13813_v21 = vld [vmem:[#allocation71_spill] sm:$0xff] }
 0x77e   : > { %2126 = vst.msk [vmem:[#allocation3 + $0x150] sm:$0xf] %vm13798_vm15, %v2058_v31  ;;  %vm13806_vm15 = vmmov %vm13803_vm9  ;;  %v8047_v29 = vor.u32 %v13813_v21, %v13812_v30 }
 0x77f   : > { %2254 = vrot.lane.b32.xlu1 %v13799_v12, %s8838_s14  ;;  %v8051_v12 = vor.u32 %v11196_v20, %v11171_v47 }
 0x780   : > { %3300 = vmatpush.bf16.msrb.mxu1 %v8608_v3 }
 0x781   : > { %v2283_v53 = vpop.permute.xlu1 %2282 }
 0x782   : > { %2258 = vrot.lane.b32.xlu2 %v2178_v9, %s8838_s14  ;;  %2351 = vst.msk [vmem:[#allocation3 + $0x150] sm:$0xf] %vm13800_vm2, %v2283_v53  ;;  %v8645_v53 = vld [vmem:[%s13519_s4 + $0x238] sm:$0xff] }
 0x783   : > { %2256 = vrot.lane.b32.xlu0 %v2177_v1, %s8838_s14 }
 0x784   : > { %v1823_v18 = vpop.permute.xlu2 %1822  ;;  %3301 = vmatpush.bf16.msrb.mxu1 %v8607_v52 }
 0x785   : > { %1896 = vst.msk [vmem:[#allocation3 + $0x114] sm:$0xf] %vm1872_vm10, %v1823_v18  ;;  %v2285_v58 = vpop.permute.xlu0 %2284 }
 0x786   : > { %2352 = vst.msk [vmem:[#allocation3 + $0x15c] sm:$0xf] %vm13801_vm6, %v2285_v58  ;;  %vm13807_vm6 = vmmov %vm13803_vm9  ;;  %v8055_v58 = vor.u32 %v11303_v42, %v11314_v15 }
 0x787   : > { %2260 = vrot.lane.b32.xlu1 %v2179_v57, %s8838_s14 }
 0x789   : > { %v1839_v38 = vpop.permute.xlu1 %1838  ;;  %v7997_v51 = vld [vmem:[#allocation3 + $0x150] sm:$0xf] }
 0x78a   : > { %2264 = vrot.lane.b32.xlu2 %v2181_v24, %s8838_s14  ;;  %1904 = vst.msk [vmem:[#allocation3 + $0x174] sm:$0xf] %vm1872_vm10, %v1839_v38 }
 0x78b   : > { %2262 = vrot.lane.b32.xlu0 %v2180_v26, %s8838_s14  ;;  %2129 = vst.msk [vmem:[#allocation3 + $0x174] sm:$0xf] %vm13802_vm11, %v2064_v8  ;;  %vm13808_vm11 = vmmov %vm13804_vm1 }
 0x78c   : > { %v1829_v36 = vpop.permute.xlu2 %1828 }
 0x78d   : > { %v2062_v50 = vpop.permute.xlu0 %2061  ;;  %v8597_v16 = vld [vmem:[#allocation3 + $0x158] sm:$0xf0]  ;;  %1899 = vst.msk [vmem:[#allocation3 + $0x138] sm:$0xf] %vm1872_vm10, %v1829_v36  ;;  %v8059_v36 = vor.u32 %v11400_v60, %v11385_v61  ;;  %v8761_v61 = vld [vmem:[%s13520_s5 + $0x5] ss:$0 sm:$0xff] }
 0x78e   : > { %v7998_v28 = vor.u32 %v8597_v16, %v7997_v51  ;;  %2128 = vst.msk [vmem:[#allocation3 + $0x168] sm:$0xf] %vm13803_vm9, %v2062_v50  ;;  %vm13809_vm9 = vmmov %vm13807_vm6  ;;  %v8644_v50 = vld [vmem:[%s13519_s4 + $0x230] sm:$0xff] }
 0x790   : > { %8033 = vmatmul.msk.bf16.vlgmr.msra.gmra.mxu1 %vm13804_vm1, %v7998_v28  ;;  %vm13810_vm1 = vmmov %vm13807_vm6 }
 0x791   : > { %v2287_v4 = vpop.permute.xlu1 %2286  ;;  %4807 = vmatpush.bf16.msra.mxu1 %v8645_v53 }
 0x792   : > { %2353 = vst.msk [vmem:[#allocation3 + $0x168] sm:$0xf] %vm13805_vm8, %v2287_v4  ;;  %vm13811_vm8 = vmmov %vm13810_vm1 }
 0x794   : > { %v2020_v34 = vpop.permute.xlu2 %2019 }
 0x795   : > { %2107 = vst.msk [vmem:[#allocation3 + $0x6c] sm:$0xf] %vm13806_vm15, %v2020_v34  ;;  %v2289_v63 = vpop.permute.xlu0 %2288  ;;  %vm13814_vm15 = vmmov %vm13808_vm11  ;;  %4808 = vmatpush.bf16.msra.mxu1 %v8644_v50 }
 0x796   : > { %2354 = vst.msk [vmem:[#allocation3 + $0x174] sm:$0xf] %vm13800_vm2, %v2289_v63  ;;  %vm13815_vm2 = vmmov %vm13810_vm1 }
 0x799   : > { %v1819_v56 = vpop.permute.xlu1 %1818  ;;  %v8001_v55 = vld [vmem:[#allocation3 + $0x168] sm:$0xf] }
 0x79a   : > { %1894 = vst.msk [vmem:[#allocation3 + $0xfc] sm:$0xf] %vm1872_vm10, %v1819_v56 }
 0x79c   : > { %v2026_v14 = vpop.permute.xlu2 %2025 }
 0x79d   : > { %2110 = vst.msk [vmem:[#allocation3 + $0x90] sm:$0xf] %vm13807_vm6, %v2026_v14  ;;  %v1821_v33 = vpop.permute.xlu0 %1820  ;;  %v8598_v39 = vld [vmem:[#allocation3 + $0x170] sm:$0xf0]  ;;  %vm13816_vm6 = vmmov %vm13810_vm1 }
 0x79e   : > { %1895 = vst.msk [vmem:[#allocation3 + $0x108] sm:$0xf] %vm1872_vm10, %v1821_v33  ;;  %v8002_v8 = vor.u32 %v8598_v39, %v8001_v55 }
 0x7a0   : > { %8034 = vmatmul.msk.bf16.gmra.mxu1 %vm13808_vm11, %v8002_v8  ;;  %vm13817_vm11 = vmmov %vm13810_vm1 }
 0x7a1   : > { %v1825_v17 = vpop.permute.xlu1 %1824 }
 0x7a2   : > { %1897 = vst.msk [vmem:[#allocation3 + $0x120] sm:$0xf] %vm1872_vm10, %v1825_v17  ;;  %v8157_v17 = vor.u32 %v11613_v54, %v11606_v41 }
 0x7a4   : > { %v2032_v5 = vpop.permute.xlu2 %2031 }
 0x7a5   : > { %2113 = vst.msk [vmem:[#allocation3 + $0xb4] sm:$0xf] %vm13809_vm9, %v2032_v5  ;;  %v1827_v6 = vpop.permute.xlu0 %1826  ;;  %vm13819_vm9 = vmmov %vm13810_vm1 }
 0x7a6   : > { %1898 = vst.msk [vmem:[#allocation3 + $0x12c] sm:$0xf] %vm1872_vm10, %v1827_v6 }
 0x7a9   : > { %v1831_v22 = vpop.permute.xlu1 %1830 }
 0x7aa   : > { %1900 = vst.msk [vmem:[#allocation3 + $0x144] sm:$0xf] %vm1872_vm10, %v1831_v22  ;;  %vm13818_vm10 = vmmov %vm13810_vm1 }
 0x7ac   : > { %v2038_v7 = vpop.permute.xlu2 %2037 }
 0x7ad   : > { %2116 = vst.msk [vmem:[#allocation3 + $0xd8] sm:$0xf] %vm13810_vm1, %v2038_v7  ;;  %v2018_v48 = vpop.permute.xlu0 %2017 }
 0x7ae   : > { %2106 = vst.msk [vmem:[#allocation3 + $0x60] sm:$0xf] %vm13811_vm8, %v2018_v48  ;;  %vm13820_vm8 = vmmov %vm13814_vm15 }
 0x7b0   : > { %8076 = vmatmul.msk.bf16.vlgmr.msrb.gmra.mxu1 %vm13814_vm15, %v8047_v29  ;;  %vm13821_vm15 = vmmov %vm13810_vm1 }
 0x7b1   : > { %v2022_v31 = vpop.permute.xlu1 %2021 }
 0x7b2   : > { %2108 = vst.msk [vmem:[#allocation3 + $0x78] sm:$0xf] %vm13815_vm2, %v2022_v31  ;;  %vm13822_vm2 = vcmask 585216  }
 0x7b4   : > { %v2044_v59 = vpop.permute.xlu2 %2043 }
 0x7b5   : > { %2119 = vst.msk [vmem:[#allocation3 + $0xfc] sm:$0xf] %vm13816_vm6, %v2044_v59  ;;  %v2024_v49 = vpop.permute.xlu0 %2023  ;;  %vm13823_vm6 = vmmov %vm13810_vm1 }
 0x7b6   : > { %2109 = vst.msk [vmem:[#allocation3 + $0x84] sm:$0xf] %vm13817_vm11, %v2024_v49  ;;  %vm13824_vm11 = vmmov %vm13810_vm1 }
 0x7b9   : > { %v2028_v2 = vpop.permute.xlu1 %2027 }
 0x7ba   : > { %2111 = vst.msk [vmem:[#allocation3 + $0x9c] sm:$0xf] %vm13818_vm10, %v2028_v2  ;;  %vm13825_vm10 = vmmov %vm13810_vm1 }
 0x7bc   : > { %v2046_v27 = vpop.permute.xlu2 %2045 }
 0x7bd   : > { %2120 = vst.msk [vmem:[#allocation3 + $0x108] sm:$0xf] %vm13819_vm9, %v2046_v27  ;;  %v2030_v9 = vpop.permute.xlu0 %2029  ;;  %vm13826_vm9 = vmmov %vm13810_vm1 }
 0x7be   : > { %2112 = vst.msk [vmem:[#allocation3 + $0xa8] sm:$0xf] %vm13810_vm1, %v2030_v9  ;;  %vm13827_vm1 = vmmov %vm13820_vm8 }
 0x7c0   : > { %8077 = vmatmul.msk.bf16.gmra.mxu1 %vm13820_vm8, %v8051_v12  ;;  %vm13828_vm8 = vmmov %vm13822_vm2 }
 0x7c1   : > { %v2034_v1 = vpop.permute.xlu1 %2033 }
 0x7c2   : > { %2114 = vst.msk [vmem:[#allocation3 + $0xc0] sm:$0xf] %vm13821_vm15, %v2034_v1  ;;  %vm13829_vm15 = vmmov %vm13822_vm2 }
 0x7c4   : > { %v2247_v11 = vpop.permute.xlu2 %2246 }
 0x7c5   : > { %2333 = vst.msk [vmem:[#allocation3 + $0x78] sm:$0xf] %vm13822_vm2, %v2247_v11  ;;  %v2036_v32 = vpop.permute.xlu0 %2035 }
 0x7c6   : > { %2115 = vst.msk [vmem:[#allocation3 + $0xcc] sm:$0xf] %vm13823_vm6, %v2036_v32 }
 0x7c7   : > { %v5634_v57 = vpop.f32.mrf.mxu2 }
 0x7c8   : > { %v5635_v60 = vadd.f32 %v8761_v61, %v5634_v57 }
 0x7c9   : > { %v2040_v18 = vpop.permute.xlu1 %2039 }
 0x7ca   : > { %2117 = vst.msk [vmem:[#allocation3 + $0xe4] sm:$0xf] %vm13824_vm11, %v2040_v18  ;;  %vm13830_vm11 = vmmov %vm13822_vm2 }
 0x7cc   : > { %v2054_v47 = vpop.permute.xlu2 %2053  ;;  %v7961_v33 = vld [vmem:[#allocation3 + $0x78] sm:$0xf] }
 0x7cd   : > { %2124 = vst.msk [vmem:[#allocation3 + $0x138] sm:$0xf] %vm13825_vm10, %v2054_v47  ;;  %v2042_v20 = vpop.permute.xlu0 %2041  ;;  %vm13831_vm10 = vmmov %vm13823_vm6  ;;  %v8168_v47 = vld [vmem:[#allocation3 + $0x20] sm:$0xf] }
 0x7ce   : > { %2118 = vst.msk [vmem:[#allocation3 + $0xf0] sm:$0xf] %vm13826_vm9, %v2042_v20  ;;  %vm13832_vm9 = vmmov %vm13827_vm1  ;;  %v8621_v20 = vld [vmem:[#allocation3 + $0x28] sm:$0xf0] }
 0x7cf   : > { %v5636_v51 = vpop.f32.mrf.mxu2 }
 0x7d0   : > { %8078 = vmatmul.msk.bf16.gmra.mxu1 %vm13827_vm1, %v8055_v58  ;;  %v5637_v6 = vadd.f32 %v8761_v61, %v5636_v51 }
 0x7d1   : > { %v2243_v0 = vpop.permute.xlu1 %2242 }
 0x7d2   : > { %2331 = vst.msk [vmem:[#allocation3 + $0x60] sm:$0xf] %vm13828_vm8, %v2243_v0  ;;  %vm13833_vm8 = vmmov %vm13822_vm2 }
 0x7d4   : > { %v2253_v10 = vpop.permute.xlu2 %2252 }
 0x7d5   : > { %2336 = vst.msk [vmem:[#allocation3 + $0x9c] sm:$0xf] %vm13829_vm15, %v2253_v10  ;;  %v2245_v43 = vpop.permute.xlu0 %2244  ;;  %vm13834_vm15 = vmmov %vm13822_vm2 }
 0x7d6   : > { %2332 = vst.msk [vmem:[#allocation3 + $0x6c] sm:$0xf] %vm13822_vm2, %v2245_v43  ;;  %vm13835_vm2 = vmmov %vm13823_vm6 }
 0x7d7   : > { %v5662_v4 = vpop.f32.mrf.mxu2 }
 0x7d9   : > { %v2048_v24 = vpop.permute.xlu1 %2047  ;;  %v7957_v42 = vld [vmem:[#allocation3 + $0x60] sm:$0xf] }
 0x7da   : > { %2121 = vst.msk [vmem:[#allocation3 + $0x114] sm:$0xf] %vm13823_vm6, %v2048_v24  ;;  %vm13836_vm6 = vmmov %vm13835_vm2 }
 0x7dc   : > { %v2259_v26 = vpop.permute.xlu2 %2258  ;;  %v8589_v24 = vld [vmem:[#allocation3 + $0x98] sm:$0xf0] }
 0x7dd   : > { %2339 = vst.msk [vmem:[#allocation3 + $0xc0] sm:$0xf] %vm13830_vm11, %v2259_v26  ;;  %v2050_v3 = vpop.permute.xlu0 %2049  ;;  %v8587_v15 = vld [vmem:[#allocation3 + $0x68] sm:$0xf0]  ;;  %vm13837_vm11 = vmmov %vm13833_vm8 }
 0x7de   : > { %2122 = vst.msk [vmem:[#allocation3 + $0x120] sm:$0xf] %vm13831_vm10, %v2050_v3  ;;  %v7958_v38 = vor.u32 %v8587_v15, %v7957_v42  ;;  %vm13838_vm10 = vmmov %vm13827_vm1  ;;  %v8169_v15 = vor.u32 %v8621_v20, %v8168_v47 }
 0x7df   : > { %v5664_v2 = vpop.f32.mrf.mxu2 }
 0x7e0   : > { %8023 = vmatmul.msk.bf16.gmra.mxu0 %vm13832_vm9, %v7958_v38  ;;  %8079 = vmatmul.msk.bf16.gmra.mxu1 %vm13827_vm1, %v8059_v36  ;;  %vm13839_vm9 = vmmov %vm13833_vm8 }
 0x7e1   : > { %v2249_v16 = vpop.permute.xlu1 %2248  ;;  %vm13840_vm1 = vmmov %vm13833_vm8 }
 0x7e2   : > { %2334 = vst.msk [vmem:[#allocation3 + $0x84] sm:$0xf] %vm13833_vm8, %v2249_v16  ;;  %vm13841_vm8 = vmmov %vm13840_vm1 }
 0x7e4   : > { %v2265_v28 = vpop.permute.xlu2 %2264 }
 0x7e5   : > { %2342 = vst.msk [vmem:[#allocation3 + $0xe4] sm:$0xf] %vm13834_vm15, %v2265_v28  ;;  %v2052_v52 = vpop.permute.xlu0 %2051  ;;  %vm13842_vm15 = vmmov %vm13838_vm10 }
 0x7e6   : > { %2123 = vst.msk [vmem:[#allocation3 + $0x12c] sm:$0xf] %vm13835_vm2, %v2052_v52  ;;  %vm13843_vm2 = vmmov %vm13840_vm1 }
 0x7e9   : > { %v2056_v34 = vpop.permute.xlu1 %2055  ;;  %v8588_v56 = vld [vmem:[#allocation3 + $0x80] sm:$0xf0] }
 0x7ea   : > { %2125 = vst.msk [vmem:[#allocation3 + $0x144] sm:$0xf] %vm13836_vm6, %v2056_v34  ;;  %v7962_v8 = vor.u32 %v8588_v56, %v7961_v33  ;;  %v8180_v56 = vld [vmem:[#allocation3 + $0x38] sm:$0xf]  ;;  %vm13844_vm6 = vmmov %vm13838_vm10 }
 0x7eb   : > { %v5648_v63 = vpop.f32.mrf.mxu3 }
 0x7ec   : > { %v5649_v55 = vadd.f32 %v5648_v63, %v5635_v60 }
 0x7ed   : > { %v2251_v14 = vpop.permute.xlu0 %2250 }
 0x7ee   : > { %v5663_v39 = vadd.f32 %v5662_v4, %v5649_v55  ;;  %2335 = vst.msk [vmem:[#allocation3 + $0x90] sm:$0xf] %vm13837_vm11, %v2251_v14  ;;  %vm13845_vm11 = vcmask 1042432  }
 0x7f0   : > { %v5667_v5 = vmax.f32 %v5663_v39, 0.0  ;;  %8024 = vmatmul.msk.bf16.gmra.mxu0 %vm13838_vm10, %v7962_v8  ;;  %8266 = vmatmul.msk.bf16.vlgmr.msra.gmra.mxu1 %vm4066_vm14, %v8157_v17  ;;  %v8624_v39 = vld [vmem:[#allocation3 + $0x40] sm:$0xf0]  ;;  %vm13846_vm10 = vmmov %vm13845_vm11 }
 0x7f1   : > { %v2255_v30 = vpop.permute.xlu1 %2254 }
 0x7f2   : > { %v5671_v22 = vrot.slane %v5667_v5, 4  ;;  %v5675_v7 = vmul.f32 0.75, %v5667_v5  ;;  %v5679_v48 = vmul.f32 0.25, %v5667_v5  ;;  %2337 = vst.msk [vmem:[#allocation3 + $0xa8] sm:$0xf] %vm13839_vm9, %v2255_v30  ;;  %vm13847_vm9 = vmmov %vm13846_vm10 }
 0x7f3   : > { %v5650_v21 = vpop.f32.mrf.mxu3 }
 0x7f4   : > { %v5676_v29 = vmul.f32 0.75, %v5671_v22  ;;  %v5680_v31 = vmul.f32 0.25, %v5671_v22  ;;  %v11857_v59 = vadd.f32 %v5679_v48, %v5675_v7  ;;  %v5651_v49 = vadd.f32 %v5650_v21, %v5637_v6 }
 0x7f5   : > { %v2257_v41 = vpop.permute.xlu0 %2256  ;;  %v7965_v18 = vld [vmem:[#allocation3 + $0x90] sm:$0xf] }
 0x7f6   : > { %v11860_v54 = vadd.f32 %v5679_v48, %v5676_v29  ;;  %v11862_v27 = vadd.f32 %v5680_v31, %v5675_v7  ;;  %5699 = vst [vmem:[#allocation1] ss:$2 sm:$0xff] %v11857_v59  ;;  %v5665_v9 = vadd.f32 %v5664_v2, %v5651_v49  ;;  %v7966_v42 = vor.u32 %v8589_v24, %v7965_v18 }
 0x7f7   : > { %2338 = vst.msk [vmem:[#allocation3 + $0xb4] sm:$0xf] %vm13840_vm1, %v2257_v41  ;;  %v8181_v2 = vor.u32 %v8624_v39, %v8180_v56  ;;  %vm13848_vm1 = vmmov %vm13847_vm9 }
 0x7f8   : > { %5702 = vst [vmem:[#allocation1 + $0x10] ss:$2 sm:$0xff] %v11862_v27  ;;  %v5668_v12 = vmax.f32 %v5665_v9, 0.0  ;;  %v11892_v8 = vmul.f32 0.75, %v11862_v27  ;;  %v11895_v17 = vmul.f32 0.75, %v11860_v54 }
 0x7f9   : > { %5705 = vst [vmem:[#allocation1 + $0x20] ss:$2 sm:$0xff] %v11860_v54  ;;  %v2261_v53 = vpop.permute.xlu1 %2260  ;;  %v7969_v47 = vld [vmem:[#allocation3 + $0xa8] sm:$0xf] }
 0x7fa   : > { %v5672_v1 = vrot.slane %v5668_v12, 4  ;;  %v5677_v11 = vmul.f32 0.75, %v5668_v12  ;;  %v5681_v32 = vmul.f32 0.25, %v5668_v12  ;;  %2340 = vst.msk [vmem:[#allocation3 + $0xcc] sm:$0xf] %vm13841_vm8, %v2261_v53  ;;  %vm13849_vm8 = vmmov %vm13848_vm1 }
 0x7fc   : > { %v5678_v58 = vmul.f32 0.75, %v5672_v1  ;;  %v11868_v0 = vadd.f32 %v5680_v31, %v5677_v11  ;;  %v5686_v10 = vmul.f32 0.25, %v5672_v1  ;;  %v11870_v43 = vadd.f32 %v5681_v32, %v5676_v29 }
 0x7fd   : > { %v5700_v57 = vld.sshfl [vmem:[#allocation1] sm:$0xff pattern:$0x75316420]  ;;  %v2263_v36 = vpop.permute.xlu0 %2262 }
 0x7fe   : > { %v11873_v26 = vadd.f32 %v5681_v32, %v5678_v58  ;;  %v11875_v3 = vadd.f32 %v5686_v10, %v5677_v11  ;;  %5708 = vst [vmem:[#allocation1 + $0x30] ss:$2 sm:$0xff] %v11870_v43  ;;  %v11888_v61 = vadd.f32 %v5686_v10, %v5678_v58  ;;  %v5718_v60 = vrot.slane %v5700_v57, 7  ;;  %v8590_v49 = vld [vmem:[#allocation3 + $0xb0] sm:$0xf0] }
 0x7ff   : > { %v5703_v38 = vld.sshfl [vmem:[#allocation1 + $0x10] sm:$0xff pattern:$0x75316420]  ;;  %5710 = vst [vmem:[#allocation1] ss:$2 sm:$0xff] %v11868_v0  ;;  %v11910_v31 = vmul.f32 0.75, %v11870_v43 }
 0x800   : > { %v5706_v50 = vld.sshfl [vmem:[#allocation1 + $0x20] sm:$0xff pattern:$0x75316420]  ;;  %v5719_v51 = vrot.slane %v5703_v38, 7  ;;  %5712 = vst [vmem:[#allocation1 + $0x10] ss:$2 sm:$0xff] %v11875_v3  ;;  %8025 = vmatmul.msk.bf16.gmra.mxu0 %vm13842_vm15, %v7966_v42  ;;  %8267 = vmatmul.msk.bf16.gmra.mxu1 %vm4066_vm14, %v8169_v15  ;;  %v5734_v22 = vsel %vm3785_vm5, %v11857_v59, %v5718_v60  ;;  %v7970_v42 = vor.u32 %v8590_v49, %v7969_v47  ;;  %vm13850_vm15 = vmmov %vm13848_vm1 }
 0x801   : > { %v5720_v16 = vrot.slane %v5706_v50, 7  ;;  %5714 = vst [vmem:[#allocation1 + $0x20] ss:$2 sm:$0xff] %v11873_v26  ;;  %v11919_v11 = vmul.f32 0.25, %v5734_v22  ;;  %v11922_v32 = vmul.f32 0.75, %v11868_v0  ;;  %v11925_v58 = vmul.f32 0.75, %v11875_v3 }
 0x802   : > { %v5735_v28 = vsel %vm3785_vm5, %v11862_v27, %v5719_v51  ;;  %2341 = vst.msk [vmem:[#allocation3 + $0xd8] sm:$0xf] %vm13843_vm2, %v2263_v36  ;;  %v11928_v10 = vmul.f32 0.75, %v11873_v26  ;;  %v11932_v15 = vld [vmem:[#allocation3 + $0x50] sm:$0xf]  ;;  %v11938_v51 = vmul.f32 0.75, %v11888_v61  ;;  %vm13851_vm2 = vmmov %vm13848_vm1 }
 0x803   : > { %v5736_v52 = vsel %vm3785_vm5, %v11860_v54, %v5720_v16  ;;  %v5794_v4 = vmul.f32 0.25, %v5735_v28 }
 0x804   : > { %v5795_v34 = vmul.f32 0.25, %v5736_v52 }
 0x805   : > { %v5709_v63 = vld.sshfl [vmem:[#allocation1 + $0x30] sm:$0xff pattern:$0x75316420]  ;;  %v11903_v21 = vadd.f32 %v5794_v4, %v11892_v8 }
 0x806   : > { %v5711_v55 = vld.sshfl [vmem:[#allocation1] sm:$0xff pattern:$0x75316420]  ;;  %5716 = vst [vmem:[#allocation1 + $0x30] ss:$2 sm:$0xff] %v11888_v61  ;;  %v5721_v14 = vrot.slane %v5709_v63, 7  ;;  %v11906_v29 = vadd.f32 %v5795_v34, %v11895_v17 }
 0x807   : > { %v5713_v33 = vld.sshfl [vmem:[#allocation1 + $0x10] sm:$0xff pattern:$0x75316420]  ;;  %v5722_v7 = vrot.slane %v5711_v55, 7  ;;  %5742 = vst [vmem:[#allocation1] ss:$2 sm:$0xff] %v11857_v59 }
 0x808   : > { %v5715_v5 = vld.sshfl [vmem:[#allocation1 + $0x20] sm:$0xff pattern:$0x75316420]  ;;  %v5737_v6 = vsel %vm3785_vm5, %v11870_v43, %v5721_v14  ;;  %v5723_v48 = vrot.slane %v5713_v33, 7  ;;  %5745 = vst [vmem:[#allocation1 + $0x10] ss:$2 sm:$0xff] %v11862_v27 }
 0x809   : > { %v5724_v30 = vrot.slane %v5715_v5, 7  ;;  %v5738_v41 = vsel %vm3785_vm5, %v11868_v0, %v5722_v7  ;;  %5748 = vst [vmem:[#allocation1 + $0x20] ss:$2 sm:$0xff] %v11860_v54  ;;  %v5796_v1 = vmul.f32 0.25, %v5737_v6  ;;  %v5858_v38 = vperm.slane %v11903_v21, 1 }
 0x80a   : > { %v5739_v9 = vsel %vm3785_vm5, %v11875_v3, %v5723_v48  ;;  %v5797_v53 = vmul.f32 0.25, %v5738_v41  ;;  %v5859_v16 = vperm.slane %v11906_v29, 1  ;;  %v11946_v4 = vld [vmem:[#allocation3 + $0x58] sm:$0xf0]  ;;  %v11993_v34 = vld [vmem:[#allocation3 + $0xe0] sm:$0xf0] }
 0x80b   : > { %v5740_v12 = vsel %vm3785_vm5, %v11873_v26, %v5724_v30  ;;  %v5798_v18 = vmul.f32 0.25, %v5739_v9  ;;  %v11944_v60 = vadd.f32 %v5796_v1, %v11910_v31  ;;  %v8193_v7 = vor.u32 %v11946_v4, %v11932_v15 }
 0x80c   : > { %v5799_v57 = vmul.f32 0.25, %v5740_v12  ;;  %v11952_v55 = vadd.f32 %v5797_v53, %v11922_v32  ;;  %v8591_v53 = vld [vmem:[#allocation3 + $0xc8] sm:$0xf0] }
 0x80d   : > { %v5717_v20 = vld.sshfl [vmem:[#allocation1 + $0x30] sm:$0xff pattern:$0x75316420]  ;;  %v11930_v24 = vpop.f32.mrf.mxu1  ;;  %v11955_v14 = vadd.f32 %v5798_v18, %v11925_v58  ;;  %v5860_v30 = vperm.slane %v11944_v60, 1 }
 0x80e   : > { %v5725_v50 = vrot.slane %v5717_v20, 7  ;;  %5751 = vst [vmem:[#allocation1 + $0x30] ss:$2 sm:$0xff] %v11870_v43  ;;  %v5743_v56 = vld.sshfl [vmem:[#allocation1] sm:$0xff pattern:$0x75316420]  ;;  %v11961_v5 = vadd.f32 %v5799_v57, %v11928_v10 }
 0x80f   : > { %v5746_v33 = vld.sshfl [vmem:[#allocation1 + $0x10] sm:$0xff pattern:$0x75316420]  ;;  %5753 = vst [vmem:[#allocation1] ss:$2 sm:$0xff] %v11868_v0  ;;  %v5861_v12 = vperm.slane %v11952_v55, 1 }
 0x810   : > { %v5741_v63 = vsel %vm3785_vm5, %v11888_v61, %v5725_v50  ;;  %8026 = vmatmul.msk.bf16.gmra.mxu0 %vm13844_vm6, %v7970_v42  ;;  %8268 = vmatmul.msk.bf16.gmra.mxu1 %vm4066_vm14, %v8181_v2  ;;  %v5749_v6 = vld.sshfl [vmem:[#allocation1 + $0x20] sm:$0xff pattern:$0x75316420]  ;;  %5755 = vst [vmem:[#allocation1 + $0x10] ss:$2 sm:$0xff] %v11875_v3  ;;  %v5762_v22 = vrot.slane %v5746_v33, 1  ;;  %vm13852_vm6 = vmmov %vm13848_vm1 }
 0x811   : > { %v5800_v39 = vmul.f32 0.25, %v5741_v63  ;;  %5757 = vst [vmem:[#allocation1 + $0x20] ss:$2 sm:$0xff] %v11873_v26  ;;  %v5763_v48 = vrot.slane %v5749_v6, 1  ;;  %v7973_v6 = vld [vmem:[#allocation3 + $0xc0] sm:$0xf] }
 0x812   : > { %v5778_v41 = vsel %vm13845_vm11, %v5762_v22, %v11862_v27  ;;  %v11991_v2 = vld [vmem:[#allocation3 + $0xd8] sm:$0xf]  ;;  %vm13853_vm11 = vcmask 588800  }
 0x813   : > { %v11973_v9 = vadd.f32 %v5800_v39, %v11938_v51  ;;  %v5779_v47 = vsel %vm13846_vm10, %v5763_v48, %v11860_v54  ;;  %v5810_v20 = vmul.f32 0.25, %v5778_v41  ;;  %v5761_v41 = vrot.slane %v5743_v56, 1  ;;  %vm13858_vm10 = vmmov %vm13848_vm1 }
 0x814   : > { %v5811_v63 = vmul.f32 0.25, %v5779_v47  ;;  %v7974_v48 = vor.u32 %v8591_v53, %v7973_v6 }
 0x815   : > { %v5752_v18 = vld.sshfl [vmem:[#allocation1 + $0x30] sm:$0xff pattern:$0x75316420]  ;;  %v11981_v50 = vpop.f32.mrf.mxu1  ;;  %v11987_v22 = vadd.f32 %v5810_v20, %v11892_v8 }
 0x816   : > { %5759 = vst [vmem:[#allocation1 + $0x30] ss:$2 sm:$0xff] %v11888_v61  ;;  %v5764_v27 = vrot.slane %v5752_v18, 1  ;;  %v5754_v52 = vld.sshfl [vmem:[#allocation1] sm:$0xff pattern:$0x75316420]  ;;  %v11998_v47 = vadd.f32 %v5811_v63, %v11895_v17 }
 0x817   : > { %v5756_v20 = vld.sshfl [vmem:[#allocation1 + $0x10] sm:$0xff pattern:$0x75316420]  ;;  %v5765_v54 = vrot.slane %v5754_v52, 1  ;;  %v5834_v28 = vperm.slane %v11987_v22, 0  ;;  %v12014_v52 = vsel %vm13849_vm8, %v5761_v41, %v11857_v59  ;;  %vm13860_vm8 = vmmov %vm13848_vm1 }
 0x818   : > { %v5780_v18 = vsel %vm13847_vm9, %v5764_v27, %v11870_v43  ;;  %v5758_v42 = vld.sshfl [vmem:[#allocation1 + $0x20] sm:$0xff pattern:$0x75316420]  ;;  %v5766_v49 = vrot.slane %v5756_v20, 1  ;;  %v5874_v20 = vperm.slane %v11987_v22, 1  ;;  %vm13859_vm9 = vmmov %vm13848_vm1 }
 0x819   : > { %v5812_v33 = vmul.f32 0.25, %v5780_v18  ;;  %v5767_v17 = vrot.slane %v5758_v42, 1  ;;  %v5781_v27 = vsel %vm13848_vm1, %v5765_v54, %v11868_v0  ;;  %v5835_v18 = vperm.slane %v11998_v47, 0 }
 0x81a   : > { %v5782_v53 = vsel %vm13850_vm15, %v5766_v49, %v11875_v3  ;;  %v5813_v6 = vmul.f32 0.25, %v5781_v27  ;;  %v5907_v49 = vperm.slane %v11998_v47, 2  ;;  %vm13861_vm15 = vmmov %vm13848_vm1 }
 0x81b   : > { %v12010_v63 = vadd.f32 %v5812_v33, %v11910_v31  ;;  %v5783_v42 = vsel %vm13851_vm2, %v5767_v17, %v11873_v26  ;;  %v5814_v0 = vmul.f32 0.25, %v5782_v53  ;;  %v5875_v31 = vperm.slane %v11998_v47, 1  ;;  %vm13862_vm2 = vmmov %vm13848_vm1 }
 0x81c   : > { %v5815_v36 = vmul.f32 0.25, %v5783_v42  ;;  %v12027_v3 = vadd.f32 %v5813_v6, %v11922_v32 }
 0x81d   : > { %v5760_v43 = vld.sshfl [vmem:[#allocation1 + $0x30] sm:$0xff pattern:$0x75316420]  ;;  %v12024_v54 = vpop.f32.mrf.mxu1  ;;  %v12031_v27 = vadd.f32 %v5814_v0, %v11925_v58  ;;  %v5836_v56 = vperm.slane %v12010_v63, 0  ;;  %v5876_v26 = vperm.slane %v12010_v63, 1  ;;  %v5908_v17 = vperm.slane %v12010_v63, 2 }
 0x81e   : > { %v5768_v41 = vrot.slane %v5760_v43, 1  ;;  %v12039_v43 = vadd.f32 %v5815_v36, %v11928_v10  ;;  %v5837_v32 = vperm.slane %v12027_v3, 0  ;;  %v5877_v42 = vperm.slane %v12027_v3, 1 }
 0x81f   : > { %v5939_v0 = vperm.slane %v11998_v47, 3  ;;  %v5838_v10 = vperm.slane %v12031_v27, 0  ;;  %v5910_v4 = vperm.slane %v12031_v27, 2  ;;  %v5954_v47 = vsel %vm3785_vm5, %v11903_v21, %v5834_v28 }
 0x820   : > { %v5784_v53 = vsel %vm13852_vm6, %v5768_v41, %v11888_v61  ;;  %8027 = vmatmul.msk.bf16.gmra.mxu0 %vm13853_vm11, %v7974_v48  ;;  %8269 = vmatmul.msk.bf16.gmra.mxu1 %vm4066_vm14, %v8193_v7  ;;  %v5839_v36 = vperm.slane %v12039_v43, 0  ;;  %v5878_v41 = vperm.slane %v12031_v27, 1  ;;  %v5909_v48 = vperm.slane %v12027_v3, 2  ;;  %vm13863_vm6 = vmmov %vm13848_vm1 }
 0x821   : > { %v5816_v58 = vmul.f32 0.25, %v5784_v53  ;;  %v5879_v15 = vperm.slane %v12039_v43, 1  ;;  %v5911_v7 = vperm.slane %v12039_v43, 2  ;;  %v5955_v53 = vsel %vm3785_vm5, %v11906_v29, %v5835_v18 }
 0x822   : > { %v5956_v61 = vsel %vm3785_vm5, %v11944_v60, %v5836_v56  ;;  %v5957_v33 = vsel %vm3785_vm5, %v11952_v55, %v5837_v32  ;;  %v5941_v39 = vperm.slane %v12027_v3, 3  ;;  %v5958_v28 = vsel %vm3785_vm5, %v11955_v14, %v5838_v10 }
 0x823   : > { %v12056_v6 = vadd.f32 %v5816_v58, %v11938_v51  ;;  %v5959_v18 = vsel %vm3785_vm5, %v11961_v5, %v5839_v36  ;;  %v5962_v56 = vsel %vm4014_vm3, %v5954_v47, %v5858_v38  ;;  %v5963_v32 = vsel %vm4014_vm3, %v5955_v53, %v5859_v16 }
 0x824   : > { %v5964_v3 = vsel %vm4014_vm3, %v5956_v61, %v5860_v30  ;;  %v5965_v10 = vsel %vm4014_vm3, %v5957_v33, %v5861_v12  ;;  %v13855_v36 = vperm.slane %v11955_v14, 1  ;;  %v13856_v38 = vperm.slane %v11961_v5, 1 }
 0x825   : > { %v5840_v51 = vperm.slane %v12056_v6, 0  ;;  %v5880_v58 = vperm.slane %v12056_v6, 1  ;;  %v5912_v8 = vperm.slane %v12056_v6, 2  ;;  %v12073_v57 = vpop.f32.mrf.mxu1  ;;  %v13857_v16 = vperm.slane %v11973_v9, 1 }
 0x826   : > { %13854 = vst [vmem:[#allocation27_spill] sm:$0xff] %v12073_v57  ;;  %v5966_v57 = vsel %vm4014_vm3, %v5958_v28, %v13855_v36  ;;  %v5967_v47 = vsel %vm4014_vm3, %v5959_v18, %v13856_v38  ;;  %v5971_v30 = vsel %vm13859_vm9, %v5963_v32, %v5875_v31  ;;  %v5972_v61 = vsel %vm13848_vm1, %v5964_v3, %v5876_v26 }
 0x827   : > { %v5960_v1 = vsel %vm3785_vm5, %v11973_v9, %v5840_v51  ;;  %v5970_v51 = vsel %vm13858_vm10, %v5962_v56, %v5874_v20  ;;  %v5973_v12 = vsel %vm13860_vm8, %v5965_v10, %v5877_v42  ;;  %v5974_v33 = vsel %vm13861_vm15, %v5966_v57, %v5878_v41  ;;  %v8700_v10 = vld [vmem:[%s13519_s4 + $0x3e8] sm:$0xff] }
 0x828   : > { %v5968_v53 = vsel %vm4014_vm3, %v5960_v1, %v13857_v16  ;;  %v5975_v28 = vsel %vm13862_vm2, %v5967_v47, %v5879_v15  ;;  %v13864_v18 = vperm.slane %v11903_v21, 2  ;;  %v13865_v1 = vperm.slane %v11906_v29, 2  ;;  %6744 = vmatpush.bf16.msra.mxu2 %v8700_v10 }
 0x829   : > { %v5976_v36 = vsel %vm13863_vm6, %v5968_v53, %v5880_v58  ;;  %v13866_v31 = vperm.slane %v11944_v60, 2  ;;  %v13867_v42 = vperm.slane %v11952_v55, 2  ;;  %v13868_v41 = vperm.slane %v11955_v14, 2 }
 0x82a   : > { %v5978_v38 = vsel %vm2554_vm13, %v5970_v51, %v13864_v18  ;;  %v5979_v20 = vsel %vm2554_vm13, %v5971_v30, %v13865_v1  ;;  %v13869_v58 = vperm.slane %v11961_v5, 2  ;;  %v13870_v32 = vperm.slane %v11973_v9, 2 }
 0x82b   : > { %v5980_v26 = vsel %vm2554_vm13, %v5972_v61, %v13866_v31  ;;  %v5981_v57 = vsel %vm2554_vm13, %v5973_v12, %v13867_v42  ;;  %v5982_v15 = vsel %vm2554_vm13, %v5974_v33, %v13868_v41  ;;  %v13871_v47 = vperm.slane %v11987_v22, 2  ;;  %v6428_v41 = vld [vmem:[#allocation2 + $0xda] sm:$0xff] }
 0x82c   : > { %v5983_v56 = vsel %vm2554_vm13, %v5975_v28, %v13869_v58  ;;  %v5984_v3 = vsel %vm2554_vm13, %v5976_v36, %v13870_v32  ;;  %vm13872_vm11 = vcmask 1044480   ;;  %v13879_v28 = vperm.slane %v11903_v21, 3 }
 0x82d   : > { %v5986_v16 = vsel %vm13872_vm11, %v5978_v38, %v13871_v47  ;;  %vm13873_vm10 = vmmov %vm13872_vm11  ;;  %vm13880_vm6 = vcmask 1045504   ;;  %v12145_v18 = vpop.f32.mrf.mxu1  ;;  %v13881_v38 = vperm.slane %v11906_v29, 3  ;;  %v5942_v1 = vperm.slane %v12031_v27, 3 }
 0x82e   : > { %v5987_v53 = vsel %vm13873_vm10, %v5979_v20, %v5907_v49  ;;  %vm13874_vm9 = vmmov %vm13873_vm10  ;;  %v5994_v36 = vsel %vm13880_vm6, %v5986_v16, %v13879_v28  ;;  %v13889_v20 = vperm.slane %v11961_v5, 3  ;;  %v13891_v31 = vperm.slane %v11987_v22, 3 }
 0x82f   : > { %v5988_v51 = vsel %vm13874_vm9, %v5980_v26, %v5908_v17  ;;  %vm13875_vm1 = vmmov %vm13874_vm9  ;;  %v13883_v17 = vperm.slane %v11944_v60, 3  ;;  %v13894_v42 = vperm.slane %v11973_v9, 3  ;;  %v5785_v22 = vmul.f32 0.75, %v11857_v59  ;;  %v8699_v59 = vld [vmem:[%s13519_s4 + $0x3e0] sm:$0xff] }
 0x830   : > { %v5989_v30 = vsel %vm13875_vm1, %v5981_v57, %v5909_v48  ;;  %vm13876_vm8 = vmmov %vm13875_vm1  ;;  %v13896_v57 = vperm.slane %v12010_v63, 3  ;;  %v13900_v9 = vor.u32 %v11993_v34, %v11991_v2  ;;  %v6436_v58 = vpack.c.bf16 %v6428_v41, %v6428_v41  ;;  %6745 = vmatpush.bf16.msra.mxu2 %v8699_v59 }
 0x831   : > { %v5990_v61 = vsel %vm13876_vm8, %v5982_v15, %v5910_v4  ;;  %vm13877_vm15 = vmmov %vm13875_vm1  ;;  %v13885_v4 = vperm.slane %v11952_v55, 3  ;;  %v5943_v55 = vperm.slane %v12039_v43, 3  ;;  %v5944_v15 = vperm.slane %v12056_v6, 3 }
 0x832   : > { %v5991_v12 = vsel %vm13877_vm15, %v5983_v56, %v5911_v7  ;;  %vm13878_vm2 = vmmov %vm13875_vm1  ;;  %vm13892_vm15 = vcmask 1046528   ;;  %v5801_v43 = vadd.f32 %v11919_v11, %v5785_v22  ;;  %6444 = vst.msk [vmem:[#allocation3 + $0x5c] sm:$0xf] %vm4112_vm4, %v6436_v58 }
 0x833   : > { %v5992_v33 = vsel %vm13878_vm2, %v5984_v3, %v5912_v8  ;;  %vm13882_vm11 = vmmov %vm13880_vm6  ;;  %v13887_v8 = vperm.slane %v11955_v14, 3  ;;  %v6002_v60 = vsel %vm13892_vm15, %v5994_v36, %v13891_v31 }
 0x834   : > { %v5995_v49 = vsel %vm13882_vm11, %v5987_v53, %v13881_v38  ;;  %vm13884_vm10 = vmmov %vm13880_vm6  ;;  %6030 = vst.msk [vmem:[#allocation2 + $0x31] sm:$0xff] %vm4066_vm14, %v6002_v60  ;;  %v5857_v56 = vperm.slane %v5801_v43, 1 }
 0x835   : > { %v5996_v48 = vsel %vm13884_vm10, %v5988_v51, %v13883_v17  ;;  %vm13886_vm9 = vmmov %vm13880_vm6  ;;  %v12195_v2 = vpop.f32.mrf.mxu1  ;;  %v5889_v51 = vperm.slane %v5801_v43, 2 }
 0x836   : > { %v5997_v7 = vsel %vm13886_vm9, %v5989_v30, %v13885_v4  ;;  %vm13888_vm1 = vmmov %vm13880_vm6 }
 0x837   : > { %v5998_v21 = vsel %vm13888_vm1, %v5990_v61, %v13887_v8  ;;  %vm13890_vm8 = vmmov %vm13888_vm1 }
 0x838   : > { %v5999_v29 = vsel %vm13890_vm8, %v5991_v12, %v13889_v20  ;;  %vm13893_vm2 = vmmov %vm13892_vm15 }
 0x839   : > { %v6003_v26 = vsel %vm13893_vm2, %v5995_v49, %v5939_v0  ;;  %vm13895_vm6 = vmmov %vm13888_vm1  ;;  %vm13901_vm1 = vcmask 588800   ;;  %v5921_v49 = vperm.slane %v5801_v43, 3 }
 0x83a   : > { %v6000_v14 = vsel %vm13895_vm6, %v5992_v33, %v13894_v42  ;;  %vm13897_vm11 = vmmov %vm13893_vm2  ;;  %6031 = vst.msk [vmem:[#allocation2 + $0x49] sm:$0xff] %vm4066_vm14, %v6003_v26  ;;  %8028 = vmatmul.msk.bf16.gmra.mxu0 %vm13901_vm1, %v13900_v9  ;;  %vm13905_vm6 = vcmask 1044480  }
 0x83b   : > { %v6004_v27 = vsel %vm13897_vm11, %v5996_v48, %v13896_v57  ;;  %vm13898_vm10 = vmmov %vm13893_vm2  ;;  %v6309_v11 = vld [vmem:[#allocation2 + $0x30] sm:$0xff]  ;;  %vm13906_vm11 = vcmask 1045504  }
 0x83c   : > { %v6005_v5 = vsel %vm13898_vm10, %v5997_v7, %v5941_v39  ;;  %vm13899_vm9 = vmmov %vm13893_vm2  ;;  %6032 = vst.msk [vmem:[#allocation2 + $0x61] sm:$0xff] %vm4066_vm14, %v6004_v27  ;;  %v5809_v39 = vmul.f32 0.25, %v12014_v52  ;;  %v6254_v32 = vld [vmem:[#allocation2 + $0x32] sm:$0xff]  ;;  %v12200_v47 = vpack.c.bf16 %v6309_v11, %v6309_v11 }
 0x83d   : > { %v6006_v0 = vsel %vm13899_vm9, %v5998_v21, %v5942_v1  ;;  %vm13902_vm8 = vmmov %vm13893_vm2  ;;  %6033 = vst.msk [vmem:[#allocation2 + $0x79] sm:$0xff] %vm4066_vm14, %v6005_v5  ;;  %v12202_v16 = vpack.c.bf16 %v6254_v32, %v6254_v32  ;;  %v6365_v7 = vld [vmem:[#allocation2 + $0x31] sm:$0xff] }
 0x83e   : > { %v6007_v63 = vsel %vm13902_vm8, %v5999_v29, %v5943_v55  ;;  %vm13903_vm15 = vmmov %vm13893_vm2  ;;  %6034 = vst.msk [vmem:[#allocation2 + $0x91] sm:$0xff] %vm4066_vm14, %v6006_v0  ;;  %v5817_v34 = vadd.f32 %v5809_v39, %v5785_v22  ;;  %vm13904_vm2 = vcmask 1042432   ;;  %6333 = vrot.lane.b32.xlu2 %v12200_v47, %s8838_s14  ;;  %v12231_v55 = vpop.f32.mrf.mxu1  ;;  %v12238_v27 = vpack.c.bf16 %v6365_v7, %v6365_v7 }
 0x83f   : > { %v6008_v6 = vsel %vm13903_vm15, %v6000_v14, %v5944_v15  ;;  %6035 = vst.msk [vmem:[#allocation2 + $0xa9] sm:$0xff] %vm4066_vm14, %v6007_v63  ;;  %6279 = vrot.lane.b32.xlu0 %v12202_v16, %s8834_s9  ;;  %vm13907_vm10 = vmmov %vm13902_vm8  ;;  %vm13912_vm8 = vcmask 588800  }
 0x840   : > { %6036 = vst.msk [vmem:[#allocation2 + $0xc1] sm:$0xff] %vm4066_vm14, %v6008_v6  ;;  %v5833_v52 = vperm.slane %v5817_v34, 0  ;;  %v5873_v3 = vperm.slane %v5817_v34, 1  ;;  %v5905_v36 = vperm.slane %v5817_v34, 2  ;;  %v5937_v1 = vperm.slane %v5817_v34, 3  ;;  %v6117_v6 = vld [vmem:[#allocation2 + $0x2] sm:$0xff] }
 0x841   : > { %v6422_v53 = vld [vmem:[#allocation2 + $0x4a] sm:$0xff]  ;;  %6437 = vst.msk [vmem:[#allocation3 + $0x8] sm:$0xf] %vm4112_vm4, %v12202_v16 }
 0x842   : > { %v5953_v10 = vsel %vm3785_vm5, %v5801_v43, %v5833_v52  ;;  %v12205_v12 = vpack.c.bf16 %v6422_v53, %v6422_v53  ;;  %v6366_v29 = vld [vmem:[#allocation2 + $0x49] sm:$0xff]  ;;  %6246 = vst.msk [vmem:[#allocation3 + $0x10] sm:$0xf] %vm4112_vm4, %v12238_v27  ;;  %v12264_v52 = vld [vmem:[%s13520_s5 + $0x1] ss:$0 sm:$0xff] }
 0x843   : > { %v6423_v30 = vld [vmem:[#allocation2 + $0x62] sm:$0xff]  ;;  %v5961_v61 = vsel %vm4014_vm3, %v5953_v10, %v5857_v56  ;;  %v12242_v41 = vpack.c.bf16 %v6366_v29, %v6366_v29  ;;  %6055 = vst.msk [vmem:[#allocation3 + $0x18] sm:$0xf] %vm4112_vm4, %v12200_v47 }
 0x844   : > { %v6424_v33 = vld [vmem:[#allocation2 + $0x7a] sm:$0xff]  ;;  %v12207_v28 = vpack.c.bf16 %v6423_v30, %v6423_v30  ;;  %v5969_v38 = vsel %vm13904_vm2, %v5961_v61, %v5873_v3  ;;  %6438 = vst.msk [vmem:[#allocation3 + $0x14] sm:$0xf] %vm4112_vm4, %v12205_v12  ;;  %v6310_v5 = vld [vmem:[#allocation2 + $0x48] sm:$0xff]  ;;  %v6125_v3 = vpack.c.bf16 %v6117_v6, %v6117_v6 }
 0x845   : > { %v12216_v17 = vpack.c.bf16 %v6424_v33, %v6424_v33  ;;  %v6425_v48 = vld [vmem:[#allocation2 + $0x92] sm:$0xff]  ;;  %v5977_v4 = vsel %vm2554_vm13, %v5969_v38, %v5889_v51  ;;  %v6367_v42 = vld [vmem:[#allocation2 + $0x61] sm:$0xff]  ;;  %v12249_v63 = vpack.c.bf16 %v6310_v5, %v6310_v5  ;;  %6247 = vst.msk [vmem:[#allocation3 + $0x1c] sm:$0xf] %vm4112_vm4, %v12242_v41 }
 0x846   : > { %6439 = vst.msk [vmem:[#allocation3 + $0x20] sm:$0xf] %vm4112_vm4, %v12207_v28  ;;  %v6426_v8 = vld [vmem:[#allocation2 + $0xaa] sm:$0xff]  ;;  %v12223_v21 = vpack.c.bf16 %v6425_v48, %v6425_v48  ;;  %v5985_v20 = vsel %vm13905_vm6, %v5977_v4, %v5905_v36  ;;  %v12246_v22 = vpack.c.bf16 %v6367_v42, %v6367_v42  ;;  %v6368_v15 = vld [vmem:[#allocation2 + $0x79] sm:$0xff]  ;;  %6391 = vrot.lane.b32.xlu2 %v12242_v41, %s8839_s20  ;;  %v3310_v11 = vpop.f32.mrf.mxu1 }
 0x847   : > { %6440 = vst.msk [vmem:[#allocation3 + $0x2c] sm:$0xf] %vm4112_vm4, %v12216_v17  ;;  %v12228_v31 = vpack.c.bf16 %v6426_v8, %v6426_v8  ;;  %v6427_v60 = vld [vmem:[#allocation2 + $0xc2] sm:$0xff]  ;;  %v5993_v26 = vsel %vm13906_vm11, %v5985_v20, %v5921_v49  ;;  %v6369_v9 = vld [vmem:[#allocation2 + $0x91] sm:$0xff]  ;;  %6389 = vrot.lane.b32.xlu0 %v12238_v27, %s8839_s20  ;;  %v12257_v34 = vpack.c.bf16 %v6368_v15, %v6368_v15  ;;  %vm13919_vm11 = vmmov %vm13907_vm10 }
 0x848   : > { %6441 = vst.msk [vmem:[#allocation3 + $0x38] sm:$0xf] %vm4112_vm4, %v12223_v21  ;;  %v12235_v14 = vpack.c.bf16 %v6427_v60, %v6427_v60  ;;  %v6001_v57 = vsel %vm13907_vm10, %v5993_v26, %v5937_v1  ;;  %v8463_v0 = vld [vmem:[#allocation3 + $0x8] sm:$0xf]  ;;  %v6370_v59 = vld [vmem:[#allocation2 + $0xa9] sm:$0xff]  ;;  %v6311_v58 = vld [vmem:[#allocation2 + $0x60] sm:$0xff]  ;;  %v12266_v56 = vpack.c.bf16 %v6369_v9, %v6369_v9  ;;  %v12276_v10 = vadd.f32 %v12264_v52, %v3310_v11 }
 0x849   : > { %6442 = vst.msk [vmem:[#allocation3 + $0x44] sm:$0xf] %vm4112_vm4, %v12228_v31  ;;  %v12271_v32 = vpack.c.bf16 %v6370_v59, %v6370_v59  ;;  %v12278_v53 = vpack.c.bf16 %v6311_v58, %v6311_v58  ;;  %v6312_v51 = vld [vmem:[#allocation2 + $0x78] sm:$0xff]  ;;  %v6313_v30 = vld [vmem:[#allocation2 + $0x90] sm:$0xff]  ;;  %v6371_v61 = vld [vmem:[#allocation2 + $0xc1] sm:$0xff] }
 0x84a   : > { %6443 = vst.msk [vmem:[#allocation3 + $0x50] sm:$0xf] %vm4112_vm4, %v12235_v14  ;;  %v12286_v7 = vpack.c.bf16 %v6312_v51, %v6312_v51  ;;  %v6314_v8 = vld [vmem:[#allocation2 + $0xa8] sm:$0xff]  ;;  %v12291_v1 = vpack.c.bf16 %v6313_v30, %v6313_v30  ;;  %v12297_v20 = vpack.c.bf16 %v6371_v61, %v6371_v61  ;;  %v3304_v51 = vadd.f32 %v12264_v52, %v12145_v18 }
 0x84b   : > { %6029 = vst.msk [vmem:[#allocation2 + $0x19] sm:$0xff] %vm4066_vm14, %v6001_v57  ;;  %v8673_v39 = vld [vmem:[#allocation3 + $0x10] sm:$0xf0]  ;;  %v12300_v29 = vpack.c.bf16 %v6314_v8, %v6314_v8 }
 0x84c   : > { %v8464_v43 = vor.u32 %v8673_v39, %v8463_v0  ;;  %6248 = vst.msk [vmem:[#allocation3 + $0x28] sm:$0xf] %vm4112_vm4, %v12246_v22  ;;  %v6061_v15 = vld [vmem:[#allocation2 + $0x1] sm:$0xff] }
 0x84d   : > { %6056 = vst.msk [vmem:[#allocation3 + $0x24] sm:$0xf] %vm4112_vm4, %v12249_v63  ;;  %v8475_v42 = vld [vmem:[#allocation3 + $0x20] sm:$0xf]  ;;  %v6069_v39 = vpack.c.bf16 %v6061_v15, %v6061_v15 }
 0x84e   : > { %8573 = vmatmul.msk.bf16.vlgmr.msra.gmra.mxu2 %vm4066_vm14, %v8464_v43  ;;  %6249 = vst.msk [vmem:[#allocation3 + $0x34] sm:$0xf] %vm4112_vm4, %v12257_v34  ;;  %6141 = vrot.lane.b32.xlu2 %v6125_v3, %s8838_s14  ;;  %v3313_v60 = vpop.f32.mrf.mxu1  ;;  %v8676_v57 = vld [vmem:[#allocation3 + $0x28] sm:$0xf0] }
 0x84f   : > { %6250 = vst.msk [vmem:[#allocation3 + $0x40] sm:$0xf] %vm4112_vm4, %v12266_v56  ;;  %v12306_v26 = vadd.f32 %v12264_v52, %v3313_v60  ;;  %v8476_v5 = vor.u32 %v8676_v57, %v8475_v42  ;;  %v8487_v43 = vld [vmem:[#allocation3 + $0x38] sm:$0xf] }
 0x850   : > { %6251 = vst.msk [vmem:[#allocation3 + $0x4c] sm:$0xf] %vm4112_vm4, %v12271_v32  ;;  %v8679_v6 = vld [vmem:[#allocation3 + $0x40] sm:$0xf0] }
 0x851   : > { %6057 = vst.msk [vmem:[#allocation3 + $0x30] sm:$0xf] %vm4112_vm4, %v12278_v53  ;;  %v8488_v58 = vor.u32 %v8679_v6, %v8487_v43 }
 0x852   : > { %v6253_v33 = vld [vmem:[#allocation2 + $0x1a] sm:$0xff]  ;;  %6058 = vst.msk [vmem:[#allocation3 + $0x3c] sm:$0xf] %vm4112_vm4, %v12286_v7 }
 0x853   : > { %v6062_v36 = vld [vmem:[#allocation2 + $0x19] sm:$0xff]  ;;  %v6261_v49 = vpack.c.bf16 %v6253_v33, %v6253_v33  ;;  %6059 = vst.msk [vmem:[#allocation3 + $0x48] sm:$0xf] %vm4112_vm4, %v12291_v1  ;;  %v3323_v33 = vmax.f32 %v3304_v51, 0.0 }
 0x854   : > { %v6173_v38 = vld [vmem:[#allocation2 + $0x18] sm:$0xff]  ;;  %v6070_v48 = vpack.c.bf16 %v6062_v36, %v6062_v36  ;;  %6252 = vst.msk [vmem:[#allocation3 + $0x58] sm:$0xf] %vm4112_vm4, %v12297_v20  ;;  %v8499_v36 = vld [vmem:[#allocation3 + $0x50] sm:$0xf] }
 0x855   : > { %v6181_v4 = vpack.c.bf16 %v6173_v38, %v6173_v38  ;;  %6277 = vrot.lane.b32.xlu1 %v6261_v49, %s8834_s9  ;;  %6060 = vst.msk [vmem:[#allocation3 + $0x54] sm:$0xf] %vm4112_vm4, %v12300_v29  ;;  %v8682_v38 = vld [vmem:[#allocation3 + $0x58] sm:$0xf0] }
 0x856   : > { %6087 = vrot.lane.b32.xlu0 %v6070_v48, %s8834_s9  ;;  %6245 = vst.msk [vmem:[#allocation3 + $0x4] sm:$0xf] %vm4112_vm4, %v6070_v48  ;;  %6199 = vrot.lane.b32.xlu2 %v12200_v47, %s8839_s20  ;;  %v3315_v0 = vpop.f32.mrf.mxu1 }
 0x857   : > { %6054 = vst.msk [vmem:[#allocation3 + $0xc] sm:$0xf] %vm4112_vm4, %v6181_v4  ;;  %v12321_v9 = vadd.f32 %v12264_v52, %v3315_v0 }
 0x85d   : > { %6335 = vrot.lane.b32.xlu1 %v12249_v63, %s8838_s14 }
 0x85e   : > { %6197 = vrot.lane.b32.xlu0 %v6181_v4, %s8839_s20  ;;  %8574 = vmatmul.msk.bf16.gmra.mxu2 %vm4066_vm14, %v8476_v5  ;;  %v3318_v47 = vpop.f32.mrf.mxu1  ;;  %v3306_v4 = vadd.f32 %v12264_v52, %v12195_v2 }
 0x85f   : > { %6337 = vrot.lane.b32.xlu2 %v12278_v53, %s8838_s14  ;;  %v12329_v59 = vadd.f32 %v12264_v52, %v3318_v47  ;;  %v3327_v47 = vmax.f32 %v12306_v26, 0.0  ;;  %v2151_v26 = vld [vmem:[#allocation2 + $0x12a] sm:$0xff] }
 0x860   : > { %v3324_v60 = vmax.f32 %v3306_v4, 0.0 }
 0x865   : > { %6085 = vrot.lane.b32.xlu1 %v6069_v39, %s8834_s9 }
 0x866   : > { %6283 = vrot.lane.b32.xlu0 %v12207_v28, %s8834_s9  ;;  %v3320_v11 = vpop.f32.mrf.mxu1 }
 0x867   : > { %6395 = vrot.lane.b32.xlu2 %v12257_v34, %s8839_s20  ;;  %v12338_v3 = vadd.f32 %v12264_v52, %v3320_v11  ;;  %v3328_v11 = vmax.f32 %v12321_v9, 0.0  ;;  %v6315_v9 = vld [vmem:[#allocation2 + $0xc0] sm:$0xff] }
 0x86d   : > { %6143 = vrot.lane.b32.xlu1 %v6261_v49, %s8838_s14 }
 0x86e   : > { %6393 = vrot.lane.b32.xlu0 %v12246_v22, %s8839_s20  ;;  %8575 = vmatmul.msk.bf16.gmra.mxu2 %vm4066_vm14, %v8488_v58  ;;  %v4810_v30 = vpop.f32.mrf.mxu1 }
 0x86f   : > { %6145 = vrot.lane.b32.xlu2 %v12202_v16, %s8838_s14  ;;  %v4811_v61 = vadd.f32 %v4810_v30, %v11500_v25  ;;  %v12352_v16 = vld [vmem:[%s13520_s5 + $0x3] ss:$0 sm:$0xff]  ;;  %v8500_v25 = vor.u32 %v8682_v38, %v8499_v36  ;;  %v2183_v30 = vpack.c.bf16 %v2151_v26, %v2151_v26 }
 0x870   : > { %v4755_v48 = vadd.f32 %v12352_v16, %v11456_v19  ;;  %v4760_v15 = vadd.f32 %v12352_v16, %v11460_v46 }
 0x871   : > { %v4830_v49 = vmax.f32 %v4811_v61, 0.0  ;;  %v6316_v61 = vld [vmem:[#allocation2 + $0xd8] sm:$0xff] }
 0x872   : > { %v4784_v18 = vadd.f32 %v11502_v35, %v4755_v48  ;;  %v3309_v35 = vadd.f32 %v12264_v52, %v12231_v55  ;;  %v4789_v55 = vadd.f32 %v11527_v37, %v4760_v15  ;;  %v3326_v52 = vmax.f32 %v12276_v10, 0.0  ;;  %v8698_v37 = vld [vmem:[%s13519_s4 + $0x3d8] sm:$0xff] }
 0x873   : > { %6709 = vmatpush.bf16.msrb.mxu3 %v8698_v37  ;;  %v6324_v36 = vpack.c.bf16 %v6316_v61, %v6316_v61  ;;  %v3330_v15 = vmax.f32 %v12338_v3, 0.0  ;;  %v8691_v3 = vld [vmem:[%s13519_s4 + $0x3a0] sm:$0xff] }
 0x874   : > { %v3325_v57 = vmax.f32 %v3309_v35, 0.0  ;;  %v2150_v35 = vld [vmem:[#allocation2 + $0x122] sm:$0xff] }
 0x875   : > { %6281 = vrot.lane.b32.xlu1 %v12205_v12, %s8834_s9 }
 0x876   : > { %6091 = vrot.lane.b32.xlu0 %v12242_v41, %s8834_s9  ;;  %v12358_v41 = vadd.f32 %v4830_v49, %v3323_v33  ;;  %v4812_v19 = vpop.f32.mrf.mxu1  ;;  %v8690_v49 = vld [vmem:[%s13519_s4 + $0x398] sm:$0xff] }
 0x877   : > { %6203 = vrot.lane.b32.xlu2 %v12278_v53, %s8839_s20  ;;  %v4813_v8 = vadd.f32 %v4812_v19, %v4784_v18  ;;  %6680 = vmatpush.bf16.msrb.mxu1 %v8690_v49  ;;  %v3329_v18 = vmax.f32 %v12329_v59, 0.0  ;;  %v4770_v19 = vadd.f32 %v12352_v16, %v11468_v44  ;;  %v8693_v59 = vld [vmem:[%s13519_s4 + $0x3b0] sm:$0xff] }
 0x879   : > { %v4831_v53 = vmax.f32 %v4813_v8, 0.0  ;;  %v6372_v8 = vld [vmem:[#allocation2 + $0xd9] sm:$0xff] }
 0x87b   : > { %v12370_v42 = vadd.f32 %v4831_v53, %v3324_v60  ;;  %v8689_v53 = vld [vmem:[%s13519_s4 + $0x390] sm:$0xff] }
 0x87c   : > { %6681 = vmatpush.bf16.msrb.mxu1 %v8689_v53 }
 0x87d   : > { %6339 = vrot.lane.b32.xlu1 %v12286_v7, %s8838_s14 }
 0x87e   : > { %6201 = vrot.lane.b32.xlu0 %v12249_v63, %s8839_s20  ;;  %8576 = vmatmul.msk.bf16.gmra.mxu2 %vm4066_vm14, %v8500_v25  ;;  %v4815_v2 = vpop.f32.mrf.mxu1  ;;  %v6323_v25 = vpack.c.bf16 %v6315_v9, %v6315_v9  ;;  %vm13908_vm14 = vcmask 585216  }
 0x87f   : > { %6341 = vrot.lane.b32.xlu2 %v12291_v1, %s8838_s14  ;;  %v4816_v63 = vadd.f32 %v4815_v2, %v11509_v13  ;;  %v6380_v2 = vpack.c.bf16 %v6372_v8, %v6372_v8  ;;  %vm13909_vm4 = vmmov %vm13908_vm14 }
 0x880   : > { %vm13910_vm9 = vmmov %vm13909_vm4 }
 0x881   : > { %v4832_v5 = vmax.f32 %v4816_v63, 0.0  ;;  %v8692_v63 = vld [vmem:[%s13519_s4 + $0x3a8] sm:$0xff]  ;;  %vm13911_vm1 = vmmov %vm13909_vm4 }
 0x882   : > { %vm13913_vm15 = vmmov %vm13911_vm1 }
 0x883   : > { %v12383_v0 = vadd.f32 %v4832_v5, %v3325_v57  ;;  %v2182_v57 = vpack.c.bf16 %v2150_v35, %v2150_v35  ;;  %v8688_v5 = vld [vmem:[%s13519_s4 + $0x388] sm:$0xff]  ;;  %vm13914_vm2 = vmmov %vm13911_vm1 }
 0x884   : > { %6682 = vmatpush.bf16.msrb.mxu1 %v8688_v5 }
 0x885   : > { %6089 = vrot.lane.b32.xlu1 %v12238_v27, %s8834_s9 }
 0x886   : > { %6287 = vrot.lane.b32.xlu0 %v12223_v21, %s8834_s9  ;;  %v4817_v27 = vpop.f32.mrf.mxu1 }
 0x887   : > { %6399 = vrot.lane.b32.xlu2 %v12271_v32, %s8839_s20  ;;  %v4818_v13 = vadd.f32 %v4817_v27, %v4789_v55 }
 0x889   : > { %v4833_v39 = vmax.f32 %v4818_v13, 0.0 }
 0x88b   : > { %v12393_v46 = vadd.f32 %v4833_v39, %v3326_v52  ;;  %v8686_v52 = vld [vmem:[%s13519_s4 + $0x378] sm:$0xff] }
 0x88d   : > { %6147 = vrot.lane.b32.xlu1 %v12205_v12, %s8838_s14 }
 0x88e   : > { %6397 = vrot.lane.b32.xlu0 %v12266_v56, %s8839_s20  ;;  %v4820_v12 = vpop.f32.mrf.mxu1 }
 0x88f   : > { %6149 = vrot.lane.b32.xlu2 %v12207_v28, %s8838_s14  ;;  %v4821_v10 = vadd.f32 %v4820_v12, %v11556_v62  ;;  %v2152_v12 = vld [vmem:[#allocation2 + $0x13a] sm:$0xff] }
 0x891   : > { %v4834_v43 = vmax.f32 %v4821_v10, 0.0  ;;  %v8685_v10 = vld [vmem:[%s13519_s4 + $0x370] sm:$0xff] }
 0x893   : > { %v12406_v28 = vadd.f32 %v4834_v43, %v3327_v47 }
 0x895   : > { %6285 = vrot.lane.b32.xlu1 %v12216_v17, %s8834_s9 }
 0x896   : > { %6095 = vrot.lane.b32.xlu0 %v12257_v34, %s8834_s9  ;;  %v8697_v34 = vld [vmem:[%s13519_s4 + $0x3d0] sm:$0xff]  ;;  %v4822_v62 = vpop.f32.mrf.mxu1 }
 0x897   : > { %6207 = vrot.lane.b32.xlu2 %v12291_v1, %s8839_s20  ;;  %6710 = vmatpush.bf16.msrb.mxu3 %v8697_v34  ;;  %v8696_v1 = vld [vmem:[%s13519_s4 + $0x3c8] sm:$0xff]  ;;  %v4823_v58 = vadd.f32 %v4822_v62, %v11563_v40  ;;  %v8695_v40 = vld [vmem:[%s13519_s4 + $0x3c0] sm:$0xff] }
 0x898   : > { %v12415_v6 = vpop.permute.xlu2 %6333  ;;  %v2155_v34 = vld [vmem:[#allocation2 + $0x15a] sm:$0xff]  ;;  %v2154_v62 = vld [vmem:[#allocation2 + $0x152] sm:$0xff] }
 0x899   : > { %v4835_v51 = vmax.f32 %v4823_v58, 0.0  ;;  %v2186_v26 = vpack.c.bf16 %v2154_v62, %v2154_v62  ;;  %v12554_v62 = vpop.f32.mrf.mxu0 }
 0x89b   : > { %6711 = vmatpush.bf16.msrb.mxu3 %v8696_v1  ;;  %v8683_v1 = vld [vmem:[%s13519_s4 + $0x360] sm:$0xff] }
 0x89d   : > { %6343 = vrot.lane.b32.xlu1 %v12300_v29, %s8838_s14 }
 0x89e   : > { %6205 = vrot.lane.b32.xlu0 %v12286_v7, %s8839_s20  ;;  %v12424_v7 = vadd.f32 %v4835_v51, %v3328_v11  ;;  %v4825_v38 = vpop.f32.mrf.mxu1 }
 0x89f   : > { %6289 = vrot.lane.b32.xlu2 %v12228_v31, %s8834_s9  ;;  %6712 = vmatpush.bf16.msrb.mxu3 %v8695_v40  ;;  %v4826_v48 = vadd.f32 %v4825_v38, %v11570_v45  ;;  %v2153_v38 = vld [vmem:[#allocation2 + $0x142] sm:$0xff] }
 0x8a0   : > { %v12429_v33 = vpop.permute.xlu2 %6391 }
 0x8a1   : > { %v4836_v4 = vmax.f32 %v4826_v48, 0.0 }
 0x8a3   : > { %v12450_v60 = vadd.f32 %v4836_v4, %v3329_v18 }
 0x8a5   : > { %6093 = vrot.lane.b32.xlu1 %v12246_v22, %s8834_s9  ;;  %v8694_v22 = vld [vmem:[%s13519_s4 + $0x3b8] sm:$0xff] }
 0x8a6   : > { %2268 = vrot.lane.b32.xlu0 %v2183_v30, %s8838_s14  ;;  %6713 = vmatpush.bf16.msrb.mxu3 %v8694_v22  ;;  %v4827_v44 = vpop.f32.mrf.mxu1 }
 0x8a7   : > { %6347 = vrot.lane.b32.xlu2 %v6324_v36, %s8838_s14 }
 0x8a8   : > { %v12448_v45 = vpop.permute.xlu2 %6141 }
 0x8aa   : > { %6714 = vmatpush.bf16.msrb.mxu3 %v8693_v59 }
 0x8ad   : > { %6151 = vrot.lane.b32.xlu1 %v12216_v17, %s8838_s14  ;;  %v4799_v17 = vadd.f32 %v11826_v23, %v4770_v19 }
 0x8ae   : > { %6345 = vrot.lane.b32.xlu0 %v6323_v25, %s8838_s14  ;;  %6715 = vmatpush.bf16.msrb.mxu3 %v8692_v63 }
 0x8af   : > { %v4828_v16 = vadd.f32 %v4827_v44, %v4799_v17  ;;  %6097 = vrot.lane.b32.xlu2 %v12266_v56, %s8834_s9  ;;  %v8687_v56 = vld [vmem:[%s13519_s4 + $0x380] sm:$0xff] }
 0x8b0   : > { %v12470_v55 = vpop.permute.xlu2 %6199  ;;  %6683 = vmatpush.bf16.msrb.mxu1 %v8687_v56 }
 0x8b1   : > { %v4837_v23 = vmax.f32 %v4828_v16, 0.0  ;;  %v6280_v27 = vpop.permute.xlu0 %6279 }
 0x8b2   : > { %6302 = vst.msk [vmem:[#allocation3 + $0x10] sm:$0xf] %vm4169_vm12, %v6280_v27  ;;  %6716 = vmatpush.bf16.msrb.mxu3 %v8691_v3 }
 0x8b3   : > { %v12472_v13 = vadd.f32 %v4837_v23, %v3330_v15 }
 0x8b4   : > { %6684 = vmatpush.bf16.msrb.mxu1 %v8686_v52 }
 0x8b5   : > { %2266 = vrot.lane.b32.xlu1 %v2182_v57, %s8838_s14 }
 0x8b6   : > { %6403 = vrot.lane.b32.xlu0 %v6380_v2, %s8839_s20 }
 0x8b7   : > { %6155 = vrot.lane.b32.xlu2 %v12228_v31, %s8838_s14  ;;  %v2184_v31 = vpack.c.bf16 %v2152_v12, %v2152_v12 }
 0x8b8   : > { %6685 = vmatpush.bf16.msrb.mxu1 %v8685_v10 }
 0x8b9   : > { %v12490_v39 = vpop.permute.xlu2 %6337  ;;  %v6390_v37 = vpop.permute.xlu0 %6389 }
 0x8bd   : > { %6291 = vrot.lane.b32.xlu1 %v12235_v14, %s8834_s9  ;;  %v8684_v14 = vld [vmem:[%s13519_s4 + $0x368] sm:$0xff] }
 0x8be   : > { %6153 = vrot.lane.b32.xlu0 %v12223_v21, %s8838_s14  ;;  %6686 = vmatpush.bf16.msrb.mxu1 %v8684_v14 }
 0x8bf   : > { %2270 = vrot.lane.b32.xlu2 %v2184_v31, %s8838_s14 }
 0x8c1   : > { %v12502_v21 = vpop.permute.xlu2 %6395 }
 0x8c2   : > { %6687 = vmatpush.bf16.msrb.mxu1 %v8683_v1 }
 0x8c5   : > { %6401 = vrot.lane.b32.xlu1 %v12297_v20, %s8839_s20  ;;  %v2187_v20 = vpack.c.bf16 %v2155_v34, %v2155_v34 }
 0x8c6   : > { %6211 = vrot.lane.b32.xlu0 %v6323_v25, %s8839_s20  ;;  %v2156_v25 = vld [vmem:[#allocation2 + $0x16a] sm:$0xff] }
 0x8c7   : > { %v6278_v47 = vpop.permute.xlu1 %6277  ;;  %2276 = vrot.lane.b32.xlu2 %v2187_v20, %s8838_s14  ;;  %v2188_v18 = vpack.c.bf16 %v2156_v25, %v2156_v25 }
 0x8c8   : > { %v6088_v43 = vpop.permute.xlu0 %6087  ;;  %6301 = vst.msk [vmem:[#allocation3 + $0x4] sm:$0xf] %vm4169_vm12, %v6278_v47 }
 0x8c9   : > { %6357 = vst.msk [vmem:[#allocation3 + $0x4] sm:$0xf] %vm4226_vm0, %v12415_v6  ;;  %v6146_v58 = vpop.permute.xlu2 %6145  ;;  %v2157_v6 = vld [vmem:[#allocation2 + $0x172] sm:$0xff] }
 0x8ca   : > { %6413 = vst.msk [vmem:[#allocation3 + $0x4] sm:$0xf] %vm4283_vm7, %v6390_v37  ;;  %v2189_v30 = vpack.c.bf16 %v2157_v6, %v2157_v6 }
 0x8cb   : > { %6110 = vst.msk [vmem:[#allocation3 + $0xc] sm:$0xf] %vm4169_vm12, %v6088_v43 }
 0x8cd   : > { %6099 = vrot.lane.b32.xlu1 %v12271_v32, %s8834_s9  ;;  %s7830_s9 = sshll.u32 %s7827_s29, 4  ;;  %s7831_s9 = int_to_ptr.hbm [resolvable:$true] %s7830_s9 }
 0x8ce   : > { %2274 = vrot.lane.b32.xlu0 %v2186_v26, %s8838_s14 }
 0x8cf   : > { %v6336_v11 = vpop.permute.xlu1 %6335 }
 0x8d0   : > { %v6198_v51 = vpop.permute.xlu0 %6197  ;;  %6358 = vst.msk [vmem:[#allocation3 + $0x10] sm:$0xf] %vm4226_vm0, %v6336_v11 }
 0x8d1   : > { %6414 = vst.msk [vmem:[#allocation3 + $0x10] sm:$0xf] %vm4283_vm7, %v12429_v33  ;;  %v8671_v61 = vld [vmem:[#allocation3 + $0x4] sm:$0xf]  ;;  %v6204_v40 = vpop.permute.xlu2 %6203  ;;  %v2185_v33 = vpack.c.bf16 %v2153_v38, %v2153_v38 }
 0x8d5   : > { %6209 = vrot.lane.b32.xlu1 %v12300_v29, %s8839_s20  ;;  %s8780_s20 = sshra.s32 %s7831_s9, 4  ;;  %s8781_s20 = int_to_ptr.hbm [resolvable:$true] %s8780_s20 }
 0x8d6   : > { %2280 = vrot.lane.b32.xlu0 %v2189_v30, %s8838_s14  ;;  %s8782_s18 = scalar_lea.hbm %s8781_s20, 64  ;;  %p8787_p0 = scmp.lt.s32.totalorder %s8781_s20, %s13521_s6 }
 0x8d7   : > { %v6086_v32 = vpop.permute.xlu1 %6085  ;;  %p8783_p11 = scmp.ne.s32.totalorder %s8781_s20, %s8782_s18  ;;  %p8788_p1 = scmp.lt.s32.totalorder %s8786_s19, %s8782_s18 }
 0x8d8   : > { %v6284_v9 = vpop.permute.xlu0 %6283  ;;  %6109 = vst.msk [vmem:[#allocation3] sm:$0xf] %vm4169_vm12, %v6086_v32  ;;  %v8457_v36 = vld [vmem:[#allocation3 + $0xc] sm:$0xf0] }
 0x8d9   : > { %6165 = vst.msk [vmem:[#allocation3] sm:$0xf] %vm4226_vm0, %v12448_v45  ;;  %v8460_v49 = vor.u32 %v8671_v61, %v8457_v36  ;;  %v6342_v29 = vpop.permute.xlu2 %6341  ;;  %p8784_p12 = pnand %p8783_p11, %p8914_p5  ;;  %p8789_p2 = por %p8788_p1, %p8787_p0 }
 0x8da   : > { %6221 = vst.msk [vmem:[#allocation3] sm:$0xf] %vm4283_vm7, %v6198_v51  ;;  %v12563_v51 = vpop.f32.mrf.mxu0 }
 0x8db   : > { %6717 = vmatmul.bf16.vlgmr.msrb.gmra.mxu3 %v8460_v49  ;;  %6304 = vst.msk [vmem:[#allocation3 + $0x28] sm:$0xf] %vm4169_vm12, %v6284_v9  ;;  %p8785_p13 = pneg %p8784_p12 }
 0x8dd   : > { %2272 = vrot.lane.b32.xlu1 %v2185_v33, %s8838_s14  ;;  %p8790_p3 = pnand %p8789_p2, %p8785_p13 }
 0x8df   : > { %v6144_v48 = vpop.permute.xlu1 %6143 }
 0x8e0   : > { %v6394_v22 = vpop.permute.xlu0 %6393  ;;  %6166 = vst.msk [vmem:[#allocation3 + $0xc] sm:$0xf] %vm4226_vm0, %v6144_v48 }
 0x8e1   : > { %6222 = vst.msk [vmem:[#allocation3 + $0xc] sm:$0xf] %vm4283_vm7, %v12470_v55  ;;  %v8455_v4 = vld [vmem:[#allocation3] sm:$0xf]  ;;  %v6400_v19 = vpop.permute.xlu2 %6399 }
 0x8e2   : > { %v12568_v36 = vpop.f32.mrf.mxu0 }
 0x8e5   : > { %2278 = vrot.lane.b32.xlu1 %v2188_v18, %s8838_s14  ;;  %s7816_s14 = scalar_lea.sflag [#allocation5], %s281_s15 }
 0x8e7   : > { %v6282_v45 = vpop.permute.xlu1 %6281 }
 0x8e8   : > { %v6092_v8 = vpop.permute.xlu0 %6091  ;;  %6303 = vst.msk [vmem:[#allocation3 + $0x1c] sm:$0xf] %vm4169_vm12, %v6282_v45  ;;  %v8672_v59 = vld [vmem:[#allocation3 + $0x8] sm:$0xf0] }
 0x8e9   : > { %6359 = vst.msk [vmem:[#allocation3 + $0x1c] sm:$0xf] %vm4226_vm0, %v12490_v39  ;;  %v8456_v53 = vor.u32 %v8672_v59, %v8455_v4  ;;  %v6150_v17 = vpop.permute.xlu2 %6149 }
 0x8ea   : > { %6415 = vst.msk [vmem:[#allocation3 + $0x1c] sm:$0xf] %vm4283_vm7, %v6394_v22  ;;  %v12575_v22 = vpop.f32.mrf.mxu0 }
 0x8eb   : > { %6688 = vmatmul.bf16.vlgmr.msrb.gmra.mxu1 %v8456_v53  ;;  %6112 = vst.msk [vmem:[#allocation3 + $0x24] sm:$0xf] %vm4169_vm12, %v6092_v8 }
 0x8ef   : > { %v6340_v35 = vpop.permute.xlu1 %6339 }
 0x8f0   : > { %v6202_v2 = vpop.permute.xlu0 %6201  ;;  %6360 = vst.msk [vmem:[#allocation3 + $0x28] sm:$0xf] %vm4226_vm0, %v6340_v35 }
 0x8f1   : > { %6416 = vst.msk [vmem:[#allocation3 + $0x28] sm:$0xf] %vm4283_vm7, %v12502_v21  ;;  %v8674_v44 = vld [vmem:[#allocation3 + $0x1c] sm:$0xf]  ;;  %v6208_v16 = vpop.permute.xlu2 %6207 }
 0x8f2   : > { %v12578_v4 = vpop.f32.mrf.mxu0 }
 0x8f7   : > { %v6090_v63 = vpop.permute.xlu1 %6089 }
 0x8f8   : > { %v6288_v57 = vpop.permute.xlu0 %6287  ;;  %6111 = vst.msk [vmem:[#allocation3 + $0x18] sm:$0xf] %vm4169_vm12, %v6090_v63  ;;  %v8469_v5 = vld [vmem:[#allocation3 + $0x24] sm:$0xf0] }
 0x8f9   : > { %6167 = vst.msk [vmem:[#allocation3 + $0x18] sm:$0xf] %vm4226_vm0, %v6146_v58  ;;  %v8472_v15 = vor.u32 %v8674_v44, %v8469_v5  ;;  %v6290_v23 = vpop.permute.xlu2 %6289 }
 0x8fa   : > { %6223 = vst.msk [vmem:[#allocation3 + $0x18] sm:$0xf] %vm4283_vm7, %v6202_v2 }
 0x8fb   : > { %6722 = vmatmul.bf16.gmra.mxu3 %v8472_v15  ;;  %6306 = vst.msk [vmem:[#allocation3 + $0x40] sm:$0xf] %vm4169_vm12, %v6288_v57 }
 0x8fc   : > { %6307 = vst.msk [vmem:[#allocation3 + $0x4c] sm:$0xf] %vm4169_vm12, %v6290_v23 }
 0x8ff   : > { %v6148_v55 = vpop.permute.xlu1 %6147 }
 0x900   : > { %v6398_v27 = vpop.permute.xlu0 %6397  ;;  %6168 = vst.msk [vmem:[#allocation3 + $0x24] sm:$0xf] %vm4226_vm0, %v6148_v55 }
 0x901   : > { %6224 = vst.msk [vmem:[#allocation3 + $0x24] sm:$0xf] %vm4283_vm7, %v6204_v40  ;;  %v8467_v3 = vld [vmem:[#allocation3 + $0x18] sm:$0xf]  ;;  %v6348_v56 = vpop.permute.xlu2 %6347 }
 0x907   : > { %v6286_v52 = vpop.permute.xlu1 %6285 }
 0x908   : > { %v6096_v39 = vpop.permute.xlu0 %6095  ;;  %6305 = vst.msk [vmem:[#allocation3 + $0x34] sm:$0xf] %vm4169_vm12, %v6286_v52  ;;  %v8675_v37 = vld [vmem:[#allocation3 + $0x20] sm:$0xf0]  ;;  %v12600_v52 = vld [vmem:[%s13520_s5 + $0x6] ss:$0 sm:$0xff] }
 0x909   : > { %6361 = vst.msk [vmem:[#allocation3 + $0x34] sm:$0xf] %vm4226_vm0, %v6342_v29  ;;  %v8468_v12 = vor.u32 %v8675_v37, %v8467_v3  ;;  %v6098_v10 = vpop.permute.xlu2 %6097 }
 0x90a   : > { %6417 = vst.msk [vmem:[#allocation3 + $0x34] sm:$0xf] %vm4283_vm7, %v6398_v27 }
 0x90b   : > { %6693 = vmatmul.bf16.gmra.mxu1 %v8468_v12  ;;  %6114 = vst.msk [vmem:[#allocation3 + $0x3c] sm:$0xf] %vm4169_vm12, %v6096_v39 }
 0x90c   : > { %6115 = vst.msk [vmem:[#allocation3 + $0x48] sm:$0xf] %vm4169_vm12, %v6098_v10 }
 0x90f   : > { %v6344_v31 = vpop.permute.xlu1 %6343 }
 0x910   : > { %v6206_v14 = vpop.permute.xlu0 %6205  ;;  %6362 = vst.msk [vmem:[#allocation3 + $0x40] sm:$0xf] %vm4226_vm0, %v6344_v31 }
 0x911   : > { %6418 = vst.msk [vmem:[#allocation3 + $0x40] sm:$0xf] %vm4283_vm7, %v6400_v19  ;;  %v8677_v21 = vld [vmem:[#allocation3 + $0x34] sm:$0xf]  ;;  %v6156_v47 = vpop.permute.xlu2 %6155 }
 0x917   : > { %v6094_v43 = vpop.permute.xlu1 %6093 }
 0x918   : > { %v2269_v34 = vpop.permute.xlu0 %2268  ;;  %6113 = vst.msk [vmem:[#allocation3 + $0x30] sm:$0xf] %vm4169_vm12, %v6094_v43  ;;  %v8481_v1 = vld [vmem:[#allocation3 + $0x3c] sm:$0xf0] }
 0x919   : > { %6169 = vst.msk [vmem:[#allocation3 + $0x30] sm:$0xf] %vm4226_vm0, %v6150_v17  ;;  %v8484_v20 = vor.u32 %v8677_v21, %v8481_v1  ;;  %v2271_v26 = vpop.permute.xlu2 %2270  ;;  %v12584_v17 = vpop.f32.mrf.mxu0 }
 0x91a   : > { %6225 = vst.msk [vmem:[#allocation3 + $0x30] sm:$0xf] %vm4283_vm7, %v6206_v14  ;;  %v6747_v21 = vpop.f32.mrf.mxu2 }
 0x91b   : > { %6727 = vmatmul.bf16.gmra.mxu3 %v8484_v20  ;;  %2344 = vst.msk [vmem:[#allocation3 + $0xfc] sm:$0xf] %vm13908_vm14, %v2269_v34  ;;  %vm13921_vm14 = vmmov %vm13919_vm11 }
 0x91c   : > { %2345 = vst.msk [vmem:[#allocation3 + $0x108] sm:$0xf] %vm13909_vm4, %v2271_v26  ;;  %vm13922_vm4 = vmmov %vm13919_vm11 }
 0x91f   : > { %v6152_v58 = vpop.permute.xlu1 %6151 }
 0x920   : > { %v6346_v11 = vpop.permute.xlu0 %6345  ;;  %6170 = vst.msk [vmem:[#allocation3 + $0x3c] sm:$0xf] %vm4226_vm0, %v6152_v58 }
 0x921   : > { %6226 = vst.msk [vmem:[#allocation3 + $0x3c] sm:$0xf] %vm4283_vm7, %v6208_v16  ;;  %v8479_v6 = vld [vmem:[#allocation3 + $0x30] sm:$0xf]  ;;  %v2277_v30 = vpop.permute.xlu2 %2276  ;;  %v12588_v16 = vpop.f32.mrf.mxu0 }
 0x922   : > { %6363 = vst.msk [vmem:[#allocation3 + $0x4c] sm:$0xf] %vm4226_vm0, %v6346_v11  ;;  %v8593_v38 = vld [vmem:[#allocation3 + $0xf8] sm:$0xf0] }
 0x923   : > { %2348 = vst.msk [vmem:[#allocation3 + $0x12c] sm:$0xf] %vm13910_vm9, %v2277_v30  ;;  %v7985_v23 = vld [vmem:[#allocation3 + $0x108] sm:$0xf]  ;;  %vm13923_vm9 = vcmask 1042432  }
 0x927   : > { %v2267_v61 = vpop.permute.xlu1 %2266 }
 0x928   : > { %v6404_v40 = vpop.permute.xlu0 %6403  ;;  %2343 = vst.msk [vmem:[#allocation3 + $0xf0] sm:$0xf] %vm13911_vm1, %v2267_v61  ;;  %v8678_v32 = vld [vmem:[#allocation3 + $0x38] sm:$0xf0] }
 0x929   : > { %v8480_v9 = vor.u32 %v8678_v32, %v8479_v6  ;;  %v12592_v3 = vpop.f32.mrf.mxu0 }
 0x92a   : > { %v8595_v37 = vld [vmem:[#allocation3 + $0x128] sm:$0xf0] }
 0x92b   : > { %6698 = vmatmul.bf16.gmra.mxu1 %v8480_v9 }
 0x92f   : > { %v6292_v49 = vpop.permute.xlu1 %6291  ;;  %v7981_v33 = vld [vmem:[#allocation3 + $0xf0] sm:$0xf] }
 0x930   : > { %v6154_v29 = vpop.permute.xlu0 %6153  ;;  %6308 = vst.msk [vmem:[#allocation3 + $0x58] sm:$0xf] %vm4169_vm12, %v6292_v49  ;;  %v7982_v48 = vor.u32 %v8593_v38, %v7981_v33 }
 0x931   : > { %6364 = vst.msk [vmem:[#allocation3 + $0x58] sm:$0xf] %vm4226_vm0, %v6348_v56  ;;  %v12595_v56 = vpop.f32.mrf.mxu0 }
 0x932   : > { %8029 = vmatmul.msk.bf16.gmra.mxu0 %vm13912_vm8, %v7982_v48  ;;  %6420 = vst.msk [vmem:[#allocation3 + $0x58] sm:$0xf] %vm4283_vm7, %v6404_v40  ;;  %v6749_v40 = vpop.f32.mrf.mxu2 }
 0x933   : > { %6171 = vst.msk [vmem:[#allocation3 + $0x48] sm:$0xf] %vm4226_vm0, %v6154_v29 }
 0x937   : > { %v6402_v25 = vpop.permute.xlu1 %6401 }
 0x938   : > { %v6212_v18 = vpop.permute.xlu0 %6211  ;;  %6419 = vst.msk [vmem:[#allocation3 + $0x4c] sm:$0xf] %vm4283_vm7, %v6402_v25 }
 0x939   : > { %v8493_v19 = vld [vmem:[#allocation3 + $0x54] sm:$0xf0] }
 0x93f   : > { %v6100_v45 = vpop.permute.xlu1 %6099  ;;  %v8680_v8 = vld [vmem:[#allocation3 + $0x4c] sm:$0xf] }
 0x940   : > { %v2275_v59 = vpop.permute.xlu0 %2274  ;;  %6116 = vst.msk [vmem:[#allocation3 + $0x54] sm:$0xf] %vm4169_vm12, %v6100_v45  ;;  %v8496_v53 = vor.u32 %v8680_v8, %v8493_v19  ;;  %vm13915_vm12 = vmmov %vm13911_vm1 }
 0x941   : > { %6172 = vst.msk [vmem:[#allocation3 + $0x54] sm:$0xf] %vm4226_vm0, %v6156_v47  ;;  %vm13916_vm0 = vmmov %vm13911_vm1  ;;  %v12604_v47 = vpop.f32.mrf.mxu0  ;;  %vm13924_vm1 = vcmask 1044480  }
 0x942   : > { %6732 = vmatmul.bf16.gmra.mxu3 %v8496_v53  ;;  %6228 = vst.msk [vmem:[#allocation3 + $0x54] sm:$0xf] %vm4283_vm7, %v6212_v18 }
 0x943   : > { %2347 = vst.msk [vmem:[#allocation3 + $0x120] sm:$0xf] %vm13913_vm15, %v2275_v59  ;;  %vm13926_vm15 = vcmask 1045504  }
 0x947   : > { %v6210_v35 = vpop.permute.xlu1 %6209 }
 0x948   : > { %v2281_v2 = vpop.permute.xlu0 %2280  ;;  %6227 = vst.msk [vmem:[#allocation3 + $0x48] sm:$0xf] %vm4283_vm7, %v6210_v35  ;;  %vm13917_vm7 = vmmov %vm13912_vm8 }
 0x949   : > { %2350 = vst.msk [vmem:[#allocation3 + $0x144] sm:$0xf] %vm13914_vm2, %v2281_v2  ;;  %v8681_v44 = vld [vmem:[#allocation3 + $0x50] sm:$0xf0]  ;;  %vm13918_vm6 = vmmov %vm13917_vm7  ;;  %v12608_v32 = vpop.f32.mrf.mxu0 }
 0x94a   : > { %v7989_v39 = vld [vmem:[#allocation3 + $0x120] sm:$0xf]  ;;  %vm13920_vm10 = vmmov %vm13918_vm6 }
 0x94b   : > { %v7990_v31 = vor.u32 %v8595_v37, %v7989_v39  ;;  %vm13925_vm8 = vmmov %vm13923_vm9 }
 0x94c   : > { %vm13927_vm2 = vmmov %vm13922_vm4 }
 0x94f   : > { %v2273_v63 = vpop.permute.xlu1 %2272  ;;  %v8491_v57 = vld [vmem:[#allocation3 + $0x48] sm:$0xf] }
 0x950   : > { %2346 = vst.msk [vmem:[#allocation3 + $0x114] sm:$0xf] %vm13915_vm12, %v2273_v63  ;;  %v8492_v5 = vor.u32 %v8681_v44, %v8491_v57  ;;  %v8596_v49 = vld [vmem:[#allocation3 + $0x140] sm:$0xf0]  ;;  %vm13928_vm12 = vmmov %vm13924_vm1 }
 0x952   : > { %6703 = vmatmul.bf16.gmra.mxu1 %v8492_v5 }
 0x957   : > { %v2279_v15 = vpop.permute.xlu1 %2278  ;;  %v8594_v55 = vld [vmem:[#allocation3 + $0x110] sm:$0xf0] }
 0x958   : > { %2349 = vst.msk [vmem:[#allocation3 + $0x138] sm:$0xf] %vm13916_vm0, %v2279_v15  ;;  %v7986_v27 = vor.u32 %v8594_v55, %v7985_v23  ;;  %v12631_v23 = vpop.f32.mrf.mxu0  ;;  %vm13929_vm0 = vmmov %vm13926_vm15 }
 0x95a   : > { %8030 = vmatmul.msk.bf16.gmra.mxu0 %vm13917_vm7, %v7986_v27  ;;  %vm13930_vm7 = vmmov %vm13925_vm8 }
 0x95e   : > { %v6718_v12 = vpop.f32.mrf.mxu3 }
 0x95f   : > { %v7993_v25 = vld [vmem:[#allocation3 + $0x138] sm:$0xf] }
 0x960   : > { %v7994_v18 = vor.u32 %v8596_v49, %v7993_v25 }
 0x966   : > { %v6720_v11 = vpop.f32.mrf.mxu3 }
 0x968   : > { %v6689_v10 = vpop.f32.mrf.mxu1 }
 0x969   : > { %v6690_v14 = vadd.f32 %v12600_v52, %v6689_v10 }
 0x96a   : > { %8031 = vmatmul.msk.bf16.gmra.mxu0 %vm13918_vm6, %v7990_v31  ;;  %vm13931_vm6 = vmmov %vm13927_vm2 }
 0x96b   : > { %v6719_v43 = vadd.f32 %v6718_v12, %v6690_v14 }
 0x96d   : > { %v6748_v34 = vadd.f32 %v6747_v21, %v6719_v43 }
 0x96f   : > { %v6767_v1 = vmax.f32 %v6748_v34, 0.0 }
 0x970   : > { %v6691_v20 = vpop.f32.mrf.mxu1 }
 0x971   : > { %v6775_v26 = vadd.f32 %v6767_v1, %v12358_v41  ;;  %v6692_v58 = vadd.f32 %v12600_v52, %v6691_v20  ;;  %v12613_v41 = vld [vmem:[%s13520_s5] ss:$0 sm:$0xff] }
 0x972   : > { %v2568_v63 = vadd.f32 %v12613_v41, %v12554_v62  ;;  %v12636_v12 = vadd.f32 %v12613_v41, %v12563_v51 }
 0x973   : > { %v6783_v6 = vmul.f32 0.75, %v6775_v26  ;;  %v6791_v30 = vmul.f32 0.25, %v6775_v26  ;;  %v6721_v61 = vadd.f32 %v6720_v11, %v6692_v58 }
 0x974   : > { %v2647_v37 = vmax.f32 %v2568_v63, 0.0 }
 0x975   : > { %v6798_v9 = vadd.f32 %v6791_v30, %v6783_v6  ;;  %v6750_v38 = vadd.f32 %v6749_v40, %v6721_v61 }
 0x977   : > { %v6831_v33 = vrot.slane %v6798_v9, 7  ;;  %v6879_v29 = vrot.slane %v6798_v9, 1  ;;  %v6768_v48 = vmax.f32 %v6750_v38, 0.0  ;;  %v6927_v59 = vmul.f32 0.75, %v6798_v9 }
 0x979   : > { %v6863_v19 = vsel %vm3785_vm5, %v6798_v9, %v6831_v33  ;;  %v6911_v45 = vsel %vm13919_vm11, %v6879_v29, %v6798_v9  ;;  %v6776_v8 = vadd.f32 %v6768_v48, %v12370_v42  ;;  %vm13932_vm11 = vmmov %vm13924_vm1 }
 0x97a   : > { %v6943_v53 = vmul.f32 0.25, %v6863_v19  ;;  %v6975_v35 = vmul.f32 0.25, %v6911_v45  ;;  %8032 = vmatmul.msk.bf16.gmra.mxu0 %vm13920_vm10, %v7994_v18  ;;  %vm13933_vm10 = vmmov %vm13929_vm0 }
 0x97b   : > { %v12619_v2 = vmul.f32 0.75, %v6776_v8  ;;  %v12621_v44 = vmul.f32 0.25, %v6776_v8 }
 0x97c   : > { %v12625_v57 = vadd.f32 %v6943_v53, %v6927_v59  ;;  %v12627_v5 = vadd.f32 %v6975_v35, %v6927_v59 }
 0x97d   : > { %v6799_v15 = vadd.f32 %v6791_v30, %v12619_v2  ;;  %v6807_v42 = vadd.f32 %v12621_v44, %v6783_v6 }
 0x97e   : > { %v7023_v39 = vrot.slane %v12627_v5, 7  ;;  %v7071_v62 = vrot.slane %v12625_v57, 7  ;;  %v7103_v10 = vrot.slane %v12627_v5, 6  ;;  %v7135_v26 = vrot.slane %v12625_v57, 6  ;;  %v6723_v35 = vpop.f32.mrf.mxu3 }
 0x97f   : > { %v6832_v55 = vrot.slane %v6807_v42, 7  ;;  %v6880_v27 = vrot.slane %v6807_v42, 1  ;;  %v6833_v31 = vrot.slane %v6799_v15, 7  ;;  %v6881_v21 = vrot.slane %v6799_v15, 1 }
 0x980   : > { %v6928_v34 = vmul.f32 0.75, %v6807_v42  ;;  %v6929_v58 = vmul.f32 0.75, %v6799_v15  ;;  %v7487_v51 = vsel %vm3785_vm5, %v12625_v57, %v7023_v39  ;;  %v7263_v11 = vrot.slane %v12625_v57, 4  ;;  %v12669_v39 = vpop.f32.mrf.mxu0 }
 0x981   : > { %v6864_v14 = vsel %vm3785_vm5, %v6807_v42, %v6832_v55  ;;  %v6912_v43 = vsel %vm13921_vm14, %v6880_v27, %v6807_v42  ;;  %v7295_v6 = vrot.slane %v12627_v5, 3  ;;  %v7167_v40 = vrot.slane %v12627_v5, 5  ;;  %vm13934_vm14 = vmmov %vm13930_vm7 }
 0x982   : > { %v6944_v1 = vmul.f32 0.25, %v6864_v14  ;;  %v6976_v20 = vmul.f32 0.25, %v6912_v43  ;;  %v7199_v9 = vrot.slane %v12625_v57, 5  ;;  %v6865_v38 = vsel %vm3785_vm5, %v6799_v15, %v6833_v31 }
 0x983   : > { %v6913_v49 = vsel %vm13922_vm4, %v6881_v21, %v6799_v15  ;;  %v7503_v33 = vsel %vm4014_vm3, %v7487_v51, %v7071_v62  ;;  %v7327_v29 = vrot.slane %v12625_v57, 3  ;;  %v7231_v48 = vrot.slane %v12627_v5, 4  ;;  %v6752_v21 = vpop.f32.mrf.mxu2  ;;  %vm13935_vm4 = vmmov %vm13927_vm2 }
 0x984   : > { %v12647_v30 = vadd.f32 %v6944_v1, %v6928_v34  ;;  %v12649_v61 = vadd.f32 %v6976_v20, %v6928_v34  ;;  %v7519_v25 = vsel %vm13923_vm9, %v7503_v33, %v7103_v10  ;;  %v7359_v18 = vrot.slane %v12627_v5, 2  ;;  %vm13936_vm9 = vmmov %vm13927_vm2 }
 0x985   : > { %v7599_v19 = vsel %vm3785_vm5, %v7263_v11, %v7295_v6  ;;  %v7535_v45 = vsel %vm2554_vm13, %v7519_v25, %v7135_v26  ;;  %v7391_v8 = vrot.slane %v12625_v57, 2  ;;  %v7423_v42 = vrot.slane %v12627_v5, 1 }
 0x986   : > { %v7615_v59 = vsel %vm4014_vm3, %v7599_v19, %v7327_v29  ;;  %v7024_v53 = vrot.slane %v12649_v61, 7  ;;  %v7551_v15 = vsel %vm13924_vm1, %v7535_v45, %v7167_v40  ;;  %v7072_v27 = vrot.slane %v12647_v30, 7 }
 0x987   : > { %v7631_v55 = vsel %vm13925_vm8, %v7615_v59, %v7359_v18  ;;  %v6945_v62 = vmul.f32 0.25, %v6865_v38  ;;  %v7567_v31 = vsel %vm13926_vm15, %v7551_v15, %v7199_v9  ;;  %v6977_v43 = vmul.f32 0.25, %v6913_v49  ;;  %vm13937_vm8 = vmmov %vm13930_vm7 }
 0x988   : > { %v6694_v63 = vpop.f32.mrf.mxu1  ;;  %v7647_v14 = vsel %vm2554_vm13, %v7631_v55, %v7391_v8  ;;  %v7583_v34 = vsel %vm13927_vm2, %v7567_v31, %v7231_v48  ;;  %v7455_v1 = vrot.slane %v12625_v57, 1  ;;  %v7104_v11 = vrot.slane %v12649_v61, 6  ;;  %vm13938_vm15 = vmmov %vm13929_vm0 }
 0x989   : > { %v6695_v10 = vadd.f32 %v12600_v52, %v6694_v63  ;;  %v7663_v20 = vsel %vm13928_vm12, %v7647_v14, %v7423_v42  ;;  %v7711_v51 = vadd.f32 %v7583_v34, %v2647_v37  ;;  %v7488_v6 = vsel %vm3785_vm5, %v12647_v30, %v7024_v53  ;;  %vm13939_vm12 = vmmov %vm13924_vm1 }
 0x98a   : > { %v7136_v40 = vrot.slane %v12647_v30, 6  ;;  %v7504_v9 = vsel %vm4014_vm3, %v7488_v6, %v7072_v27  ;;  %v7264_v38 = vrot.slane %v12647_v30, 4  ;;  %v7296_v49 = vrot.slane %v12649_v61, 3  ;;  %v6725_v27 = vpop.f32.mrf.mxu3 }
 0x98b   : > { %v6724_v26 = vadd.f32 %v6723_v35, %v6695_v10  ;;  %7743 = vxpose.xlu2.b32.start [1/16] (narrow) %v7711_v51, 32  ;;  %v7679_v57 = vsel %vm13929_vm0, %v7663_v20, %v7455_v1  ;;  %v7520_v29 = vsel %vm13930_vm7, %v7504_v9, %v7104_v11  ;;  %v7328_v37 = vrot.slane %v12647_v30, 3  ;;  %vm13940_vm0 = vmmov %vm13930_vm7 }
 0x98c   : > { %v12687_v48 = vadd.f32 %v6977_v43, %v6929_v58  ;;  %v7536_v25 = vsel %vm2554_vm13, %v7520_v29, %v7136_v40  ;;  %v7168_v19 = vrot.slane %v12649_v61, 5  ;;  %v7600_v45 = vsel %vm3785_vm5, %v7264_v38, %v7296_v49  ;;  %v6754_v43 = vpop.f32.mrf.mxu2  ;;  %vm13941_vm7 = vmmov %vm13927_vm2 }
 0x98d   : > { %v6753_v33 = vadd.f32 %v6752_v21, %v6724_v26  ;;  %v2648_v8 = vmax.f32 %v12636_v12, 0.0  ;;  %v12693_v59 = vadd.f32 %v6945_v62, %v6929_v58  ;;  %v7695_v35 = vsel %vm13931_vm6, %v7679_v57, %v12627_v5  ;;  %v12704_v58 = vpop.f32.mrf.mxu0  ;;  %vm13942_vm6 = vmmov %vm13933_vm10 }
 0x98e   : > { %v7552_v42 = vsel %vm13932_vm11, %v7536_v25, %v7168_v19  ;;  %v7616_v55 = vsel %vm4014_vm3, %v7600_v45, %v7328_v37  ;;  %v7200_v10 = vrot.slane %v12647_v30, 5  ;;  %v7360_v31 = vrot.slane %v12649_v61, 2  ;;  %vm13943_vm11 = vmmov %vm13927_vm2 }
 0x98f   : > { %v6769_v18 = vmax.f32 %v6753_v33, 0.0  ;;  %v7025_v12 = vrot.slane %v12687_v48, 7  ;;  %v7712_v21 = vadd.f32 %v7695_v35, %v2648_v8  ;;  %v7392_v1 = vrot.slane %v12647_v30, 2 }
 0x990   : > { %v6696_v53 = vpop.f32.mrf.mxu1  ;;  %v7568_v34 = vsel %vm13933_vm10, %v7552_v42, %v7200_v10  ;;  %v7632_v20 = vsel %vm13934_vm14, %v7616_v55, %v7360_v31  ;;  %v7073_v6 = vrot.slane %v12693_v59, 7  ;;  %v7232_v40 = vrot.slane %v12649_v61, 4  ;;  %vm13944_vm10 = vmmov %vm13924_vm1 }
 0x991   : > { %v6777_v63 = vadd.f32 %v6769_v18, %v12383_v0  ;;  %v6697_v15 = vadd.f32 %v12600_v52, %v6696_v53  ;;  %v2573_v0 = vadd.f32 %v12613_v41, %v12568_v36  ;;  %v7489_v36 = vsel %vm3785_vm5, %v12693_v59, %v7025_v12  ;;  %vm13945_vm14 = vmmov %vm13940_vm0 }
 0x992   : > { %v7648_v49 = vsel %vm2554_vm13, %v7632_v20, %v7392_v1  ;;  %v7424_v29 = vrot.slane %v12649_v61, 1  ;;  %v7105_v25 = vrot.slane %v12687_v48, 6  ;;  %v7505_v18 = vsel %vm4014_vm3, %v7489_v36, %v7073_v6 }
 0x993   : > { %v6785_v62 = vmul.f32 0.75, %v6777_v63  ;;  %v6793_v14 = vmul.f32 0.25, %v6777_v63  ;;  %v6726_v5 = vadd.f32 %v6725_v27, %v6697_v15  ;;  %7744 = vxpose.xlu2.b32.cont [2/16] (narrow) %v7712_v21, 32  ;;  %v2649_v33 = vmax.f32 %v2573_v0, 0.0 }
 0x994   : > { %v7664_v45 = vsel %vm13924_vm1, %v7648_v49, %v7424_v29  ;;  %v7265_v8 = vrot.slane %v12693_v59, 4  ;;  %v7297_v53 = vrot.slane %v12687_v48, 3  ;;  %v7456_v15 = vrot.slane %v12647_v30, 1 }
 0x995   : > { %v12712_v26 = vadd.f32 %v12621_v44, %v6785_v62  ;;  %v6808_v51 = vadd.f32 %v6793_v14, %v12619_v2  ;;  %v6755_v11 = vadd.f32 %v6754_v43, %v6726_v5  ;;  %v7584_v44 = vsel %vm13935_vm4, %v7568_v34, %v7232_v40  ;;  %v12735_v12 = vpop.f32.mrf.mxu0  ;;  %vm13946_vm4 = vmmov %vm13942_vm6 }
 0x996   : > { %v7713_v63 = vadd.f32 %v7584_v44, %v2649_v33  ;;  %v7329_v42 = vrot.slane %v12693_v59, 3  ;;  %v2575_v55 = vadd.f32 %v12613_v41, %v12575_v22  ;;  %v7521_v31 = vsel %vm13937_vm8, %v7505_v18, %v7105_v25  ;;  %vm13948_vm8 = vmmov %vm13940_vm0 }
 0x997   : > { %v6834_v9 = vrot.slane %v6808_v51, 7  ;;  %v6882_v38 = vrot.slane %v6808_v51, 1  ;;  %v6770_v57 = vmax.f32 %v6755_v11, 0.0  ;;  %v6930_v27 = vmul.f32 0.75, %v6808_v51 }
 0x998   : > { %v7137_v30 = vrot.slane %v12693_v59, 6  ;;  %v7601_v43 = vsel %vm3785_vm5, %v7265_v8, %v7297_v53  ;;  %v7169_v6 = vrot.slane %v12687_v48, 5  ;;  %v7361_v40 = vrot.slane %v12687_v48, 2 }
 0x999   : > { %v6866_v2 = vsel %vm3785_vm5, %v6808_v51, %v6834_v9  ;;  %v6914_v37 = vsel %vm13936_vm9, %v6882_v38, %v6808_v51  ;;  %v6778_v35 = vadd.f32 %v6770_v57, %v12393_v46  ;;  %v7680_v46 = vsel %vm13938_vm15, %v7664_v45, %v7456_v15  ;;  %vm13947_vm9 = vmmov %vm13927_vm2 }
 0x99a   : > { %v6978_v19 = vmul.f32 0.25, %v6914_v37  ;;  %v6946_v10 = vmul.f32 0.25, %v6866_v2  ;;  %v7537_v1 = vsel %vm2554_vm13, %v7521_v31, %v7137_v30  ;;  %v7617_v20 = vsel %vm4014_vm3, %v7601_v43, %v7329_v42  ;;  %vm13949_vm15 = vmmov %vm13946_vm4 }
 0x99b   : > { %v12737_v5 = vmul.f32 0.75, %v6778_v35  ;;  %v12739_v21 = vmul.f32 0.25, %v6778_v35  ;;  %7745 = vxpose.xlu2.b32.cont [3/16] (narrow) %v7713_v63, 32  ;;  %v7696_v11 = vsel %vm13927_vm2, %v7680_v46, %v12649_v61  ;;  %v2650_v36 = vmax.f32 %v2575_v55, 0.0 }
 0x99c   : > { %v12743_v0 = vadd.f32 %v6978_v19, %v6930_v27  ;;  %v12754_v51 = vadd.f32 %v6946_v10, %v6930_v27  ;;  %v7201_v9 = vrot.slane %v12693_v59, 5  ;;  %v7553_v38 = vsel %vm13939_vm12, %v7537_v1, %v7169_v6  ;;  %v6757_v1 = vpop.f32.mrf.mxu2  ;;  %vm13950_vm12 = vmmov %vm13927_vm2 }
 0x99d   : > { %v12747_v22 = vadd.f32 %v6793_v14, %v12737_v5  ;;  %v12750_v34 = vadd.f32 %v12739_v21, %v6785_v62  ;;  %v6883_v14 = vrot.slane %v12712_v26, 1  ;;  %v2578_v62 = vadd.f32 %v12613_v41, %v12578_v4  ;;  %v12782_v53 = vpop.f32.mrf.mxu0 }
 0x99e   : > { %v7633_v49 = vsel %vm13940_vm0, %v7617_v20, %v7361_v40  ;;  %v6835_v33 = vrot.slane %v12712_v26, 7  ;;  %v7714_v57 = vadd.f32 %v7696_v11, %v2650_v36  ;;  %v7393_v61 = vrot.slane %v12693_v59, 2  ;;  %v6728_v42 = vpop.f32.mrf.mxu3  ;;  %vm13951_vm0 = vmmov %vm13924_vm1 }
 0x99f   : > { %v7026_v44 = vrot.slane %v12743_v0, 7  ;;  %v7074_v29 = vrot.slane %v12754_v51, 7  ;;  %v6915_v2 = vsel %vm13941_vm7, %v6883_v14, %v12712_v26  ;;  %v7569_v4 = vsel %vm13942_vm6, %v7553_v38, %v7201_v9  ;;  %vm13952_vm7 = vmmov %vm13948_vm8 }
 0x9a0   : > { %v7649_v37 = vsel %vm2554_vm13, %v7633_v49, %v7393_v61  ;;  %v2651_v25 = vmax.f32 %v2578_v62, 0.0  ;;  %v7233_v18 = vrot.slane %v12687_v48, 4  ;;  %v7425_v19 = vrot.slane %v12687_v48, 1  ;;  %vm13953_vm6 = vmmov %vm13946_vm4 }
 0x9a1   : > { %v2580_v45 = vadd.f32 %v12613_v41, %v12584_v17  ;;  %v12780_v8 = vadd.f32 %v12613_v41, %v12588_v16  ;;  %v6867_v35 = vsel %vm3785_vm5, %v12712_v26, %v6835_v33  ;;  %v7490_v63 = vsel %vm3785_vm5, %v12754_v51, %v7026_v44 }
 0x9a2   : > { %v6979_v15 = vmul.f32 0.25, %v6915_v2  ;;  %v7585_v27 = vsel %vm13943_vm11, %v7569_v4, %v7233_v18  ;;  %v7665_v10 = vsel %vm13944_vm10, %v7649_v37, %v7425_v19  ;;  %v7506_v17 = vsel %vm4014_vm3, %v7490_v63, %v7074_v29  ;;  %vm13954_vm11 = vmmov %vm13927_vm2 }
 0x9a3   : > { %7746 = vxpose.xlu2.b32.cont [4/16] (narrow) %v7714_v57, 32  ;;  %v7106_v31 = vrot.slane %v12743_v0, 6  ;;  %v7266_v46 = vrot.slane %v12754_v51, 4  ;;  %v7298_v30 = vrot.slane %v12743_v0, 3  ;;  %v12797_v43 = vadd.f32 %v12613_v41, %v12592_v3  ;;  %vm13955_vm10 = vmmov %vm13927_vm2 }
 0x9a4   : > { %v6931_v20 = vmul.f32 0.75, %v12712_v26  ;;  %v6947_v11 = vmul.f32 0.25, %v6867_v35  ;;  %v7457_v6 = vrot.slane %v12693_v59, 1  ;;  %v12803_v40 = vadd.f32 %v12613_v41, %v12595_v56 }
 0x9a5   : > { %v7715_v14 = vadd.f32 %v7585_v27, %v2651_v25  ;;  %v7522_v62 = vsel %vm13945_vm14, %v7506_v17, %v7106_v31  ;;  %v7138_v3 = vrot.slane %v12754_v51, 6  ;;  %v7330_v49 = vrot.slane %v12754_v51, 3  ;;  %vm13956_vm14 = vmmov %vm13951_vm0 }
 0x9a6   : > { %v12806_v9 = vadd.f32 %v6979_v15, %v6931_v20  ;;  %v7681_v38 = vsel %vm13946_vm4, %v7665_v10, %v7457_v6  ;;  %v7602_v59 = vsel %vm3785_vm5, %v7266_v46, %v7298_v30  ;;  %v2652_v33 = vmax.f32 %v2580_v45, 0.0  ;;  %v2607_v45 = vpop.f32.mrf.mxu0  ;;  %v6759_v30 = vpop.f32.mrf.mxu2  ;;  %vm13957_vm4 = vmmov %vm13952_vm7 }
 0x9a7   : > { %v12814_v56 = vadd.f32 %v12613_v41, %v12604_v47  ;;  %v12816_v57 = vadd.f32 %v6947_v11, %v6931_v20  ;;  %v7538_v61 = vsel %vm2554_vm13, %v7522_v62, %v7138_v3  ;;  %v2653_v44 = vmax.f32 %v12780_v8, 0.0 }
 0x9a8   : > { %v6699_v55 = vpop.f32.mrf.mxu1  ;;  %v7697_v2 = vsel %vm13947_vm9, %v7681_v38, %v12687_v48  ;;  %v7170_v4 = vrot.slane %v12743_v0, 5  ;;  %v2654_v37 = vmax.f32 %v12797_v43, 0.0  ;;  %v2655_v25 = vmax.f32 %v12803_v40, 0.0  ;;  %vm13958_vm9 = vmmov %vm13953_vm6 }
 0x9a9   : > { %v6700_v16 = vadd.f32 %v12600_v52, %v6699_v55  ;;  %v7618_v47 = vsel %vm4014_vm3, %v7602_v59, %v7330_v49  ;;  %v7027_v19 = vrot.slane %v12806_v9, 7  ;;  %v7362_v48 = vrot.slane %v12743_v0, 2 }
 0x9aa   : > { %v7554_v63 = vsel %vm13924_vm1, %v7538_v61, %v7170_v4  ;;  %v2656_v15 = vmax.f32 %v12814_v56, 0.0  ;;  %v7716_v55 = vadd.f32 %v7697_v2, %v2652_v33  ;;  %v7202_v27 = vrot.slane %v12754_v51, 5  ;;  %vm13959_vm1 = vmmov %vm13957_vm4 }
 0x9ab   : > { %v6729_v36 = vadd.f32 %v6728_v42, %v6700_v16  ;;  %7747 = vxpose.xlu2.b32.cont [5/16] (narrow) %v7715_v14, 32  ;;  %v6730_v42 = vpop.f32.mrf.mxu3  ;;  %v7075_v10 = vrot.slane %v12816_v57, 7  ;;  %v7634_v46 = vsel %vm13948_vm8, %v7618_v47, %v7362_v48  ;;  %v7394_v20 = vrot.slane %v12754_v51, 2  ;;  %vm13960_vm8 = vmmov %vm13927_vm2 }
 0x9ac   : > { %v7491_v11 = vsel %vm3785_vm5, %v12816_v57, %v7027_v19  ;;  %v7234_v62 = vrot.slane %v12743_v0, 4  ;;  %v6836_v38 = vrot.slane %v12750_v34, 7  ;;  %v6884_v3 = vrot.slane %v12750_v34, 1 }
 0x9ad   : > { %v6758_v26 = vadd.f32 %v6757_v1, %v6729_v36  ;;  %v7570_v1 = vsel %vm13949_vm15, %v7554_v63, %v7202_v27  ;;  %v7426_v49 = vrot.slane %v12743_v0, 1  ;;  %v7267_v2 = vrot.slane %v12816_v57, 4  ;;  %vm13961_vm15 = vmmov %vm13927_vm2 }
 0x9ae   : > { %v7586_v61 = vsel %vm13927_vm2, %v7570_v1, %v7234_v62  ;;  %v7299_v4 = vrot.slane %v12806_v9, 3  ;;  %v7458_v19 = vrot.slane %v12754_v51, 1  ;;  %v7139_v27 = vrot.slane %v12816_v57, 6  ;;  %v2609_v1 = vpop.f32.mrf.mxu0  ;;  %vm13962_vm2 = vmmov %vm13951_vm0 }
 0x9af   : > { %v6771_v29 = vmax.f32 %v6758_v26, 0.0  ;;  %v7650_v26 = vsel %vm2554_vm13, %v7634_v46, %v7394_v20  ;;  %v6868_v20 = vsel %vm3785_vm5, %v12750_v34, %v6836_v38 }
 0x9b0   : > { %v6701_v18 = vpop.f32.mrf.mxu1 }
 0x9b1   : > { %v6779_v35 = vadd.f32 %v6771_v29, %v12406_v28  ;;  %v6702_v8 = vadd.f32 %v12600_v52, %v6701_v18  ;;  %v12836_v28 = vadd.f32 %v12613_v41, %v2607_v45  ;;  %v7107_v29 = vrot.slane %v12806_v9, 6 }
 0x9b2   : > { %v7666_v45 = vsel %vm13951_vm0, %v7650_v26, %v7426_v49 }
 0x9b3   : > { %v6787_v17 = vmul.f32 0.75, %v6779_v35  ;;  %v6795_v16 = vmul.f32 0.25, %v6779_v35  ;;  %v6731_v31 = vadd.f32 %v6730_v42, %v6702_v8  ;;  %7748 = vxpose.xlu2.b32.cont [6/16] (narrow) %v7716_v55, 32  ;;  %v7717_v55 = vadd.f32 %v7586_v61, %v2653_v44 }
 0x9b4   : > { %v7682_v51 = vsel %vm13953_vm6, %v7666_v45, %v7458_v19  ;;  %v12890_v61 = vadd.f32 %v12613_v41, %v2609_v1 }
 0x9b5   : > { %v6802_v6 = vadd.f32 %v12739_v21, %v6787_v17  ;;  %v12844_v36 = vadd.f32 %v6795_v16, %v12737_v5  ;;  %v6760_v14 = vadd.f32 %v6759_v30, %v6731_v31  ;;  %v7507_v21 = vsel %vm4014_vm3, %v7491_v11, %v7075_v10 }
 0x9b6   : > { %v7523_v48 = vsel %vm13952_vm7, %v7507_v21, %v7107_v29  ;;  %v7331_v10 = vrot.slane %v12816_v57, 3  ;;  %v7603_v30 = vsel %vm3785_vm5, %v7267_v2, %v7299_v4  ;;  %v6948_v29 = vmul.f32 0.25, %v6868_v20  ;;  %vm13965_vm7 = vmmov %vm13960_vm8 }
 0x9b7   : > { %v6839_v59 = vrot.slane %v6802_v6, 7  ;;  %v6887_v33 = vrot.slane %v6802_v6, 1  ;;  %v6772_v5 = vmax.f32 %v6760_v14, 0.0  ;;  %v6935_v35 = vmul.f32 0.75, %v6802_v6 }
 0x9b8   : > { %v7539_v44 = vsel %vm2554_vm13, %v7523_v48, %v7139_v27  ;;  %v7171_v14 = vrot.slane %v12806_v9, 5  ;;  %v2664_v43 = vmax.f32 %v12890_v61, 0.0 }
 0x9b9   : > { %v6871_v18 = vsel %vm3785_vm5, %v6802_v6, %v6839_v59  ;;  %v6919_v47 = vsel %vm13950_vm12, %v6887_v33, %v6802_v6  ;;  %v6780_v42 = vadd.f32 %v6772_v5, %v12424_v7  ;;  %v6916_v6 = vsel %vm13954_vm11, %v6884_v3, %v12750_v34  ;;  %vm13963_vm12 = vmmov %vm13951_vm0 }
 0x9ba   : > { %v6951_v8 = vmul.f32 0.25, %v6871_v18  ;;  %v6983_v63 = vmul.f32 0.25, %v6919_v47  ;;  %v7698_v59 = vsel %vm13955_vm10, %v7682_v51, %v12743_v0  ;;  %v7619_v33 = vsel %vm4014_vm3, %v7603_v30, %v7331_v10  ;;  %vm13964_vm0 = vmmov %vm13953_vm6 }
 0x9bb   : > { %v12872_v11 = vmul.f32 0.75, %v6780_v42  ;;  %v12874_v7 = vmul.f32 0.25, %v6780_v42  ;;  %7749 = vxpose.xlu2.b32.cont [7/16] (narrow) %v7717_v55, 32  ;;  %v7555_v3 = vsel %vm13956_vm14, %v7539_v44, %v7171_v14  ;;  %v7363_v5 = vrot.slane %v12806_v9, 2  ;;  %vm13966_vm6 = vmmov %vm13964_vm0 }
 0x9bc   : > { %v12864_v31 = vadd.f32 %v6951_v8, %v6935_v35  ;;  %v12866_v46 = vadd.f32 %v6983_v63, %v6935_v35  ;;  %v6980_v2 = vmul.f32 0.25, %v6916_v6  ;;  %v7718_v0 = vadd.f32 %v7698_v59, %v2654_v37  ;;  %v2612_v6 = vpop.f32.mrf.mxu0  ;;  %vm13967_vm11 = vmmov %vm13965_vm7 }
 0x9bd   : > { %v12883_v26 = vadd.f32 %v6795_v16, %v12872_v11  ;;  %v6811_v38 = vadd.f32 %v12874_v7, %v6787_v17  ;;  %v6932_v16 = vmul.f32 0.75, %v12750_v34  ;;  %v7203_v17 = vrot.slane %v12816_v57, 5  ;;  %vm13968_vm10 = vmmov %vm13959_vm1 }
 0x9be   : > { %v7031_v62 = vrot.slane %v12866_v46, 7  ;;  %v7079_v49 = vrot.slane %v12864_v31, 7  ;;  %v7635_v47 = vsel %vm13957_vm4, %v7619_v33, %v7363_v5  ;;  %v7111_v35 = vrot.slane %v12866_v46, 6  ;;  %vm13969_vm14 = vmmov %vm13962_vm2 }
 0x9bf   : > { %v6888_v4 = vrot.slane %v6811_v38, 1  ;;  %v6840_v19 = vrot.slane %v6811_v38, 7  ;;  %v7571_v45 = vsel %vm13958_vm9, %v7555_v3, %v7203_v17  ;;  %v7395_v8 = vrot.slane %v12816_v57, 2  ;;  %vm13970_vm4 = vmmov %vm13964_vm0 }
 0x9c0   : > { %v7495_v21 = vsel %vm3785_vm5, %v12864_v31, %v7031_v62  ;;  %v12907_v34 = vadd.f32 %v12613_v41, %v12608_v32  ;;  %v2663_v63 = vmax.f32 %v12836_v28, 0.0  ;;  %v7235_v37 = vrot.slane %v12806_v9, 4  ;;  %vm13971_vm9 = vmmov %vm13959_vm1 }
 0x9c1   : > { %v7511_v18 = vsel %vm4014_vm3, %v7495_v21, %v7079_v49  ;;  %v12912_v48 = vadd.f32 %v6948_v29, %v6932_v16  ;;  %v7143_v42 = vrot.slane %v12864_v31, 6  ;;  %v7651_v27 = vsel %vm2554_vm13, %v7635_v47, %v7395_v8 }
 0x9c2   : > { %v7527_v55 = vsel %vm13959_vm1, %v7511_v18, %v7111_v35  ;;  %v12917_v10 = vadd.f32 %v6980_v2, %v6932_v16  ;;  %v6920_v32 = vsel %vm13960_vm8, %v6888_v4, %v6811_v38  ;;  %v7587_v51 = vsel %vm13961_vm15, %v7571_v45, %v7235_v37  ;;  %vm13972_vm1 = vmmov %vm13965_vm7 }
 0x9c3   : > { %7750 = vxpose.xlu2.b32.cont [8/16] (narrow) %v7718_v0, 32  ;;  %v7427_v28 = vrot.slane %v12806_v9, 1  ;;  %v6872_v30 = vsel %vm3785_vm5, %v6811_v38, %v6840_v19  ;;  %v7175_v1 = vrot.slane %v12866_v46, 5  ;;  %v7543_v20 = vsel %vm2554_vm13, %v7527_v55, %v7143_v42  ;;  %vm13973_vm8 = vmmov %vm13962_vm2 }
 0x9c4   : > { %v7459_v44 = vrot.slane %v12816_v57, 1  ;;  %v7207_v14 = vrot.slane %v12864_v31, 5  ;;  %v7271_v49 = vrot.slane %v12864_v31, 4  ;;  %v7303_v59 = vrot.slane %v12866_v46, 3  ;;  %vm13974_vm15 = vmmov %vm13972_vm1 }
 0x9c5   : > { %v7667_v62 = vsel %vm13962_vm2, %v7651_v27, %v7427_v28  ;;  %v6984_v33 = vmul.f32 0.25, %v6920_v32  ;;  %v7239_v3 = vrot.slane %v12866_v46, 4  ;;  %v7559_v21 = vsel %vm13963_vm12, %v7543_v20, %v7175_v1  ;;  %v6733_v27 = vpop.f32.mrf.mxu3  ;;  %vm13975_vm2 = vmmov %vm13964_vm0 }
 0x9c6   : > { %v7335_v5 = vrot.slane %v12864_v31, 3  ;;  %v6952_v16 = vmul.f32 0.25, %v6872_v30  ;;  %v7719_v57 = vadd.f32 %v7587_v51, %v2655_v25  ;;  %v7575_v29 = vsel %vm13964_vm0, %v7559_v21, %v7207_v14  ;;  %vm13976_vm12 = vmmov %vm13971_vm9 }
 0x9c7   : > { %v7028_v2 = vrot.slane %v12917_v10, 7  ;;  %v6936_v17 = vmul.f32 0.75, %v6811_v38  ;;  %v7591_v4 = vsel %vm13965_vm7, %v7575_v29, %v7239_v3  ;;  %v7683_v0 = vsel %vm13966_vm6, %v7667_v62, %v7459_v44  ;;  %v6762_v62 = vpop.f32.mrf.mxu2  ;;  %v12967_v3 = vpop.f32.mrf.mxu0  ;;  %vm13977_vm0 = vmmov %vm13972_vm1 }
 0x9c8   : > { %v7076_v18 = vrot.slane %v12912_v48, 7  ;;  %v6841_v47 = vrot.slane %v12883_v26, 7  ;;  %v7727_v19 = vadd.f32 %v7591_v4, %v2663_v63  ;;  %v7367_v45 = vrot.slane %v12866_v46, 2  ;;  %vm13978_vm7 = vmmov %vm13973_vm8 }
 0x9c9   : > { %v7607_v35 = vsel %vm3785_vm5, %v7271_v49, %v7303_v59  ;;  %v6889_v40 = vrot.slane %v12883_v26, 1  ;;  %v12944_v25 = vadd.f32 %v6984_v33, %v6936_v17  ;;  %v7399_v38 = vrot.slane %v12864_v31, 2  ;;  %vm13979_vm6 = vmmov %vm13975_vm2 }
 0x9ca   : > { %v7623_v8 = vsel %vm4014_vm3, %v7607_v35, %v7335_v5  ;;  %v12948_v37 = vadd.f32 %v6952_v16, %v6936_v17  ;;  %7775 = vxpose.xlu1.b32.start [1/16] (narrow) %v7727_v19, 32  ;;  %v7699_v42 = vsel %vm13967_vm11, %v7683_v0, %v12806_v9  ;;  %v7431_v63 = vrot.slane %v12866_v46, 1  ;;  %vm13980_vm11 = vmmov %vm13977_vm0 }
 0x9cb   : > { %7751 = vxpose.xlu2.b32.cont [9/16] (narrow) %v7719_v57, 32  ;;  %v7639_v55 = vsel %vm13968_vm10, %v7623_v8, %v7367_v45  ;;  %v7463_v51 = vrot.slane %v12864_v31, 1  ;;  %v7108_v30 = vrot.slane %v12917_v10, 6  ;;  %v7492_v1 = vsel %vm3785_vm5, %v12912_v48, %v7028_v2  ;;  %vm13981_vm10 = vmmov %vm13977_vm0 }
 0x9cc   : > { %v7655_v28 = vsel %vm2554_vm13, %v7639_v55, %v7399_v38  ;;  %v7140_v9 = vrot.slane %v12912_v48, 6  ;;  %v7508_v14 = vsel %vm4014_vm3, %v7492_v1, %v7076_v18  ;;  %v7172_v31 = vrot.slane %v12917_v10, 5 }
 0x9cd   : > { %v7671_v44 = vsel %vm13969_vm14, %v7655_v28, %v7431_v63  ;;  %v7524_v59 = vsel %vm13971_vm9, %v7508_v14, %v7108_v30  ;;  %v7032_v33 = vrot.slane %v12944_v25, 7  ;;  %v7080_v57 = vrot.slane %v12948_v37, 7  ;;  %v6735_v30 = vpop.f32.mrf.mxu3  ;;  %vm13982_vm14 = vmmov %vm13971_vm9 }
 0x9ce   : > { %v7687_v49 = vsel %vm13970_vm4, %v7671_v44, %v7463_v51  ;;  %v7540_v16 = vsel %vm2554_vm13, %v7524_v59, %v7140_v9  ;;  %v2613_v29 = vadd.f32 %v12613_v41, %v2612_v6  ;;  %v7720_v2 = vadd.f32 %v7699_v42, %v2656_v15  ;;  %vm13983_vm4 = vmmov %vm13971_vm9 }
 0x9cf   : > { %v6704_v32 = vpop.f32.mrf.mxu1  ;;  %v7703_v5 = vsel %vm13972_vm1, %v7687_v49, %v12866_v46  ;;  %v7204_v17 = vrot.slane %v12912_v48, 5  ;;  %v7556_v4 = vsel %vm13973_vm8, %v7540_v16, %v7172_v31  ;;  %v2657_v0 = vmax.f32 %v12907_v34, 0.0  ;;  %vm13984_vm9 = vmmov %vm13977_vm0 }
 0x9d0   : > { %v6705_v20 = vadd.f32 %v12600_v52, %v6704_v32  ;;  %v6873_v18 = vsel %vm3785_vm5, %v12883_v26, %v6841_v47  ;;  %v7728_v46 = vadd.f32 %v7703_v5, %v2664_v43  ;;  %v6921_v45 = vsel %vm13974_vm15, %v6889_v40, %v12883_v26  ;;  %vm13985_vm1 = vmmov %vm13978_vm7 }
 0x9d1   : > { %v7572_v56 = vsel %vm13975_vm2, %v7556_v4, %v7204_v17  ;;  %v7112_v15 = vrot.slane %v12944_v25, 6  ;;  %v7496_v6 = vsel %vm3785_vm5, %v12948_v37, %v7032_v33  ;;  %v7236_v34 = vrot.slane %v12917_v10, 4  ;;  %vm13986_vm8 = vmmov %vm13975_vm2 }
 0x9d2   : > { %v6734_v21 = vadd.f32 %v6733_v27, %v6705_v20  ;;  %7776 = vxpose.xlu1.b32.cont [2/16] (narrow) %v7728_v46, 32  ;;  %v7144_v47 = vrot.slane %v12948_v37, 6  ;;  %v7512_v61 = vsel %vm4014_vm3, %v7496_v6, %v7080_v57  ;;  %v2665_v43 = vmax.f32 %v2613_v29, 0.0  ;;  %v2617_v20 = vpop.f32.mrf.mxu0  ;;  %vm13987_vm15 = vmmov %vm13977_vm0 }
 0x9d3   : > { %7752 = vxpose.xlu2.b32.cont [10/16] (narrow) %v7720_v2, 32  ;;  %v6937_v38 = vmul.f32 0.75, %v12883_v26  ;;  %v7176_v8 = vrot.slane %v12944_v25, 5  ;;  %v7528_v42 = vsel %vm13976_vm12, %v7512_v61, %v7112_v15  ;;  %v7588_v27 = vsel %vm13977_vm0, %v7572_v56, %v7236_v34  ;;  %vm13988_vm2 = vmmov %vm13985_vm1 }
 0x9d4   : > { %v6763_v19 = vadd.f32 %v6762_v62, %v6734_v21  ;;  %v7544_v32 = vsel %vm2554_vm13, %v7528_v42, %v7144_v47  ;;  %v6953_v51 = vmul.f32 0.25, %v6873_v18  ;;  %v6985_v28 = vmul.f32 0.25, %v6921_v45  ;;  %vm13989_vm12 = vmmov %vm13977_vm0 }
 0x9d5   : > { %v7208_v1 = vrot.slane %v12948_v37, 5  ;;  %v7560_v26 = vsel %vm13978_vm7, %v7544_v32, %v7176_v8  ;;  %v7240_v62 = vrot.slane %v12944_v25, 4  ;;  %v7721_v49 = vadd.f32 %v7588_v27, %v2657_v0  ;;  %vm13990_vm0 = vmmov %vm13979_vm6 }
 0x9d6   : > { %v6773_v35 = vmax.f32 %v6763_v19, 0.0  ;;  %v7268_v31 = vrot.slane %v12912_v48, 4  ;;  %v7300_v59 = vrot.slane %v12917_v10, 3  ;;  %v13012_v57 = vadd.f32 %v6953_v51, %v6937_v38  ;;  %vm13991_vm7 = vmmov %vm13983_vm4 }
 0x9d7   : > { %v6706_v40 = vpop.f32.mrf.mxu1  ;;  %v13014_v29 = vadd.f32 %v6985_v28, %v6937_v38  ;;  %v6837_v17 = vrot.slane %v12747_v22, 7  ;;  %v6885_v4 = vrot.slane %v12747_v22, 1  ;;  %v13022_v18 = vadd.f32 %v12613_v41, %v12631_v23 }
 0x9d8   : > { %v6781_v63 = vadd.f32 %v6773_v35, %v12450_v60  ;;  %v6707_v55 = vadd.f32 %v12600_v52, %v6706_v40  ;;  %v6764_v60 = vpop.f32.mrf.mxu2  ;;  %v7576_v52 = vsel %vm13979_vm6, %v7560_v26, %v7208_v1  ;;  %v13026_v19 = vadd.f32 %v12613_v41, %v12669_v39  ;;  %vm13992_vm6 = vmmov %vm13984_vm9 }
 0x9d9   : > { %v7592_v16 = vsel %vm13980_vm11, %v7576_v52, %v7240_v62  ;;  %v7273_v46 = vrot.slane %v13012_v57, 4  ;;  %v7305_v45 = vrot.slane %v13014_v29, 3  ;;  %v13032_v56 = vadd.f32 %v12613_v41, %v11930_v24  ;;  %vm13993_vm11 = vmmov %vm13985_vm1 }
 0x9da   : > { %v6789_v44 = vmul.f32 0.75, %v6781_v63  ;;  %v6797_v9 = vmul.f32 0.25, %v6781_v63  ;;  %v6736_v14 = vadd.f32 %v6735_v30, %v6707_v55  ;;  %v7729_v2 = vadd.f32 %v7592_v16, %v2665_v43  ;;  %v2619_v34 = vpop.f32.mrf.mxu0 }
 0x9db   : > { %7753 = vxpose.xlu2.b32.cont [11/16] (narrow) %v7721_v49, 32  ;;  %v13037_v6 = vadd.f32 %v12613_v41, %v12704_v58  ;;  %v6869_v23 = vsel %vm3785_vm5, %v12747_v22, %v6837_v17  ;;  %v6917_v39 = vsel %vm13981_vm10, %v6885_v4, %v12747_v22  ;;  %v7337_v47 = vrot.slane %v13012_v57, 3  ;;  %vm13994_vm10 = vmmov %vm13992_vm6 }
 0x9dc   : > { %v13006_v33 = vadd.f32 %v12874_v7, %v6789_v44  ;;  %v13009_v21 = vadd.f32 %v6797_v9, %v12872_v11  ;;  %v6765_v5 = vadd.f32 %v6764_v60, %v6736_v14  ;;  %7777 = vxpose.xlu1.b32.cont [3/16] (narrow) %v7729_v2, 32  ;;  %v7332_v7 = vrot.slane %v12912_v48, 3 }
 0x9dd   : > { %v7604_v11 = vsel %vm3785_vm5, %v7268_v31, %v7300_v59  ;;  %v2658_v58 = vmax.f32 %v13022_v18, 0.0  ;;  %v2659_v43 = vmax.f32 %v13026_v19, 0.0  ;;  %v13054_v38 = vadd.f32 %v12613_v41, %v12735_v12 }
 0x9de   : > { %v6774_v0 = vmax.f32 %v6765_v5, 0.0  ;;  %v7620_v35 = vsel %vm4014_vm3, %v7604_v11, %v7332_v7  ;;  %v7609_v40 = vsel %vm3785_vm5, %v7273_v46, %v7305_v45  ;;  %v13059_v8 = vadd.f32 %v12613_v41, %v12782_v53 }
 0x9df   : > { %v13063_v42 = vadd.f32 %v12613_v41, %v12967_v3  ;;  %v6949_v27 = vmul.f32 0.25, %v6869_v23  ;;  %v6981_v32 = vmul.f32 0.25, %v6917_v39  ;;  %v7396_v51 = vrot.slane %v12912_v48, 2 }
 0x9e0   : > { %v6782_v15 = vadd.f32 %v6774_v0, %v12472_v13  ;;  %v7364_v13 = vrot.slane %v12917_v10, 2  ;;  %v2660_v28 = vmax.f32 %v13037_v6, 0.0  ;;  %v6933_v53 = vmul.f32 0.75, %v12747_v22 }
 0x9e1   : > { %v7625_v30 = vsel %vm4014_vm3, %v7609_v40, %v7337_v47  ;;  %v6890_v3 = vrot.slane %v13009_v21, 1  ;;  %v6838_v1 = vrot.slane %v12844_v36, 7  ;;  %v13079_v26 = vadd.f32 %v12613_v41, %v2617_v20 }
 0x9e2   : > { %v13045_v61 = vmul.f32 0.75, %v6782_v15  ;;  %v13047_v24 = vmul.f32 0.25, %v6782_v15  ;;  %v7636_v55 = vsel %vm13982_vm14, %v7620_v35, %v7364_v13  ;;  %v2661_v14 = vmax.f32 %v13054_v38, 0.0  ;;  %v2622_v2 = vpop.f32.mrf.mxu0  ;;  %vm13995_vm14 = vmmov %vm13990_vm0 }
 0x9e3   : > { %v2662_v62 = vmax.f32 %v13059_v8, 0.0  ;;  %v2666_v60 = vmax.f32 %v13063_v42, 0.0  ;;  %v7428_v22 = vrot.slane %v12917_v10, 1  ;;  %v13087_v49 = vadd.f32 %v6949_v27, %v6933_v53 }
 0x9e4   : > { %v13066_v63 = vadd.f32 %v6797_v9, %v13045_v61  ;;  %v13070_v12 = vadd.f32 %v13047_v24, %v6789_v44  ;;  %v7369_v9 = vrot.slane %v13014_v29, 2  ;;  %v7652_v44 = vsel %vm2554_vm13, %v7636_v55, %v7396_v51 }
 0x9e5   : > { %v13089_v52 = vadd.f32 %v6981_v32, %v6933_v53  ;;  %v6842_v20 = vrot.slane %v13009_v21, 7  ;;  %v6886_v59 = vrot.slane %v12844_v36, 1  ;;  %v7401_v5 = vrot.slane %v13012_v57, 2 }
 0x9e6   : > { %v7641_v31 = vsel %vm13983_vm4, %v7625_v30, %v7369_v9  ;;  %v6922_v16 = vsel %vm13984_vm9, %v6890_v3, %v13009_v21  ;;  %v7668_v17 = vsel %vm13985_vm1, %v7652_v44, %v7428_v22  ;;  %v6870_v4 = vsel %vm3785_vm5, %v12844_v36, %v6838_v1  ;;  %vm13996_vm4 = vmmov %vm13992_vm6 }
 0x9e7   : > { %v6934_v0 = vmul.f32 0.75, %v12844_v36  ;;  %v2667_v7 = vmax.f32 %v13079_v26, 0.0  ;;  %v7460_v11 = vrot.slane %v12912_v48, 1  ;;  %v7433_v18 = vrot.slane %v13014_v29, 1  ;;  %vm13997_vm9 = vmmov %vm13991_vm7 }
 0x9e8   : > { %v7657_v46 = vsel %vm2554_vm13, %v7641_v31, %v7401_v5  ;;  %v7272_v45 = vrot.slane %v12948_v37, 4  ;;  %v7304_v15 = vrot.slane %v12944_v25, 3  ;;  %v6874_v23 = vsel %vm3785_vm5, %v13009_v21, %v6842_v20 }
 0x9e9   : > { %v6986_v39 = vmul.f32 0.25, %v6922_v16  ;;  %v7684_v35 = vsel %vm13986_vm8, %v7668_v17, %v7460_v11  ;;  %v7336_v47 = vrot.slane %v12948_v37, 3  ;;  %v6918_v13 = vsel %vm13987_vm15, %v6886_v59, %v12844_v36  ;;  %vm13998_vm8 = vmmov %vm13990_vm0 }
 0x9ea   : > { %v6950_v48 = vmul.f32 0.25, %v6870_v4  ;;  %v2620_v40 = vadd.f32 %v12613_v41, %v2619_v34  ;;  %v6843_v55 = vrot.slane %v13006_v33, 7  ;;  %v7465_v27 = vrot.slane %v13012_v57, 1  ;;  %vm13999_vm15 = vmmov %vm13996_vm4 }
 0x9eb   : > { %v7673_v32 = vsel %vm13988_vm2, %v7657_v46, %v7433_v18  ;;  %v6938_v51 = vmul.f32 0.75, %v13009_v21  ;;  %v7368_v53 = vrot.slane %v12944_v25, 2  ;;  %v6891_v30 = vrot.slane %v13006_v33, 1  ;;  %v2624_v18 = vpop.f32.mrf.mxu0  ;;  %vm14000_vm2 = vmmov %vm13991_vm7 }
 0x9ec   : > { %v6954_v3 = vmul.f32 0.25, %v6874_v23  ;;  %v7700_v1 = vsel %vm13989_vm12, %v7684_v35, %v12917_v10  ;;  %v7608_v36 = vsel %vm3785_vm5, %v7272_v45, %v7304_v15  ;;  %v7400_v44 = vrot.slane %v12948_v37, 2  ;;  %vm14001_vm12 = vmmov %vm14000_vm2 }
 0x9ed   : > { %v13123_v9 = vadd.f32 %v6986_v39, %v6938_v51  ;;  %v7722_v34 = vadd.f32 %v7700_v1, %v2658_v58  ;;  %v7624_v22 = vsel %vm4014_vm3, %v7608_v36, %v7336_v47  ;;  %v7689_v31 = vsel %vm13990_vm0, %v7673_v32, %v7465_v27  ;;  %vm14002_vm0 = vmmov %vm13985_vm1 }
 0x9ee   : > { %v6875_v21 = vsel %vm3785_vm5, %v13006_v33, %v6843_v55  ;;  %v7432_v20 = vrot.slane %v12944_v25, 1  ;;  %v7640_v59 = vsel %vm13991_vm7, %v7624_v22, %v7368_v53  ;;  %v6982_v5 = vmul.f32 0.25, %v6918_v13  ;;  %v13155_v13 = vld [vmem:[%s13520_s5] ss:$0 sm:$0xff]  ;;  %vm14003_vm7 = vmmov %vm13998_vm8 }
 0x9ef   : > { %v2668_v10 = vmax.f32 %v2620_v40, 0.0  ;;  %7754 = vxpose.xlu2.b32.cont [12/16] (narrow) %v7722_v34, 32  ;;  %v7464_v16 = vrot.slane %v12948_v37, 1  ;;  %v7656_v58 = vsel %vm2554_vm13, %v7640_v59, %v7400_v44  ;;  %v6923_v17 = vsel %vm13992_vm6, %v6891_v30, %v13006_v33  ;;  %vm14004_vm6 = vmmov %vm13996_vm4 }
 0x9f0   : > { %v13136_v4 = vadd.f32 %v6954_v3, %v6938_v51  ;;  %v13139_v11 = vadd.f32 %v12613_v41, %v2622_v2  ;;  %v7672_v46 = vsel %vm13993_vm11, %v7656_v58, %v7432_v20  ;;  %v7705_v45 = vsel %vm13994_vm10, %v7689_v31, %v13014_v29  ;;  %vm14005_vm11 = vmmov %vm14002_vm0 }
 0x9f1   : > { %v6955_v15 = vmul.f32 0.25, %v6875_v21  ;;  %v7034_v23 = vrot.slane %v13123_v9, 7  ;;  %v7688_v37 = vsel %vm13995_vm14, %v7672_v46, %v7464_v16  ;;  %v13146_v39 = vadd.f32 %v6950_v48, %v6934_v0  ;;  %vm14006_vm10 = vmmov %vm14000_vm2 }
 0x9f2   : > { %v6939_v35 = vmul.f32 0.75, %v13006_v33  ;;  %v7704_v47 = vsel %vm13996_vm4, %v7688_v37, %v12944_v25  ;;  %v7029_v41 = vrot.slane %v13089_v52, 7  ;;  %v6987_v2 = vmul.f32 0.25, %v6923_v17  ;;  %vm14007_vm14 = vmmov %vm14003_vm7 }
 0x9f3   : > { %v13158_v40 = vadd.f32 %v13155_v13, %v2624_v18  ;;  %v7730_v48 = vadd.f32 %v7704_v47, %v2666_v60  ;;  %v7077_v55 = vrot.slane %v13087_v49, 7  ;;  %v13163_v33 = vadd.f32 %v6982_v5, %v6934_v0  ;;  %vm14008_vm4 = vmmov %vm14002_vm0 }
 0x9f4   : > { %v13165_v27 = vadd.f32 %v7705_v45, %v2668_v10  ;;  %v2669_v25 = vmax.f32 %v13139_v11, 0.0  ;;  %v7082_v32 = vrot.slane %v13136_v4, 7  ;;  %v13169_v51 = vadd.f32 %v6955_v15, %v6939_v35 }
 0x9f5   : > { %v7498_v53 = vsel %vm3785_vm5, %v13136_v4, %v7034_v23  ;;  %7778 = vxpose.xlu1.b32.cont [4/16] (narrow) %v7730_v48, 32  ;;  %v7109_v30 = vrot.slane %v13089_v52, 6  ;;  %v7493_v42 = vsel %vm3785_vm5, %v13087_v49, %v7029_v41  ;;  %v7141_v60 = vrot.slane %v13087_v49, 6 }
 0x9f6   : > { %v7509_v0 = vsel %vm4014_vm3, %v7493_v42, %v7077_v55  ;;  %v7033_v3 = vrot.slane %v13014_v29, 7  ;;  %v7081_v1 = vrot.slane %v13012_v57, 7  ;;  %v13180_v36 = vadd.f32 %v6987_v2, %v6939_v35 }
 0x9f7   : > { %v2670_v34 = vmax.f32 %v13158_v40, 0.0  ;;  %v7173_v44 = vrot.slane %v13089_v52, 5  ;;  %v7525_v22 = vsel %vm13997_vm9, %v7509_v0, %v7109_v30  ;;  %v7114_v31 = vrot.slane %v13123_v9, 6  ;;  %vm14009_vm9 = vmmov %vm14003_vm7 }
 0x9f8   : > { %v7514_v21 = vsel %vm4014_vm3, %v7498_v53, %v7082_v32  ;;  %v7205_v20 = vrot.slane %v13087_v49, 5  ;;  %v7541_v59 = vsel %vm2554_vm13, %v7525_v22, %v7141_v60  ;;  %v7237_v5 = vrot.slane %v13089_v52, 4 }
 0x9f9   : > { %v7557_v10 = vsel %vm13985_vm1, %v7541_v59, %v7173_v44  ;;  %v7113_v16 = vrot.slane %v13014_v29, 6  ;;  %v7497_v58 = vsel %vm3785_vm5, %v13012_v57, %v7033_v3  ;;  %v7146_v17 = vrot.slane %v13136_v4, 6  ;;  %vm14010_vm1 = vmmov %vm14004_vm6 }
 0x9fa   : > { %v7573_v18 = vsel %vm13998_vm8, %v7557_v10, %v7205_v20  ;;  %v7145_v46 = vrot.slane %v13012_v57, 6  ;;  %v7513_v45 = vsel %vm4014_vm3, %v7497_v58, %v7081_v1  ;;  %v7178_v15 = vrot.slane %v13123_v9, 5  ;;  %vm14011_vm8 = vmmov %vm14010_vm1 }
 0x9fb   : > { %v7589_v23 = vsel %vm13999_vm15, %v7573_v18, %v7237_v5  ;;  %v7177_v37 = vrot.slane %v13014_v29, 5  ;;  %v7529_v35 = vsel %vm14000_vm2, %v7513_v45, %v7113_v16  ;;  %v7530_v47 = vsel %vm14001_vm12, %v7514_v21, %v7114_v31  ;;  %vm14012_vm15 = vmmov %vm14010_vm1 }
 0x9fc   : > { %v7723_v41 = vadd.f32 %v7589_v23, %v2659_v43  ;;  %v7209_v2 = vrot.slane %v13012_v57, 5  ;;  %v7545_v48 = vsel %vm2554_vm13, %v7529_v35, %v7145_v46  ;;  %v7210_v55 = vrot.slane %v13136_v4, 5  ;;  %vm14013_vm2 = vmmov %vm14010_vm1 }
 0x9fd   : > { %v7274_v32 = vrot.slane %v13136_v4, 4  ;;  %v7241_v53 = vrot.slane %v13014_v29, 4  ;;  %v7561_v30 = vsel %vm14002_vm0, %v7545_v48, %v7177_v37  ;;  %v7306_v42 = vrot.slane %v13123_v9, 3  ;;  %vm14014_vm12 = vmmov %vm14006_vm10 }
 0x9fe   : > { %7755 = vxpose.xlu2.b32.cont [13/16] (narrow) %v7723_v41, 32  ;;  %v7577_v60 = vsel %vm14003_vm7, %v7561_v30, %v7209_v2  ;;  %v7269_v19 = vrot.slane %v13087_v49, 4  ;;  %v7301_v43 = vrot.slane %v13089_v52, 3  ;;  %v7242_v57 = vrot.slane %v13123_v9, 4  ;;  %vm14015_vm0 = vmmov %vm14006_vm10 }
 0x9ff   : > { %v7546_v0 = vsel %vm2554_vm13, %v7530_v47, %v7146_v17  ;;  %v7593_v3 = vsel %vm14004_vm6, %v7577_v60, %v7241_v53  ;;  %v7333_v1 = vrot.slane %v13087_v49, 3  ;;  %v13221_v29 = vadd.f32 %v13047_v24, %v13045_v61  ;;  %vm14016_vm7 = vmmov %vm14008_vm4 }
 0xa00   : > { %v6845_v44 = vrot.slane %v13066_v63, 7  ;;  %v6893_v22 = vrot.slane %v13066_v63, 1  ;;  %v7731_v31 = vadd.f32 %v7593_v3, %v2667_v7  ;;  %v6844_v21 = vrot.slane %v13070_v12, 7  ;;  %vm14017_vm6 = vmmov %vm14009_vm9 }
 0xa01   : > { %v7338_v20 = vrot.slane %v13136_v4, 3  ;;  %v7365_v59 = vrot.slane %v13089_v52, 2  ;;  %v7605_v5 = vsel %vm3785_vm5, %v7269_v19, %v7301_v43  ;;  %v7562_v10 = vsel %vm14005_vm11, %v7546_v0, %v7178_v15  ;;  %vm14018_vm11 = vmmov %vm14008_vm4 }
 0xa02   : > { %v7610_v61 = vsel %vm3785_vm5, %v7274_v32, %v7306_v42  ;;  %7779 = vxpose.xlu1.b32.cont [5/16] (narrow) %v7731_v31, 32  ;;  %v7397_v24 = vrot.slane %v13087_v49, 2  ;;  %v7621_v16 = vsel %vm4014_vm3, %v7605_v5, %v7333_v1  ;;  %v6892_v26 = vrot.slane %v13070_v12, 1 }
 0xa03   : > { %v13237_v7 = vmul.f32 0.75, %v13066_v63  ;;  %v7429_v58 = vrot.slane %v13089_v52, 1  ;;  %v7637_v17 = vsel %vm14006_vm10, %v7621_v16, %v7365_v59  ;;  %v6846_v18 = vrot.slane %v13221_v29, 7  ;;  %vm14019_vm10 = vmmov %vm14010_vm1 }
 0xa04   : > { %v6877_v46 = vsel %vm3785_vm5, %v13066_v63, %v6845_v44  ;;  %v7461_v45 = vrot.slane %v13087_v49, 1  ;;  %v7653_v15 = vsel %vm2554_vm13, %v7637_v17, %v7397_v24  ;;  %v7578_v23 = vsel %vm14007_vm14, %v7562_v10, %v7210_v55  ;;  %vm14020_vm14 = vmmov %vm14015_vm0 }
 0xa05   : > { %v6876_v37 = vsel %vm3785_vm5, %v13070_v12, %v6844_v21  ;;  %v7626_v35 = vsel %vm4014_vm3, %v7610_v61, %v7338_v20  ;;  %v7669_v47 = vsel %vm14008_vm4, %v7653_v15, %v7429_v58  ;;  %v7035_v41 = vrot.slane %v13180_v36, 7  ;;  %vm14021_vm4 = vmmov %vm14017_vm6 }
 0xa06   : > { %v7685_v2 = vsel %vm14009_vm9, %v7669_v47, %v7461_v45  ;;  %v7030_v48 = vrot.slane %v13163_v33, 7  ;;  %v7078_v32 = vrot.slane %v13146_v39, 7  ;;  %v6924_v49 = vsel %vm14010_vm1, %v6892_v26, %v13070_v12  ;;  %vm14022_vm9 = vmmov %vm14015_vm0 }
 0xa07   : > { %v6925_v55 = vsel %vm14011_vm8, %v6893_v22, %v13066_v63  ;;  %v7370_v53 = vrot.slane %v13123_v9, 2  ;;  %v7701_v30 = vsel %vm14012_vm15, %v7685_v2, %v13089_v52  ;;  %v7594_v42 = vsel %vm14013_vm2, %v7578_v23, %v7242_v57  ;;  %vm14023_vm8 = vmmov %vm14016_vm7 }
 0xa08   : > { %v6940_v60 = vmul.f32 0.75, %v13070_v12  ;;  %v6956_v19 = vmul.f32 0.25, %v6876_v37  ;;  %v7724_v43 = vadd.f32 %v7701_v30, %v2660_v28  ;;  %v7083_v3 = vrot.slane %v13169_v51, 7  ;;  %vm14024_vm15 = vmmov %vm14016_vm7 }
 0xa09   : > { %v7642_v0 = vsel %vm14014_vm12, %v7626_v35, %v7370_v53  ;;  %v7110_v1 = vrot.slane %v13163_v33, 6  ;;  %v7494_v63 = vsel %vm3785_vm5, %v13146_v39, %v7030_v48  ;;  %v7402_v44 = vrot.slane %v13136_v4, 2  ;;  %vm14025_vm2 = vmmov %vm14021_vm4 }
 0xa0a   : > { %v7499_v52 = vsel %vm3785_vm5, %v13169_v51, %v7035_v41  ;;  %7756 = vxpose.xlu2.b32.cont [14/16] (narrow) %v7724_v43, 32  ;;  %7780 = vxpose.xlu1.b32.cont [6/16] (narrow) %v13165_v27, 32  ;;  %v7142_v6 = vrot.slane %v13146_v39, 6  ;;  %v7510_v12 = vsel %vm4014_vm3, %v7494_v63, %v7078_v32  ;;  %v7733_v28 = vadd.f32 %v7594_v42, %v2669_v25  ;;  %vm14026_vm12 = vmmov %vm14010_vm1 }
 0xa0b   : > { %v6957_v57 = vmul.f32 0.25, %v6877_v46  ;;  %v7174_v22 = vrot.slane %v13163_v33, 5  ;;  %v7526_v31 = vsel %vm14015_vm0, %v7510_v12, %v7110_v1  ;;  %v6988_v21 = vmul.f32 0.25, %v6924_v49  ;;  %v2627_v46 = vpop.f32.mrf.mxu0  ;;  %vm14027_vm0 = vmmov %vm14010_vm1 }
 0xa0c   : > { %v7658_v20 = vsel %vm2554_vm13, %v7642_v0, %v7402_v44  ;;  %v7206_v59 = vrot.slane %v13146_v39, 5  ;;  %v7542_v5 = vsel %vm2554_vm13, %v7526_v31, %v7142_v6  ;;  %v7434_v27 = vrot.slane %v13123_v9, 1 }
 0xa0d   : > { %v7515_v10 = vsel %vm4014_vm3, %v7499_v52, %v7083_v3  ;;  %v7238_v61 = vrot.slane %v13163_v33, 4  ;;  %v7558_v11 = vsel %vm14016_vm7, %v7542_v5, %v7174_v22  ;;  %v7115_v25 = vrot.slane %v13180_v36, 6  ;;  %vm14028_vm7 = vmmov %vm14025_vm2 }
 0xa0e   : > { %v7574_v24 = vsel %vm14017_vm6, %v7558_v11, %v7206_v59  ;;  %v7270_v16 = vrot.slane %v13146_v39, 4  ;;  %v7302_v26 = vrot.slane %v13163_v33, 3  ;;  %v7466_v58 = vrot.slane %v13136_v4, 1  ;;  %vm14029_vm6 = vmmov %vm14022_vm9 }
 0xa0f   : > { %v7674_v17 = vsel %vm14018_vm11, %v7658_v20, %v7434_v27  ;;  %v7590_v45 = vsel %vm14019_vm10, %v7574_v24, %v7238_v61  ;;  %v7334_v15 = vrot.slane %v13146_v39, 3  ;;  %v7531_v23 = vsel %vm14020_vm14, %v7515_v10, %v7115_v25  ;;  %vm14030_vm11 = vmmov %vm14027_vm0 }
 0xa10   : > { %v7275_v37 = vrot.slane %v13169_v51, 4  ;;  %v7307_v35 = vrot.slane %v13180_v36, 3  ;;  %v7725_v47 = vadd.f32 %v7590_v45, %v2661_v14  ;;  %v6989_v41 = vmul.f32 0.25, %v6925_v55  ;;  %vm14031_vm10 = vmmov %vm14029_vm6 }
 0xa11   : > { %v7147_v2 = vrot.slane %v13169_v51, 6  ;;  %v7366_v4 = vrot.slane %v13163_v33, 2  ;;  %v7606_v48 = vsel %vm3785_vm5, %v7270_v16, %v7302_v26  ;;  %v13304_v32 = vadd.f32 %v6988_v21, %v6940_v60  ;;  %vm14032_vm14 = vmmov %vm14023_vm8 }
 0xa12   : > { %v7690_v49 = vsel %vm14021_vm4, %v7674_v17, %v7466_v58  ;;  %7757 = vxpose.xlu2.b32.cont [15/16] (narrow) %v7725_v47, 32  ;;  %7781 = vxpose.xlu1.b32.cont [7/16] (narrow) %v7733_v28, 32  ;;  %v7398_v53 = vrot.slane %v13146_v39, 2  ;;  %v7622_v30 = vsel %vm4014_vm3, %v7606_v48, %v7334_v15  ;;  %v7339_v14 = vrot.slane %v13169_v51, 3  ;;  %vm14033_vm4 = vmmov %vm14023_vm8 }
 0xa13   : > { %v7547_v38 = vsel %vm2554_vm13, %v7531_v23, %v7147_v2  ;;  %v7430_v55 = vrot.slane %v13163_v33, 1  ;;  %v7638_v42 = vsel %vm14022_vm9, %v7622_v30, %v7366_v4  ;;  %v7179_v43 = vrot.slane %v13180_v36, 5  ;;  %v2629_v10 = vpop.f32.mrf.mxu0  ;;  %vm14034_vm9 = vmmov %vm14029_vm6 }
 0xa14   : > { %v7611_v0 = vsel %vm3785_vm5, %v7275_v37, %v7307_v35  ;;  %v7462_v3 = vrot.slane %v13146_v39, 1  ;;  %v7654_v1 = vsel %vm2554_vm13, %v7638_v42, %v7398_v53  ;;  %v6894_v63 = vrot.slane %v13221_v29, 1 }
 0xa15   : > { %v13318_v44 = vadd.f32 %v6956_v19, %v6940_v60  ;;  %v7706_v52 = vsel %vm14010_vm1, %v7690_v49, %v13123_v9  ;;  %v7670_v6 = vsel %vm14023_vm8, %v7654_v1, %v7430_v55  ;;  %v13324_v12 = vadd.f32 %v6957_v57, %v13237_v7  ;;  %vm14035_vm1 = vmmov %vm14025_vm2 }
 0xa16   : > { %v13327_v28 = vadd.f32 %v6989_v41, %v13237_v7  ;;  %v7563_v22 = vsel %vm14024_vm15, %v7547_v38, %v7179_v43  ;;  %v7686_v39 = vsel %vm14025_vm2, %v7670_v6, %v7462_v3  ;;  %v7211_v31 = vrot.slane %v13169_v51, 5  ;;  %vm14036_vm8 = vmmov %vm14027_vm0 }
 0xa17   : > { %v7627_v60 = vsel %vm4014_vm3, %v7611_v0, %v7339_v14  ;;  %v7036_v19 = vrot.slane %v13304_v32, 7  ;;  %v7702_v9 = vsel %vm14026_vm12, %v7686_v39, %v13163_v33  ;;  %v6878_v57 = vsel %vm3785_vm5, %v13221_v29, %v6846_v18  ;;  %vm14037_vm15 = vmmov %vm14035_vm1 }
 0xa18   : > { %v7734_v7 = vadd.f32 %v7706_v52, %v2670_v34  ;;  %v7371_v21 = vrot.slane %v13180_v36, 2  ;;  %v7726_v20 = vadd.f32 %v7702_v9, %v2662_v62  ;;  %v6926_v59 = vsel %vm14027_vm0, %v6894_v63, %v13221_v29  ;;  %vm14038_vm2 = vmmov %vm14027_vm0 }
 0xa19   : > { %v2628_v5 = vadd.f32 %v13155_v13, %v2627_v46  ;;  %v7243_v33 = vrot.slane %v13180_v36, 4  ;;  %v7579_v27 = vsel %vm14028_vm7, %v7563_v22, %v7211_v31  ;;  %v7084_v40 = vrot.slane %v13318_v44, 7  ;;  %vm14039_vm12 = vmmov %vm14033_vm4 }
 0xa1a   : > { %v7643_v18 = vsel %vm14029_vm6, %v7627_v60, %v7371_v21  ;;  %7758 = vxpose.xlu2.b32.end [16/16] (narrow) %v7726_v20, 32  ;;  %7782 = vxpose.xlu1.b32.cont [8/16] (narrow) %v7734_v7, 32  ;;  %v7037_v34 = vrot.slane %v13327_v28, 7  ;;  %v7085_v8 = vrot.slane %v13324_v12, 7  ;;  %v2675_v62 = vmax.f32 %v13032_v56, 0.0  ;;  %vm14040_vm0 = vmmov %vm14035_vm1 }
 0xa1b   : > { %v6958_v61 = vmul.f32 0.25, %v6878_v57  ;;  %v7403_v11 = vrot.slane %v13169_v51, 2  ;;  %v7500_v25 = vsel %vm3785_vm5, %v13318_v44, %v7036_v19  ;;  %v6990_v24 = vmul.f32 0.25, %v6926_v59  ;;  %v2632_v63 = vpop.f32.mrf.mxu0  ;;  %vm14041_vm7 = vmmov %vm14029_vm6 }
 0xa1c   : > { %v7595_v16 = vsel %vm14030_vm11, %v7579_v27, %v7243_v33  ;;  %v7117_v26 = vrot.slane %v13327_v28, 6  ;;  %v7501_v58 = vsel %vm3785_vm5, %v13324_v12, %v7037_v34  ;;  %v2671_v17 = vmax.f32 %v2628_v5, 0.0  ;;  %vm14042_vm6 = vmmov %vm14038_vm2 }
 0xa1d   : > { %v7659_v46 = vsel %vm2554_vm13, %v7643_v18, %v7403_v11  ;;  %v7149_v45 = vrot.slane %v13324_v12, 6  ;;  %v7517_v56 = vsel %vm4014_vm3, %v7501_v58, %v7085_v8  ;;  %v7435_v15 = vrot.slane %v13180_v36, 1  ;;  %vm14043_vm11 = vmmov %vm14041_vm7 }
 0xa1e   : > { %v7516_v23 = vsel %vm4014_vm3, %v7500_v25, %v7084_v40  ;;  %v7181_v37 = vrot.slane %v13327_v28, 5  ;;  %v7533_v35 = vsel %vm14031_vm10, %v7517_v56, %v7117_v26  ;;  %v7735_v47 = vadd.f32 %v7595_v16, %v2671_v17  ;;  %vm14044_vm10 = vmmov %vm14033_vm4 }
 0xa1f   : > { %v7116_v41 = vrot.slane %v13304_v32, 6  ;;  %v7213_v2 = vrot.slane %v13324_v12, 5  ;;  %v7549_v4 = vsel %vm2554_vm13, %v7533_v35, %v7149_v45  ;;  %v2630_v48 = vadd.f32 %v13155_v13, %v2629_v10 }
 0xa20   : > { %v7675_v49 = vsel %vm14032_vm14, %v7659_v46, %v7435_v15  ;;  %v7245_v53 = vrot.slane %v13327_v28, 4  ;;  %v7565_v30 = vsel %vm14033_vm4, %v7549_v4, %v7181_v37  ;;  %v7276_v14 = vrot.slane %v13318_v44, 4  ;;  %vm14045_vm14 = vmmov %vm14040_vm0 }
 0xa21   : > { %v7532_v38 = vsel %vm14034_vm9, %v7516_v23, %v7116_v41  ;;  %v7308_v55 = vrot.slane %v13304_v32, 3  ;;  %v7581_v42 = vsel %vm14035_vm1, %v7565_v30, %v7213_v2  ;;  %v7467_v43 = vrot.slane %v13169_v51, 1  ;;  %vm14046_vm9 = vmmov %vm14038_vm2 }
 0xa22   : > { %v7148_v0 = vrot.slane %v13318_v44, 6  ;;  %7783 = vxpose.xlu1.b32.cont [9/16] (narrow) %v7735_v47, 32  ;;  %v7597_v3 = vsel %vm14036_vm8, %v7581_v42, %v7245_v53  ;;  %v6942_v1 = vmul.f32 0.75, %v13221_v29  ;;  %v2672_v6 = vmax.f32 %v2630_v48, 0.0  ;;  %vm14047_vm1 = vmmov %vm14040_vm0 }
 0xa23   : > { %v13384_v52 = vadd.f32 %v7597_v3, %v2675_v62  ;;  %v7691_v22 = vsel %vm14037_vm15, %v7675_v49, %v7467_v43  ;;  %v7340_v31 = vrot.slane %v13318_v44, 3  ;;  %v7180_v19 = vrot.slane %v13304_v32, 5  ;;  %vm14048_vm8 = vmmov %vm14038_vm2 }
 0xa24   : > { %v7548_v39 = vsel %vm2554_vm13, %v7532_v38, %v7148_v0  ;;  %v13389_v60 = vadd.f32 %v6958_v61, %v6942_v1  ;;  %v13391_v51 = vadd.f32 %v6990_v24, %v6942_v1  ;;  %v7612_v9 = vsel %vm3785_vm5, %v7276_v14, %v7308_v55  ;;  %v2634_v24 = vpop.f32.mrf.mxu0  ;;  %vm14049_vm15 = vmmov %vm14041_vm7 }
 0xa25   : > { %v7707_v29 = vsel %vm14038_vm2, %v7691_v22, %v13180_v36  ;;  %v7564_v57 = vsel %vm14039_vm12, %v7548_v39, %v7180_v19  ;;  %v2633_v21 = vadd.f32 %v13155_v13, %v2632_v63  ;;  %v7212_v20 = vrot.slane %v13318_v44, 5  ;;  %vm14050_vm2 = vmmov %vm14033_vm4 }
 0xa26   : > { %v7736_v7 = vadd.f32 %v7707_v29, %v2672_v6  ;;  %v7628_v59 = vsel %vm4014_vm3, %v7612_v9, %v7340_v31  ;;  %v7372_v5 = vrot.slane %v13304_v32, 2  ;;  %v7038_v33 = vrot.slane %v13391_v51, 7  ;;  %vm14051_vm12 = vmmov %vm14040_vm0 }
 0xa27   : > { %v7086_v27 = vrot.slane %v13389_v60, 7  ;;  %v2643_v10 = vadd.f32 %v13155_v13, %v12024_v54  ;;  %v7580_v36 = vsel %vm14040_vm0, %v7564_v57, %v7212_v20  ;;  %v7244_v18 = vrot.slane %v13304_v32, 4  ;;  %vm14052_vm0 = vmmov %vm14042_vm6 }
 0xa28   : > { %v7644_v40 = vsel %vm14041_vm7, %v7628_v59, %v7372_v5  ;;  %v7118_v34 = vrot.slane %v13391_v51, 6  ;;  %v7502_v8 = vsel %vm3785_vm5, %v13389_v60, %v7038_v33  ;;  %v2673_v62 = vmax.f32 %v2633_v21, 0.0 }
 0xa29   : > { %v7404_v61 = vrot.slane %v13318_v44, 2  ;;  %v7150_v11 = vrot.slane %v13389_v60, 6  ;;  %v7518_v25 = vsel %vm4014_vm3, %v7502_v8, %v7086_v27  ;;  %v7596_v54 = vsel %vm14042_vm6, %v7580_v36, %v7244_v18  ;;  %v14054_v36 = vld [vmem:[#allocation27_spill] sm:$0xff]  ;;  %vm14056_vm6 = vmmov %vm14052_vm0 }
 0xa2a   : > { %7784 = vxpose.xlu1.b32.cont [10/16] (narrow) %v7736_v7, 32  ;;  %v7182_v16 = vrot.slane %v13391_v51, 5  ;;  %v7534_v26 = vsel %vm14043_vm11, %v7518_v25, %v7118_v34  ;;  %v7436_v58 = vrot.slane %v13304_v32, 1  ;;  %v7214_v46 = vrot.slane %v13389_v60, 5 }
 0xa2b   : > { %v7660_v17 = vsel %vm2554_vm13, %v7644_v40, %v7404_v61  ;;  %v7550_v45 = vsel %vm2554_vm13, %v7534_v26, %v7150_v11  ;;  %v7277_v56 = vrot.slane %v13324_v12, 4  ;;  %v7309_v15 = vrot.slane %v13327_v28, 3 }
 0xa2c   : > { %v7246_v23 = vrot.slane %v13391_v51, 4  ;;  %v7566_v37 = vsel %vm14044_vm10, %v7550_v45, %v7182_v16  ;;  %v2677_v35 = vmax.f32 %v2643_v10, 0.0  ;;  %v7737_v47 = vadd.f32 %v7596_v54, %v2673_v62 }
 0xa2d   : > { %v2635_v41 = vadd.f32 %v13155_v13, %v2634_v24  ;;  %v7582_v2 = vsel %vm14045_vm14, %v7566_v37, %v7214_v46  ;;  %v7676_v4 = vsel %vm14033_vm4, %v7660_v17, %v7436_v58  ;;  %v7468_v49 = vrot.slane %v13318_v44, 1 }
 0xa2e   : > { %v7598_v48 = vsel %vm14046_vm9, %v7582_v2, %v7246_v23  ;;  %v7341_v53 = vrot.slane %v13324_v12, 3  ;;  %v7613_v38 = vsel %vm3785_vm5, %v7277_v56, %v7309_v15  ;;  %v7373_v0 = vrot.slane %v13327_v28, 2 }
 0xa2f   : > { %v7741_v30 = vadd.f32 %v7598_v48, %v2677_v35  ;;  %v2674_v14 = vmax.f32 %v2635_v41, 0.0  ;;  %v7692_v55 = vsel %vm14047_vm1, %v7676_v4, %v7468_v49  ;;  %v7405_v1 = vrot.slane %v13324_v12, 2 }
 0xa30   : > { %v7629_v42 = vsel %vm4014_vm3, %v7613_v38, %v7341_v53  ;;  %v7708_v43 = vsel %vm14048_vm8, %v7692_v55, %v13304_v32  ;;  %v7437_v22 = vrot.slane %v13327_v28, 1  ;;  %v7278_v32 = vrot.slane %v13389_v60, 4 }
 0xa31   : > { %v7738_v44 = vadd.f32 %v7708_v43, %v2674_v14  ;;  %v7645_v3 = vsel %vm14049_vm15, %v7629_v42, %v7373_v0  ;;  %v7310_v31 = vrot.slane %v13391_v51, 3  ;;  %v7469_v19 = vrot.slane %v13324_v12, 1 }
 0xa32   : > { %7785 = vxpose.xlu1.b32.cont [11/16] (narrow) %v7737_v47, 32  ;;  %v7661_v6 = vsel %vm2554_vm13, %v7645_v3, %v7405_v1  ;;  %v2640_v9 = vadd.f32 %v13155_v13, %v11981_v50  ;;  %v7342_v57 = vrot.slane %v13389_v60, 3  ;;  %v7374_v5 = vrot.slane %v13391_v51, 2 }
 0xa33   : > { %v7677_v39 = vsel %vm14050_vm2, %v7661_v6, %v7437_v22  ;;  %v7614_v7 = vsel %vm3785_vm5, %v7278_v32, %v7310_v31  ;;  %v7438_v27 = vrot.slane %v13391_v51, 1  ;;  %vm14053_vm5 = vmmov %vm14050_vm2  ;;  %v7470_v10 = vrot.slane %v13389_v60, 1 }
 0xa34   : > { %v7693_v29 = vsel %vm14051_vm12, %v7677_v39, %v7469_v19  ;;  %v2676_v20 = vmax.f32 %v2640_v9, 0.0  ;;  %v7630_v59 = vsel %vm4014_vm3, %v7614_v7, %v7342_v57  ;;  %v2645_v18 = vadd.f32 %v13155_v13, %v14054_v36  ;;  %vm14055_vm3 = vmmov %vm14047_vm1 }
 0xa35   : > { %v7709_v21 = vsel %vm14052_vm0, %v7693_v29, %v13327_v28  ;;  %v7646_v50 = vsel %vm14041_vm7, %v7630_v59, %v7374_v5 }
 0xa36   : > { %v7740_v12 = vadd.f32 %v7709_v21, %v2676_v20  ;;  %v2678_v8 = vmax.f32 %v2645_v18, 0.0 }
 0xa3a   : > { %7786 = vxpose.xlu1.b32.cont [12/16] (narrow) %v7738_v44, 32 }
 0xa3b   : > { %v7759_v63 = vpop.trf.xlu2 }
 0xa3c   : > { %7807 = vst [vmem:[%s13444_s16] sm:$0xff] %v7759_v63 }
 0xa42   : > { %7787 = vxpose.xlu1.b32.cont [13/16] (narrow) %v13384_v52, 32  ;;  %v7406_v52 = vrot.slane %v13389_v60, 2 }
 0xa43   : > { %v7760_v61 = vpop.trf.xlu2 }
 0xa44   : > { %v7662_v33 = vsel %vm2554_vm13, %v7646_v50, %v7406_v52  ;;  %7809 = vst [vmem:[%s13444_s16 + $0x10] sm:$0xff] %v7760_v61 }
 0xa45   : > { %v7678_v28 = vsel %vm14053_vm5, %v7662_v33, %v7438_v27 }
 0xa46   : > { %v7694_v40 = vsel %vm14055_vm3, %v7678_v28, %v7470_v10 }
 0xa47   : > { %v7710_v34 = vsel %vm14056_vm6, %v7694_v40, %v13391_v51 }
 0xa48   : > { %v7742_v62 = vadd.f32 %v7710_v34, %v2678_v8 }
 0xa4a   : > { %7788 = vxpose.xlu1.b32.cont [14/16] (narrow) %v7740_v12, 32 }
 0xa4b   : > { %v7761_v11 = vpop.trf.xlu2 }
 0xa4c   : > { %7811 = vst [vmem:[%s13444_s16 + $0x20] sm:$0xff] %v7761_v11 }
 0xa52   : > { %7789 = vxpose.xlu1.b32.cont [15/16] (narrow) %v7741_v30, 32 }
 0xa53   : > { %v7762_v60 = vpop.trf.xlu2 }
 0xa54   : > { %7813 = vst [vmem:[%s13444_s16 + $0x30] sm:$0xff] %v7762_v60 }
 0xa5a   : > { %7790 = vxpose.xlu1.b32.end [16/16] (narrow) %v7742_v62, 32 }
 0xa86   : > { %v7791_v13 = vpop.trf.xlu1 }
 0xa87   : > { %7808 = vst [vmem:[%s13444_s16 + $0x8] sm:$0xff] %v7791_v13 }
 0xa8e   : > { %v7792_v25 = vpop.trf.xlu1 }
 0xa8f   : > { %7810 = vst [vmem:[%s13444_s16 + $0x18] sm:$0xff] %v7792_v25 }
 0xa96   : > { %v7793_v51 = vpop.trf.xlu1 }
 0xa97   : > { %7812 = vst [vmem:[%s13444_s16 + $0x28] sm:$0xff] %v7793_v51 }
 0xa9e   : > { %v7794_v54 = vpop.trf.xlu1 }
 0xa9f   : > { %7814 = vst [vmem:[%s13444_s16 + $0x38] sm:$0xff] %v7794_v54 }
 0xaa0   : > { %8793 = shalt.err (!%p8790_p3)
}
 0xaa1   : > { %s8840_s15 = smov 256  }
 0xaa2   : > { %8707 = dma.vmem_to_hbm [thread:$0]  (%p8914_p5), %s7829_s10, 1024, %s7831_s9, %s7816_s14, %s8840_s15, %s8840_s15, %s8832_s28  }
 0xaa3 PF: > { %p8713_p4 = scmp.ge.s32.totalorder %s8828_s24, 2  ;;  %s7845_s16 = sand.u32 1, %s8816_s21  }
 0xaa4   : > { %s7846_s12 = scalar_lea.sflag [#allocation5], %s7845_s16 }
 0xaa5   : > { %p8710_p7 = pnand %p8713_p4, %p8918_p6 }
 0xaa7   : > { %p8711_p8 = pneg %p8710_p7 }
 0xaa9   : > { %8811 = dma.done.wait (%p8711_p8), %s7846_s12, 1024  }
 0xaaa   : > { %8813 = vsyncadd (%p8711_p8), %s7846_s12, 4294966272  ;;  %p16_p9 = scmp.ge.s32.totalorder %s8901_s27, 4   ;;  %s14057_s21 = smov %s8820_s22 }
 0xaab   : > { %s14058_s22 = smov %s8824_s23  ;;  %s14059_s23 = smov %s8912_s30 }
 0xaac   : > { %s14060_s24 = smov %s8901_s27  ;;  %18 = sbr.rel (!%p16_p9) target bundleno = 3 (0x3), region = 171 }
 0xab1   :  { %7852 = vsyncpa [#allocation5], 1 }
 0xab2   :  { %7854 = vsyncpa [#allocation5 + $0x1], 1 }

</bundles_post_ra>
